<compile_context>
chip_gen: v7x
topology: tpu7x:2x2x1
jax: 0.10.0
libtpu: 0.0.40
codegen_flags: <defaults>
</compile_context>

<pallas_src>
import functools
import math

import jax
import jax.numpy as jnp
from jax.experimental import pallas as pl
from jax.experimental.pallas import tpu as pltpu

MATMUL_DTYPE = jnp.bfloat16   # MXU operand dtype; accumulation stays f32.


# ----------------------------------------------------------------------------
# Pallas kernel: C = A @ B + bias (+ ReLU), single full-K / full-N block.
# ----------------------------------------------------------------------------
def _matmul_kernel(a_ref, b_ref, bias_ref, o_ref, *, relu):
    out = jnp.dot(a_ref[...], b_ref[...], preferred_element_type=jnp.float32)
    out = out + bias_ref[...]                       # (1, N) broadcasts over rows
    if relu:
        out = jnp.maximum(out, 0.0)
    o_ref[...] = out


def _choose_row_block(M):
    """Full M for small problems; otherwise a few 8-aligned tiles that divide
    M exactly (>=2 tiles so a v7x megacore can shard the 'parallel' axis)."""
    if M < 256:
        return M
    for nt in (4, 2):
        tm = M // nt
        if M % nt == 0 and tm % 8 == 0:
            return tm
    return M


def pallas_matmul(a, b, bias=None, relu=False):
    """a: (M, K), b: (K, N), bias: (N,) or None -> (M, N) float32."""
    M, K = a.shape
    K2, N = b.shape
    assert K == K2
    a = a.astype(MATMUL_DTYPE)
    b = b.astype(MATMUL_DTYPE)
    if bias is None:
        bias = jnp.zeros((N,), jnp.float32)
    bias2d = bias.astype(jnp.float32).reshape(1, N)

    tm = _choose_row_block(M)
    return pl.pallas_call(
        functools.partial(_matmul_kernel, relu=relu),
        out_shape=jax.ShapeDtypeStruct((M, N), jnp.float32),
        grid=(M // tm,),
        in_specs=[
            pl.BlockSpec((tm, K), lambda i: (i, 0)),   # row tile of A
            pl.BlockSpec((K, N), lambda i: (0, 0)),    # whole B, resident
            pl.BlockSpec((1, N), lambda i: (0, 0)),    # bias row, resident
        ],
        out_specs=pl.BlockSpec((tm, N), lambda i: (i, 0)),
        compiler_params=pltpu.CompilerParams(
            dimension_semantics=("parallel",),
            vmem_limit_bytes=32 * 1024 * 1024,
        ),
    )(a, b, bias2d)


# ----------------------------------------------------------------------------
# Layer helpers (NHWC glue that lowers onto the Pallas matmul)
# ----------------------------------------------------------------------------
def relu(x):
    return jnp.maximum(x, 0.0)


def silu(x):
    return x * jax.nn.sigmoid(x)


def conv2d(x, wmat, bias, ksize, stride=1, padding=0, relu_out=False):
    """x: (B, H, W, Cin) NHWC.  wmat: (Cin*KH*KW, Cout) pre-transposed.
    Returns (B, OH, OW, Cout) float32."""
    B, H, W, Cin = x.shape
    Cout = wmat.shape[1]
    if ksize == 1 and stride == 1 and padding == 0:
        patches = x.reshape(B * H * W, Cin)
        OH, OW = H, W
    else:
        # One fused patch-extraction op; feature order is (Cin, KH, KW),
        # which matches wmat = w.reshape(Cout, Cin*KH*KW).T
        patches = jax.lax.conv_general_dilated_patches(
            x.astype(MATMUL_DTYPE),
            filter_shape=(ksize, ksize),
            window_strides=(stride, stride),
            padding=((padding, padding), (padding, padding)),
            dimension_numbers=('NHWC', 'HWIO', 'NHWC'),
        )
        _, OH, OW, KF = patches.shape
        patches = patches.reshape(B * OH * OW, KF)
    out = pallas_matmul(patches, wmat, bias, relu=relu_out)
    return out.reshape(B, OH, OW, Cout)


def conv_transpose_2x2(x, wmat, bias4):
    """ConvTranspose2d(kernel=2, stride=2).  x: (B,H,W,Cin) NHWC.
    wmat: (Cin, 4*Cout), columns ordered (di, dj, cout); bias4: (4*Cout,)."""
    B, H, W, Cin = x.shape
    Cout = wmat.shape[1] // 4
    out = pallas_matmul(x.reshape(B * H * W, Cin), wmat, bias4)
    out = out.reshape(B, H, W, 2, 2, Cout)
    out = out.transpose(0, 1, 3, 2, 4, 5).reshape(B, 2 * H, 2 * W, Cout)
    return out


def batchnorm(x, gamma, beta, eps=1e-5):
    # Fresh nn.BatchNorm2d is in training mode -> biased batch statistics.
    mean = jnp.mean(x, axis=(0, 1, 2), keepdims=True)
    var = jnp.mean(jnp.square(x - mean), axis=(0, 1, 2), keepdims=True)
    xhat = (x - mean) * jax.lax.rsqrt(var + eps)
    return xhat * gamma + beta


def bilinear_resize(x, out_h, out_w):
    """F.interpolate(mode='bilinear', align_corners=False), NHWC."""
    B, H, W, C = x.shape
    if (H, W) == (out_h, out_w):
        return x

    def grid(in_size, out_size):
        scale = in_size / out_size
        o = jnp.arange(out_size, dtype=jnp.float32)
        src = jnp.maximum((o + 0.5) * scale - 0.5, 0.0)
        lo = jnp.minimum(jnp.floor(src).astype(jnp.int32), in_size - 1)
        hi = jnp.minimum(lo + 1, in_size - 1)
        frac = jnp.clip(src - lo.astype(jnp.float32), 0.0, 1.0)
        return lo, hi, frac

    h0, h1, fh = grid(H, out_h)
    w0, w1, fw = grid(W, out_w)
    top = x[:, h0, :, :]
    bot = x[:, h1, :, :]
    rows = top * (1.0 - fh)[None, :, None, None] + bot * fh[None, :, None, None]
    left = rows[:, :, w0, :]
    right = rows[:, :, w1, :]
    return (left * (1.0 - fw)[None, None, :, None]
            + right * fw[None, None, :, None])


def sinusoidal_embedding(t, dim):
    half = dim // 2
    freqs = jnp.exp(-math.log(10000.0) *
                    jnp.arange(half, dtype=jnp.float32) / half)
    args = t.astype(jnp.float32)[:, None] * freqs[None, :]
    return jnp.concatenate([jnp.sin(args), jnp.cos(args)], axis=1)


def residual_bottleneck(x, p):
    out = relu(batchnorm(conv2d(x, p['w1'], None, ksize=1), p['g1'], p['be1']))
    out = relu(batchnorm(conv2d(out, p['w2'], None, ksize=3, padding=1),
                         p['g2'], p['be2']))
    out = batchnorm(conv2d(out, p['w3'], None, ksize=1), p['g3'], p['be3'])
    return relu(out + x)


# ----------------------------------------------------------------------------
# Parameter construction: weights stored in matmul-ready (pre-transposed,
# bf16) layout so the forward pass does zero per-layer weight reshaping.
# ----------------------------------------------------------------------------
def init_params(key, in_ch, time_dim, C):
    counter = [0]

    def nk():
        counter[0] += 1
        return jax.random.fold_in(key, counter[0])

    def uni(shape, fan_in):
        bound = 1.0 / math.sqrt(fan_in)
        return jax.random.uniform(nk(), shape, jnp.float32, -bound, bound)

    def conv_w(cout, cin, k):
        w = uni((cout, cin, k, k), cin * k * k)          # PyTorch layout
        return w.reshape(cout, cin * k * k).T.astype(MATMUL_DTYPE)

    def conv(cout, cin, k):
        return {'w': conv_w(cout, cin, k), 'b': uni((cout,), cin * k * k)}

    def convT(cin, cout, k=2):
        w = uni((cin, cout, k, k), cout * k * k)         # (Cin, Cout, kh, kw)
        wm = jnp.transpose(w, (0, 2, 3, 1)).reshape(cin, k * k * cout)
        b = uni((cout,), cout * k * k)
        return {'w': wm.astype(MATMUL_DTYPE), 'b': jnp.tile(b, k * k)}

    def linear(in_f, out_f):
        w = uni((out_f, in_f), in_f)
        return {'w': w.T.astype(MATMUL_DTYPE), 'b': uni((out_f,), in_f)}

    def rb(c):
        mid = c // 2
        return {'w1': conv_w(mid, c, 1),
                'g1': jnp.ones((mid,), jnp.float32),
                'be1': jnp.zeros((mid,), jnp.float32),
                'w2': conv_w(mid, mid, 3),
                'g2': jnp.ones((mid,), jnp.float32),
                'be2': jnp.zeros((mid,), jnp.float32),
                'w3': conv_w(c, mid, 1),
                'g3': jnp.ones((c,), jnp.float32),
                'be3': jnp.zeros((c,), jnp.float32)}

    return {
        'mlp1': linear(time_dim, time_dim),
        'mlp2': linear(time_dim, time_dim),
        'enc1': conv(C[0], in_ch, 3), 'rb1': rb(C[0]),
        'enc2': conv(C[1], C[0], 3), 'rb2': rb(C[1]),
        'enc3': conv(C[2], C[1], 3), 'rb3': rb(C[2]),
        'enc4': conv(C[3], C[2], 3), 'rb4': rb(C[3]),
        'rb5': rb(C[4]),
        'up5': convT(C[4] + time_dim, C[3]), 'rb5d': rb(C[3]),
        'up4': convT(C[3] * 2, C[2]), 'rb4d': rb(C[2]),
        'up3': convT(C[2] * 2, C[1]), 'rb3d': rb(C[1]),
        'up2': convT(C[1] * 2, C[0]), 'rb2d': rb(C[0]),
        'final': conv(in_ch, C[0] * 2, 1),
    }


# ----------------------------------------------------------------------------
# UNet3 forward (NCHW public interface, NHWC internally)
# ----------------------------------------------------------------------------
def unet3_forward(params, x, t):
    time_dim = params['mlp1']['w'].shape[0]
    te = sinusoidal_embedding(t, time_dim)
    h = silu(pallas_matmul(te, params['mlp1']['w'], params['mlp1']['b']))
    temb = pallas_matmul(h, params['mlp2']['w'], params['mlp2']['b'])

    xh = jnp.transpose(x, (0, 2, 3, 1))                       # NCHW -> NHWC

    x1 = conv2d(xh, params['enc1']['w'], params['enc1']['b'],
                ksize=3, padding=1, relu_out=True)
    x1 = residual_bottleneck(x1, params['rb1'])
    x2 = conv2d(x1, params['enc2']['w'], params['enc2']['b'],
                ksize=3, stride=2, padding=1, relu_out=True)
    x2 = residual_bottleneck(x2, params['rb2'])
    x3 = conv2d(x2, params['enc3']['w'], params['enc3']['b'],
                ksize=3, stride=2, padding=1, relu_out=True)
    x3 = residual_bottleneck(x3, params['rb3'])
    x4 = conv2d(x3, params['enc4']['w'], params['enc4']['b'],
                ksize=3, stride=2, padding=1, relu_out=True)
    x4 = residual_bottleneck(x4, params['rb4'])
    x5 = residual_bottleneck(x4, params['rb5'])

    B = x.shape[0]
    temb_map = jnp.broadcast_to(
        temb[:, None, None, :], (B, x5.shape[1], x5.shape[2], temb.shape[1]))
    y = jnp.concatenate([x5, temb_map], axis=-1)
    y = conv_transpose_2x2(y, params['up5']['w'], params['up5']['b'])
    y = bilinear_resize(y, x4.shape[1], x4.shape[2])   # matches PyTorch ref
    y = residual_bottleneck(y, params['rb5d'])
    y = jnp.concatenate([y, x4], axis=-1)
    y = conv_transpose_2x2(y, params['up4']['w'], params['up4']['b'])
    y = bilinear_resize(y, x3.shape[1], x3.shape[2])
    y = residual_bottleneck(y, params['rb4d'])
    y = jnp.concatenate([y, x3], axis=-1)
    y = conv_transpose_2x2(y, params['up3']['w'], params['up3']['b'])
    y = bilinear_resize(y, x2.shape[1], x2.shape[2])
    y = residual_bottleneck(y, params['rb3d'])
    y = jnp.concatenate([y, x2], axis=-1)
    y = conv_transpose_2x2(y, params['up2']['w'], params['up2']['b'])
    y = bilinear_resize(y, x1.shape[1], x1.shape[2])
    y = residual_bottleneck(y, params['rb2d'])
    y = jnp.concatenate([y, x1], axis=-1)
    out = conv2d(y, params['final']['w'], params['final']['b'], ksize=1)
    return jnp.transpose(out, (0, 3, 1, 2))                   # NHWC -> NCHW


if __name__ == "__main__":
    # Small-but-faithful config: 28x28 input (the module is tuned for 28x28),
    # channel widths scaled down from [128, 256, 512, 1024, 1024].
    B, in_ch, H, W = 2, 1, 28, 28
    time_dim = 32
    C = (16, 32, 64, 64, 64)

    key = jax.random.PRNGKey(0)
    pkey, xkey, tkey = jax.random.split(key, 3)
    params = init_params(pkey, in_ch, time_dim, C)
    x = jax.random.normal(xkey, (B, in_ch, H, W), jnp.float32)
    t = jax.random.randint(tkey, (B,), 0, 1000)

    fwd = jax.jit(unet3_forward)
    out = jax.block_until_ready(fwd(params, x, t))
    assert out.shape == (B, in_ch, H, W), out.shape
    assert bool(jnp.all(jnp.isfinite(out)))
    print("KERNEL_OK")
</pallas_src>

<mosaic_0001>
module attributes {stable_mosaic.version = 11 : i64} {
  func.func @_matmul_kernel(%arg0: i32, %arg1: memref<392x9xbf16, #tpu.memory_space<vmem>>, %arg2: memref<9x16xbf16, #tpu.memory_space<vmem>>, %arg3: memref<1x16xf32, #tpu.memory_space<vmem>>, %arg4: memref<392x16xf32, #tpu.memory_space<vmem>>) attributes {dimension_semantics = [#tpu.dimension_semantics<parallel>], iteration_bounds = array<i64: 4>, scalar_prefetch = 0 : i64, scratch_operands = 0 : i64, tpu.core_type = #tpu.core_type<tc>, window_params = [{transform_indices = @transform_0, window_bounds = array<i64: 392, 9>}, {pipeline_mode = #tpu.pipeline_mode<synchronous>, transform_indices = @transform_1, window_bounds = array<i64: 9, 16>}, {pipeline_mode = #tpu.pipeline_mode<synchronous>, transform_indices = @transform_2, window_bounds = array<i64: 1, 16>}, {transform_indices = @transform_3, window_bounds = array<i64: 392, 16>}]} {
    %c0 = arith.constant 0 : index
    %c0_0 = arith.constant 0 : index
    %0 = vector.load %arg1[%c0, %c0_0] : memref<392x9xbf16, #tpu.memory_space<vmem>>, vector<392x9xbf16>
    %c0_1 = arith.constant 0 : index
    %c0_2 = arith.constant 0 : index
    %1 = vector.load %arg2[%c0_1, %c0_2] : memref<9x16xbf16, #tpu.memory_space<vmem>>, vector<9x16xbf16>
    %cst = arith.constant dense<0.000000e+00> : vector<392x16xf32>
    %2 = tpu.matmul %0, %1, %cst {dimension_numbers = #tpu.dot_dimension_numbers<[1], [0], [0], [1], [0, 0, 1, 1], [], []>} : vector<392x9xbf16>, vector<9x16xbf16>, vector<392x16xf32> -> vector<392x16xf32>
    %c0_3 = arith.constant 0 : index
    %c0_4 = arith.constant 0 : index
    %3 = vector.load %arg3[%c0_3, %c0_4] : memref<1x16xf32, #tpu.memory_space<vmem>>, vector<1x16xf32>
    %4 = vector.broadcast %3 : vector<1x16xf32> to vector<392x16xf32>
    %5 = arith.addf %2, %4 : vector<392x16xf32>
    %cst_5 = arith.constant 0.000000e+00 : f32
    %6 = vector.broadcast %cst_5 : f32 to vector<392x16xf32>
    %7 = arith.maximumf %5, %6 : vector<392x16xf32>
    %c0_6 = arith.constant 0 : index
    %c0_7 = arith.constant 0 : index
    %8 = vector.load %arg4[%c0_6, %c0_7] : memref<392x16xf32, #tpu.memory_space<vmem>>, vector<392x16xf32>
    tpu.vector_store %arg4[%c0_6, %c0_7], %7 {strides = array<i32>} : memref<392x16xf32, #tpu.memory_space<vmem>>, vector<392x16xf32>,
    return
  }
  func.func @transform_0(%arg0: i32) -> (i32, i32) {
    %c0_i32 = arith.constant 0 : i32
    %c0_i32_0 = arith.constant 0 : i32
    return %arg0, %c0_i32 : i32, i32
  }
  func.func @transform_1(%arg0: i32) -> (i32, i32) {
    %c0_i32 = arith.constant 0 : i32
    %c0_i32_0 = arith.constant 0 : i32
    %c0_i32_1 = arith.constant 0 : i32
    return %c0_i32, %c0_i32_0 : i32, i32
  }
  func.func @transform_2(%arg0: i32) -> (i32, i32) {
    %c0_i32 = arith.constant 0 : i32
    %c0_i32_0 = arith.constant 0 : i32
    %c0_i32_1 = arith.constant 0 : i32
    return %c0_i32, %c0_i32_0 : i32, i32
  }
  func.func @transform_3(%arg0: i32) -> (i32, i32) {
    %c0_i32 = arith.constant 0 : i32
    %c0_i32_0 = arith.constant 0 : i32
    return %arg0, %c0_i32 : i32, i32
  }
}

module attributes {stable_mosaic.version = 11 : i64} {
  func.func @_matmul_kernel(%arg0: i32, %arg1: memref<392x16xbf16, #tpu.memory_space<vmem>>, %arg2: memref<16x8xbf16, #tpu.memory_space<vmem>>, %arg3: memref<1x8xf32, #tpu.memory_space<vmem>>, %arg4: memref<392x8xf32, #tpu.memory_space<vmem>>) attributes {dimension_semantics = [#tpu.dimension_semantics<parallel>], iteration_bounds = array<i64: 4>, scalar_prefetch = 0 : i64, scratch_operands = 0 : i64, tpu.core_type = #tpu.core_type<tc>, window_params = [{transform_indices = @transform_0, window_bounds = array<i64: 392, 16>}, {pipeline_mode = #tpu.pipeline_mode<synchronous>, transform_indices = @transform_1, window_bounds = array<i64: 16, 8>}, {pipeline_mode = #tpu.pipeline_mode<synchronous>, transform_indices = @transform_2, window_bounds = array<i64: 1, 8>}, {transform_indices = @transform_3, window_bounds = array<i64: 392, 8>}]} {
    %c0 = arith.constant 0 : index
    %c0_0 = arith.constant 0 : index
    %0 = vector.load %arg1[%c0, %c0_0] : memref<392x16xbf16, #tpu.memory_space<vmem>>, vector<392x16xbf16>
    %c0_1 = arith.constant 0 : index
    %c0_2 = arith.constant 0 : index
    %1 = vector.load %arg2[%c0_1, %c0_2] : memref<16x8xbf16, #tpu.memory_space<vmem>>, vector<16x8xbf16>
    %cst = arith.constant dense<0.000000e+00> : vector<392x8xf32>
    %2 = tpu.matmul %0, %1, %cst {dimension_numbers = #tpu.dot_dimension_numbers<[1], [0], [0], [1], [0, 0, 1, 1], [], []>} : vector<392x16xbf16>, vector<16x8xbf16>, vector<392x8xf32> -> vector<392x8xf32>
    %c0_3 = arith.constant 0 : index
    %c0_4 = arith.constant 0 : index
    %3 = vector.load %arg3[%c0_3, %c0_4] : memref<1x8xf32, #tpu.memory_space<vmem>>, vector<1x8xf32>
    %4 = vector.broadcast %3 : vector<1x8xf32> to vector<392x8xf32>
    %5 = arith.addf %2, %4 : vector<392x8xf32>
    %c0_5 = arith.constant 0 : index
    %c0_6 = arith.constant 0 : index
    %6 = vector.load %arg4[%c0_5, %c0_6] : memref<392x8xf32, #tpu.memory_space<vmem>>, vector<392x8xf32>
    tpu.vector_store %arg4[%c0_5, %c0_6], %5 {strides = array<i32>} : memref<392x8xf32, #tpu.memory_space<vmem>>, vector<392x8xf32>,
    return
  }
  func.func @transform_0(%arg0: i32) -> (i32, i32) {
    %c0_i32 = arith.constant 0 : i32
    %c0_i32_0 = arith.constant 0 : i32
    return %arg0, %c0_i32 : i32, i32
  }
  func.func @transform_1(%arg0: i32) -> (i32, i32) {
    %c0_i32 = arith.constant 0 : i32
    %c0_i32_0 = arith.constant 0 : i32
    %c0_i32_1 = arith.constant 0 : i32
    return %c0_i32, %c0_i32_0 : i32, i32
  }
  func.func @transform_2(%arg0: i32) -> (i32, i32) {
    %c0_i32 = arith.constant 0 : i32
    %c0_i32_0 = arith.constant 0 : i32
    %c0_i32_1 = arith.constant 0 : i32
    return %c0_i32, %c0_i32_0 : i32, i32
  }
  func.func @transform_3(%arg0: i32) -> (i32, i32) {
    %c0_i32 = arith.constant 0 : i32
    %c0_i32_0 = arith.constant 0 : i32
    return %arg0, %c0_i32 : i32, i32
  }
}

module attributes {stable_mosaic.version = 11 : i64} {
  func.func @_matmul_kernel(%arg0: i32, %arg1: memref<392x72xbf16, #tpu.memory_space<vmem>>, %arg2: memref<72x8xbf16, #tpu.memory_space<vmem>>, %arg3: memref<1x8xf32, #tpu.memory_space<vmem>>, %arg4: memref<392x8xf32, #tpu.memory_space<vmem>>) attributes {dimension_semantics = [#tpu.dimension_semantics<parallel>], iteration_bounds = array<i64: 4>, scalar_prefetch = 0 : i64, scratch_operands = 0 : i64, tpu.core_type = #tpu.core_type<tc>, window_params = [{transform_indices = @transform_0, window_bounds = array<i64: 392, 72>}, {pipeline_mode = #tpu.pipeline_mode<synchronous>, transform_indices = @transform_1, window_bounds = array<i64: 72, 8>}, {pipeline_mode = #tpu.pipeline_mode<synchronous>, transform_indices = @transform_2, window_bounds = array<i64: 1, 8>}, {transform_indices = @transform_3, window_bounds = array<i64: 392, 8>}]} {
    %c0 = arith.constant 0 : index
    %c0_0 = arith.constant 0 : index
    %0 = vector.load %arg1[%c0, %c0_0] : memref<392x72xbf16, #tpu.memory_space<vmem>>, vector<392x72xbf16>
    %c0_1 = arith.constant 0 : index
    %c0_2 = arith.constant 0 : index
    %1 = vector.load %arg2[%c0_1, %c0_2] : memref<72x8xbf16, #tpu.memory_space<vmem>>, vector<72x8xbf16>
    %cst = arith.constant dense<0.000000e+00> : vector<392x8xf32>
    %2 = tpu.matmul %0, %1, %cst {dimension_numbers = #tpu.dot_dimension_numbers<[1], [0], [0], [1], [0, 0, 1, 1], [], []>} : vector<392x72xbf16>, vector<72x8xbf16>, vector<392x8xf32> -> vector<392x8xf32>
    %c0_3 = arith.constant 0 : index
    %c0_4 = arith.constant 0 : index
    %3 = vector.load %arg3[%c0_3, %c0_4] : memref<1x8xf32, #tpu.memory_space<vmem>>, vector<1x8xf32>
    %4 = vector.broadcast %3 : vector<1x8xf32> to vector<392x8xf32>
    %5 = arith.addf %2, %4 : vector<392x8xf32>
    %c0_5 = arith.constant 0 : index
    %c0_6 = arith.constant 0 : index
    %6 = vector.load %arg4[%c0_5, %c0_6] : memref<392x8xf32, #tpu.memory_space<vmem>>, vector<392x8xf32>
    tpu.vector_store %arg4[%c0_5, %c0_6], %5 {strides = array<i32>} : memref<392x8xf32, #tpu.memory_space<vmem>>, vector<392x8xf32>,
    return
  }
  func.func @transform_0(%arg0: i32) -> (i32, i32) {
    %c0_i32 = arith.constant 0 : i32
    %c0_i32_0 = arith.constant 0 : i32
    return %arg0, %c0_i32 : i32, i32
  }
  func.func @transform_1(%arg0: i32) -> (i32, i32) {
    %c0_i32 = arith.constant 0 : i32
    %c0_i32_0 = arith.constant 0 : i32
    %c0_i32_1 = arith.constant 0 : i32
    return %c0_i32, %c0_i32_0 : i32, i32
  }
  func.func @transform_2(%arg0: i32) -> (i32, i32) {
    %c0_i32 = arith.constant 0 : i32
    %c0_i32_0 = arith.constant 0 : i32
    %c0_i32_1 = arith.constant 0 : i32
    return %c0_i32, %c0_i32_0 : i32, i32
  }
  func.func @transform_3(%arg0: i32) -> (i32, i32) {
    %c0_i32 = arith.constant 0 : i32
    %c0_i32_0 = arith.constant 0 : i32
    return %arg0, %c0_i32 : i32, i32
  }
}

module attributes {stable_mosaic.version = 11 : i64} {
  func.func @_matmul_kernel(%arg0: i32, %arg1: memref<392x8xbf16, #tpu.memory_space<vmem>>, %arg2: memref<8x16xbf16, #tpu.memory_space<vmem>>, %arg3: memref<1x16xf32, #tpu.memory_space<vmem>>, %arg4: memref<392x16xf32, #tpu.memory_space<vmem>>) attributes {dimension_semantics = [#tpu.dimension_semantics<parallel>], iteration_bounds = array<i64: 4>, scalar_prefetch = 0 : i64, scratch_operands = 0 : i64, tpu.core_type = #tpu.core_type<tc>, window_params = [{transform_indices = @transform_0, window_bounds = array<i64: 392, 8>}, {pipeline_mode = #tpu.pipeline_mode<synchronous>, transform_indices = @transform_1, window_bounds = array<i64: 8, 16>}, {pipeline_mode = #tpu.pipeline_mode<synchronous>, transform_indices = @transform_2, window_bounds = array<i64: 1, 16>}, {transform_indices = @transform_3, window_bounds = array<i64: 392, 16>}]} {
    %c0 = arith.constant 0 : index
    %c0_0 = arith.constant 0 : index
    %0 = vector.load %arg1[%c0, %c0_0] : memref<392x8xbf16, #tpu.memory_space<vmem>>, vector<392x8xbf16>
    %c0_1 = arith.constant 0 : index
    %c0_2 = arith.constant 0 : index
    %1 = vector.load %arg2[%c0_1, %c0_2] : memref<8x16xbf16, #tpu.memory_space<vmem>>, vector<8x16xbf16>
    %cst = arith.constant dense<0.000000e+00> : vector<392x16xf32>
    %2 = tpu.matmul %0, %1, %cst {dimension_numbers = #tpu.dot_dimension_numbers<[1], [0], [0], [1], [0, 0, 1, 1], [], []>} : vector<392x8xbf16>, vector<8x16xbf16>, vector<392x16xf32> -> vector<392x16xf32>
    %c0_3 = arith.constant 0 : index
    %c0_4 = arith.constant 0 : index
    %3 = vector.load %arg3[%c0_3, %c0_4] : memref<1x16xf32, #tpu.memory_space<vmem>>, vector<1x16xf32>
    %4 = vector.broadcast %3 : vector<1x16xf32> to vector<392x16xf32>
    %5 = arith.addf %2, %4 : vector<392x16xf32>
    %c0_5 = arith.constant 0 : index
    %c0_6 = arith.constant 0 : index
    %6 = vector.load %arg4[%c0_5, %c0_6] : memref<392x16xf32, #tpu.memory_space<vmem>>, vector<392x16xf32>
    tpu.vector_store %arg4[%c0_5, %c0_6], %5 {strides = array<i32>} : memref<392x16xf32, #tpu.memory_space<vmem>>, vector<392x16xf32>,
    return
  }
  func.func @transform_0(%arg0: i32) -> (i32, i32) {
    %c0_i32 = arith.constant 0 : i32
    %c0_i32_0 = arith.constant 0 : i32
    return %arg0, %c0_i32 : i32, i32
  }
  func.func @transform_1(%arg0: i32) -> (i32, i32) {
    %c0_i32 = arith.constant 0 : i32
    %c0_i32_0 = arith.constant 0 : i32
    %c0_i32_1 = arith.constant 0 : i32
    return %c0_i32, %c0_i32_0 : i32, i32
  }
  func.func @transform_2(%arg0: i32) -> (i32, i32) {
    %c0_i32 = arith.constant 0 : i32
    %c0_i32_0 = arith.constant 0 : i32
    %c0_i32_1 = arith.constant 0 : i32
    return %c0_i32, %c0_i32_0 : i32, i32
  }
  func.func @transform_3(%arg0: i32) -> (i32, i32) {
    %c0_i32 = arith.constant 0 : i32
    %c0_i32_0 = arith.constant 0 : i32
    return %arg0, %c0_i32 : i32, i32
  }
}

module attributes {stable_mosaic.version = 11 : i64} {
  func.func @_matmul_kernel(%arg0: i32, %arg1: memref<392x144xbf16, #tpu.memory_space<vmem>>, %arg2: memref<144x32xbf16, #tpu.memory_space<vmem>>, %arg3: memref<1x32xf32, #tpu.memory_space<vmem>>, %arg4: memref<392x32xf32, #tpu.memory_space<vmem>>) attributes {dimension_semantics = [#tpu.dimension_semantics<parallel>], iteration_bounds = array<i64: 1>, scalar_prefetch = 0 : i64, scratch_operands = 0 : i64, tpu.core_type = #tpu.core_type<tc>, window_params = [{transform_indices = @transform_0, window_bounds = array<i64: 392, 144>}, {pipeline_mode = #tpu.pipeline_mode<synchronous>, transform_indices = @transform_1, window_bounds = array<i64: 144, 32>}, {pipeline_mode = #tpu.pipeline_mode<synchronous>, transform_indices = @transform_2, window_bounds = array<i64: 1, 32>}, {transform_indices = @transform_3, window_bounds = array<i64: 392, 32>}]} {
    %c0 = arith.constant 0 : index
    %c0_0 = arith.constant 0 : index
    %0 = vector.load %arg1[%c0, %c0_0] : memref<392x144xbf16, #tpu.memory_space<vmem>>, vector<392x144xbf16>
    %c0_1 = arith.constant 0 : index
    %c0_2 = arith.constant 0 : index
    %1 = vector.load %arg2[%c0_1, %c0_2] : memref<144x32xbf16, #tpu.memory_space<vmem>>, vector<144x32xbf16>
    %cst = arith.constant dense<0.000000e+00> : vector<392x32xf32>
    %2 = tpu.matmul %0, %1, %cst {dimension_numbers = #tpu.dot_dimension_numbers<[1], [0], [0], [1], [0, 0, 1, 1], [], []>} : vector<392x144xbf16>, vector<144x32xbf16>, vector<392x32xf32> -> vector<392x32xf32>
    %c0_3 = arith.constant 0 : index
    %c0_4 = arith.constant 0 : index
    %3 = vector.load %arg3[%c0_3, %c0_4] : memref<1x32xf32, #tpu.memory_space<vmem>>, vector<1x32xf32>
    %4 = vector.broadcast %3 : vector<1x32xf32> to vector<392x32xf32>
    %5 = arith.addf %2, %4 : vector<392x32xf32>
    %cst_5 = arith.constant 0.000000e+00 : f32
    %6 = vector.broadcast %cst_5 : f32 to vector<392x32xf32>
    %7 = arith.maximumf %5, %6 : vector<392x32xf32>
    %c0_6 = arith.constant 0 : index
    %c0_7 = arith.constant 0 : index
    %8 = vector.load %arg4[%c0_6, %c0_7] : memref<392x32xf32, #tpu.memory_space<vmem>>, vector<392x32xf32>
    tpu.vector_store %arg4[%c0_6, %c0_7], %7 {strides = array<i32>} : memref<392x32xf32, #tpu.memory_space<vmem>>, vector<392x32xf32>,
    return
  }
  func.func @transform_0(%arg0: i32) -> (i32, i32) {
    %c0_i32 = arith.constant 0 : i32
    %c0_i32_0 = arith.constant 0 : i32
    return %arg0, %c0_i32 : i32, i32
  }
  func.func @transform_1(%arg0: i32) -> (i32, i32) {
    %c0_i32 = arith.constant 0 : i32
    %c0_i32_0 = arith.constant 0 : i32
    %c0_i32_1 = arith.constant 0 : i32
    return %c0_i32, %c0_i32_0 : i32, i32
  }
  func.func @transform_2(%arg0: i32) -> (i32, i32) {
    %c0_i32 = arith.constant 0 : i32
    %c0_i32_0 = arith.constant 0 : i32
    %c0_i32_1 = arith.constant 0 : i32
    return %c0_i32, %c0_i32_0 : i32, i32
  }
  func.func @transform_3(%arg0: i32) -> (i32, i32) {
    %c0_i32 = arith.constant 0 : i32
    %c0_i32_0 = arith.constant 0 : i32
    return %arg0, %c0_i32 : i32, i32
  }
}

module attributes {stable_mosaic.version = 11 : i64} {
  func.func @_matmul_kernel(%arg0: i32, %arg1: memref<392x32xbf16, #tpu.memory_space<vmem>>, %arg2: memref<32x16xbf16, #tpu.memory_space<vmem>>, %arg3: memref<1x16xf32, #tpu.memory_space<vmem>>, %arg4: memref<392x16xf32, #tpu.memory_space<vmem>>) attributes {dimension_semantics = [#tpu.dimension_semantics<parallel>], iteration_bounds = array<i64: 1>, scalar_prefetch = 0 : i64, scratch_operands = 0 : i64, tpu.core_type = #tpu.core_type<tc>, window_params = [{transform_indices = @transform_0, window_bounds = array<i64: 392, 32>}, {pipeline_mode = #tpu.pipeline_mode<synchronous>, transform_indices = @transform_1, window_bounds = array<i64: 32, 16>}, {pipeline_mode = #tpu.pipeline_mode<synchronous>, transform_indices = @transform_2, window_bounds = array<i64: 1, 16>}, {transform_indices = @transform_3, window_bounds = array<i64: 392, 16>}]} {
    %c0 = arith.constant 0 : index
    %c0_0 = arith.constant 0 : index
    %0 = vector.load %arg1[%c0, %c0_0] : memref<392x32xbf16, #tpu.memory_space<vmem>>, vector<392x32xbf16>
    %c0_1 = arith.constant 0 : index
    %c0_2 = arith.constant 0 : index
    %1 = vector.load %arg2[%c0_1, %c0_2] : memref<32x16xbf16, #tpu.memory_space<vmem>>, vector<32x16xbf16>
    %cst = arith.constant dense<0.000000e+00> : vector<392x16xf32>
    %2 = tpu.matmul %0, %1, %cst {dimension_numbers = #tpu.dot_dimension_numbers<[1], [0], [0], [1], [0, 0, 1, 1], [], []>} : vector<392x32xbf16>, vector<32x16xbf16>, vector<392x16xf32> -> vector<392x16xf32>
    %c0_3 = arith.constant 0 : index
    %c0_4 = arith.constant 0 : index
    %3 = vector.load %arg3[%c0_3, %c0_4] : memref<1x16xf32, #tpu.memory_space<vmem>>, vector<1x16xf32>
    %4 = vector.broadcast %3 : vector<1x16xf32> to vector<392x16xf32>
    %5 = arith.addf %2, %4 : vector<392x16xf32>
    %c0_5 = arith.constant 0 : index
    %c0_6 = arith.constant 0 : index
    %6 = vector.load %arg4[%c0_5, %c0_6] : memref<392x16xf32, #tpu.memory_space<vmem>>, vector<392x16xf32>
    tpu.vector_store %arg4[%c0_5, %c0_6], %5 {strides = array<i32>} : memref<392x16xf32, #tpu.memory_space<vmem>>, vector<392x16xf32>,
    return
  }
  func.func @transform_0(%arg0: i32) -> (i32, i32) {
    %c0_i32 = arith.constant 0 : i32
    %c0_i32_0 = arith.constant 0 : i32
    return %arg0, %c0_i32 : i32, i32
  }
  func.func @transform_1(%arg0: i32) -> (i32, i32) {
    %c0_i32 = arith.constant 0 : i32
    %c0_i32_0 = arith.constant 0 : i32
    %c0_i32_1 = arith.constant 0 : i32
    return %c0_i32, %c0_i32_0 : i32, i32
  }
  func.func @transform_2(%arg0: i32) -> (i32, i32) {
    %c0_i32 = arith.constant 0 : i32
    %c0_i32_0 = arith.constant 0 : i32
    %c0_i32_1 = arith.constant 0 : i32
    return %c0_i32, %c0_i32_0 : i32, i32
  }
  func.func @transform_3(%arg0: i32) -> (i32, i32) {
    %c0_i32 = arith.constant 0 : i32
    %c0_i32_0 = arith.constant 0 : i32
    return %arg0, %c0_i32 : i32, i32
  }
}

module attributes {stable_mosaic.version = 11 : i64} {
  func.func @_matmul_kernel(%arg0: i32, %arg1: memref<392x144xbf16, #tpu.memory_space<vmem>>, %arg2: memref<144x16xbf16, #tpu.memory_space<vmem>>, %arg3: memref<1x16xf32, #tpu.memory_space<vmem>>, %arg4: memref<392x16xf32, #tpu.memory_space<vmem>>) attributes {dimension_semantics = [#tpu.dimension_semantics<parallel>], iteration_bounds = array<i64: 1>, scalar_prefetch = 0 : i64, scratch_operands = 0 : i64, tpu.core_type = #tpu.core_type<tc>, window_params = [{transform_indices = @transform_0, window_bounds = array<i64: 392, 144>}, {pipeline_mode = #tpu.pipeline_mode<synchronous>, transform_indices = @transform_1, window_bounds = array<i64: 144, 16>}, {pipeline_mode = #tpu.pipeline_mode<synchronous>, transform_indices = @transform_2, window_bounds = array<i64: 1, 16>}, {transform_indices = @transform_3, window_bounds = array<i64: 392, 16>}]} {
    %c0 = arith.constant 0 : index
    %c0_0 = arith.constant 0 : index
    %0 = vector.load %arg1[%c0, %c0_0] : memref<392x144xbf16, #tpu.memory_space<vmem>>, vector<392x144xbf16>
    %c0_1 = arith.constant 0 : index
    %c0_2 = arith.constant 0 : index
    %1 = vector.load %arg2[%c0_1, %c0_2] : memref<144x16xbf16, #tpu.memory_space<vmem>>, vector<144x16xbf16>
    %cst = arith.constant dense<0.000000e+00> : vector<392x16xf32>
    %2 = tpu.matmul %0, %1, %cst {dimension_numbers = #tpu.dot_dimension_numbers<[1], [0], [0], [1], [0, 0, 1, 1], [], []>} : vector<392x144xbf16>, vector<144x16xbf16>, vector<392x16xf32> -> vector<392x16xf32>
    %c0_3 = arith.constant 0 : index
    %c0_4 = arith.constant 0 : index
    %3 = vector.load %arg3[%c0_3, %c0_4] : memref<1x16xf32, #tpu.memory_space<vmem>>, vector<1x16xf32>
    %4 = vector.broadcast %3 : vector<1x16xf32> to vector<392x16xf32>
    %5 = arith.addf %2, %4 : vector<392x16xf32>
    %c0_5 = arith.constant 0 : index
    %c0_6 = arith.constant 0 : index
    %6 = vector.load %arg4[%c0_5, %c0_6] : memref<392x16xf32, #tpu.memory_space<vmem>>, vector<392x16xf32>
    tpu.vector_store %arg4[%c0_5, %c0_6], %5 {strides = array<i32>} : memref<392x16xf32, #tpu.memory_space<vmem>>, vector<392x16xf32>,
    return
  }
  func.func @transform_0(%arg0: i32) -> (i32, i32) {
    %c0_i32 = arith.constant 0 : i32
    %c0_i32_0 = arith.constant 0 : i32
    return %arg0, %c0_i32 : i32, i32
  }
  func.func @transform_1(%arg0: i32) -> (i32, i32) {
    %c0_i32 = arith.constant 0 : i32
    %c0_i32_0 = arith.constant 0 : i32
    %c0_i32_1 = arith.constant 0 : i32
    return %c0_i32, %c0_i32_0 : i32, i32
  }
  func.func @transform_2(%arg0: i32) -> (i32, i32) {
    %c0_i32 = arith.constant 0 : i32
    %c0_i32_0 = arith.constant 0 : i32
    %c0_i32_1 = arith.constant 0 : i32
    return %c0_i32, %c0_i32_0 : i32, i32
  }
  func.func @transform_3(%arg0: i32) -> (i32, i32) {
    %c0_i32 = arith.constant 0 : i32
    %c0_i32_0 = arith.constant 0 : i32
    return %arg0, %c0_i32 : i32, i32
  }
}

module attributes {stable_mosaic.version = 11 : i64} {
  func.func @_matmul_kernel(%arg0: i32, %arg1: memref<392x16xbf16, #tpu.memory_space<vmem>>, %arg2: memref<16x32xbf16, #tpu.memory_space<vmem>>, %arg3: memref<1x32xf32, #tpu.memory_space<vmem>>, %arg4: memref<392x32xf32, #tpu.memory_space<vmem>>) attributes {dimension_semantics = [#tpu.dimension_semantics<parallel>], iteration_bounds = array<i64: 1>, scalar_prefetch = 0 : i64, scratch_operands = 0 : i64, tpu.core_type = #tpu.core_type<tc>, window_params = [{transform_indices = @transform_0, window_bounds = array<i64: 392, 16>}, {pipeline_mode = #tpu.pipeline_mode<synchronous>, transform_indices = @transform_1, window_bounds = array<i64: 16, 32>}, {pipeline_mode = #tpu.pipeline_mode<synchronous>, transform_indices = @transform_2, window_bounds = array<i64: 1, 32>}, {transform_indices = @transform_3, window_bounds = array<i64: 392, 32>}]} {
    %c0 = arith.constant 0 : index
    %c0_0 = arith.constant 0 : index
    %0 = vector.load %arg1[%c0, %c0_0] : memref<392x16xbf16, #tpu.memory_space<vmem>>, vector<392x16xbf16>
    %c0_1 = arith.constant 0 : index
    %c0_2 = arith.constant 0 : index
    %1 = vector.load %arg2[%c0_1, %c0_2] : memref<16x32xbf16, #tpu.memory_space<vmem>>, vector<16x32xbf16>
    %cst = arith.constant dense<0.000000e+00> : vector<392x32xf32>
    %2 = tpu.matmul %0, %1, %cst {dimension_numbers = #tpu.dot_dimension_numbers<[1], [0], [0], [1], [0, 0, 1, 1], [], []>} : vector<392x16xbf16>, vector<16x32xbf16>, vector<392x32xf32> -> vector<392x32xf32>
    %c0_3 = arith.constant 0 : index
    %c0_4 = arith.constant 0 : index
    %3 = vector.load %arg3[%c0_3, %c0_4] : memref<1x32xf32, #tpu.memory_space<vmem>>, vector<1x32xf32>
    %4 = vector.broadcast %3 : vector<1x32xf32> to vector<392x32xf32>
    %5 = arith.addf %2, %4 : vector<392x32xf32>
    %c0_5 = arith.constant 0 : index
    %c0_6 = arith.constant 0 : index
    %6 = vector.load %arg4[%c0_5, %c0_6] : memref<392x32xf32, #tpu.memory_space<vmem>>, vector<392x32xf32>
    tpu.vector_store %arg4[%c0_5, %c0_6], %5 {strides = array<i32>} : memref<392x32xf32, #tpu.memory_space<vmem>>, vector<392x32xf32>,
    return
  }
  func.func @transform_0(%arg0: i32) -> (i32, i32) {
    %c0_i32 = arith.constant 0 : i32
    %c0_i32_0 = arith.constant 0 : i32
    return %arg0, %c0_i32 : i32, i32
  }
  func.func @transform_1(%arg0: i32) -> (i32, i32) {
    %c0_i32 = arith.constant 0 : i32
    %c0_i32_0 = arith.constant 0 : i32
    %c0_i32_1 = arith.constant 0 : i32
    return %c0_i32, %c0_i32_0 : i32, i32
  }
  func.func @transform_2(%arg0: i32) -> (i32, i32) {
    %c0_i32 = arith.constant 0 : i32
    %c0_i32_0 = arith.constant 0 : i32
    %c0_i32_1 = arith.constant 0 : i32
    return %c0_i32, %c0_i32_0 : i32, i32
  }
  func.func @transform_3(%arg0: i32) -> (i32, i32) {
    %c0_i32 = arith.constant 0 : i32
    %c0_i32_0 = arith.constant 0 : i32
    return %arg0, %c0_i32 : i32, i32
  }
}

module attributes {stable_mosaic.version = 11 : i64} {
  func.func @_matmul_kernel(%arg0: i32, %arg1: memref<98x288xbf16, #tpu.memory_space<vmem>>, %arg2: memref<288x64xbf16, #tpu.memory_space<vmem>>, %arg3: memref<1x64xf32, #tpu.memory_space<vmem>>, %arg4: memref<98x64xf32, #tpu.memory_space<vmem>>) attributes {dimension_semantics = [#tpu.dimension_semantics<parallel>], iteration_bounds = array<i64: 1>, scalar_prefetch = 0 : i64, scratch_operands = 0 : i64, tpu.core_type = #tpu.core_type<tc>, window_params = [{transform_indices = @transform_0, window_bounds = array<i64: 98, 288>}, {pipeline_mode = #tpu.pipeline_mode<synchronous>, transform_indices = @transform_1, window_bounds = array<i64: 288, 64>}, {pipeline_mode = #tpu.pipeline_mode<synchronous>, transform_indices = @transform_2, window_bounds = array<i64: 1, 64>}, {transform_indices = @transform_3, window_bounds = array<i64: 98, 64>}]} {
    %c0 = arith.constant 0 : index
    %c0_0 = arith.constant 0 : index
    %0 = vector.load %arg1[%c0, %c0_0] : memref<98x288xbf16, #tpu.memory_space<vmem>>, vector<98x288xbf16>
    %c0_1 = arith.constant 0 : index
    %c0_2 = arith.constant 0 : index
    %1 = vector.load %arg2[%c0_1, %c0_2] : memref<288x64xbf16, #tpu.memory_space<vmem>>, vector<288x64xbf16>
    %cst = arith.constant dense<0.000000e+00> : vector<98x64xf32>
    %2 = tpu.matmul %0, %1, %cst {dimension_numbers = #tpu.dot_dimension_numbers<[1], [0], [0], [1], [0, 0, 1, 1], [], []>} : vector<98x288xbf16>, vector<288x64xbf16>, vector<98x64xf32> -> vector<98x64xf32>
    %c0_3 = arith.constant 0 : index
    %c0_4 = arith.constant 0 : index
    %3 = vector.load %arg3[%c0_3, %c0_4] : memref<1x64xf32, #tpu.memory_space<vmem>>, vector<1x64xf32>
    %4 = vector.broadcast %3 : vector<1x64xf32> to vector<98x64xf32>
    %5 = arith.addf %2, %4 : vector<98x64xf32>
    %cst_5 = arith.constant 0.000000e+00 : f32
    %6 = vector.broadcast %cst_5 : f32 to vector<98x64xf32>
    %7 = arith.maximumf %5, %6 : vector<98x64xf32>
    %c0_6 = arith.constant 0 : index
    %c0_7 = arith.constant 0 : index
    %8 = vector.load %arg4[%c0_6, %c0_7] : memref<98x64xf32, #tpu.memory_space<vmem>>, vector<98x64xf32>
    tpu.vector_store %arg4[%c0_6, %c0_7], %7 {strides = array<i32>} : memref<98x64xf32, #tpu.memory_space<vmem>>, vector<98x64xf32>,
    return
  }
  func.func @transform_0(%arg0: i32) -> (i32, i32) {
    %c0_i32 = arith.constant 0 : i32
    %c0_i32_0 = arith.constant 0 : i32
    return %arg0, %c0_i32 : i32, i32
  }
  func.func @transform_1(%arg0: i32) -> (i32, i32) {
    %c0_i32 = arith.constant 0 : i32
    %c0_i32_0 = arith.constant 0 : i32
    %c0_i32_1 = arith.constant 0 : i32
    return %c0_i32, %c0_i32_0 : i32, i32
  }
  func.func @transform_2(%arg0: i32) -> (i32, i32) {
    %c0_i32 = arith.constant 0 : i32
    %c0_i32_0 = arith.constant 0 : i32
    %c0_i32_1 = arith.constant 0 : i32
    return %c0_i32, %c0_i32_0 : i32, i32
  }
  func.func @transform_3(%arg0: i32) -> (i32, i32) {
    %c0_i32 = arith.constant 0 : i32
    %c0_i32_0 = arith.constant 0 : i32
    return %arg0, %c0_i32 : i32, i32
  }
}

module attributes {stable_mosaic.version = 11 : i64} {
  func.func @_matmul_kernel(%arg0: i32, %arg1: memref<98x64xbf16, #tpu.memory_space<vmem>>, %arg2: memref<64x32xbf16, #tpu.memory_space<vmem>>, %arg3: memref<1x32xf32, #tpu.memory_space<vmem>>, %arg4: memref<98x32xf32, #tpu.memory_space<vmem>>) attributes {dimension_semantics = [#tpu.dimension_semantics<parallel>], iteration_bounds = array<i64: 1>, scalar_prefetch = 0 : i64, scratch_operands = 0 : i64, tpu.core_type = #tpu.core_type<tc>, window_params = [{transform_indices = @transform_0, window_bounds = array<i64: 98, 64>}, {pipeline_mode = #tpu.pipeline_mode<synchronous>, transform_indices = @transform_1, window_bounds = array<i64: 64, 32>}, {pipeline_mode = #tpu.pipeline_mode<synchronous>, transform_indices = @transform_2, window_bounds = array<i64: 1, 32>}, {transform_indices = @transform_3, window_bounds = array<i64: 98, 32>}]} {
    %c0 = arith.constant 0 : index
    %c0_0 = arith.constant 0 : index
    %0 = vector.load %arg1[%c0, %c0_0] : memref<98x64xbf16, #tpu.memory_space<vmem>>, vector<98x64xbf16>
    %c0_1 = arith.constant 0 : index
    %c0_2 = arith.constant 0 : index
    %1 = vector.load %arg2[%c0_1, %c0_2] : memref<64x32xbf16, #tpu.memory_space<vmem>>, vector<64x32xbf16>
    %cst = arith.constant dense<0.000000e+00> : vector<98x32xf32>
    %2 = tpu.matmul %0, %1, %cst {dimension_numbers = #tpu.dot_dimension_numbers<[1], [0], [0], [1], [0, 0, 1, 1], [], []>} : vector<98x64xbf16>, vector<64x32xbf16>, vector<98x32xf32> -> vector<98x32xf32>
    %c0_3 = arith.constant 0 : index
    %c0_4 = arith.constant 0 : index
    %3 = vector.load %arg3[%c0_3, %c0_4] : memref<1x32xf32, #tpu.memory_space<vmem>>, vector<1x32xf32>
    %4 = vector.broadcast %3 : vector<1x32xf32> to vector<98x32xf32>
    %5 = arith.addf %2, %4 : vector<98x32xf32>
    %c0_5 = arith.constant 0 : index
    %c0_6 = arith.constant 0 : index
    %6 = vector.load %arg4[%c0_5, %c0_6] : memref<98x32xf32, #tpu.memory_space<vmem>>, vector<98x32xf32>
    tpu.vector_store %arg4[%c0_5, %c0_6], %5 {strides = array<i32>} : memref<98x32xf32, #tpu.memory_space<vmem>>, vector<98x32xf32>,
    return
  }
  func.func @transform_0(%arg0: i32) -> (i32, i32) {
    %c0_i32 = arith.constant 0 : i32
    %c0_i32_0 = arith.constant 0 : i32
    return %arg0, %c0_i32 : i32, i32
  }
  func.func @transform_1(%arg0: i32) -> (i32, i32) {
    %c0_i32 = arith.constant 0 : i32
    %c0_i32_0 = arith.constant 0 : i32
    %c0_i32_1 = arith.constant 0 : i32
    return %c0_i32, %c0_i32_0 : i32, i32
  }
  func.func @transform_2(%arg0: i32) -> (i32, i32) {
    %c0_i32 = arith.constant 0 : i32
    %c0_i32_0 = arith.constant 0 : i32
    %c0_i32_1 = arith.constant 0 : i32
    return %c0_i32, %c0_i32_0 : i32, i32
  }
  func.func @transform_3(%arg0: i32) -> (i32, i32) {
    %c0_i32 = arith.constant 0 : i32
    %c0_i32_0 = arith.constant 0 : i32
    return %arg0, %c0_i32 : i32, i32
  }
}

module attributes {stable_mosaic.version = 11 : i64} {
  func.func @_matmul_kernel(%arg0: i32, %arg1: memref<98x288xbf16, #tpu.memory_space<vmem>>, %arg2: memref<288x32xbf16, #tpu.memory_space<vmem>>, %arg3: memref<1x32xf32, #tpu.memory_space<vmem>>, %arg4: memref<98x32xf32, #tpu.memory_space<vmem>>) attributes {dimension_semantics = [#tpu.dimension_semantics<parallel>], iteration_bounds = array<i64: 1>, scalar_prefetch = 0 : i64, scratch_operands = 0 : i64, tpu.core_type = #tpu.core_type<tc>, window_params = [{transform_indices = @transform_0, window_bounds = array<i64: 98, 288>}, {pipeline_mode = #tpu.pipeline_mode<synchronous>, transform_indices = @transform_1, window_bounds = array<i64: 288, 32>}, {pipeline_mode = #tpu.pipeline_mode<synchronous>, transform_indices = @transform_2, window_bounds = array<i64: 1, 32>}, {transform_indices = @transform_3, window_bounds = array<i64: 98, 32>}]} {
    %c0 = arith.constant 0 : index
    %c0_0 = arith.constant 0 : index
    %0 = vector.load %arg1[%c0, %c0_0] : memref<98x288xbf16, #tpu.memory_space<vmem>>, vector<98x288xbf16>
    %c0_1 = arith.constant 0 : index
    %c0_2 = arith.constant 0 : index
    %1 = vector.load %arg2[%c0_1, %c0_2] : memref<288x32xbf16, #tpu.memory_space<vmem>>, vector<288x32xbf16>
    %cst = arith.constant dense<0.000000e+00> : vector<98x32xf32>
    %2 = tpu.matmul %0, %1, %cst {dimension_numbers = #tpu.dot_dimension_numbers<[1], [0], [0], [1], [0, 0, 1, 1], [], []>} : vector<98x288xbf16>, vector<288x32xbf16>, vector<98x32xf32> -> vector<98x32xf32>
    %c0_3 = arith.constant 0 : index
    %c0_4 = arith.constant 0 : index
    %3 = vector.load %arg3[%c0_3, %c0_4] : memref<1x32xf32, #tpu.memory_space<vmem>>, vector<1x32xf32>
    %4 = vector.broadcast %3 : vector<1x32xf32> to vector<98x32xf32>
    %5 = arith.addf %2, %4 : vector<98x32xf32>
    %c0_5 = arith.constant 0 : index
    %c0_6 = arith.constant 0 : index
    %6 = vector.load %arg4[%c0_5, %c0_6] : memref<98x32xf32, #tpu.memory_space<vmem>>, vector<98x32xf32>
    tpu.vector_store %arg4[%c0_5, %c0_6], %5 {strides = array<i32>} : memref<98x32xf32, #tpu.memory_space<vmem>>, vector<98x32xf32>,
    return
  }
  func.func @transform_0(%arg0: i32) -> (i32, i32) {
    %c0_i32 = arith.constant 0 : i32
    %c0_i32_0 = arith.constant 0 : i32
    return %arg0, %c0_i32 : i32, i32
  }
  func.func @transform_1(%arg0: i32) -> (i32, i32) {
    %c0_i32 = arith.constant 0 : i32
    %c0_i32_0 = arith.constant 0 : i32
    %c0_i32_1 = arith.constant 0 : i32
    return %c0_i32, %c0_i32_0 : i32, i32
  }
  func.func @transform_2(%arg0: i32) -> (i32, i32) {
    %c0_i32 = arith.constant 0 : i32
    %c0_i32_0 = arith.constant 0 : i32
    %c0_i32_1 = arith.constant 0 : i32
    return %c0_i32, %c0_i32_0 : i32, i32
  }
  func.func @transform_3(%arg0: i32) -> (i32, i32) {
    %c0_i32 = arith.constant 0 : i32
    %c0_i32_0 = arith.constant 0 : i32
    return %arg0, %c0_i32 : i32, i32
  }
}

module attributes {stable_mosaic.version = 11 : i64} {
  func.func @_matmul_kernel(%arg0: i32, %arg1: memref<98x32xbf16, #tpu.memory_space<vmem>>, %arg2: memref<32x64xbf16, #tpu.memory_space<vmem>>, %arg3: memref<1x64xf32, #tpu.memory_space<vmem>>, %arg4: memref<98x64xf32, #tpu.memory_space<vmem>>) attributes {dimension_semantics = [#tpu.dimension_semantics<parallel>], iteration_bounds = array<i64: 1>, scalar_prefetch = 0 : i64, scratch_operands = 0 : i64, tpu.core_type = #tpu.core_type<tc>, window_params = [{transform_indices = @transform_0, window_bounds = array<i64: 98, 32>}, {pipeline_mode = #tpu.pipeline_mode<synchronous>, transform_indices = @transform_1, window_bounds = array<i64: 32, 64>}, {pipeline_mode = #tpu.pipeline_mode<synchronous>, transform_indices = @transform_2, window_bounds = array<i64: 1, 64>}, {transform_indices = @transform_3, window_bounds = array<i64: 98, 64>}]} {
    %c0 = arith.constant 0 : index
    %c0_0 = arith.constant 0 : index
    %0 = vector.load %arg1[%c0, %c0_0] : memref<98x32xbf16, #tpu.memory_space<vmem>>, vector<98x32xbf16>
    %c0_1 = arith.constant 0 : index
    %c0_2 = arith.constant 0 : index
    %1 = vector.load %arg2[%c0_1, %c0_2] : memref<32x64xbf16, #tpu.memory_space<vmem>>, vector<32x64xbf16>
    %cst = arith.constant dense<0.000000e+00> : vector<98x64xf32>
    %2 = tpu.matmul %0, %1, %cst {dimension_numbers = #tpu.dot_dimension_numbers<[1], [0], [0], [1], [0, 0, 1, 1], [], []>} : vector<98x32xbf16>, vector<32x64xbf16>, vector<98x64xf32> -> vector<98x64xf32>
    %c0_3 = arith.constant 0 : index
    %c0_4 = arith.constant 0 : index
    %3 = vector.load %arg3[%c0_3, %c0_4] : memref<1x64xf32, #tpu.memory_space<vmem>>, vector<1x64xf32>
    %4 = vector.broadcast %3 : vector<1x64xf32> to vector<98x64xf32>
    %5 = arith.addf %2, %4 : vector<98x64xf32>
    %c0_5 = arith.constant 0 : index
    %c0_6 = arith.constant 0 : index
    %6 = vector.load %arg4[%c0_5, %c0_6] : memref<98x64xf32, #tpu.memory_space<vmem>>, vector<98x64xf32>
    tpu.vector_store %arg4[%c0_5, %c0_6], %5 {strides = array<i32>} : memref<98x64xf32, #tpu.memory_space<vmem>>, vector<98x64xf32>,
    return
  }
  func.func @transform_0(%arg0: i32) -> (i32, i32) {
    %c0_i32 = arith.constant 0 : i32
    %c0_i32_0 = arith.constant 0 : i32
    return %arg0, %c0_i32 : i32, i32
  }
  func.func @transform_1(%arg0: i32) -> (i32, i32) {
    %c0_i32 = arith.constant 0 : i32
    %c0_i32_0 = arith.constant 0 : i32
    %c0_i32_1 = arith.constant 0 : i32
    return %c0_i32, %c0_i32_0 : i32, i32
  }
  func.func @transform_2(%arg0: i32) -> (i32, i32) {
    %c0_i32 = arith.constant 0 : i32
    %c0_i32_0 = arith.constant 0 : i32
    %c0_i32_1 = arith.constant 0 : i32
    return %c0_i32, %c0_i32_0 : i32, i32
  }
  func.func @transform_3(%arg0: i32) -> (i32, i32) {
    %c0_i32 = arith.constant 0 : i32
    %c0_i32_0 = arith.constant 0 : i32
    return %arg0, %c0_i32 : i32, i32
  }
}

module attributes {stable_mosaic.version = 11 : i64} {
  func.func @_matmul_kernel(%arg0: i32, %arg1: memref<32x576xbf16, #tpu.memory_space<vmem>>, %arg2: memref<576x64xbf16, #tpu.memory_space<vmem>>, %arg3: memref<1x64xf32, #tpu.memory_space<vmem>>, %arg4: memref<32x64xf32, #tpu.memory_space<vmem>>) attributes {dimension_semantics = [#tpu.dimension_semantics<parallel>], iteration_bounds = array<i64: 1>, scalar_prefetch = 0 : i64, scratch_operands = 0 : i64, tpu.core_type = #tpu.core_type<tc>, window_params = [{transform_indices = @transform_0, window_bounds = array<i64: 32, 576>}, {pipeline_mode = #tpu.pipeline_mode<synchronous>, transform_indices = @transform_1, window_bounds = array<i64: 576, 64>}, {pipeline_mode = #tpu.pipeline_mode<synchronous>, transform_indices = @transform_2, window_bounds = array<i64: 1, 64>}, {transform_indices = @transform_3, window_bounds = array<i64: 32, 64>}]} {
    %c0 = arith.constant 0 : index
    %c0_0 = arith.constant 0 : index
    %0 = vector.load %arg1[%c0, %c0_0] : memref<32x576xbf16, #tpu.memory_space<vmem>>, vector<32x576xbf16>
    %c0_1 = arith.constant 0 : index
    %c0_2 = arith.constant 0 : index
    %1 = vector.load %arg2[%c0_1, %c0_2] : memref<576x64xbf16, #tpu.memory_space<vmem>>, vector<576x64xbf16>
    %cst = arith.constant dense<0.000000e+00> : vector<32x64xf32>
    %2 = tpu.matmul %0, %1, %cst {dimension_numbers = #tpu.dot_dimension_numbers<[1], [0], [0], [1], [0, 0, 1, 1], [], []>} : vector<32x576xbf16>, vector<576x64xbf16>, vector<32x64xf32> -> vector<32x64xf32>
    %c0_3 = arith.constant 0 : index
    %c0_4 = arith.constant 0 : index
    %3 = vector.load %arg3[%c0_3, %c0_4] : memref<1x64xf32, #tpu.memory_space<vmem>>, vector<1x64xf32>
    %4 = vector.broadcast %3 : vector<1x64xf32> to vector<32x64xf32>
    %5 = arith.addf %2, %4 : vector<32x64xf32>
    %cst_5 = arith.constant 0.000000e+00 : f32
    %6 = vector.broadcast %cst_5 : f32 to vector<32x64xf32>
    %7 = arith.maximumf %5, %6 : vector<32x64xf32>
    %c0_6 = arith.constant 0 : index
    %c0_7 = arith.constant 0 : index
    %8 = vector.load %arg4[%c0_6, %c0_7] : memref<32x64xf32, #tpu.memory_space<vmem>>, vector<32x64xf32>
    tpu.vector_store %arg4[%c0_6, %c0_7], %7 {strides = array<i32>} : memref<32x64xf32, #tpu.memory_space<vmem>>, vector<32x64xf32>,
    return
  }
  func.func @transform_0(%arg0: i32) -> (i32, i32) {
    %c0_i32 = arith.constant 0 : i32
    %c0_i32_0 = arith.constant 0 : i32
    return %arg0, %c0_i32 : i32, i32
  }
  func.func @transform_1(%arg0: i32) -> (i32, i32) {
    %c0_i32 = arith.constant 0 : i32
    %c0_i32_0 = arith.constant 0 : i32
    %c0_i32_1 = arith.constant 0 : i32
    return %c0_i32, %c0_i32_0 : i32, i32
  }
  func.func @transform_2(%arg0: i32) -> (i32, i32) {
    %c0_i32 = arith.constant 0 : i32
    %c0_i32_0 = arith.constant 0 : i32
    %c0_i32_1 = arith.constant 0 : i32
    return %c0_i32, %c0_i32_0 : i32, i32
  }
  func.func @transform_3(%arg0: i32) -> (i32, i32) {
    %c0_i32 = arith.constant 0 : i32
    %c0_i32_0 = arith.constant 0 : i32
    return %arg0, %c0_i32 : i32, i32
  }
}

module attributes {stable_mosaic.version = 11 : i64} {
  func.func @_matmul_kernel(%arg0: i32, %arg1: memref<32x64xbf16, #tpu.memory_space<vmem>>, %arg2: memref<64x32xbf16, #tpu.memory_space<vmem>>, %arg3: memref<1x32xf32, #tpu.memory_space<vmem>>, %arg4: memref<32x32xf32, #tpu.memory_space<vmem>>) attributes {dimension_semantics = [#tpu.dimension_semantics<parallel>], iteration_bounds = array<i64: 1>, scalar_prefetch = 0 : i64, scratch_operands = 0 : i64, tpu.core_type = #tpu.core_type<tc>, window_params = [{transform_indices = @transform_0, window_bounds = array<i64: 32, 64>}, {pipeline_mode = #tpu.pipeline_mode<synchronous>, transform_indices = @transform_1, window_bounds = array<i64: 64, 32>}, {pipeline_mode = #tpu.pipeline_mode<synchronous>, transform_indices = @transform_2, window_bounds = array<i64: 1, 32>}, {transform_indices = @transform_3, window_bounds = array<i64: 32, 32>}]} {
    %c0 = arith.constant 0 : index
    %c0_0 = arith.constant 0 : index
    %0 = vector.load %arg1[%c0, %c0_0] : memref<32x64xbf16, #tpu.memory_space<vmem>>, vector<32x64xbf16>
    %c0_1 = arith.constant 0 : index
    %c0_2 = arith.constant 0 : index
    %1 = vector.load %arg2[%c0_1, %c0_2] : memref<64x32xbf16, #tpu.memory_space<vmem>>, vector<64x32xbf16>
    %cst = arith.constant dense<0.000000e+00> : vector<32x32xf32>
    %2 = tpu.matmul %0, %1, %cst {dimension_numbers = #tpu.dot_dimension_numbers<[1], [0], [0], [1], [0, 0, 1, 1], [], []>} : vector<32x64xbf16>, vector<64x32xbf16>, vector<32x32xf32> -> vector<32x32xf32>
    %c0_3 = arith.constant 0 : index
    %c0_4 = arith.constant 0 : index
    %3 = vector.load %arg3[%c0_3, %c0_4] : memref<1x32xf32, #tpu.memory_space<vmem>>, vector<1x32xf32>
    %4 = vector.broadcast %3 : vector<1x32xf32> to vector<32x32xf32>
    %5 = arith.addf %2, %4 : vector<32x32xf32>
    %c0_5 = arith.constant 0 : index
    %c0_6 = arith.constant 0 : index
    %6 = vector.load %arg4[%c0_5, %c0_6] : memref<32x32xf32, #tpu.memory_space<vmem>>, vector<32x32xf32>
    tpu.vector_store %arg4[%c0_5, %c0_6], %5 {strides = array<i32>} : memref<32x32xf32, #tpu.memory_space<vmem>>, vector<32x32xf32>,
    return
  }
  func.func @transform_0(%arg0: i32) -> (i32, i32) {
    %c0_i32 = arith.constant 0 : i32
    %c0_i32_0 = arith.constant 0 : i32
    return %arg0, %c0_i32 : i32, i32
  }
  func.func @transform_1(%arg0: i32) -> (i32, i32) {
    %c0_i32 = arith.constant 0 : i32
    %c0_i32_0 = arith.constant 0 : i32
    %c0_i32_1 = arith.constant 0 : i32
    return %c0_i32, %c0_i32_0 : i32, i32
  }
  func.func @transform_2(%arg0: i32) -> (i32, i32) {
    %c0_i32 = arith.constant 0 : i32
    %c0_i32_0 = arith.constant 0 : i32
    %c0_i32_1 = arith.constant 0 : i32
    return %c0_i32, %c0_i32_0 : i32, i32
  }
  func.func @transform_3(%arg0: i32) -> (i32, i32) {
    %c0_i32 = arith.constant 0 : i32
    %c0_i32_0 = arith.constant 0 : i32
    return %arg0, %c0_i32 : i32, i32
  }
}

module attributes {stable_mosaic.version = 11 : i64} {
  func.func @_matmul_kernel(%arg0: i32, %arg1: memref<32x288xbf16, #tpu.memory_space<vmem>>, %arg2: memref<288x32xbf16, #tpu.memory_space<vmem>>, %arg3: memref<1x32xf32, #tpu.memory_space<vmem>>, %arg4: memref<32x32xf32, #tpu.memory_space<vmem>>) attributes {dimension_semantics = [#tpu.dimension_semantics<parallel>], iteration_bounds = array<i64: 1>, scalar_prefetch = 0 : i64, scratch_operands = 0 : i64, tpu.core_type = #tpu.core_type<tc>, window_params = [{transform_indices = @transform_0, window_bounds = array<i64: 32, 288>}, {pipeline_mode = #tpu.pipeline_mode<synchronous>, transform_indices = @transform_1, window_bounds = array<i64: 288, 32>}, {pipeline_mode = #tpu.pipeline_mode<synchronous>, transform_indices = @transform_2, window_bounds = array<i64: 1, 32>}, {transform_indices = @transform_3, window_bounds = array<i64: 32, 32>}]} {
    %c0 = arith.constant 0 : index
    %c0_0 = arith.constant 0 : index
    %0 = vector.load %arg1[%c0, %c0_0] : memref<32x288xbf16, #tpu.memory_space<vmem>>, vector<32x288xbf16>
    %c0_1 = arith.constant 0 : index
    %c0_2 = arith.constant 0 : index
    %1 = vector.load %arg2[%c0_1, %c0_2] : memref<288x32xbf16, #tpu.memory_space<vmem>>, vector<288x32xbf16>
    %cst = arith.constant dense<0.000000e+00> : vector<32x32xf32>
    %2 = tpu.matmul %0, %1, %cst {dimension_numbers = #tpu.dot_dimension_numbers<[1], [0], [0], [1], [0, 0, 1, 1], [], []>} : vector<32x288xbf16>, vector<288x32xbf16>, vector<32x32xf32> -> vector<32x32xf32>
    %c0_3 = arith.constant 0 : index
    %c0_4 = arith.constant 0 : index
    %3 = vector.load %arg3[%c0_3, %c0_4] : memref<1x32xf32, #tpu.memory_space<vmem>>, vector<1x32xf32>
    %4 = vector.broadcast %3 : vector<1x32xf32> to vector<32x32xf32>
    %5 = arith.addf %2, %4 : vector<32x32xf32>
    %c0_5 = arith.constant 0 : index
    %c0_6 = arith.constant 0 : index
    %6 = vector.load %arg4[%c0_5, %c0_6] : memref<32x32xf32, #tpu.memory_space<vmem>>, vector<32x32xf32>
    tpu.vector_store %arg4[%c0_5, %c0_6], %5 {strides = array<i32>} : memref<32x32xf32, #tpu.memory_space<vmem>>, vector<32x32xf32>,
    return
  }
  func.func @transform_0(%arg0: i32) -> (i32, i32) {
    %c0_i32 = arith.constant 0 : i32
    %c0_i32_0 = arith.constant 0 : i32
    return %arg0, %c0_i32 : i32, i32
  }
  func.func @transform_1(%arg0: i32) -> (i32, i32) {
    %c0_i32 = arith.constant 0 : i32
    %c0_i32_0 = arith.constant 0 : i32
    %c0_i32_1 = arith.constant 0 : i32
    return %c0_i32, %c0_i32_0 : i32, i32
  }
  func.func @transform_2(%arg0: i32) -> (i32, i32) {
    %c0_i32 = arith.constant 0 : i32
    %c0_i32_0 = arith.constant 0 : i32
    %c0_i32_1 = arith.constant 0 : i32
    return %c0_i32, %c0_i32_0 : i32, i32
  }
  func.func @transform_3(%arg0: i32) -> (i32, i32) {
    %c0_i32 = arith.constant 0 : i32
    %c0_i32_0 = arith.constant 0 : i32
    return %arg0, %c0_i32 : i32, i32
  }
}

module attributes {stable_mosaic.version = 11 : i64} {
  func.func @_matmul_kernel(%arg0: i32, %arg1: memref<32x32xbf16, #tpu.memory_space<vmem>>, %arg2: memref<32x64xbf16, #tpu.memory_space<vmem>>, %arg3: memref<1x64xf32, #tpu.memory_space<vmem>>, %arg4: memref<32x64xf32, #tpu.memory_space<vmem>>) attributes {dimension_semantics = [#tpu.dimension_semantics<parallel>], iteration_bounds = array<i64: 1>, scalar_prefetch = 0 : i64, scratch_operands = 0 : i64, tpu.core_type = #tpu.core_type<tc>, window_params = [{transform_indices = @transform_0, window_bounds = array<i64: 32, 32>}, {pipeline_mode = #tpu.pipeline_mode<synchronous>, transform_indices = @transform_1, window_bounds = array<i64: 32, 64>}, {pipeline_mode = #tpu.pipeline_mode<synchronous>, transform_indices = @transform_2, window_bounds = array<i64: 1, 64>}, {transform_indices = @transform_3, window_bounds = array<i64: 32, 64>}]} {
    %c0 = arith.constant 0 : index
    %c0_0 = arith.constant 0 : index
    %0 = vector.load %arg1[%c0, %c0_0] : memref<32x32xbf16, #tpu.memory_space<vmem>>, vector<32x32xbf16>
    %c0_1 = arith.constant 0 : index
    %c0_2 = arith.constant 0 : index
    %1 = vector.load %arg2[%c0_1, %c0_2] : memref<32x64xbf16, #tpu.memory_space<vmem>>, vector<32x64xbf16>
    %cst = arith.constant dense<0.000000e+00> : vector<32x64xf32>
    %2 = tpu.matmul %0, %1, %cst {dimension_numbers = #tpu.dot_dimension_numbers<[1], [0], [0], [1], [0, 0, 1, 1], [], []>} : vector<32x32xbf16>, vector<32x64xbf16>, vector<32x64xf32> -> vector<32x64xf32>
    %c0_3 = arith.constant 0 : index
    %c0_4 = arith.constant 0 : index
    %3 = vector.load %arg3[%c0_3, %c0_4] : memref<1x64xf32, #tpu.memory_space<vmem>>, vector<1x64xf32>
    %4 = vector.broadcast %3 : vector<1x64xf32> to vector<32x64xf32>
    %5 = arith.addf %2, %4 : vector<32x64xf32>
    %c0_5 = arith.constant 0 : index
    %c0_6 = arith.constant 0 : index
    %6 = vector.load %arg4[%c0_5, %c0_6] : memref<32x64xf32, #tpu.memory_space<vmem>>, vector<32x64xf32>
    tpu.vector_store %arg4[%c0_5, %c0_6], %5 {strides = array<i32>} : memref<32x64xf32, #tpu.memory_space<vmem>>, vector<32x64xf32>,
    return
  }
  func.func @transform_0(%arg0: i32) -> (i32, i32) {
    %c0_i32 = arith.constant 0 : i32
    %c0_i32_0 = arith.constant 0 : i32
    return %arg0, %c0_i32 : i32, i32
  }
  func.func @transform_1(%arg0: i32) -> (i32, i32) {
    %c0_i32 = arith.constant 0 : i32
    %c0_i32_0 = arith.constant 0 : i32
    %c0_i32_1 = arith.constant 0 : i32
    return %c0_i32, %c0_i32_0 : i32, i32
  }
  func.func @transform_2(%arg0: i32) -> (i32, i32) {
    %c0_i32 = arith.constant 0 : i32
    %c0_i32_0 = arith.constant 0 : i32
    %c0_i32_1 = arith.constant 0 : i32
    return %c0_i32, %c0_i32_0 : i32, i32
  }
  func.func @transform_3(%arg0: i32) -> (i32, i32) {
    %c0_i32 = arith.constant 0 : i32
    %c0_i32_0 = arith.constant 0 : i32
    return %arg0, %c0_i32 : i32, i32
  }
}

module attributes {stable_mosaic.version = 11 : i64} {
  func.func @_matmul_kernel(%arg0: i32, %arg1: memref<2x32xbf16, #tpu.memory_space<vmem>>, %arg2: memref<32x32xbf16, #tpu.memory_space<vmem>>, %arg3: memref<1x32xf32, #tpu.memory_space<vmem>>, %arg4: memref<2x32xf32, #tpu.memory_space<vmem>>) attributes {dimension_semantics = [#tpu.dimension_semantics<parallel>], iteration_bounds = array<i64: 1>, scalar_prefetch = 0 : i64, scratch_operands = 0 : i64, tpu.core_type = #tpu.core_type<tc>, window_params = [{transform_indices = @transform_0, window_bounds = array<i64: 2, 32>}, {pipeline_mode = #tpu.pipeline_mode<synchronous>, transform_indices = @transform_1, window_bounds = array<i64: 32, 32>}, {pipeline_mode = #tpu.pipeline_mode<synchronous>, transform_indices = @transform_2, window_bounds = array<i64: 1, 32>}, {transform_indices = @transform_3, window_bounds = array<i64: 2, 32>}]} {
    %c0 = arith.constant 0 : index
    %c0_0 = arith.constant 0 : index
    %0 = vector.load %arg1[%c0, %c0_0] : memref<2x32xbf16, #tpu.memory_space<vmem>>, vector<2x32xbf16>
    %c0_1 = arith.constant 0 : index
    %c0_2 = arith.constant 0 : index
    %1 = vector.load %arg2[%c0_1, %c0_2] : memref<32x32xbf16, #tpu.memory_space<vmem>>, vector<32x32xbf16>
    %cst = arith.constant dense<0.000000e+00> : vector<2x32xf32>
    %2 = tpu.matmul %0, %1, %cst {dimension_numbers = #tpu.dot_dimension_numbers<[1], [0], [0], [1], [0, 0, 1, 1], [], []>} : vector<2x32xbf16>, vector<32x32xbf16>, vector<2x32xf32> -> vector<2x32xf32>
    %c0_3 = arith.constant 0 : index
    %c0_4 = arith.constant 0 : index
    %3 = vector.load %arg3[%c0_3, %c0_4] : memref<1x32xf32, #tpu.memory_space<vmem>>, vector<1x32xf32>
    %4 = vector.broadcast %3 : vector<1x32xf32> to vector<2x32xf32>
    %5 = arith.addf %2, %4 : vector<2x32xf32>
    %c0_5 = arith.constant 0 : index
    %c0_6 = arith.constant 0 : index
    %6 = vector.load %arg4[%c0_5, %c0_6] : memref<2x32xf32, #tpu.memory_space<vmem>>, vector<2x32xf32>
    tpu.vector_store %arg4[%c0_5, %c0_6], %5 {strides = array<i32>} : memref<2x32xf32, #tpu.memory_space<vmem>>, vector<2x32xf32>,
    return
  }
  func.func @transform_0(%arg0: i32) -> (i32, i32) {
    %c0_i32 = arith.constant 0 : i32
    %c0_i32_0 = arith.constant 0 : i32
    return %arg0, %c0_i32 : i32, i32
  }
  func.func @transform_1(%arg0: i32) -> (i32, i32) {
    %c0_i32 = arith.constant 0 : i32
    %c0_i32_0 = arith.constant 0 : i32
    %c0_i32_1 = arith.constant 0 : i32
    return %c0_i32, %c0_i32_0 : i32, i32
  }
  func.func @transform_2(%arg0: i32) -> (i32, i32) {
    %c0_i32 = arith.constant 0 : i32
    %c0_i32_0 = arith.constant 0 : i32
    %c0_i32_1 = arith.constant 0 : i32
    return %c0_i32, %c0_i32_0 : i32, i32
  }
  func.func @transform_3(%arg0: i32) -> (i32, i32) {
    %c0_i32 = arith.constant 0 : i32
    %c0_i32_0 = arith.constant 0 : i32
    return %arg0, %c0_i32 : i32, i32
  }
}

module attributes {stable_mosaic.version = 11 : i64} {
  func.func @_matmul_kernel(%arg0: i32, %arg1: memref<32x96xbf16, #tpu.memory_space<vmem>>, %arg2: memref<96x256xbf16, #tpu.memory_space<vmem>>, %arg3: memref<1x256xf32, #tpu.memory_space<vmem>>, %arg4: memref<32x256xf32, #tpu.memory_space<vmem>>) attributes {dimension_semantics = [#tpu.dimension_semantics<parallel>], iteration_bounds = array<i64: 1>, scalar_prefetch = 0 : i64, scratch_operands = 0 : i64, tpu.core_type = #tpu.core_type<tc>, window_params = [{transform_indices = @transform_0, window_bounds = array<i64: 32, 96>}, {pipeline_mode = #tpu.pipeline_mode<synchronous>, transform_indices = @transform_1, window_bounds = array<i64: 96, 256>}, {pipeline_mode = #tpu.pipeline_mode<synchronous>, transform_indices = @transform_2, window_bounds = array<i64: 1, 256>}, {transform_indices = @transform_3, window_bounds = array<i64: 32, 256>}]} {
    %c0 = arith.constant 0 : index
    %c0_0 = arith.constant 0 : index
    %0 = vector.load %arg1[%c0, %c0_0] : memref<32x96xbf16, #tpu.memory_space<vmem>>, vector<32x96xbf16>
    %c0_1 = arith.constant 0 : index
    %c0_2 = arith.constant 0 : index
    %1 = vector.load %arg2[%c0_1, %c0_2] : memref<96x256xbf16, #tpu.memory_space<vmem>>, vector<96x256xbf16>
    %cst = arith.constant dense<0.000000e+00> : vector<32x256xf32>
    %2 = tpu.matmul %0, %1, %cst {dimension_numbers = #tpu.dot_dimension_numbers<[1], [0], [0], [1], [0, 0, 1, 1], [], []>} : vector<32x96xbf16>, vector<96x256xbf16>, vector<32x256xf32> -> vector<32x256xf32>
    %c0_3 = arith.constant 0 : index
    %c0_4 = arith.constant 0 : index
    %3 = vector.load %arg3[%c0_3, %c0_4] : memref<1x256xf32, #tpu.memory_space<vmem>>, vector<1x256xf32>
    %4 = vector.broadcast %3 : vector<1x256xf32> to vector<32x256xf32>
    %5 = arith.addf %2, %4 : vector<32x256xf32>
    %c0_5 = arith.constant 0 : index
    %c0_6 = arith.constant 0 : index
    %6 = vector.load %arg4[%c0_5, %c0_6] : memref<32x256xf32, #tpu.memory_space<vmem>>, vector<32x256xf32>
    tpu.vector_store %arg4[%c0_5, %c0_6], %5 {strides = array<i32>} : memref<32x256xf32, #tpu.memory_space<vmem>>, vector<32x256xf32>,
    return
  }
  func.func @transform_0(%arg0: i32) -> (i32, i32) {
    %c0_i32 = arith.constant 0 : i32
    %c0_i32_0 = arith.constant 0 : i32
    return %arg0, %c0_i32 : i32, i32
  }
  func.func @transform_1(%arg0: i32) -> (i32, i32) {
    %c0_i32 = arith.constant 0 : i32
    %c0_i32_0 = arith.constant 0 : i32
    %c0_i32_1 = arith.constant 0 : i32
    return %c0_i32, %c0_i32_0 : i32, i32
  }
  func.func @transform_2(%arg0: i32) -> (i32, i32) {
    %c0_i32 = arith.constant 0 : i32
    %c0_i32_0 = arith.constant 0 : i32
    %c0_i32_1 = arith.constant 0 : i32
    return %c0_i32, %c0_i32_0 : i32, i32
  }
  func.func @transform_3(%arg0: i32) -> (i32, i32) {
    %c0_i32 = arith.constant 0 : i32
    %c0_i32_0 = arith.constant 0 : i32
    return %arg0, %c0_i32 : i32, i32
  }
}

module attributes {stable_mosaic.version = 11 : i64} {
  func.func @_matmul_kernel(%arg0: i32, %arg1: memref<32x128xbf16, #tpu.memory_space<vmem>>, %arg2: memref<128x256xbf16, #tpu.memory_space<vmem>>, %arg3: memref<1x256xf32, #tpu.memory_space<vmem>>, %arg4: memref<32x256xf32, #tpu.memory_space<vmem>>) attributes {dimension_semantics = [#tpu.dimension_semantics<parallel>], iteration_bounds = array<i64: 1>, scalar_prefetch = 0 : i64, scratch_operands = 0 : i64, tpu.core_type = #tpu.core_type<tc>, window_params = [{transform_indices = @transform_0, window_bounds = array<i64: 32, 128>}, {pipeline_mode = #tpu.pipeline_mode<synchronous>, transform_indices = @transform_1, window_bounds = array<i64: 128, 256>}, {pipeline_mode = #tpu.pipeline_mode<synchronous>, transform_indices = @transform_2, window_bounds = array<i64: 1, 256>}, {transform_indices = @transform_3, window_bounds = array<i64: 32, 256>}]} {
    %c0 = arith.constant 0 : index
    %c0_0 = arith.constant 0 : index
    %0 = vector.load %arg1[%c0, %c0_0] : memref<32x128xbf16, #tpu.memory_space<vmem>>, vector<32x128xbf16>
    %c0_1 = arith.constant 0 : index
    %c0_2 = arith.constant 0 : index
    %1 = vector.load %arg2[%c0_1, %c0_2] : memref<128x256xbf16, #tpu.memory_space<vmem>>, vector<128x256xbf16>
    %cst = arith.constant dense<0.000000e+00> : vector<32x256xf32>
    %2 = tpu.matmul %0, %1, %cst {dimension_numbers = #tpu.dot_dimension_numbers<[1], [0], [0], [1], [0, 0, 1, 1], [], []>} : vector<32x128xbf16>, vector<128x256xbf16>, vector<32x256xf32> -> vector<32x256xf32>
    %c0_3 = arith.constant 0 : index
    %c0_4 = arith.constant 0 : index
    %3 = vector.load %arg3[%c0_3, %c0_4] : memref<1x256xf32, #tpu.memory_space<vmem>>, vector<1x256xf32>
    %4 = vector.broadcast %3 : vector<1x256xf32> to vector<32x256xf32>
    %5 = arith.addf %2, %4 : vector<32x256xf32>
    %c0_5 = arith.constant 0 : index
    %c0_6 = arith.constant 0 : index
    %6 = vector.load %arg4[%c0_5, %c0_6] : memref<32x256xf32, #tpu.memory_space<vmem>>, vector<32x256xf32>
    tpu.vector_store %arg4[%c0_5, %c0_6], %5 {strides = array<i32>} : memref<32x256xf32, #tpu.memory_space<vmem>>, vector<32x256xf32>,
    return
  }
  func.func @transform_0(%arg0: i32) -> (i32, i32) {
    %c0_i32 = arith.constant 0 : i32
    %c0_i32_0 = arith.constant 0 : i32
    return %arg0, %c0_i32 : i32, i32
  }
  func.func @transform_1(%arg0: i32) -> (i32, i32) {
    %c0_i32 = arith.constant 0 : i32
    %c0_i32_0 = arith.constant 0 : i32
    %c0_i32_1 = arith.constant 0 : i32
    return %c0_i32, %c0_i32_0 : i32, i32
  }
  func.func @transform_2(%arg0: i32) -> (i32, i32) {
    %c0_i32 = arith.constant 0 : i32
    %c0_i32_0 = arith.constant 0 : i32
    %c0_i32_1 = arith.constant 0 : i32
    return %c0_i32, %c0_i32_0 : i32, i32
  }
  func.func @transform_3(%arg0: i32) -> (i32, i32) {
    %c0_i32 = arith.constant 0 : i32
    %c0_i32_0 = arith.constant 0 : i32
    return %arg0, %c0_i32 : i32, i32
  }
}

module attributes {stable_mosaic.version = 11 : i64} {
  func.func @_matmul_kernel(%arg0: i32, %arg1: memref<98x128xbf16, #tpu.memory_space<vmem>>, %arg2: memref<128x128xbf16, #tpu.memory_space<vmem>>, %arg3: memref<1x128xf32, #tpu.memory_space<vmem>>, %arg4: memref<98x128xf32, #tpu.memory_space<vmem>>) attributes {dimension_semantics = [#tpu.dimension_semantics<parallel>], iteration_bounds = array<i64: 1>, scalar_prefetch = 0 : i64, scratch_operands = 0 : i64, tpu.core_type = #tpu.core_type<tc>, window_params = [{transform_indices = @transform_0, window_bounds = array<i64: 98, 128>}, {pipeline_mode = #tpu.pipeline_mode<synchronous>, transform_indices = @transform_1, window_bounds = array<i64: 128, 128>}, {pipeline_mode = #tpu.pipeline_mode<synchronous>, transform_indices = @transform_2, window_bounds = array<i64: 1, 128>}, {transform_indices = @transform_3, window_bounds = array<i64: 98, 128>}]} {
    %c0 = arith.constant 0 : index
    %c0_0 = arith.constant 0 : index
    %0 = vector.load %arg1[%c0, %c0_0] : memref<98x128xbf16, #tpu.memory_space<vmem>>, vector<98x128xbf16>
    %c0_1 = arith.constant 0 : index
    %c0_2 = arith.constant 0 : index
    %1 = vector.load %arg2[%c0_1, %c0_2] : memref<128x128xbf16, #tpu.memory_space<vmem>>, vector<128x128xbf16>
    %cst = arith.constant dense<0.000000e+00> : vector<98x128xf32>
    %2 = tpu.matmul %0, %1, %cst {dimension_numbers = #tpu.dot_dimension_numbers<[1], [0], [0], [1], [0, 0, 1, 1], [], []>} : vector<98x128xbf16>, vector<128x128xbf16>, vector<98x128xf32> -> vector<98x128xf32>
    %c0_3 = arith.constant 0 : index
    %c0_4 = arith.constant 0 : index
    %3 = vector.load %arg3[%c0_3, %c0_4] : memref<1x128xf32, #tpu.memory_space<vmem>>, vector<1x128xf32>
    %4 = vector.broadcast %3 : vector<1x128xf32> to vector<98x128xf32>
    %5 = arith.addf %2, %4 : vector<98x128xf32>
    %c0_5 = arith.constant 0 : index
    %c0_6 = arith.constant 0 : index
    %6 = vector.load %arg4[%c0_5, %c0_6] : memref<98x128xf32, #tpu.memory_space<vmem>>, vector<98x128xf32>
    tpu.vector_store %arg4[%c0_5, %c0_6], %5 {strides = array<i32>} : memref<98x128xf32, #tpu.memory_space<vmem>>, vector<98x128xf32>,
    return
  }
  func.func @transform_0(%arg0: i32) -> (i32, i32) {
    %c0_i32 = arith.constant 0 : i32
    %c0_i32_0 = arith.constant 0 : i32
    return %arg0, %c0_i32 : i32, i32
  }
  func.func @transform_1(%arg0: i32) -> (i32, i32) {
    %c0_i32 = arith.constant 0 : i32
    %c0_i32_0 = arith.constant 0 : i32
    %c0_i32_1 = arith.constant 0 : i32
    return %c0_i32, %c0_i32_0 : i32, i32
  }
  func.func @transform_2(%arg0: i32) -> (i32, i32) {
    %c0_i32 = arith.constant 0 : i32
    %c0_i32_0 = arith.constant 0 : i32
    %c0_i32_1 = arith.constant 0 : i32
    return %c0_i32, %c0_i32_0 : i32, i32
  }
  func.func @transform_3(%arg0: i32) -> (i32, i32) {
    %c0_i32 = arith.constant 0 : i32
    %c0_i32_0 = arith.constant 0 : i32
    return %arg0, %c0_i32 : i32, i32
  }
}

module attributes {stable_mosaic.version = 11 : i64} {
  func.func @_matmul_kernel(%arg0: i32, %arg1: memref<392x64xbf16, #tpu.memory_space<vmem>>, %arg2: memref<64x64xbf16, #tpu.memory_space<vmem>>, %arg3: memref<1x64xf32, #tpu.memory_space<vmem>>, %arg4: memref<392x64xf32, #tpu.memory_space<vmem>>) attributes {dimension_semantics = [#tpu.dimension_semantics<parallel>], iteration_bounds = array<i64: 1>, scalar_prefetch = 0 : i64, scratch_operands = 0 : i64, tpu.core_type = #tpu.core_type<tc>, window_params = [{transform_indices = @transform_0, window_bounds = array<i64: 392, 64>}, {pipeline_mode = #tpu.pipeline_mode<synchronous>, transform_indices = @transform_1, window_bounds = array<i64: 64, 64>}, {pipeline_mode = #tpu.pipeline_mode<synchronous>, transform_indices = @transform_2, window_bounds = array<i64: 1, 64>}, {transform_indices = @transform_3, window_bounds = array<i64: 392, 64>}]} {
    %c0 = arith.constant 0 : index
    %c0_0 = arith.constant 0 : index
    %0 = vector.load %arg1[%c0, %c0_0] : memref<392x64xbf16, #tpu.memory_space<vmem>>, vector<392x64xbf16>
    %c0_1 = arith.constant 0 : index
    %c0_2 = arith.constant 0 : index
    %1 = vector.load %arg2[%c0_1, %c0_2] : memref<64x64xbf16, #tpu.memory_space<vmem>>, vector<64x64xbf16>
    %cst = arith.constant dense<0.000000e+00> : vector<392x64xf32>
    %2 = tpu.matmul %0, %1, %cst {dimension_numbers = #tpu.dot_dimension_numbers<[1], [0], [0], [1], [0, 0, 1, 1], [], []>} : vector<392x64xbf16>, vector<64x64xbf16>, vector<392x64xf32> -> vector<392x64xf32>
    %c0_3 = arith.constant 0 : index
    %c0_4 = arith.constant 0 : index
    %3 = vector.load %arg3[%c0_3, %c0_4] : memref<1x64xf32, #tpu.memory_space<vmem>>, vector<1x64xf32>
    %4 = vector.broadcast %3 : vector<1x64xf32> to vector<392x64xf32>
    %5 = arith.addf %2, %4 : vector<392x64xf32>
    %c0_5 = arith.constant 0 : index
    %c0_6 = arith.constant 0 : index
    %6 = vector.load %arg4[%c0_5, %c0_6] : memref<392x64xf32, #tpu.memory_space<vmem>>, vector<392x64xf32>
    tpu.vector_store %arg4[%c0_5, %c0_6], %5 {strides = array<i32>} : memref<392x64xf32, #tpu.memory_space<vmem>>, vector<392x64xf32>,
    return
  }
  func.func @transform_0(%arg0: i32) -> (i32, i32) {
    %c0_i32 = arith.constant 0 : i32
    %c0_i32_0 = arith.constant 0 : i32
    return %arg0, %c0_i32 : i32, i32
  }
  func.func @transform_1(%arg0: i32) -> (i32, i32) {
    %c0_i32 = arith.constant 0 : i32
    %c0_i32_0 = arith.constant 0 : i32
    %c0_i32_1 = arith.constant 0 : i32
    return %c0_i32, %c0_i32_0 : i32, i32
  }
  func.func @transform_2(%arg0: i32) -> (i32, i32) {
    %c0_i32 = arith.constant 0 : i32
    %c0_i32_0 = arith.constant 0 : i32
    %c0_i32_1 = arith.constant 0 : i32
    return %c0_i32, %c0_i32_0 : i32, i32
  }
  func.func @transform_3(%arg0: i32) -> (i32, i32) {
    %c0_i32 = arith.constant 0 : i32
    %c0_i32_0 = arith.constant 0 : i32
    return %arg0, %c0_i32 : i32, i32
  }
}

module attributes {stable_mosaic.version = 11 : i64} {
  func.func @_matmul_kernel(%arg0: i32, %arg1: memref<392x32xbf16, #tpu.memory_space<vmem>>, %arg2: memref<32x1xbf16, #tpu.memory_space<vmem>>, %arg3: memref<1x1xf32, #tpu.memory_space<vmem>>, %arg4: memref<392x1xf32, #tpu.memory_space<vmem>>) attributes {dimension_semantics = [#tpu.dimension_semantics<parallel>], iteration_bounds = array<i64: 4>, scalar_prefetch = 0 : i64, scratch_operands = 0 : i64, tpu.core_type = #tpu.core_type<tc>, window_params = [{transform_indices = @transform_0, window_bounds = array<i64: 392, 32>}, {pipeline_mode = #tpu.pipeline_mode<synchronous>, transform_indices = @transform_1, window_bounds = array<i64: 32, 1>}, {pipeline_mode = #tpu.pipeline_mode<synchronous>, transform_indices = @transform_2, window_bounds = array<i64: 1, 1>}, {transform_indices = @transform_3, window_bounds = array<i64: 392, 1>}]} {
    %c0 = arith.constant 0 : index
    %c0_0 = arith.constant 0 : index
    %0 = vector.load %arg1[%c0, %c0_0] : memref<392x32xbf16, #tpu.memory_space<vmem>>, vector<392x32xbf16>
    %c0_1 = arith.constant 0 : index
    %c0_2 = arith.constant 0 : index
    %1 = vector.load %arg2[%c0_1, %c0_2] : memref<32x1xbf16, #tpu.memory_space<vmem>>, vector<32x1xbf16>
    %cst = arith.constant dense<0.000000e+00> : vector<392x1xf32>
    %2 = tpu.matmul %0, %1, %cst {dimension_numbers = #tpu.dot_dimension_numbers<[1], [0], [0], [1], [0, 0, 1, 1], [], []>} : vector<392x32xbf16>, vector<32x1xbf16>, vector<392x1xf32> -> vector<392x1xf32>
    %c0_3 = arith.constant 0 : index
    %c0_4 = arith.constant 0 : index
    %3 = vector.load %arg3[%c0_3, %c0_4] : memref<1x1xf32, #tpu.memory_space<vmem>>, vector<1x1xf32>
    %4 = vector.broadcast %3 : vector<1x1xf32> to vector<392x1xf32>
    %5 = arith.addf %2, %4 : vector<392x1xf32>
    %c0_5 = arith.constant 0 : index
    %c0_6 = arith.constant 0 : index
    %6 = vector.load %arg4[%c0_5, %c0_6] : memref<392x1xf32, #tpu.memory_space<vmem>>, vector<392x1xf32>
    tpu.vector_store %arg4[%c0_5, %c0_6], %5 {strides = array<i32>} : memref<392x1xf32, #tpu.memory_space<vmem>>, vector<392x1xf32>,
    return
  }
  func.func @transform_0(%arg0: i32) -> (i32, i32) {
    %c0_i32 = arith.constant 0 : i32
    %c0_i32_0 = arith.constant 0 : i32
    return %arg0, %c0_i32 : i32, i32
  }
  func.func @transform_1(%arg0: i32) -> (i32, i32) {
    %c0_i32 = arith.constant 0 : i32
    %c0_i32_0 = arith.constant 0 : i32
    %c0_i32_1 = arith.constant 0 : i32
    return %c0_i32, %c0_i32_0 : i32, i32
  }
  func.func @transform_2(%arg0: i32) -> (i32, i32) {
    %c0_i32 = arith.constant 0 : i32
    %c0_i32_0 = arith.constant 0 : i32
    %c0_i32_1 = arith.constant 0 : i32
    return %c0_i32, %c0_i32_0 : i32, i32
  }
  func.func @transform_3(%arg0: i32) -> (i32, i32) {
    %c0_i32 = arith.constant 0 : i32
    %c0_i32_0 = arith.constant 0 : i32
    return %arg0, %c0_i32 : i32, i32
  }
}

</mosaic_0001>

<bundles_post_ra>
// kernel: unet3_forward.41
= control target key start
LH: loop header
LB: loop body
LE: loop exit
PB: predicated region body
PF: predicated region fallthrough
CT: control target
= control target key end

     0   :  { %s1033_s12 = smov 0   ;;  %s1315_s0 = inlined_call_operand.vmem [shape: bf16[1568,16], index: 0, kind: input, shape index: {}]   ;;  %s1316_s1 = inlined_call_operand.vmem [shape: bf16[16,8], index: 1, kind: input, shape index: {}]   ;;  %s1317_s2 = inlined_call_operand.vmem [shape: f32[1,8], index: 2, kind: input, shape index: {}]   ;;  %s1318_s3 = inlined_call_operand.vmem [shape: f32[1568,8], index: 3, kind: output, shape index: {}]  }
   0x1 LB: > { %s776_s13 = sadd.s32 4294967295, %s1009_s12   ;;  %p780_p0 = scmp.ge.s32.totalorder %s1009_s12, 1  ;;  %s1009_s12 = sphi %s1033_s12, %s13_s12  }
   0x2   : > { %p138_p1 = scmp.lt.s32.totalorder %s1009_s12, 5 }
   0x4   : > { %p139_p2 = pnand %p780_p0, %p138_p1 }
   0x5   : > { %v977_v0 = vld [vmem:[%s1316_s1] sm:$0xff] (!%p139_p2)   ;;  %v1011_v1 = vmov (!%p139_p2), 0.0   ;;  %s162_s16 = smul.u32 (!%p139_p2), 49, %s776_s13  ;;  %vm1012_vm0 = vmmov (!%p139_p2), 0   ;;  %vm362_vm1 = vcmask (!%p139_p2), 130048   ;;  %vm670_vm2 = vcmask (!%p139_p2), 64512  }
   0x6   : > { %142 = sbr.rel (%p139_p2) target bundleno = 330 (0x14a), region = 32  ;;  %863 = vmatprep.subr.bf16.mxu0 (!%p139_p2), %v1011_v1  ;;  %965 = vmatprep.subr.bf16.mxu1 (!%p139_p2), %v1011_v1  ;;  %v1158_v27 = vld [vmem:[%s1317_s2] ss:$0 sm:$0xff] (!%p139_p2) }
   0x7   : > { %864 = vmatpush3.bf16.msra.mxu0 (!%p139_p2), %v977_v0  ;;  %865 = vmatprep.mubr.msk.bf16.mxu0 (!%p139_p2), %vm1012_vm0, %v1011_v1  ;;  %p163_p3 = scmp.lt.s32.totalorder (!%p139_p2), %s162_s16, 195 }
   0x8   : > { %966 = vmatpush3.bf16.msra.mxu1 (!%p139_p2), %v977_v0  ;;  %917 = vmatprep.mubr.msk.bf16.mxu1 (!%p139_p2), %vm1012_vm0, %v1011_v1 }
   0xd   : > { %s1320_s16 = smov (!%p163_p3, %s162_s16), 195 }
   0xe   : > { %s781_s17 = sshll.u32 %s1320_s16, 2  ;;  %s782_s21 = sshll.u32 %s1320_s16, 3 }
   0xf   : > { %s1056_s20 = scalar_lea.vmem %s1315_s0, %s781_s17  ;;  %s1163_s26 = scalar_lea.vmem %s1318_s3, %s782_s21 }
  0x10   : > { %v978_v2 = vld [vmem:[%s1056_s20] sm:$0xff]   ;;  %v979_v3 = vld [vmem:[%s1056_s20 + $0x68] sm:$0xff]   ;;  %v981_v5 = vld [vmem:[%s1056_s20 + $0x70] sm:$0xff]  }
  0x11   : > { %866 = vmatmul.mubr.msk.bf16.vlgmr.msra.gmra.mrb[0].mxu0 %vm362_vm1, %v978_v2  ;;  %918 = vmatmul.mubr.msk.bf16.vlgmr.msra.gmra.mrb[0].mxu1 %vm362_vm1, %v979_v3  ;;  %v980_v4 = vld [vmem:[%s1056_s20 + $0x8] sm:$0xff]   ;;  %v982_v6 = vld [vmem:[%s1056_s20 + $0x10] sm:$0xff]   ;;  %v983_v7 = vld [vmem:[%s1056_s20 + $0x78] sm:$0xff]  }
  0x12   : > { %869 = vmatprep.mubr.msk.bf16.mxu0 %vm1012_vm0, %v1011_v1  ;;  %921 = vmatprep.mubr.msk.bf16.mxu1 %vm1012_vm0, %v1011_v1  ;;  %v984_v8 = vld [vmem:[%s1056_s20 + $0x18] sm:$0xff]   ;;  %v985_v9 = vld [vmem:[%s1056_s20 + $0x80] sm:$0xff]   ;;  %v987_v11 = vld [vmem:[%s1056_s20 + $0x88] sm:$0xff]  }
  0x13   : > { %v986_v10 = vld [vmem:[%s1056_s20 + $0x20] sm:$0xff]   ;;  %v988_v12 = vld [vmem:[%s1056_s20 + $0x28] sm:$0xff]   ;;  %v989_v13 = vld [vmem:[%s1056_s20 + $0x90] sm:$0xff]  }
  0x14   : > { %v990_v14 = vld [vmem:[%s1056_s20 + $0x30] sm:$0xff]   ;;  %v991_v15 = vld [vmem:[%s1056_s20 + $0x98] sm:$0xff]   ;;  %v993_v17 = vld [vmem:[%s1056_s20 + $0xa0] sm:$0xff]  }
  0x15   : > { %v992_v16 = vld [vmem:[%s1056_s20 + $0x38] sm:$0xff]   ;;  %v994_v18 = vld [vmem:[%s1056_s20 + $0x40] sm:$0xff]   ;;  %v995_v19 = vld [vmem:[%s1056_s20 + $0xa8] sm:$0xff]  }
  0x16   : > { %v996_v20 = vld [vmem:[%s1056_s20 + $0x48] sm:$0xff]   ;;  %v997_v21 = vld [vmem:[%s1056_s20 + $0xb0] sm:$0xff]   ;;  %v999_v23 = vld [vmem:[%s1056_s20 + $0xb8] sm:$0xff]  }
  0x17   : > { %v998_v22 = vld [vmem:[%s1056_s20 + $0x50] sm:$0xff]   ;;  %v1000_v24 = vld [vmem:[%s1056_s20 + $0x58] sm:$0xff]   ;;  %v1001_v25 = vld [vmem:[%s1056_s20 + $0xc0] ss:$0 sps:$4 sm:$0xff]  }
  0x18   : > { %v1002_v26 = vld [vmem:[%s1056_s20 + $0x60] sm:$0xff]  }
  0x19   : > { %870 = vmatmul.mubr.msk.bf16.gmra.mrb[4].mxu0 %vm362_vm1, %v980_v4  ;;  %922 = vmatmul.mubr.msk.bf16.gmra.mrb[4].mxu1 %vm362_vm1, %v981_v5 }
  0x1a   : > { %873 = vmatprep.mubr.msk.bf16.mxu0 %vm1012_vm0, %v1011_v1  ;;  %925 = vmatprep.mubr.msk.bf16.mxu1 %vm1012_vm0, %v1011_v1 }
  0x21   : > { %874 = vmatmul.mubr.msk.bf16.gmra.mrb[8].mxu0 %vm362_vm1, %v982_v6  ;;  %926 = vmatmul.mubr.msk.bf16.gmra.mrb[8].mxu1 %vm362_vm1, %v983_v7 }
  0x22   : > { %877 = vmatprep.mubr.msk.bf16.mxu0 %vm1012_vm0, %v1011_v1  ;;  %929 = vmatprep.mubr.msk.bf16.mxu1 %vm1012_vm0, %v1011_v1 }
  0x29   : > { %878 = vmatmul.mubr.msk.bf16.gmra.mrb[12].mxu0 %vm362_vm1, %v984_v8  ;;  %930 = vmatmul.mubr.msk.bf16.gmra.mrb[12].mxu1 %vm362_vm1, %v985_v9 }
  0x2a   : > { %881 = vmatprep.mubr.msk.bf16.mxu0 %vm1012_vm0, %v1011_v1  ;;  %933 = vmatprep.mubr.msk.bf16.mxu1 %vm1012_vm0, %v1011_v1 }
  0x31   : > { %882 = vmatmul.mubr.msk.bf16.gmra.mrb[16].mxu0 %vm362_vm1, %v986_v10  ;;  %934 = vmatmul.mubr.msk.bf16.gmra.mrb[16].mxu1 %vm362_vm1, %v987_v11 }
  0x32   : > { %885 = vmatprep.mubr.msk.bf16.mxu0 %vm1012_vm0, %v1011_v1  ;;  %937 = vmatprep.mubr.msk.bf16.mxu1 %vm1012_vm0, %v1011_v1 }
  0x39   : > { %886 = vmatmul.mubr.msk.bf16.gmra.mrb[20].mxu0 %vm362_vm1, %v988_v12  ;;  %938 = vmatmul.mubr.msk.bf16.gmra.mrb[20].mxu1 %vm362_vm1, %v989_v13 }
  0x3a   : > { %889 = vmatprep.mubr.msk.bf16.mxu0 %vm1012_vm0, %v1011_v1  ;;  %941 = vmatprep.mubr.msk.bf16.mxu1 %vm1012_vm0, %v1011_v1 }
  0x41   : > { %890 = vmatmul.mubr.msk.bf16.gmra.mrb[24].mxu0 %vm362_vm1, %v990_v14  ;;  %942 = vmatmul.mubr.msk.bf16.gmra.mrb[24].mxu1 %vm362_vm1, %v991_v15 }
  0x42   : > { %893 = vmatprep.mubr.msk.bf16.mxu0 %vm1012_vm0, %v1011_v1  ;;  %945 = vmatprep.mubr.msk.bf16.mxu1 %vm1012_vm0, %v1011_v1 }
  0x49   : > { %894 = vmatmul.mubr.msk.bf16.gmra.mrb[28].mxu0 %vm362_vm1, %v992_v16  ;;  %946 = vmatmul.mubr.msk.bf16.gmra.mrb[28].mxu1 %vm362_vm1, %v993_v17 }
  0x4a   : > { %897 = vmatprep.mubr.msk.bf16.mxu0 %vm1012_vm0, %v1011_v1  ;;  %949 = vmatprep.mubr.msk.bf16.mxu1 %vm1012_vm0, %v1011_v1 }
  0x51   : > { %898 = vmatmul.mubr.msk.bf16.gmra.mrb[32].mxu0 %vm362_vm1, %v994_v18  ;;  %950 = vmatmul.mubr.msk.bf16.gmra.mrb[32].mxu1 %vm362_vm1, %v995_v19 }
  0x52   : > { %901 = vmatprep.mubr.msk.bf16.mxu0 %vm1012_vm0, %v1011_v1  ;;  %953 = vmatprep.mubr.msk.bf16.mxu1 %vm1012_vm0, %v1011_v1 }
  0x59   : > { %902 = vmatmul.mubr.msk.bf16.gmra.mrb[36].mxu0 %vm362_vm1, %v996_v20  ;;  %954 = vmatmul.mubr.msk.bf16.gmra.mrb[36].mxu1 %vm362_vm1, %v997_v21 }
  0x5a   : > { %905 = vmatprep.mubr.msk.bf16.mxu0 %vm1012_vm0, %v1011_v1  ;;  %957 = vmatprep.mubr.msk.bf16.mxu1 %vm1012_vm0, %v1011_v1 }
  0x61   : > { %906 = vmatmul.mubr.msk.bf16.gmra.mrb[40].mxu0 %vm362_vm1, %v998_v22  ;;  %958 = vmatmul.mubr.msk.bf16.gmra.mrb[40].mxu1 %vm362_vm1, %v999_v23 }
  0x62   : > { %909 = vmatprep.mubr.msk.bf16.mxu0 %vm1012_vm0, %v1011_v1  ;;  %961 = vmatprep.mubr.msk.bf16.mxu1 %vm1012_vm0, %v1011_v1 }
  0x69   : > { %910 = vmatmul.mubr.msk.bf16.gmra.mrb[44].mxu0 %vm362_vm1, %v1000_v24  ;;  %962 = vmatmul.mubr.msk.bf16.gmra.mrb[44].mxu1 %vm362_vm1, %v1001_v25 }
  0x6a   : > { %913 = vmatprep.mubr.msk.bf16.mxu0 %vm1012_vm0, %v1011_v1 }
  0x71   : > { %914 = vmatmul.mubr.msk.bf16.gmra.mrb[48].mxu0 %vm362_vm1, %v1002_v26 }
  0xe4   : > { %v472_v28 = vpop.f32.mrb[0].mxu0  ;;  %v576_v31 = vpop.f32.mrb[0].mxu1 }
  0xe5   : > { %v473_v29 = vadd.f32 %v1158_v27, %v472_v28  ;;  %v867_v30 = vpop.f32.mrb[1].mxu0  ;;  %v577_v33 = vadd.f32 %v1158_v27, %v576_v31  ;;  %v919_v34 = vpop.f32.mrb[1].mxu1 }
  0xe6   : > { %v475_v32 = vpop.f32.mrb[2].mxu0  ;;  %v579_v37 = vpop.f32.mrb[2].mxu1 }
  0xe7   : > { %671 = vst.msk [vmem:[%s1163_s26] sm:$0xff] %vm670_vm2, %v473_v29  ;;  %v476_v35 = vadd.f32 %v1158_v27, %v475_v32  ;;  %v868_v36 = vpop.f32.mrb[3].mxu0  ;;  %697 = vst.msk [vmem:[%s1163_s26 + $0xd0] sm:$0xff] %vm670_vm2, %v577_v33  ;;  %v580_v38 = vadd.f32 %v1158_v27, %v579_v37  ;;  %v920_v39 = vpop.f32.mrb[3].mxu1 }
  0xe9   : > { %672 = vst.msk [vmem:[%s1163_s26 + $0x8] sm:$0xff] %vm670_vm2, %v476_v35  ;;  %698 = vst.msk [vmem:[%s1163_s26 + $0xd8] sm:$0xff] %vm670_vm2, %v580_v38 }
  0xec   : > { %v480_v40 = vpop.f32.mrb[4].mxu0  ;;  %v584_v43 = vpop.f32.mrb[4].mxu1 }
  0xed   : > { %v481_v41 = vadd.f32 %v1158_v27, %v480_v40  ;;  %v871_v42 = vpop.f32.mrb[5].mxu0  ;;  %v585_v45 = vadd.f32 %v1158_v27, %v584_v43  ;;  %v923_v46 = vpop.f32.mrb[5].mxu1 }
  0xee   : > { %v483_v44 = vpop.f32.mrb[6].mxu0  ;;  %v587_v49 = vpop.f32.mrb[6].mxu1 }
  0xef   : > { %673 = vst.msk [vmem:[%s1163_s26 + $0x10] sm:$0xff] %vm670_vm2, %v481_v41  ;;  %v484_v47 = vadd.f32 %v1158_v27, %v483_v44  ;;  %v872_v48 = vpop.f32.mrb[7].mxu0  ;;  %699 = vst.msk [vmem:[%s1163_s26 + $0xe0] sm:$0xff] %vm670_vm2, %v585_v45  ;;  %v588_v50 = vadd.f32 %v1158_v27, %v587_v49  ;;  %v924_v51 = vpop.f32.mrb[7].mxu1 }
  0xf1   : > { %674 = vst.msk [vmem:[%s1163_s26 + $0x18] sm:$0xff] %vm670_vm2, %v484_v47  ;;  %700 = vst.msk [vmem:[%s1163_s26 + $0xe8] sm:$0xff] %vm670_vm2, %v588_v50 }
  0xf4   : > { %v488_v52 = vpop.f32.mrb[8].mxu0  ;;  %v592_v55 = vpop.f32.mrb[8].mxu1 }
  0xf5   : > { %v489_v53 = vadd.f32 %v1158_v27, %v488_v52  ;;  %v875_v54 = vpop.f32.mrb[9].mxu0  ;;  %v593_v57 = vadd.f32 %v1158_v27, %v592_v55  ;;  %v927_v58 = vpop.f32.mrb[9].mxu1 }
  0xf6   : > { %v491_v56 = vpop.f32.mrb[10].mxu0  ;;  %v595_v61 = vpop.f32.mrb[10].mxu1 }
  0xf7   : > { %675 = vst.msk [vmem:[%s1163_s26 + $0x20] sm:$0xff] %vm670_vm2, %v489_v53  ;;  %v492_v59 = vadd.f32 %v1158_v27, %v491_v56  ;;  %v876_v60 = vpop.f32.mrb[11].mxu0  ;;  %701 = vst.msk [vmem:[%s1163_s26 + $0xf0] sm:$0xff] %vm670_vm2, %v593_v57  ;;  %v596_v62 = vadd.f32 %v1158_v27, %v595_v61  ;;  %v928_v63 = vpop.f32.mrb[11].mxu1 }
  0xf9   : > { %676 = vst.msk [vmem:[%s1163_s26 + $0x28] sm:$0xff] %vm670_vm2, %v492_v59  ;;  %702 = vst.msk [vmem:[%s1163_s26 + $0xf8] sm:$0xff] %vm670_vm2, %v596_v62 }
  0xfc   : > { %v496_v0 = vpop.f32.mrb[12].mxu0  ;;  %v600_v3 = vpop.f32.mrb[12].mxu1 }
  0xfd   : > { %v497_v1 = vadd.f32 %v1158_v27, %v496_v0  ;;  %v879_v2 = vpop.f32.mrb[13].mxu0  ;;  %v601_v5 = vadd.f32 %v1158_v27, %v600_v3  ;;  %v931_v6 = vpop.f32.mrb[13].mxu1 }
  0xfe   : > { %v499_v4 = vpop.f32.mrb[14].mxu0  ;;  %v603_v9 = vpop.f32.mrb[14].mxu1 }
  0xff   : > { %677 = vst.msk [vmem:[%s1163_s26 + $0x30] sm:$0xff] %vm670_vm2, %v497_v1  ;;  %v500_v7 = vadd.f32 %v1158_v27, %v499_v4  ;;  %v880_v8 = vpop.f32.mrb[15].mxu0  ;;  %703 = vst.msk [vmem:[%s1163_s26 + $0x100] sm:$0xff] %vm670_vm2, %v601_v5  ;;  %v604_v10 = vadd.f32 %v1158_v27, %v603_v9  ;;  %v932_v11 = vpop.f32.mrb[15].mxu1 }
 0x101   : > { %678 = vst.msk [vmem:[%s1163_s26 + $0x38] sm:$0xff] %vm670_vm2, %v500_v7  ;;  %704 = vst.msk [vmem:[%s1163_s26 + $0x108] sm:$0xff] %vm670_vm2, %v604_v10 }
 0x104   : > { %v504_v12 = vpop.f32.mrb[16].mxu0  ;;  %v608_v15 = vpop.f32.mrb[16].mxu1 }
 0x105   : > { %v505_v13 = vadd.f32 %v1158_v27, %v504_v12  ;;  %v883_v14 = vpop.f32.mrb[17].mxu0  ;;  %v609_v17 = vadd.f32 %v1158_v27, %v608_v15  ;;  %v935_v18 = vpop.f32.mrb[17].mxu1 }
 0x106   : > { %v507_v16 = vpop.f32.mrb[18].mxu0  ;;  %v611_v21 = vpop.f32.mrb[18].mxu1 }
 0x107   : > { %679 = vst.msk [vmem:[%s1163_s26 + $0x40] sm:$0xff] %vm670_vm2, %v505_v13  ;;  %v508_v19 = vadd.f32 %v1158_v27, %v507_v16  ;;  %v884_v20 = vpop.f32.mrb[19].mxu0  ;;  %705 = vst.msk [vmem:[%s1163_s26 + $0x110] sm:$0xff] %vm670_vm2, %v609_v17  ;;  %v612_v22 = vadd.f32 %v1158_v27, %v611_v21  ;;  %v936_v23 = vpop.f32.mrb[19].mxu1 }
 0x109   : > { %680 = vst.msk [vmem:[%s1163_s26 + $0x48] sm:$0xff] %vm670_vm2, %v508_v19  ;;  %706 = vst.msk [vmem:[%s1163_s26 + $0x118] sm:$0xff] %vm670_vm2, %v612_v22 }
 0x10c   : > { %v512_v24 = vpop.f32.mrb[20].mxu0  ;;  %v616_v28 = vpop.f32.mrb[20].mxu1 }
 0x10d   : > { %v513_v25 = vadd.f32 %v1158_v27, %v512_v24  ;;  %v887_v26 = vpop.f32.mrb[21].mxu0  ;;  %v617_v30 = vadd.f32 %v1158_v27, %v616_v28  ;;  %v939_v31 = vpop.f32.mrb[21].mxu1 }
 0x10e   : > { %v515_v29 = vpop.f32.mrb[22].mxu0  ;;  %v619_v34 = vpop.f32.mrb[22].mxu1 }
 0x10f   : > { %681 = vst.msk [vmem:[%s1163_s26 + $0x50] sm:$0xff] %vm670_vm2, %v513_v25  ;;  %v516_v32 = vadd.f32 %v1158_v27, %v515_v29  ;;  %v888_v33 = vpop.f32.mrb[23].mxu0  ;;  %707 = vst.msk [vmem:[%s1163_s26 + $0x120] sm:$0xff] %vm670_vm2, %v617_v30  ;;  %v620_v35 = vadd.f32 %v1158_v27, %v619_v34  ;;  %v940_v36 = vpop.f32.mrb[23].mxu1 }
 0x111   : > { %682 = vst.msk [vmem:[%s1163_s26 + $0x58] sm:$0xff] %vm670_vm2, %v516_v32  ;;  %708 = vst.msk [vmem:[%s1163_s26 + $0x128] sm:$0xff] %vm670_vm2, %v620_v35 }
 0x114   : > { %v520_v37 = vpop.f32.mrb[24].mxu0  ;;  %v624_v40 = vpop.f32.mrb[24].mxu1 }
 0x115   : > { %v521_v38 = vadd.f32 %v1158_v27, %v520_v37  ;;  %v891_v39 = vpop.f32.mrb[25].mxu0  ;;  %v625_v42 = vadd.f32 %v1158_v27, %v624_v40  ;;  %v943_v43 = vpop.f32.mrb[25].mxu1 }
 0x116   : > { %v523_v41 = vpop.f32.mrb[26].mxu0  ;;  %v627_v46 = vpop.f32.mrb[26].mxu1 }
 0x117   : > { %683 = vst.msk [vmem:[%s1163_s26 + $0x60] sm:$0xff] %vm670_vm2, %v521_v38  ;;  %v524_v44 = vadd.f32 %v1158_v27, %v523_v41  ;;  %v892_v45 = vpop.f32.mrb[27].mxu0  ;;  %709 = vst.msk [vmem:[%s1163_s26 + $0x130] sm:$0xff] %vm670_vm2, %v625_v42  ;;  %v628_v47 = vadd.f32 %v1158_v27, %v627_v46  ;;  %v944_v48 = vpop.f32.mrb[27].mxu1 }
 0x119   : > { %684 = vst.msk [vmem:[%s1163_s26 + $0x68] sm:$0xff] %vm670_vm2, %v524_v44  ;;  %710 = vst.msk [vmem:[%s1163_s26 + $0x138] sm:$0xff] %vm670_vm2, %v628_v47 }
 0x11c   : > { %v528_v49 = vpop.f32.mrb[28].mxu0  ;;  %v632_v52 = vpop.f32.mrb[28].mxu1 }
 0x11d   : > { %v529_v50 = vadd.f32 %v1158_v27, %v528_v49  ;;  %v895_v51 = vpop.f32.mrb[29].mxu0  ;;  %v633_v54 = vadd.f32 %v1158_v27, %v632_v52  ;;  %v947_v55 = vpop.f32.mrb[29].mxu1 }
 0x11e   : > { %v531_v53 = vpop.f32.mrb[30].mxu0  ;;  %v635_v58 = vpop.f32.mrb[30].mxu1 }
 0x11f   : > { %685 = vst.msk [vmem:[%s1163_s26 + $0x70] sm:$0xff] %vm670_vm2, %v529_v50  ;;  %v532_v56 = vadd.f32 %v1158_v27, %v531_v53  ;;  %v896_v57 = vpop.f32.mrb[31].mxu0  ;;  %711 = vst.msk [vmem:[%s1163_s26 + $0x140] sm:$0xff] %vm670_vm2, %v633_v54  ;;  %v636_v59 = vadd.f32 %v1158_v27, %v635_v58  ;;  %v948_v60 = vpop.f32.mrb[31].mxu1 }
 0x121   : > { %686 = vst.msk [vmem:[%s1163_s26 + $0x78] sm:$0xff] %vm670_vm2, %v532_v56  ;;  %712 = vst.msk [vmem:[%s1163_s26 + $0x148] sm:$0xff] %vm670_vm2, %v636_v59 }
 0x124   : > { %v536_v61 = vpop.f32.mrb[32].mxu0  ;;  %v640_v0 = vpop.f32.mrb[32].mxu1 }
 0x125   : > { %v537_v62 = vadd.f32 %v1158_v27, %v536_v61  ;;  %v899_v63 = vpop.f32.mrb[33].mxu0  ;;  %v641_v2 = vadd.f32 %v1158_v27, %v640_v0  ;;  %v951_v3 = vpop.f32.mrb[33].mxu1 }
 0x126   : > { %v539_v1 = vpop.f32.mrb[34].mxu0  ;;  %v643_v6 = vpop.f32.mrb[34].mxu1 }
 0x127   : > { %687 = vst.msk [vmem:[%s1163_s26 + $0x80] sm:$0xff] %vm670_vm2, %v537_v62  ;;  %v540_v4 = vadd.f32 %v1158_v27, %v539_v1  ;;  %v900_v5 = vpop.f32.mrb[35].mxu0  ;;  %713 = vst.msk [vmem:[%s1163_s26 + $0x150] sm:$0xff] %vm670_vm2, %v641_v2  ;;  %v644_v7 = vadd.f32 %v1158_v27, %v643_v6  ;;  %v952_v8 = vpop.f32.mrb[35].mxu1 }
 0x129   : > { %688 = vst.msk [vmem:[%s1163_s26 + $0x88] sm:$0xff] %vm670_vm2, %v540_v4  ;;  %714 = vst.msk [vmem:[%s1163_s26 + $0x158] sm:$0xff] %vm670_vm2, %v644_v7 }
 0x12c   : > { %v544_v9 = vpop.f32.mrb[36].mxu0  ;;  %v648_v12 = vpop.f32.mrb[36].mxu1 }
 0x12d   : > { %v545_v10 = vadd.f32 %v1158_v27, %v544_v9  ;;  %v903_v11 = vpop.f32.mrb[37].mxu0  ;;  %v649_v14 = vadd.f32 %v1158_v27, %v648_v12  ;;  %v955_v15 = vpop.f32.mrb[37].mxu1 }
 0x12e   : > { %v547_v13 = vpop.f32.mrb[38].mxu0  ;;  %v651_v18 = vpop.f32.mrb[38].mxu1 }
 0x12f   : > { %689 = vst.msk [vmem:[%s1163_s26 + $0x90] sm:$0xff] %vm670_vm2, %v545_v10  ;;  %v548_v16 = vadd.f32 %v1158_v27, %v547_v13  ;;  %v904_v17 = vpop.f32.mrb[39].mxu0  ;;  %715 = vst.msk [vmem:[%s1163_s26 + $0x160] sm:$0xff] %vm670_vm2, %v649_v14  ;;  %v652_v19 = vadd.f32 %v1158_v27, %v651_v18  ;;  %v956_v20 = vpop.f32.mrb[39].mxu1 }
 0x131   : > { %690 = vst.msk [vmem:[%s1163_s26 + $0x98] sm:$0xff] %vm670_vm2, %v548_v16  ;;  %716 = vst.msk [vmem:[%s1163_s26 + $0x168] sm:$0xff] %vm670_vm2, %v652_v19 }
 0x134   : > { %v552_v21 = vpop.f32.mrb[40].mxu0  ;;  %v656_v24 = vpop.f32.mrb[40].mxu1 }
 0x135   : > { %v553_v22 = vadd.f32 %v1158_v27, %v552_v21  ;;  %v907_v23 = vpop.f32.mrb[41].mxu0  ;;  %v657_v26 = vadd.f32 %v1158_v27, %v656_v24  ;;  %v959_v28 = vpop.f32.mrb[41].mxu1 }
 0x136   : > { %v555_v25 = vpop.f32.mrb[42].mxu0  ;;  %v659_v31 = vpop.f32.mrb[42].mxu1 }
 0x137   : > { %691 = vst.msk [vmem:[%s1163_s26 + $0xa0] sm:$0xff] %vm670_vm2, %v553_v22  ;;  %v556_v29 = vadd.f32 %v1158_v27, %v555_v25  ;;  %v908_v30 = vpop.f32.mrb[43].mxu0  ;;  %717 = vst.msk [vmem:[%s1163_s26 + $0x170] sm:$0xff] %vm670_vm2, %v657_v26  ;;  %v660_v32 = vadd.f32 %v1158_v27, %v659_v31  ;;  %v960_v33 = vpop.f32.mrb[43].mxu1 }
 0x139   : > { %692 = vst.msk [vmem:[%s1163_s26 + $0xa8] sm:$0xff] %vm670_vm2, %v556_v29  ;;  %718 = vst.msk [vmem:[%s1163_s26 + $0x178] sm:$0xff] %vm670_vm2, %v660_v32 }
 0x13c   : > { %v560_v34 = vpop.f32.mrb[44].mxu0  ;;  %v664_v37 = vpop.f32.mrb[44].mxu1 }
 0x13d   : > { %v561_v35 = vadd.f32 %v1158_v27, %v560_v34  ;;  %v911_v36 = vpop.f32.mrb[45].mxu0  ;;  %v665_v39 = vadd.f32 %v1158_v27, %v664_v37  ;;  %v963_v40 = vpop.f32.mrb[45].mxu1 }
 0x13e   : > { %v563_v38 = vpop.f32.mrb[46].mxu0  ;;  %v667_v43 = vpop.f32.mrb[46].mxu1 }
 0x13f   : > { %693 = vst.msk [vmem:[%s1163_s26 + $0xb0] sm:$0xff] %vm670_vm2, %v561_v35  ;;  %v564_v41 = vadd.f32 %v1158_v27, %v563_v38  ;;  %v912_v42 = vpop.f32.mrb[47].mxu0  ;;  %719 = vst.msk [vmem:[%s1163_s26 + $0x180] sm:$0xff] %vm670_vm2, %v665_v39  ;;  %v964_v44 = vpop.f32.mrb[47].mxu1 }
 0x141   : > { %694 = vst.msk [vmem:[%s1163_s26 + $0xb8] sm:$0xff] %vm670_vm2, %v564_v41 }
 0x144   : > { %v568_v45 = vpop.f32.mrb[48].mxu0 }
 0x145   : > { %v569_v46 = vadd.f32 %v1158_v27, %v568_v45  ;;  %v915_v47 = vpop.f32.mrb[49].mxu0 }
 0x146   : > { %v571_v48 = vpop.f32.mrb[50].mxu0 }
 0x147   : > { %695 = vst.msk [vmem:[%s1163_s26 + $0xc0] sm:$0xff] %vm670_vm2, %v569_v46  ;;  %v572_v49 = vadd.f32 %v1158_v27, %v571_v48  ;;  %v916_v50 = vpop.f32.mrb[51].mxu0 }
 0x149   : > { %696 = vst.msk [vmem:[%s1163_s26 + $0xc8] sm:$0xff] %vm670_vm2, %v572_v49 }
 0x14a PF: > { %s13_s12 = sadd.s32 1, %s1009_s12  }
 0x14b   : > { %p10_p4 = scmp.ge.s32.totalorder %s13_s12, 6  }
 0x14d   :  { %12 = sbr.rel (!%p10_p4) target bundleno = 1 (0x1), region = 62 }

// kernel: unet3_forward.40
= control target key start
LH: loop header
LB: loop body
LE: loop exit
PB: predicated region body
PF: predicated region fallthrough
CT: control target
= control target key end

     0   :  { %s1090_s12 = smov 0   ;;  %s1372_s0 = inlined_call_operand.vmem [shape: bf16[1568,9], index: 0, kind: input, shape index: {}]   ;;  %s1373_s1 = inlined_call_operand.vmem [shape: bf16[9,16], index: 1, kind: input, shape index: {}]   ;;  %s1374_s2 = inlined_call_operand.vmem [shape: f32[1,16], index: 2, kind: input, shape index: {}]   ;;  %s1375_s3 = inlined_call_operand.vmem [shape: f32[1568,16], index: 3, kind: output, shape index: {}]  }
   0x1 LB: > { %s831_s13 = sadd.s32 4294967295, %s1065_s12   ;;  %p835_p0 = scmp.ge.s32.totalorder %s1065_s12, 1  ;;  %s1065_s12 = sphi %s1090_s12, %s13_s12  }
   0x2   : > { %p138_p1 = scmp.lt.s32.totalorder %s1065_s12, 5 }
   0x4   : > { %p139_p2 = pnand %p835_p0, %p138_p1 }
   0x5   : > { %vm437_vm0 = vcmask (!%p139_p2), 1043456   ;;  %v1067_v0 = vmov (!%p139_p2), 0.0   ;;  %v1033_v1 = vld [vmem:[%s1373_s1] sm:$0x1f] (!%p139_p2)   ;;  %vm438_vm1 = vcmask (!%p139_p2), 1044480   ;;  %s162_s16 = smul.u32 (!%p139_p2), 49, %s831_s13 }
   0x6   : > { %142 = sbr.rel (%p139_p2) target bundleno = 332 (0x14c), region = 32  ;;  %918 = vmatprep.subr.bf16.mxu0 (!%p139_p2), %v1067_v0  ;;  %1020 = vmatprep.subr.bf16.mxu1 (!%p139_p2), %v1067_v0  ;;  %v1068_v2 = vmov (!%p139_p2), 65535   ;;  %vm1069_vm2 = vmmov (!%p139_p2), 0   ;;  %vm361_vm3 = vcmask (!%p139_p2), 72704   ;;  %v1214_v31 = vld [vmem:[%s1374_s2] ss:$0 sm:$0xff] (!%p139_p2) }
   0x7   : > { %v439_v3 = vsel (!%p139_p2), %vm437_vm0, 4294967295, %v1068_v2  ;;  %920 = vmatprep.mubr.msk.bf16.mxu0 (!%p139_p2), %vm1069_vm2, %v1067_v0  ;;  %972 = vmatprep.mubr.msk.bf16.mxu1 (!%p139_p2), %vm1069_vm2, %v1067_v0  ;;  %p163_p3 = scmp.lt.s32.totalorder (!%p139_p2), %s162_s16, 195  ;;  %vm725_vm4 = vcmask (!%p139_p2), 130048  }
   0x8   : > { %v440_v4 = vsel (!%p139_p2), %vm438_vm1, %v439_v3, 0 }
   0x9   : > { %v442_v5 = vand.u32 (!%p139_p2), %v1033_v1, %v440_v4 }
   0xb   : > { %919 = vmatpush3.bf16.msra.mxu0 (!%p139_p2), %v442_v5  ;;  %1021 = vmatpush3.bf16.msra.mxu1 (!%p139_p2), %v442_v5 }
   0xd   : > { %s1377_s16 = smov (!%p163_p3, %s162_s16), 195 }
   0xe   : > { %s836_s17 = sshll.u32 %s1377_s16, 2  ;;  %s837_s23 = sshll.u32 %s1377_s16, 3 }
   0xf   : > { %s1113_s20 = scalar_lea.vmem %s1372_s0, %s836_s17  ;;  %s1221_s26 = scalar_lea.vmem %s1375_s3, %s837_s23 }
  0x10   : > { %v1034_v6 = vld [vmem:[%s1113_s20] sm:$0xff]   ;;  %v1035_v7 = vld [vmem:[%s1113_s20 + $0x68] sm:$0xff]   ;;  %v1037_v9 = vld [vmem:[%s1113_s20 + $0x70] sm:$0xff]  }
  0x11   : > { %921 = vmatmul.mubr.msk.bf16.vlgmr.msra.gmra.mrb[0].mxu0 %vm361_vm3, %v1034_v6  ;;  %973 = vmatmul.mubr.msk.bf16.vlgmr.msra.gmra.mrb[0].mxu1 %vm361_vm3, %v1035_v7  ;;  %v1036_v8 = vld [vmem:[%s1113_s20 + $0x8] sm:$0xff]   ;;  %v1038_v10 = vld [vmem:[%s1113_s20 + $0x10] sm:$0xff]   ;;  %v1039_v11 = vld [vmem:[%s1113_s20 + $0x78] sm:$0xff]  }
  0x12   : > { %924 = vmatprep.mubr.msk.bf16.mxu0 %vm1069_vm2, %v1067_v0  ;;  %976 = vmatprep.mubr.msk.bf16.mxu1 %vm1069_vm2, %v1067_v0  ;;  %v1040_v12 = vld [vmem:[%s1113_s20 + $0x18] sm:$0xff]   ;;  %v1041_v13 = vld [vmem:[%s1113_s20 + $0x80] sm:$0xff]   ;;  %v1043_v15 = vld [vmem:[%s1113_s20 + $0x88] sm:$0xff]  }
  0x13   : > { %v1042_v14 = vld [vmem:[%s1113_s20 + $0x20] sm:$0xff]   ;;  %v1044_v16 = vld [vmem:[%s1113_s20 + $0x28] sm:$0xff]   ;;  %v1045_v17 = vld [vmem:[%s1113_s20 + $0x90] sm:$0xff]  }
  0x14   : > { %v1046_v18 = vld [vmem:[%s1113_s20 + $0x30] sm:$0xff]   ;;  %v1047_v19 = vld [vmem:[%s1113_s20 + $0x98] sm:$0xff]   ;;  %v1049_v21 = vld [vmem:[%s1113_s20 + $0xa0] sm:$0xff]  }
  0x15   : > { %v1048_v20 = vld [vmem:[%s1113_s20 + $0x38] sm:$0xff]   ;;  %v1050_v22 = vld [vmem:[%s1113_s20 + $0x40] sm:$0xff]   ;;  %v1051_v23 = vld [vmem:[%s1113_s20 + $0xa8] sm:$0xff]  }
  0x16   : > { %v1052_v24 = vld [vmem:[%s1113_s20 + $0x48] sm:$0xff]   ;;  %v1053_v25 = vld [vmem:[%s1113_s20 + $0xb0] sm:$0xff]   ;;  %v1055_v27 = vld [vmem:[%s1113_s20 + $0xb8] sm:$0xff]  }
  0x17   : > { %v1054_v26 = vld [vmem:[%s1113_s20 + $0x50] sm:$0xff]   ;;  %v1056_v28 = vld [vmem:[%s1113_s20 + $0x58] sm:$0xff]   ;;  %v1057_v29 = vld [vmem:[%s1113_s20 + $0xc0] ss:$0 sps:$4 sm:$0xff]  }
  0x18   : > { %v1058_v30 = vld [vmem:[%s1113_s20 + $0x60] sm:$0xff]  }
  0x19   : > { %925 = vmatmul.mubr.msk.bf16.gmra.mrb[4].mxu0 %vm361_vm3, %v1036_v8  ;;  %977 = vmatmul.mubr.msk.bf16.gmra.mrb[4].mxu1 %vm361_vm3, %v1037_v9 }
  0x1a   : > { %928 = vmatprep.mubr.msk.bf16.mxu0 %vm1069_vm2, %v1067_v0  ;;  %980 = vmatprep.mubr.msk.bf16.mxu1 %vm1069_vm2, %v1067_v0 }
  0x21   : > { %929 = vmatmul.mubr.msk.bf16.gmra.mrb[8].mxu0 %vm361_vm3, %v1038_v10  ;;  %981 = vmatmul.mubr.msk.bf16.gmra.mrb[8].mxu1 %vm361_vm3, %v1039_v11 }
  0x22   : > { %932 = vmatprep.mubr.msk.bf16.mxu0 %vm1069_vm2, %v1067_v0  ;;  %984 = vmatprep.mubr.msk.bf16.mxu1 %vm1069_vm2, %v1067_v0 }
  0x29   : > { %933 = vmatmul.mubr.msk.bf16.gmra.mrb[12].mxu0 %vm361_vm3, %v1040_v12  ;;  %985 = vmatmul.mubr.msk.bf16.gmra.mrb[12].mxu1 %vm361_vm3, %v1041_v13 }
  0x2a   : > { %936 = vmatprep.mubr.msk.bf16.mxu0 %vm1069_vm2, %v1067_v0  ;;  %988 = vmatprep.mubr.msk.bf16.mxu1 %vm1069_vm2, %v1067_v0 }
  0x31   : > { %937 = vmatmul.mubr.msk.bf16.gmra.mrb[16].mxu0 %vm361_vm3, %v1042_v14  ;;  %989 = vmatmul.mubr.msk.bf16.gmra.mrb[16].mxu1 %vm361_vm3, %v1043_v15 }
  0x32   : > { %940 = vmatprep.mubr.msk.bf16.mxu0 %vm1069_vm2, %v1067_v0  ;;  %992 = vmatprep.mubr.msk.bf16.mxu1 %vm1069_vm2, %v1067_v0 }
  0x39   : > { %941 = vmatmul.mubr.msk.bf16.gmra.mrb[20].mxu0 %vm361_vm3, %v1044_v16  ;;  %993 = vmatmul.mubr.msk.bf16.gmra.mrb[20].mxu1 %vm361_vm3, %v1045_v17 }
  0x3a   : > { %944 = vmatprep.mubr.msk.bf16.mxu0 %vm1069_vm2, %v1067_v0  ;;  %996 = vmatprep.mubr.msk.bf16.mxu1 %vm1069_vm2, %v1067_v0 }
  0x41   : > { %945 = vmatmul.mubr.msk.bf16.gmra.mrb[24].mxu0 %vm361_vm3, %v1046_v18  ;;  %997 = vmatmul.mubr.msk.bf16.gmra.mrb[24].mxu1 %vm361_vm3, %v1047_v19 }
  0x42   : > { %948 = vmatprep.mubr.msk.bf16.mxu0 %vm1069_vm2, %v1067_v0  ;;  %1000 = vmatprep.mubr.msk.bf16.mxu1 %vm1069_vm2, %v1067_v0 }
  0x49   : > { %949 = vmatmul.mubr.msk.bf16.gmra.mrb[28].mxu0 %vm361_vm3, %v1048_v20  ;;  %1001 = vmatmul.mubr.msk.bf16.gmra.mrb[28].mxu1 %vm361_vm3, %v1049_v21 }
  0x4a   : > { %952 = vmatprep.mubr.msk.bf16.mxu0 %vm1069_vm2, %v1067_v0  ;;  %1004 = vmatprep.mubr.msk.bf16.mxu1 %vm1069_vm2, %v1067_v0 }
  0x51   : > { %953 = vmatmul.mubr.msk.bf16.gmra.mrb[32].mxu0 %vm361_vm3, %v1050_v22  ;;  %1005 = vmatmul.mubr.msk.bf16.gmra.mrb[32].mxu1 %vm361_vm3, %v1051_v23 }
  0x52   : > { %956 = vmatprep.mubr.msk.bf16.mxu0 %vm1069_vm2, %v1067_v0  ;;  %1008 = vmatprep.mubr.msk.bf16.mxu1 %vm1069_vm2, %v1067_v0 }
  0x59   : > { %957 = vmatmul.mubr.msk.bf16.gmra.mrb[36].mxu0 %vm361_vm3, %v1052_v24  ;;  %1009 = vmatmul.mubr.msk.bf16.gmra.mrb[36].mxu1 %vm361_vm3, %v1053_v25 }
  0x5a   : > { %960 = vmatprep.mubr.msk.bf16.mxu0 %vm1069_vm2, %v1067_v0  ;;  %1012 = vmatprep.mubr.msk.bf16.mxu1 %vm1069_vm2, %v1067_v0 }
  0x61   : > { %961 = vmatmul.mubr.msk.bf16.gmra.mrb[40].mxu0 %vm361_vm3, %v1054_v26  ;;  %1013 = vmatmul.mubr.msk.bf16.gmra.mrb[40].mxu1 %vm361_vm3, %v1055_v27 }
  0x62   : > { %964 = vmatprep.mubr.msk.bf16.mxu0 %vm1069_vm2, %v1067_v0  ;;  %1016 = vmatprep.mubr.msk.bf16.mxu1 %vm1069_vm2, %v1067_v0 }
  0x69   : > { %965 = vmatmul.mubr.msk.bf16.gmra.mrb[44].mxu0 %vm361_vm3, %v1056_v28  ;;  %1017 = vmatmul.mubr.msk.bf16.gmra.mrb[44].mxu1 %vm361_vm3, %v1057_v29 }
  0x6a   : > { %968 = vmatprep.mubr.msk.bf16.mxu0 %vm1069_vm2, %v1067_v0 }
  0x71   : > { %969 = vmatmul.mubr.msk.bf16.gmra.mrb[48].mxu0 %vm361_vm3, %v1058_v30 }
  0xe4   : > { %v478_v32 = vpop.f32.mrb[0].mxu0  ;;  %v582_v35 = vpop.f32.mrb[0].mxu1 }
  0xe5   : > { %v479_v33 = vadd.f32 %v1214_v31, %v478_v32  ;;  %v922_v34 = vpop.f32.mrb[1].mxu0  ;;  %v583_v37 = vadd.f32 %v1214_v31, %v582_v35  ;;  %v974_v38 = vpop.f32.mrb[1].mxu1 }
  0xe6   : > { %v481_v36 = vpop.f32.mrb[2].mxu0  ;;  %v585_v42 = vpop.f32.mrb[2].mxu1 }
  0xe7   : > { %v676_v39 = vmax.f32 %v479_v33, 0.0  ;;  %v482_v40 = vadd.f32 %v1214_v31, %v481_v36  ;;  %v923_v41 = vpop.f32.mrb[3].mxu0  ;;  %v702_v43 = vmax.f32 %v583_v37, 0.0  ;;  %v586_v44 = vadd.f32 %v1214_v31, %v585_v42  ;;  %v975_v45 = vpop.f32.mrb[3].mxu1 }
  0xe9   : > { %726 = vst.msk [vmem:[%s1221_s26] sm:$0xff] %vm725_vm4, %v676_v39  ;;  %v677_v46 = vmax.f32 %v482_v40, 0.0  ;;  %752 = vst.msk [vmem:[%s1221_s26 + $0xd0] sm:$0xff] %vm725_vm4, %v702_v43  ;;  %v703_v47 = vmax.f32 %v586_v44, 0.0 }
  0xeb   : > { %727 = vst.msk [vmem:[%s1221_s26 + $0x8] sm:$0xff] %vm725_vm4, %v677_v46  ;;  %753 = vst.msk [vmem:[%s1221_s26 + $0xd8] sm:$0xff] %vm725_vm4, %v703_v47 }
  0xec   : > { %v486_v48 = vpop.f32.mrb[4].mxu0  ;;  %v590_v51 = vpop.f32.mrb[4].mxu1 }
  0xed   : > { %v487_v49 = vadd.f32 %v1214_v31, %v486_v48  ;;  %v926_v50 = vpop.f32.mrb[5].mxu0  ;;  %v591_v53 = vadd.f32 %v1214_v31, %v590_v51  ;;  %v978_v54 = vpop.f32.mrb[5].mxu1 }
  0xee   : > { %v489_v52 = vpop.f32.mrb[6].mxu0  ;;  %v593_v58 = vpop.f32.mrb[6].mxu1 }
  0xef   : > { %v678_v55 = vmax.f32 %v487_v49, 0.0  ;;  %v490_v56 = vadd.f32 %v1214_v31, %v489_v52  ;;  %v927_v57 = vpop.f32.mrb[7].mxu0  ;;  %v704_v59 = vmax.f32 %v591_v53, 0.0  ;;  %v594_v60 = vadd.f32 %v1214_v31, %v593_v58  ;;  %v979_v61 = vpop.f32.mrb[7].mxu1 }
  0xf1   : > { %728 = vst.msk [vmem:[%s1221_s26 + $0x10] sm:$0xff] %vm725_vm4, %v678_v55  ;;  %v679_v62 = vmax.f32 %v490_v56, 0.0  ;;  %754 = vst.msk [vmem:[%s1221_s26 + $0xe0] sm:$0xff] %vm725_vm4, %v704_v59  ;;  %v705_v63 = vmax.f32 %v594_v60, 0.0 }
  0xf3   : > { %729 = vst.msk [vmem:[%s1221_s26 + $0x18] sm:$0xff] %vm725_vm4, %v679_v62  ;;  %755 = vst.msk [vmem:[%s1221_s26 + $0xe8] sm:$0xff] %vm725_vm4, %v705_v63 }
  0xf4   : > { %v494_v0 = vpop.f32.mrb[8].mxu0  ;;  %v598_v3 = vpop.f32.mrb[8].mxu1 }
  0xf5   : > { %v495_v1 = vadd.f32 %v1214_v31, %v494_v0  ;;  %v930_v2 = vpop.f32.mrb[9].mxu0  ;;  %v599_v5 = vadd.f32 %v1214_v31, %v598_v3  ;;  %v982_v6 = vpop.f32.mrb[9].mxu1 }
  0xf6   : > { %v497_v4 = vpop.f32.mrb[10].mxu0  ;;  %v601_v10 = vpop.f32.mrb[10].mxu1 }
  0xf7   : > { %v680_v7 = vmax.f32 %v495_v1, 0.0  ;;  %v498_v8 = vadd.f32 %v1214_v31, %v497_v4  ;;  %v931_v9 = vpop.f32.mrb[11].mxu0  ;;  %v706_v11 = vmax.f32 %v599_v5, 0.0  ;;  %v602_v12 = vadd.f32 %v1214_v31, %v601_v10  ;;  %v983_v13 = vpop.f32.mrb[11].mxu1 }
  0xf9   : > { %730 = vst.msk [vmem:[%s1221_s26 + $0x20] sm:$0xff] %vm725_vm4, %v680_v7  ;;  %v681_v14 = vmax.f32 %v498_v8, 0.0  ;;  %756 = vst.msk [vmem:[%s1221_s26 + $0xf0] sm:$0xff] %vm725_vm4, %v706_v11  ;;  %v707_v15 = vmax.f32 %v602_v12, 0.0 }
  0xfb   : > { %731 = vst.msk [vmem:[%s1221_s26 + $0x28] sm:$0xff] %vm725_vm4, %v681_v14  ;;  %757 = vst.msk [vmem:[%s1221_s26 + $0xf8] sm:$0xff] %vm725_vm4, %v707_v15 }
  0xfc   : > { %v502_v16 = vpop.f32.mrb[12].mxu0  ;;  %v606_v19 = vpop.f32.mrb[12].mxu1 }
  0xfd   : > { %v503_v17 = vadd.f32 %v1214_v31, %v502_v16  ;;  %v934_v18 = vpop.f32.mrb[13].mxu0  ;;  %v607_v21 = vadd.f32 %v1214_v31, %v606_v19  ;;  %v986_v22 = vpop.f32.mrb[13].mxu1 }
  0xfe   : > { %v505_v20 = vpop.f32.mrb[14].mxu0  ;;  %v609_v26 = vpop.f32.mrb[14].mxu1 }
  0xff   : > { %v682_v23 = vmax.f32 %v503_v17, 0.0  ;;  %v506_v24 = vadd.f32 %v1214_v31, %v505_v20  ;;  %v935_v25 = vpop.f32.mrb[15].mxu0  ;;  %v708_v27 = vmax.f32 %v607_v21, 0.0  ;;  %v610_v28 = vadd.f32 %v1214_v31, %v609_v26  ;;  %v987_v29 = vpop.f32.mrb[15].mxu1 }
 0x101   : > { %732 = vst.msk [vmem:[%s1221_s26 + $0x30] sm:$0xff] %vm725_vm4, %v682_v23  ;;  %v683_v30 = vmax.f32 %v506_v24, 0.0  ;;  %758 = vst.msk [vmem:[%s1221_s26 + $0x100] sm:$0xff] %vm725_vm4, %v708_v27  ;;  %v709_v32 = vmax.f32 %v610_v28, 0.0 }
 0x103   : > { %733 = vst.msk [vmem:[%s1221_s26 + $0x38] sm:$0xff] %vm725_vm4, %v683_v30  ;;  %759 = vst.msk [vmem:[%s1221_s26 + $0x108] sm:$0xff] %vm725_vm4, %v709_v32 }
 0x104   : > { %v510_v33 = vpop.f32.mrb[16].mxu0  ;;  %v614_v36 = vpop.f32.mrb[16].mxu1 }
 0x105   : > { %v511_v34 = vadd.f32 %v1214_v31, %v510_v33  ;;  %v938_v35 = vpop.f32.mrb[17].mxu0  ;;  %v615_v38 = vadd.f32 %v1214_v31, %v614_v36  ;;  %v990_v39 = vpop.f32.mrb[17].mxu1 }
 0x106   : > { %v513_v37 = vpop.f32.mrb[18].mxu0  ;;  %v617_v43 = vpop.f32.mrb[18].mxu1 }
 0x107   : > { %v684_v40 = vmax.f32 %v511_v34, 0.0  ;;  %v514_v41 = vadd.f32 %v1214_v31, %v513_v37  ;;  %v939_v42 = vpop.f32.mrb[19].mxu0  ;;  %v710_v44 = vmax.f32 %v615_v38, 0.0  ;;  %v618_v45 = vadd.f32 %v1214_v31, %v617_v43  ;;  %v991_v46 = vpop.f32.mrb[19].mxu1 }
 0x109   : > { %734 = vst.msk [vmem:[%s1221_s26 + $0x40] sm:$0xff] %vm725_vm4, %v684_v40  ;;  %v685_v47 = vmax.f32 %v514_v41, 0.0  ;;  %760 = vst.msk [vmem:[%s1221_s26 + $0x110] sm:$0xff] %vm725_vm4, %v710_v44  ;;  %v711_v48 = vmax.f32 %v618_v45, 0.0 }
 0x10b   : > { %735 = vst.msk [vmem:[%s1221_s26 + $0x48] sm:$0xff] %vm725_vm4, %v685_v47  ;;  %761 = vst.msk [vmem:[%s1221_s26 + $0x118] sm:$0xff] %vm725_vm4, %v711_v48 }
 0x10c   : > { %v518_v49 = vpop.f32.mrb[20].mxu0  ;;  %v622_v52 = vpop.f32.mrb[20].mxu1 }
 0x10d   : > { %v519_v50 = vadd.f32 %v1214_v31, %v518_v49  ;;  %v942_v51 = vpop.f32.mrb[21].mxu0  ;;  %v623_v54 = vadd.f32 %v1214_v31, %v622_v52  ;;  %v994_v55 = vpop.f32.mrb[21].mxu1 }
 0x10e   : > { %v521_v53 = vpop.f32.mrb[22].mxu0  ;;  %v625_v59 = vpop.f32.mrb[22].mxu1 }
 0x10f   : > { %v686_v56 = vmax.f32 %v519_v50, 0.0  ;;  %v522_v57 = vadd.f32 %v1214_v31, %v521_v53  ;;  %v943_v58 = vpop.f32.mrb[23].mxu0  ;;  %v712_v60 = vmax.f32 %v623_v54, 0.0  ;;  %v626_v61 = vadd.f32 %v1214_v31, %v625_v59  ;;  %v995_v62 = vpop.f32.mrb[23].mxu1 }
 0x111   : > { %736 = vst.msk [vmem:[%s1221_s26 + $0x50] sm:$0xff] %vm725_vm4, %v686_v56  ;;  %v687_v63 = vmax.f32 %v522_v57, 0.0  ;;  %762 = vst.msk [vmem:[%s1221_s26 + $0x120] sm:$0xff] %vm725_vm4, %v712_v60  ;;  %v713_v0 = vmax.f32 %v626_v61, 0.0 }
 0x113   : > { %737 = vst.msk [vmem:[%s1221_s26 + $0x58] sm:$0xff] %vm725_vm4, %v687_v63  ;;  %763 = vst.msk [vmem:[%s1221_s26 + $0x128] sm:$0xff] %vm725_vm4, %v713_v0 }
 0x114   : > { %v526_v1 = vpop.f32.mrb[24].mxu0  ;;  %v630_v4 = vpop.f32.mrb[24].mxu1 }
 0x115   : > { %v527_v2 = vadd.f32 %v1214_v31, %v526_v1  ;;  %v946_v3 = vpop.f32.mrb[25].mxu0  ;;  %v631_v6 = vadd.f32 %v1214_v31, %v630_v4  ;;  %v998_v7 = vpop.f32.mrb[25].mxu1 }
 0x116   : > { %v529_v5 = vpop.f32.mrb[26].mxu0  ;;  %v633_v11 = vpop.f32.mrb[26].mxu1 }
 0x117   : > { %v688_v8 = vmax.f32 %v527_v2, 0.0  ;;  %v530_v9 = vadd.f32 %v1214_v31, %v529_v5  ;;  %v947_v10 = vpop.f32.mrb[27].mxu0  ;;  %v714_v12 = vmax.f32 %v631_v6, 0.0  ;;  %v634_v13 = vadd.f32 %v1214_v31, %v633_v11  ;;  %v999_v14 = vpop.f32.mrb[27].mxu1 }
 0x119   : > { %738 = vst.msk [vmem:[%s1221_s26 + $0x60] sm:$0xff] %vm725_vm4, %v688_v8  ;;  %v689_v15 = vmax.f32 %v530_v9, 0.0  ;;  %764 = vst.msk [vmem:[%s1221_s26 + $0x130] sm:$0xff] %vm725_vm4, %v714_v12  ;;  %v715_v16 = vmax.f32 %v634_v13, 0.0 }
 0x11b   : > { %739 = vst.msk [vmem:[%s1221_s26 + $0x68] sm:$0xff] %vm725_vm4, %v689_v15  ;;  %765 = vst.msk [vmem:[%s1221_s26 + $0x138] sm:$0xff] %vm725_vm4, %v715_v16 }
 0x11c   : > { %v534_v17 = vpop.f32.mrb[28].mxu0  ;;  %v638_v20 = vpop.f32.mrb[28].mxu1 }
 0x11d   : > { %v535_v18 = vadd.f32 %v1214_v31, %v534_v17  ;;  %v950_v19 = vpop.f32.mrb[29].mxu0  ;;  %v639_v22 = vadd.f32 %v1214_v31, %v638_v20  ;;  %v1002_v23 = vpop.f32.mrb[29].mxu1 }
 0x11e   : > { %v537_v21 = vpop.f32.mrb[30].mxu0  ;;  %v641_v27 = vpop.f32.mrb[30].mxu1 }
 0x11f   : > { %v690_v24 = vmax.f32 %v535_v18, 0.0  ;;  %v538_v25 = vadd.f32 %v1214_v31, %v537_v21  ;;  %v951_v26 = vpop.f32.mrb[31].mxu0  ;;  %v716_v28 = vmax.f32 %v639_v22, 0.0  ;;  %v642_v29 = vadd.f32 %v1214_v31, %v641_v27  ;;  %v1003_v30 = vpop.f32.mrb[31].mxu1 }
 0x121   : > { %740 = vst.msk [vmem:[%s1221_s26 + $0x70] sm:$0xff] %vm725_vm4, %v690_v24  ;;  %v691_v32 = vmax.f32 %v538_v25, 0.0  ;;  %766 = vst.msk [vmem:[%s1221_s26 + $0x140] sm:$0xff] %vm725_vm4, %v716_v28  ;;  %v717_v33 = vmax.f32 %v642_v29, 0.0 }
 0x123   : > { %741 = vst.msk [vmem:[%s1221_s26 + $0x78] sm:$0xff] %vm725_vm4, %v691_v32  ;;  %767 = vst.msk [vmem:[%s1221_s26 + $0x148] sm:$0xff] %vm725_vm4, %v717_v33 }
 0x124   : > { %v542_v34 = vpop.f32.mrb[32].mxu0  ;;  %v646_v37 = vpop.f32.mrb[32].mxu1 }
 0x125   : > { %v543_v35 = vadd.f32 %v1214_v31, %v542_v34  ;;  %v954_v36 = vpop.f32.mrb[33].mxu0  ;;  %v647_v39 = vadd.f32 %v1214_v31, %v646_v37  ;;  %v1006_v40 = vpop.f32.mrb[33].mxu1 }
 0x126   : > { %v545_v38 = vpop.f32.mrb[34].mxu0  ;;  %v649_v44 = vpop.f32.mrb[34].mxu1 }
 0x127   : > { %v692_v41 = vmax.f32 %v543_v35, 0.0  ;;  %v546_v42 = vadd.f32 %v1214_v31, %v545_v38  ;;  %v955_v43 = vpop.f32.mrb[35].mxu0  ;;  %v718_v45 = vmax.f32 %v647_v39, 0.0  ;;  %v650_v46 = vadd.f32 %v1214_v31, %v649_v44  ;;  %v1007_v47 = vpop.f32.mrb[35].mxu1 }
 0x129   : > { %742 = vst.msk [vmem:[%s1221_s26 + $0x80] sm:$0xff] %vm725_vm4, %v692_v41  ;;  %v693_v48 = vmax.f32 %v546_v42, 0.0  ;;  %768 = vst.msk [vmem:[%s1221_s26 + $0x150] sm:$0xff] %vm725_vm4, %v718_v45  ;;  %v719_v49 = vmax.f32 %v650_v46, 0.0 }
 0x12b   : > { %743 = vst.msk [vmem:[%s1221_s26 + $0x88] sm:$0xff] %vm725_vm4, %v693_v48  ;;  %769 = vst.msk [vmem:[%s1221_s26 + $0x158] sm:$0xff] %vm725_vm4, %v719_v49 }
 0x12c   : > { %v550_v50 = vpop.f32.mrb[36].mxu0  ;;  %v654_v53 = vpop.f32.mrb[36].mxu1 }
 0x12d   : > { %v551_v51 = vadd.f32 %v1214_v31, %v550_v50  ;;  %v958_v52 = vpop.f32.mrb[37].mxu0  ;;  %v655_v55 = vadd.f32 %v1214_v31, %v654_v53  ;;  %v1010_v56 = vpop.f32.mrb[37].mxu1 }
 0x12e   : > { %v553_v54 = vpop.f32.mrb[38].mxu0  ;;  %v657_v60 = vpop.f32.mrb[38].mxu1 }
 0x12f   : > { %v694_v57 = vmax.f32 %v551_v51, 0.0  ;;  %v554_v58 = vadd.f32 %v1214_v31, %v553_v54  ;;  %v959_v59 = vpop.f32.mrb[39].mxu0  ;;  %v720_v61 = vmax.f32 %v655_v55, 0.0  ;;  %v658_v62 = vadd.f32 %v1214_v31, %v657_v60  ;;  %v1011_v63 = vpop.f32.mrb[39].mxu1 }
 0x131   : > { %744 = vst.msk [vmem:[%s1221_s26 + $0x90] sm:$0xff] %vm725_vm4, %v694_v57  ;;  %v695_v0 = vmax.f32 %v554_v58, 0.0  ;;  %770 = vst.msk [vmem:[%s1221_s26 + $0x160] sm:$0xff] %vm725_vm4, %v720_v61  ;;  %v721_v1 = vmax.f32 %v658_v62, 0.0 }
 0x133   : > { %745 = vst.msk [vmem:[%s1221_s26 + $0x98] sm:$0xff] %vm725_vm4, %v695_v0  ;;  %771 = vst.msk [vmem:[%s1221_s26 + $0x168] sm:$0xff] %vm725_vm4, %v721_v1 }
 0x134   : > { %v558_v2 = vpop.f32.mrb[40].mxu0  ;;  %v662_v5 = vpop.f32.mrb[40].mxu1 }
 0x135   : > { %v559_v3 = vadd.f32 %v1214_v31, %v558_v2  ;;  %v962_v4 = vpop.f32.mrb[41].mxu0  ;;  %v663_v7 = vadd.f32 %v1214_v31, %v662_v5  ;;  %v1014_v8 = vpop.f32.mrb[41].mxu1 }
 0x136   : > { %v561_v6 = vpop.f32.mrb[42].mxu0  ;;  %v665_v12 = vpop.f32.mrb[42].mxu1 }
 0x137   : > { %v696_v9 = vmax.f32 %v559_v3, 0.0  ;;  %v562_v10 = vadd.f32 %v1214_v31, %v561_v6  ;;  %v963_v11 = vpop.f32.mrb[43].mxu0  ;;  %v722_v13 = vmax.f32 %v663_v7, 0.0  ;;  %v666_v14 = vadd.f32 %v1214_v31, %v665_v12  ;;  %v1015_v15 = vpop.f32.mrb[43].mxu1 }
 0x139   : > { %746 = vst.msk [vmem:[%s1221_s26 + $0xa0] sm:$0xff] %vm725_vm4, %v696_v9  ;;  %v697_v16 = vmax.f32 %v562_v10, 0.0  ;;  %772 = vst.msk [vmem:[%s1221_s26 + $0x170] sm:$0xff] %vm725_vm4, %v722_v13  ;;  %v723_v17 = vmax.f32 %v666_v14, 0.0 }
 0x13b   : > { %747 = vst.msk [vmem:[%s1221_s26 + $0xa8] sm:$0xff] %vm725_vm4, %v697_v16  ;;  %773 = vst.msk [vmem:[%s1221_s26 + $0x178] sm:$0xff] %vm725_vm4, %v723_v17 }
 0x13c   : > { %v566_v18 = vpop.f32.mrb[44].mxu0  ;;  %v670_v21 = vpop.f32.mrb[44].mxu1 }
 0x13d   : > { %v567_v19 = vadd.f32 %v1214_v31, %v566_v18  ;;  %v966_v20 = vpop.f32.mrb[45].mxu0  ;;  %v671_v23 = vadd.f32 %v1214_v31, %v670_v21  ;;  %v1018_v24 = vpop.f32.mrb[45].mxu1 }
 0x13e   : > { %v569_v22 = vpop.f32.mrb[46].mxu0  ;;  %v673_v28 = vpop.f32.mrb[46].mxu1 }
 0x13f   : > { %v698_v25 = vmax.f32 %v567_v19, 0.0  ;;  %v570_v26 = vadd.f32 %v1214_v31, %v569_v22  ;;  %v967_v27 = vpop.f32.mrb[47].mxu0  ;;  %v724_v29 = vmax.f32 %v671_v23, 0.0  ;;  %v1019_v30 = vpop.f32.mrb[47].mxu1 }
 0x141   : > { %748 = vst.msk [vmem:[%s1221_s26 + $0xb0] sm:$0xff] %vm725_vm4, %v698_v25  ;;  %v699_v32 = vmax.f32 %v570_v26, 0.0  ;;  %774 = vst.msk [vmem:[%s1221_s26 + $0x180] sm:$0xff] %vm725_vm4, %v724_v29 }
 0x143   : > { %749 = vst.msk [vmem:[%s1221_s26 + $0xb8] sm:$0xff] %vm725_vm4, %v699_v32 }
 0x144   : > { %v574_v33 = vpop.f32.mrb[48].mxu0 }
 0x145   : > { %v575_v34 = vadd.f32 %v1214_v31, %v574_v33  ;;  %v970_v35 = vpop.f32.mrb[49].mxu0 }
 0x146   : > { %v577_v36 = vpop.f32.mrb[50].mxu0 }
 0x147   : > { %v700_v37 = vmax.f32 %v575_v34, 0.0  ;;  %v578_v38 = vadd.f32 %v1214_v31, %v577_v36  ;;  %v971_v39 = vpop.f32.mrb[51].mxu0 }
 0x149   : > { %750 = vst.msk [vmem:[%s1221_s26 + $0xc0] sm:$0xff] %vm725_vm4, %v700_v37  ;;  %v701_v40 = vmax.f32 %v578_v38, 0.0 }
 0x14b   : > { %751 = vst.msk [vmem:[%s1221_s26 + $0xc8] sm:$0xff] %vm725_vm4, %v701_v40 }
 0x14c PF: > { %s13_s12 = sadd.s32 1, %s1065_s12  }
 0x14d   : > { %p10_p4 = scmp.ge.s32.totalorder %s13_s12, 6  }
 0x14f   :  { %12 = sbr.rel (!%p10_p4) target bundleno = 1 (0x1), region = 62 }

// kernel: unet3_forward.42
= control target key start
LH: loop header
LB: loop body
LE: loop exit
PB: predicated region body
PF: predicated region fallthrough
CT: control target
= control target key end

     0   :  { %s1093_s12 = smov 0   ;;  %s1395_s0 = inlined_call_operand.vmem [shape: bf16[1568,72], index: 0, kind: input, shape index: {}]   ;;  %s1396_s1 = inlined_call_operand.vmem [shape: bf16[72,8], index: 1, kind: input, shape index: {}]   ;;  %s1397_s2 = inlined_call_operand.vmem [shape: f32[1,8], index: 2, kind: input, shape index: {}]   ;;  %s1398_s3 = inlined_call_operand.vmem [shape: f32[1568,8], index: 3, kind: output, shape index: {}]  }
   0x1 LB: > { %s808_s13 = sadd.s32 4294967295, %s1069_s12   ;;  %p812_p0 = scmp.ge.s32.totalorder %s1069_s12, 1  ;;  %s1069_s12 = sphi %s1093_s12, %s13_s12  }
   0x2   : > { %p138_p1 = scmp.lt.s32.totalorder %s1069_s12, 5 }
   0x4   : > { %p139_p2 = pnand %p812_p0, %p138_p1 }
   0x5   : > { %v1033_v0 = vld [vmem:[%s1396_s1] sm:$0xff] (!%p139_p2)   ;;  %v1071_v1 = vmov (!%p139_p2), 0.0   ;;  %v1034_v2 = vld [vmem:[%s1396_s1 + $0x8] sm:$0xff] (!%p139_p2)   ;;  %s162_s18 = smul.u32 (!%p139_p2), 49, %s808_s13  ;;  %vm1072_vm0 = vmmov (!%p139_p2), 0   ;;  %v1035_v3 = vld [vmem:[%s1396_s1 + $0x10] sm:$0xff] (!%p139_p2)  }
   0x6   : > { %142 = sbr.rel (%p139_p2) target bundleno = 339 (0x153), region = 32  ;;  %903 = vmatprep.subr.bf16.mxu0 (!%p139_p2), %v1071_v1  ;;  %1013 = vmatprep.subr.bf16.mxu1 (!%p139_p2), %v1071_v1  ;;  %v1036_v4 = vld [vmem:[%s1396_s1 + $0x18] sm:$0xff] (!%p139_p2)   ;;  %v1037_v5 = vld [vmem:[%s1396_s1 + $0x20] ss:$0 sps:$4 sm:$0xff] (!%p139_p2)   ;;  %vm466_vm1 = vcmask (!%p139_p2), 1043456   ;;  %vm390_vm2 = vcmask (!%p139_p2), 588800  }
   0x7   : > { %904 = vmatpush3.bf16.msra.mxu0 (!%p139_p2), %v1033_v0  ;;  %1018 = vmatpush3.bf16.msra.mxu1 (!%p139_p2), %v1033_v0  ;;  %p163_p3 = scmp.lt.s32.totalorder (!%p139_p2), %s162_s18, 195  ;;  %v468_v6 = vsel (!%p139_p2), %vm466_vm1, %v1037_v5, 0  ;;  %v1238_v32 = vld [vmem:[%s1397_s2] ss:$0 sm:$0xff] (!%p139_p2)  ;;  %vm702_vm3 = vcmask (!%p139_p2), 64512  }
   0x8   : > { %905 = vmatprep.subr.bf16.mxu0 (!%p139_p2), %v1071_v1  ;;  %1014 = vmatprep.subr.bf16.mxu1 (!%p139_p2), %v1071_v1 }
   0x9   : > { %913 = vmatprep.mubr.msk.bf16.mxu0 (!%p139_p2), %vm1072_vm0, %v1071_v1  ;;  %965 = vmatprep.mubr.msk.bf16.mxu1 (!%p139_p2), %vm1072_vm0, %v1071_v1 }
   0xb   : > { %906 = vmatpush3.bf16.msra.mxu0 (!%p139_p2), %v1034_v2  ;;  %1019 = vmatpush3.bf16.msra.mxu1 (!%p139_p2), %v1034_v2 }
   0xc   : > { %907 = vmatprep.subr.bf16.mxu0 (!%p139_p2), %v1071_v1  ;;  %1015 = vmatprep.subr.bf16.mxu1 (!%p139_p2), %v1071_v1 }
   0xd   : > { %s1400_s18 = smov (!%p163_p3, %s162_s18), 195 }
   0xe   : > { %s813_s21 = sshll.u32 %s1400_s18, 2  ;;  %s814_s29 = sshll.u32 %s1400_s18, 3 }
   0xf   : > { %908 = vmatpush3.bf16.msra.mxu0 %v1035_v3  ;;  %1020 = vmatpush3.bf16.msra.mxu1 %v1035_v3  ;;  %s1129_s26 = scalar_lea.vmem %s1395_s0, %s813_s21  ;;  %s1243_s7 = scalar_lea.vmem %s1398_s3, %s814_s29 }
  0x10   : > { %909 = vmatprep.subr.bf16.mxu0 %v1071_v1  ;;  %1016 = vmatprep.subr.bf16.mxu1 %v1071_v1  ;;  %v1038_v7 = vld [vmem:[%s1129_s26] sm:$0xff]   ;;  %v1039_v8 = vld [vmem:[%s1129_s26 + $0x68] sm:$0xff]   ;;  %v1041_v10 = vld [vmem:[%s1129_s26 + $0x70] sm:$0xff]  }
  0x11   : > { %v1040_v9 = vld [vmem:[%s1129_s26 + $0x8] sm:$0xff]   ;;  %v1042_v11 = vld [vmem:[%s1129_s26 + $0x10] sm:$0xff]   ;;  %v1043_v12 = vld [vmem:[%s1129_s26 + $0x78] sm:$0xff]  }
  0x12   : > { %v1044_v13 = vld [vmem:[%s1129_s26 + $0x18] sm:$0xff]   ;;  %v1045_v14 = vld [vmem:[%s1129_s26 + $0x80] sm:$0xff]   ;;  %v1047_v16 = vld [vmem:[%s1129_s26 + $0x88] sm:$0xff]  }
  0x13   : > { %910 = vmatpush3.bf16.msra.mxu0 %v1036_v4  ;;  %1021 = vmatpush3.bf16.msra.mxu1 %v1036_v4  ;;  %v1046_v15 = vld [vmem:[%s1129_s26 + $0x20] sm:$0xff]   ;;  %v1048_v17 = vld [vmem:[%s1129_s26 + $0x28] sm:$0xff]   ;;  %v1049_v18 = vld [vmem:[%s1129_s26 + $0x90] sm:$0xff]  }
  0x14   : > { %911 = vmatprep.subr.bf16.mxu0 %v1071_v1  ;;  %1017 = vmatprep.subr.bf16.mxu1 %v1071_v1  ;;  %v1050_v19 = vld [vmem:[%s1129_s26 + $0x30] sm:$0xff]   ;;  %v1051_v20 = vld [vmem:[%s1129_s26 + $0x98] sm:$0xff]   ;;  %v1053_v22 = vld [vmem:[%s1129_s26 + $0xa0] sm:$0xff]  }
  0x15   : > { %v1052_v21 = vld [vmem:[%s1129_s26 + $0x38] sm:$0xff]   ;;  %v1054_v23 = vld [vmem:[%s1129_s26 + $0x40] sm:$0xff]   ;;  %v1055_v24 = vld [vmem:[%s1129_s26 + $0xa8] sm:$0xff]  }
  0x16   : > { %v1056_v25 = vld [vmem:[%s1129_s26 + $0x48] sm:$0xff]   ;;  %v1057_v26 = vld [vmem:[%s1129_s26 + $0xb0] sm:$0xff]   ;;  %v1059_v28 = vld [vmem:[%s1129_s26 + $0xb8] sm:$0xff]  }
  0x17   : > { %912 = vmatpush3.bf16.msra.mxu0 %v468_v6  ;;  %1022 = vmatpush3.bf16.msra.mxu1 %v468_v6  ;;  %v1058_v27 = vld [vmem:[%s1129_s26 + $0x50] sm:$0xff]   ;;  %v1060_v29 = vld [vmem:[%s1129_s26 + $0x58] sm:$0xff]   ;;  %v1061_v30 = vld [vmem:[%s1129_s26 + $0xc0] ss:$0 sps:$4 sm:$0xff]  }
  0x18   : > { %v1062_v31 = vld [vmem:[%s1129_s26 + $0x60] sm:$0xff]  }
  0x1a   : > { %914 = vmatmul.mubr.msk.bf16.vlgmr.msra.gmra.mrb[0].mxu0 %vm390_vm2, %v1038_v7  ;;  %966 = vmatmul.mubr.msk.bf16.vlgmr.msra.gmra.mrb[0].mxu1 %vm390_vm2, %v1039_v8 }
  0x1b   : > { %917 = vmatprep.mubr.msk.bf16.mxu0 %vm1072_vm0, %v1071_v1  ;;  %969 = vmatprep.mubr.msk.bf16.mxu1 %vm1072_vm0, %v1071_v1 }
  0x22   : > { %918 = vmatmul.mubr.msk.bf16.gmra.mrb[4].mxu0 %vm390_vm2, %v1040_v9  ;;  %970 = vmatmul.mubr.msk.bf16.gmra.mrb[4].mxu1 %vm390_vm2, %v1041_v10 }
  0x23   : > { %921 = vmatprep.mubr.msk.bf16.mxu0 %vm1072_vm0, %v1071_v1  ;;  %973 = vmatprep.mubr.msk.bf16.mxu1 %vm1072_vm0, %v1071_v1 }
  0x2a   : > { %922 = vmatmul.mubr.msk.bf16.gmra.mrb[8].mxu0 %vm390_vm2, %v1042_v11  ;;  %974 = vmatmul.mubr.msk.bf16.gmra.mrb[8].mxu1 %vm390_vm2, %v1043_v12 }
  0x2b   : > { %925 = vmatprep.mubr.msk.bf16.mxu0 %vm1072_vm0, %v1071_v1  ;;  %977 = vmatprep.mubr.msk.bf16.mxu1 %vm1072_vm0, %v1071_v1 }
  0x32   : > { %926 = vmatmul.mubr.msk.bf16.gmra.mrb[12].mxu0 %vm390_vm2, %v1044_v13  ;;  %978 = vmatmul.mubr.msk.bf16.gmra.mrb[12].mxu1 %vm390_vm2, %v1045_v14 }
  0x33   : > { %929 = vmatprep.mubr.msk.bf16.mxu0 %vm1072_vm0, %v1071_v1  ;;  %981 = vmatprep.mubr.msk.bf16.mxu1 %vm1072_vm0, %v1071_v1 }
  0x3a   : > { %930 = vmatmul.mubr.msk.bf16.gmra.mrb[16].mxu0 %vm390_vm2, %v1046_v15  ;;  %982 = vmatmul.mubr.msk.bf16.gmra.mrb[16].mxu1 %vm390_vm2, %v1047_v16 }
  0x3b   : > { %933 = vmatprep.mubr.msk.bf16.mxu0 %vm1072_vm0, %v1071_v1  ;;  %985 = vmatprep.mubr.msk.bf16.mxu1 %vm1072_vm0, %v1071_v1 }
  0x42   : > { %934 = vmatmul.mubr.msk.bf16.gmra.mrb[20].mxu0 %vm390_vm2, %v1048_v17  ;;  %986 = vmatmul.mubr.msk.bf16.gmra.mrb[20].mxu1 %vm390_vm2, %v1049_v18 }
  0x43   : > { %937 = vmatprep.mubr.msk.bf16.mxu0 %vm1072_vm0, %v1071_v1  ;;  %989 = vmatprep.mubr.msk.bf16.mxu1 %vm1072_vm0, %v1071_v1 }
  0x4a   : > { %938 = vmatmul.mubr.msk.bf16.gmra.mrb[24].mxu0 %vm390_vm2, %v1050_v19  ;;  %990 = vmatmul.mubr.msk.bf16.gmra.mrb[24].mxu1 %vm390_vm2, %v1051_v20 }
  0x4b   : > { %941 = vmatprep.mubr.msk.bf16.mxu0 %vm1072_vm0, %v1071_v1  ;;  %993 = vmatprep.mubr.msk.bf16.mxu1 %vm1072_vm0, %v1071_v1 }
  0x52   : > { %942 = vmatmul.mubr.msk.bf16.gmra.mrb[28].mxu0 %vm390_vm2, %v1052_v21  ;;  %994 = vmatmul.mubr.msk.bf16.gmra.mrb[28].mxu1 %vm390_vm2, %v1053_v22 }
  0x53   : > { %945 = vmatprep.mubr.msk.bf16.mxu0 %vm1072_vm0, %v1071_v1  ;;  %997 = vmatprep.mubr.msk.bf16.mxu1 %vm1072_vm0, %v1071_v1 }
  0x5a   : > { %946 = vmatmul.mubr.msk.bf16.gmra.mrb[32].mxu0 %vm390_vm2, %v1054_v23  ;;  %998 = vmatmul.mubr.msk.bf16.gmra.mrb[32].mxu1 %vm390_vm2, %v1055_v24 }
  0x5b   : > { %949 = vmatprep.mubr.msk.bf16.mxu0 %vm1072_vm0, %v1071_v1  ;;  %1001 = vmatprep.mubr.msk.bf16.mxu1 %vm1072_vm0, %v1071_v1 }
  0x62   : > { %950 = vmatmul.mubr.msk.bf16.gmra.mrb[36].mxu0 %vm390_vm2, %v1056_v25  ;;  %1002 = vmatmul.mubr.msk.bf16.gmra.mrb[36].mxu1 %vm390_vm2, %v1057_v26 }
  0x63   : > { %953 = vmatprep.mubr.msk.bf16.mxu0 %vm1072_vm0, %v1071_v1  ;;  %1005 = vmatprep.mubr.msk.bf16.mxu1 %vm1072_vm0, %v1071_v1 }
  0x6a   : > { %954 = vmatmul.mubr.msk.bf16.gmra.mrb[40].mxu0 %vm390_vm2, %v1058_v27  ;;  %1006 = vmatmul.mubr.msk.bf16.gmra.mrb[40].mxu1 %vm390_vm2, %v1059_v28 }
  0x6b   : > { %957 = vmatprep.mubr.msk.bf16.mxu0 %vm1072_vm0, %v1071_v1  ;;  %1009 = vmatprep.mubr.msk.bf16.mxu1 %vm1072_vm0, %v1071_v1 }
  0x72   : > { %958 = vmatmul.mubr.msk.bf16.gmra.mrb[44].mxu0 %vm390_vm2, %v1060_v29  ;;  %1010 = vmatmul.mubr.msk.bf16.gmra.mrb[44].mxu1 %vm390_vm2, %v1061_v30 }
  0x73   : > { %961 = vmatprep.mubr.msk.bf16.mxu0 %vm1072_vm0, %v1071_v1 }
  0x7a   : > { %962 = vmatmul.mubr.msk.bf16.gmra.mrb[48].mxu0 %vm390_vm2, %v1062_v31 }
  0xed   : > { %v504_v33 = vpop.f32.mrb[0].mxu0  ;;  %v608_v34 = vpop.f32.mrb[0].mxu1 }
  0xee   : > { %v505_v35 = vadd.f32 %v1238_v32, %v504_v33  ;;  %v915_v36 = vpop.f32.mrb[1].mxu0  ;;  %v609_v37 = vadd.f32 %v1238_v32, %v608_v34  ;;  %v967_v38 = vpop.f32.mrb[1].mxu1 }
  0xef   : > { %v507_v39 = vpop.f32.mrb[2].mxu0  ;;  %v611_v40 = vpop.f32.mrb[2].mxu1 }
  0xf0   : > { %703 = vst.msk [vmem:[%s1243_s7] sm:$0xff] %vm702_vm3, %v505_v35  ;;  %v508_v41 = vadd.f32 %v1238_v32, %v507_v39  ;;  %v916_v42 = vpop.f32.mrb[3].mxu0  ;;  %729 = vst.msk [vmem:[%s1243_s7 + $0xd0] sm:$0xff] %vm702_vm3, %v609_v37  ;;  %v612_v43 = vadd.f32 %v1238_v32, %v611_v40  ;;  %v968_v44 = vpop.f32.mrb[3].mxu1 }
  0xf2   : > { %704 = vst.msk [vmem:[%s1243_s7 + $0x8] sm:$0xff] %vm702_vm3, %v508_v41  ;;  %730 = vst.msk [vmem:[%s1243_s7 + $0xd8] sm:$0xff] %vm702_vm3, %v612_v43 }
  0xf5   : > { %v512_v45 = vpop.f32.mrb[4].mxu0  ;;  %v616_v46 = vpop.f32.mrb[4].mxu1 }
  0xf6   : > { %v513_v47 = vadd.f32 %v1238_v32, %v512_v45  ;;  %v919_v48 = vpop.f32.mrb[5].mxu0  ;;  %v617_v49 = vadd.f32 %v1238_v32, %v616_v46  ;;  %v971_v50 = vpop.f32.mrb[5].mxu1 }
  0xf7   : > { %v515_v51 = vpop.f32.mrb[6].mxu0  ;;  %v619_v52 = vpop.f32.mrb[6].mxu1 }
  0xf8   : > { %705 = vst.msk [vmem:[%s1243_s7 + $0x10] sm:$0xff] %vm702_vm3, %v513_v47  ;;  %v516_v53 = vadd.f32 %v1238_v32, %v515_v51  ;;  %v920_v54 = vpop.f32.mrb[7].mxu0  ;;  %731 = vst.msk [vmem:[%s1243_s7 + $0xe0] sm:$0xff] %vm702_vm3, %v617_v49  ;;  %v620_v55 = vadd.f32 %v1238_v32, %v619_v52  ;;  %v972_v56 = vpop.f32.mrb[7].mxu1 }
  0xfa   : > { %706 = vst.msk [vmem:[%s1243_s7 + $0x18] sm:$0xff] %vm702_vm3, %v516_v53  ;;  %732 = vst.msk [vmem:[%s1243_s7 + $0xe8] sm:$0xff] %vm702_vm3, %v620_v55 }
  0xfd   : > { %v520_v57 = vpop.f32.mrb[8].mxu0  ;;  %v624_v58 = vpop.f32.mrb[8].mxu1 }
  0xfe   : > { %v521_v59 = vadd.f32 %v1238_v32, %v520_v57  ;;  %v923_v60 = vpop.f32.mrb[9].mxu0  ;;  %v625_v61 = vadd.f32 %v1238_v32, %v624_v58  ;;  %v975_v62 = vpop.f32.mrb[9].mxu1 }
  0xff   : > { %v523_v63 = vpop.f32.mrb[10].mxu0  ;;  %v627_v0 = vpop.f32.mrb[10].mxu1 }
 0x100   : > { %707 = vst.msk [vmem:[%s1243_s7 + $0x20] sm:$0xff] %vm702_vm3, %v521_v59  ;;  %v524_v1 = vadd.f32 %v1238_v32, %v523_v63  ;;  %v924_v2 = vpop.f32.mrb[11].mxu0  ;;  %733 = vst.msk [vmem:[%s1243_s7 + $0xf0] sm:$0xff] %vm702_vm3, %v625_v61  ;;  %v628_v3 = vadd.f32 %v1238_v32, %v627_v0  ;;  %v976_v4 = vpop.f32.mrb[11].mxu1 }
 0x102   : > { %708 = vst.msk [vmem:[%s1243_s7 + $0x28] sm:$0xff] %vm702_vm3, %v524_v1  ;;  %734 = vst.msk [vmem:[%s1243_s7 + $0xf8] sm:$0xff] %vm702_vm3, %v628_v3 }
 0x105   : > { %v528_v5 = vpop.f32.mrb[12].mxu0  ;;  %v632_v6 = vpop.f32.mrb[12].mxu1 }
 0x106   : > { %v529_v7 = vadd.f32 %v1238_v32, %v528_v5  ;;  %v927_v8 = vpop.f32.mrb[13].mxu0  ;;  %v633_v9 = vadd.f32 %v1238_v32, %v632_v6  ;;  %v979_v10 = vpop.f32.mrb[13].mxu1 }
 0x107   : > { %v531_v11 = vpop.f32.mrb[14].mxu0  ;;  %v635_v12 = vpop.f32.mrb[14].mxu1 }
 0x108   : > { %709 = vst.msk [vmem:[%s1243_s7 + $0x30] sm:$0xff] %vm702_vm3, %v529_v7  ;;  %v532_v13 = vadd.f32 %v1238_v32, %v531_v11  ;;  %v928_v14 = vpop.f32.mrb[15].mxu0  ;;  %735 = vst.msk [vmem:[%s1243_s7 + $0x100] sm:$0xff] %vm702_vm3, %v633_v9  ;;  %v636_v15 = vadd.f32 %v1238_v32, %v635_v12  ;;  %v980_v16 = vpop.f32.mrb[15].mxu1 }
 0x10a   : > { %710 = vst.msk [vmem:[%s1243_s7 + $0x38] sm:$0xff] %vm702_vm3, %v532_v13  ;;  %736 = vst.msk [vmem:[%s1243_s7 + $0x108] sm:$0xff] %vm702_vm3, %v636_v15 }
 0x10d   : > { %v536_v17 = vpop.f32.mrb[16].mxu0  ;;  %v640_v18 = vpop.f32.mrb[16].mxu1 }
 0x10e   : > { %v537_v19 = vadd.f32 %v1238_v32, %v536_v17  ;;  %v931_v20 = vpop.f32.mrb[17].mxu0  ;;  %v641_v21 = vadd.f32 %v1238_v32, %v640_v18  ;;  %v983_v22 = vpop.f32.mrb[17].mxu1 }
 0x10f   : > { %v539_v23 = vpop.f32.mrb[18].mxu0  ;;  %v643_v24 = vpop.f32.mrb[18].mxu1 }
 0x110   : > { %711 = vst.msk [vmem:[%s1243_s7 + $0x40] sm:$0xff] %vm702_vm3, %v537_v19  ;;  %v540_v25 = vadd.f32 %v1238_v32, %v539_v23  ;;  %v932_v26 = vpop.f32.mrb[19].mxu0  ;;  %737 = vst.msk [vmem:[%s1243_s7 + $0x110] sm:$0xff] %vm702_vm3, %v641_v21  ;;  %v644_v27 = vadd.f32 %v1238_v32, %v643_v24  ;;  %v984_v28 = vpop.f32.mrb[19].mxu1 }
 0x112   : > { %712 = vst.msk [vmem:[%s1243_s7 + $0x48] sm:$0xff] %vm702_vm3, %v540_v25  ;;  %738 = vst.msk [vmem:[%s1243_s7 + $0x118] sm:$0xff] %vm702_vm3, %v644_v27 }
 0x115   : > { %v544_v29 = vpop.f32.mrb[20].mxu0  ;;  %v648_v30 = vpop.f32.mrb[20].mxu1 }
 0x116   : > { %v545_v31 = vadd.f32 %v1238_v32, %v544_v29  ;;  %v935_v33 = vpop.f32.mrb[21].mxu0  ;;  %v649_v34 = vadd.f32 %v1238_v32, %v648_v30  ;;  %v987_v35 = vpop.f32.mrb[21].mxu1 }
 0x117   : > { %v547_v36 = vpop.f32.mrb[22].mxu0  ;;  %v651_v37 = vpop.f32.mrb[22].mxu1 }
 0x118   : > { %713 = vst.msk [vmem:[%s1243_s7 + $0x50] sm:$0xff] %vm702_vm3, %v545_v31  ;;  %v548_v38 = vadd.f32 %v1238_v32, %v547_v36  ;;  %v936_v39 = vpop.f32.mrb[23].mxu0  ;;  %739 = vst.msk [vmem:[%s1243_s7 + $0x120] sm:$0xff] %vm702_vm3, %v649_v34  ;;  %v652_v40 = vadd.f32 %v1238_v32, %v651_v37  ;;  %v988_v41 = vpop.f32.mrb[23].mxu1 }
 0x11a   : > { %714 = vst.msk [vmem:[%s1243_s7 + $0x58] sm:$0xff] %vm702_vm3, %v548_v38  ;;  %740 = vst.msk [vmem:[%s1243_s7 + $0x128] sm:$0xff] %vm702_vm3, %v652_v40 }
 0x11d   : > { %v552_v42 = vpop.f32.mrb[24].mxu0  ;;  %v656_v43 = vpop.f32.mrb[24].mxu1 }
 0x11e   : > { %v553_v44 = vadd.f32 %v1238_v32, %v552_v42  ;;  %v939_v45 = vpop.f32.mrb[25].mxu0  ;;  %v657_v46 = vadd.f32 %v1238_v32, %v656_v43  ;;  %v991_v47 = vpop.f32.mrb[25].mxu1 }
 0x11f   : > { %v555_v48 = vpop.f32.mrb[26].mxu0  ;;  %v659_v49 = vpop.f32.mrb[26].mxu1 }
 0x120   : > { %715 = vst.msk [vmem:[%s1243_s7 + $0x60] sm:$0xff] %vm702_vm3, %v553_v44  ;;  %v556_v50 = vadd.f32 %v1238_v32, %v555_v48  ;;  %v940_v51 = vpop.f32.mrb[27].mxu0  ;;  %741 = vst.msk [vmem:[%s1243_s7 + $0x130] sm:$0xff] %vm702_vm3, %v657_v46  ;;  %v660_v52 = vadd.f32 %v1238_v32, %v659_v49  ;;  %v992_v53 = vpop.f32.mrb[27].mxu1 }
 0x122   : > { %716 = vst.msk [vmem:[%s1243_s7 + $0x68] sm:$0xff] %vm702_vm3, %v556_v50  ;;  %742 = vst.msk [vmem:[%s1243_s7 + $0x138] sm:$0xff] %vm702_vm3, %v660_v52 }
 0x125   : > { %v560_v54 = vpop.f32.mrb[28].mxu0  ;;  %v664_v55 = vpop.f32.mrb[28].mxu1 }
 0x126   : > { %v561_v56 = vadd.f32 %v1238_v32, %v560_v54  ;;  %v943_v57 = vpop.f32.mrb[29].mxu0  ;;  %v665_v58 = vadd.f32 %v1238_v32, %v664_v55  ;;  %v995_v59 = vpop.f32.mrb[29].mxu1 }
 0x127   : > { %v563_v60 = vpop.f32.mrb[30].mxu0  ;;  %v667_v61 = vpop.f32.mrb[30].mxu1 }
 0x128   : > { %717 = vst.msk [vmem:[%s1243_s7 + $0x70] sm:$0xff] %vm702_vm3, %v561_v56  ;;  %v564_v62 = vadd.f32 %v1238_v32, %v563_v60  ;;  %v944_v63 = vpop.f32.mrb[31].mxu0  ;;  %743 = vst.msk [vmem:[%s1243_s7 + $0x140] sm:$0xff] %vm702_vm3, %v665_v58  ;;  %v668_v0 = vadd.f32 %v1238_v32, %v667_v61  ;;  %v996_v1 = vpop.f32.mrb[31].mxu1 }
 0x12a   : > { %718 = vst.msk [vmem:[%s1243_s7 + $0x78] sm:$0xff] %vm702_vm3, %v564_v62  ;;  %744 = vst.msk [vmem:[%s1243_s7 + $0x148] sm:$0xff] %vm702_vm3, %v668_v0 }
 0x12d   : > { %v568_v2 = vpop.f32.mrb[32].mxu0  ;;  %v672_v3 = vpop.f32.mrb[32].mxu1 }
 0x12e   : > { %v569_v4 = vadd.f32 %v1238_v32, %v568_v2  ;;  %v947_v5 = vpop.f32.mrb[33].mxu0  ;;  %v673_v6 = vadd.f32 %v1238_v32, %v672_v3  ;;  %v999_v7 = vpop.f32.mrb[33].mxu1 }
 0x12f   : > { %v571_v8 = vpop.f32.mrb[34].mxu0  ;;  %v675_v9 = vpop.f32.mrb[34].mxu1 }
 0x130   : > { %719 = vst.msk [vmem:[%s1243_s7 + $0x80] sm:$0xff] %vm702_vm3, %v569_v4  ;;  %v572_v10 = vadd.f32 %v1238_v32, %v571_v8  ;;  %v948_v11 = vpop.f32.mrb[35].mxu0  ;;  %745 = vst.msk [vmem:[%s1243_s7 + $0x150] sm:$0xff] %vm702_vm3, %v673_v6  ;;  %v676_v12 = vadd.f32 %v1238_v32, %v675_v9  ;;  %v1000_v13 = vpop.f32.mrb[35].mxu1 }
 0x132   : > { %720 = vst.msk [vmem:[%s1243_s7 + $0x88] sm:$0xff] %vm702_vm3, %v572_v10  ;;  %746 = vst.msk [vmem:[%s1243_s7 + $0x158] sm:$0xff] %vm702_vm3, %v676_v12 }
 0x135   : > { %v576_v14 = vpop.f32.mrb[36].mxu0  ;;  %v680_v15 = vpop.f32.mrb[36].mxu1 }
 0x136   : > { %v577_v16 = vadd.f32 %v1238_v32, %v576_v14  ;;  %v951_v17 = vpop.f32.mrb[37].mxu0  ;;  %v681_v18 = vadd.f32 %v1238_v32, %v680_v15  ;;  %v1003_v19 = vpop.f32.mrb[37].mxu1 }
 0x137   : > { %v579_v20 = vpop.f32.mrb[38].mxu0  ;;  %v683_v21 = vpop.f32.mrb[38].mxu1 }
 0x138   : > { %721 = vst.msk [vmem:[%s1243_s7 + $0x90] sm:$0xff] %vm702_vm3, %v577_v16  ;;  %v580_v22 = vadd.f32 %v1238_v32, %v579_v20  ;;  %v952_v23 = vpop.f32.mrb[39].mxu0  ;;  %747 = vst.msk [vmem:[%s1243_s7 + $0x160] sm:$0xff] %vm702_vm3, %v681_v18  ;;  %v684_v24 = vadd.f32 %v1238_v32, %v683_v21  ;;  %v1004_v25 = vpop.f32.mrb[39].mxu1 }
 0x13a   : > { %722 = vst.msk [vmem:[%s1243_s7 + $0x98] sm:$0xff] %vm702_vm3, %v580_v22  ;;  %748 = vst.msk [vmem:[%s1243_s7 + $0x168] sm:$0xff] %vm702_vm3, %v684_v24 }
 0x13d   : > { %v584_v26 = vpop.f32.mrb[40].mxu0  ;;  %v688_v27 = vpop.f32.mrb[40].mxu1 }
 0x13e   : > { %v585_v28 = vadd.f32 %v1238_v32, %v584_v26  ;;  %v955_v29 = vpop.f32.mrb[41].mxu0  ;;  %v689_v30 = vadd.f32 %v1238_v32, %v688_v27  ;;  %v1007_v31 = vpop.f32.mrb[41].mxu1 }
 0x13f   : > { %v587_v33 = vpop.f32.mrb[42].mxu0  ;;  %v691_v34 = vpop.f32.mrb[42].mxu1 }
 0x140   : > { %723 = vst.msk [vmem:[%s1243_s7 + $0xa0] sm:$0xff] %vm702_vm3, %v585_v28  ;;  %v588_v35 = vadd.f32 %v1238_v32, %v587_v33  ;;  %v956_v36 = vpop.f32.mrb[43].mxu0  ;;  %749 = vst.msk [vmem:[%s1243_s7 + $0x170] sm:$0xff] %vm702_vm3, %v689_v30  ;;  %v692_v37 = vadd.f32 %v1238_v32, %v691_v34  ;;  %v1008_v38 = vpop.f32.mrb[43].mxu1 }
 0x142   : > { %724 = vst.msk [vmem:[%s1243_s7 + $0xa8] sm:$0xff] %vm702_vm3, %v588_v35  ;;  %750 = vst.msk [vmem:[%s1243_s7 + $0x178] sm:$0xff] %vm702_vm3, %v692_v37 }
 0x145   : > { %v592_v39 = vpop.f32.mrb[44].mxu0  ;;  %v696_v40 = vpop.f32.mrb[44].mxu1 }
 0x146   : > { %v593_v41 = vadd.f32 %v1238_v32, %v592_v39  ;;  %v959_v42 = vpop.f32.mrb[45].mxu0  ;;  %v697_v43 = vadd.f32 %v1238_v32, %v696_v40  ;;  %v1011_v44 = vpop.f32.mrb[45].mxu1 }
 0x147   : > { %v595_v45 = vpop.f32.mrb[46].mxu0  ;;  %v699_v46 = vpop.f32.mrb[46].mxu1 }
 0x148   : > { %725 = vst.msk [vmem:[%s1243_s7 + $0xb0] sm:$0xff] %vm702_vm3, %v593_v41  ;;  %v596_v47 = vadd.f32 %v1238_v32, %v595_v45  ;;  %v960_v48 = vpop.f32.mrb[47].mxu0  ;;  %751 = vst.msk [vmem:[%s1243_s7 + $0x180] sm:$0xff] %vm702_vm3, %v697_v43  ;;  %v1012_v49 = vpop.f32.mrb[47].mxu1 }
 0x14a   : > { %726 = vst.msk [vmem:[%s1243_s7 + $0xb8] sm:$0xff] %vm702_vm3, %v596_v47 }
 0x14d   : > { %v600_v50 = vpop.f32.mrb[48].mxu0 }
 0x14e   : > { %v601_v51 = vadd.f32 %v1238_v32, %v600_v50  ;;  %v963_v52 = vpop.f32.mrb[49].mxu0 }
 0x14f   : > { %v603_v53 = vpop.f32.mrb[50].mxu0 }
 0x150   : > { %727 = vst.msk [vmem:[%s1243_s7 + $0xc0] sm:$0xff] %vm702_vm3, %v601_v51  ;;  %v604_v54 = vadd.f32 %v1238_v32, %v603_v53  ;;  %v964_v55 = vpop.f32.mrb[51].mxu0 }
 0x152   : > { %728 = vst.msk [vmem:[%s1243_s7 + $0xc8] sm:$0xff] %vm702_vm3, %v604_v54 }
 0x153 PF: > { %s13_s12 = sadd.s32 1, %s1069_s12  }
 0x154   : > { %p10_p4 = scmp.ge.s32.totalorder %s13_s12, 6  }
 0x156   :  { %12 = sbr.rel (!%p10_p4) target bundleno = 1 (0x1), region = 62 }

// kernel: unet3_forward.43
= control target key start
LH: loop header
LB: loop body
LE: loop exit
PB: predicated region body
PF: predicated region fallthrough
CT: control target
= control target key end

     0   :  { %s1028_s12 = smov 0   ;;  %s1310_s0 = inlined_call_operand.vmem [shape: bf16[1568,8], index: 0, kind: input, shape index: {}]   ;;  %s1311_s1 = inlined_call_operand.vmem [shape: bf16[8,16], index: 1, kind: input, shape index: {}]   ;;  %s1312_s2 = inlined_call_operand.vmem [shape: f32[1,16], index: 2, kind: input, shape index: {}]   ;;  %s1313_s3 = inlined_call_operand.vmem [shape: f32[1568,16], index: 3, kind: output, shape index: {}]  }
   0x1 LB: > { %s773_s13 = sadd.s32 4294967295, %s1004_s12   ;;  %p777_p0 = scmp.ge.s32.totalorder %s1004_s12, 1  ;;  %s1004_s12 = sphi %s1028_s12, %s13_s12  }
   0x2   : > { %p138_p1 = scmp.lt.s32.totalorder %s1004_s12, 5 }
   0x4   : > { %p139_p2 = pnand %p777_p0, %p138_p1 }
   0x5   : > { %v224_v0 = vld [vmem:[%s1311_s1] sm:$0xf] (!%p139_p2)  ;;  %vm431_vm0 = vcmask (!%p139_p2), 1043456   ;;  %s162_s16 = smul.u32 (!%p139_p2), 49, %s773_s13  ;;  %v1006_v1 = vmov (!%p139_p2), 0.0   ;;  %vm1007_vm1 = vmmov (!%p139_p2), 0  }
   0x6   : > { %142 = sbr.rel (%p139_p2) target bundleno = 330 (0x14a), region = 32  ;;  %859 = vmatprep.subr.bf16.mxu0 (!%p139_p2), %v1006_v1  ;;  %v433_v2 = vsel (!%p139_p2), %vm431_vm0, %v224_v0, 0  ;;  %861 = vmatprep.mubr.msk.bf16.mxu0 (!%p139_p2), %vm1007_vm1, %v1006_v1  ;;  %vm355_vm2 = vcmask (!%p139_p2), 64512   ;;  %v1153_v28 = vld [vmem:[%s1312_s2] ss:$0 sm:$0xff] (!%p139_p2)  ;;  %vm667_vm3 = vcmask (!%p139_p2), 130048  }
   0x7   : > { %860 = vmatpush3.bf16.msra.mxu0 (!%p139_p2), %v433_v2  ;;  %p163_p3 = scmp.lt.s32.totalorder (!%p139_p2), %s162_s16, 195  ;;  %961 = vmatprep.subr.bf16.mxu1 (!%p139_p2), %v1006_v1 }
   0x8   : > { %962 = vmatpush3.bf16.msra.mxu1 (!%p139_p2), %v433_v2  ;;  %913 = vmatprep.mubr.msk.bf16.mxu1 (!%p139_p2), %vm1007_vm1, %v1006_v1 }
   0xd   : > { %s1315_s16 = smov (!%p163_p3, %s162_s16), 195 }
   0xe   : > { %s778_s17 = sshll.u32 %s1315_s16, 2  ;;  %s779_s21 = sshll.u32 %s1315_s16, 3 }
   0xf   : > { %s1051_s20 = scalar_lea.vmem %s1310_s0, %s778_s17  ;;  %s1158_s26 = scalar_lea.vmem %s1313_s3, %s779_s21 }
  0x10   : > { %v973_v3 = vld [vmem:[%s1051_s20] sm:$0xff]   ;;  %v974_v4 = vld [vmem:[%s1051_s20 + $0x68] sm:$0xff]   ;;  %v976_v6 = vld [vmem:[%s1051_s20 + $0x70] sm:$0xff]  }
  0x11   : > { %862 = vmatmul.mubr.msk.bf16.vlgmr.msra.gmra.mrb[0].mxu0 %vm355_vm2, %v973_v3  ;;  %914 = vmatmul.mubr.msk.bf16.vlgmr.msra.gmra.mrb[0].mxu1 %vm355_vm2, %v974_v4  ;;  %v975_v5 = vld [vmem:[%s1051_s20 + $0x8] sm:$0xff]   ;;  %v977_v7 = vld [vmem:[%s1051_s20 + $0x10] sm:$0xff]   ;;  %v978_v8 = vld [vmem:[%s1051_s20 + $0x78] sm:$0xff]  }
  0x12   : > { %865 = vmatprep.mubr.msk.bf16.mxu0 %vm1007_vm1, %v1006_v1  ;;  %917 = vmatprep.mubr.msk.bf16.mxu1 %vm1007_vm1, %v1006_v1  ;;  %v979_v9 = vld [vmem:[%s1051_s20 + $0x18] sm:$0xff]   ;;  %v980_v10 = vld [vmem:[%s1051_s20 + $0x80] sm:$0xff]   ;;  %v982_v12 = vld [vmem:[%s1051_s20 + $0x88] sm:$0xff]  }
  0x13   : > { %v981_v11 = vld [vmem:[%s1051_s20 + $0x20] sm:$0xff]   ;;  %v983_v13 = vld [vmem:[%s1051_s20 + $0x28] sm:$0xff]   ;;  %v984_v14 = vld [vmem:[%s1051_s20 + $0x90] sm:$0xff]  }
  0x14   : > { %v985_v15 = vld [vmem:[%s1051_s20 + $0x30] sm:$0xff]   ;;  %v986_v16 = vld [vmem:[%s1051_s20 + $0x98] sm:$0xff]   ;;  %v988_v18 = vld [vmem:[%s1051_s20 + $0xa0] sm:$0xff]  }
  0x15   : > { %v987_v17 = vld [vmem:[%s1051_s20 + $0x38] sm:$0xff]   ;;  %v989_v19 = vld [vmem:[%s1051_s20 + $0x40] sm:$0xff]   ;;  %v990_v20 = vld [vmem:[%s1051_s20 + $0xa8] sm:$0xff]  }
  0x16   : > { %v991_v21 = vld [vmem:[%s1051_s20 + $0x48] sm:$0xff]   ;;  %v992_v22 = vld [vmem:[%s1051_s20 + $0xb0] sm:$0xff]   ;;  %v994_v24 = vld [vmem:[%s1051_s20 + $0xb8] sm:$0xff]  }
  0x17   : > { %v993_v23 = vld [vmem:[%s1051_s20 + $0x50] sm:$0xff]   ;;  %v995_v25 = vld [vmem:[%s1051_s20 + $0x58] sm:$0xff]   ;;  %v996_v26 = vld [vmem:[%s1051_s20 + $0xc0] ss:$0 sps:$4 sm:$0xff]  }
  0x18   : > { %v997_v27 = vld [vmem:[%s1051_s20 + $0x60] sm:$0xff]  }
  0x19   : > { %866 = vmatmul.mubr.msk.bf16.gmra.mrb[4].mxu0 %vm355_vm2, %v975_v5  ;;  %918 = vmatmul.mubr.msk.bf16.gmra.mrb[4].mxu1 %vm355_vm2, %v976_v6 }
  0x1a   : > { %869 = vmatprep.mubr.msk.bf16.mxu0 %vm1007_vm1, %v1006_v1  ;;  %921 = vmatprep.mubr.msk.bf16.mxu1 %vm1007_vm1, %v1006_v1 }
  0x21   : > { %870 = vmatmul.mubr.msk.bf16.gmra.mrb[8].mxu0 %vm355_vm2, %v977_v7  ;;  %922 = vmatmul.mubr.msk.bf16.gmra.mrb[8].mxu1 %vm355_vm2, %v978_v8 }
  0x22   : > { %873 = vmatprep.mubr.msk.bf16.mxu0 %vm1007_vm1, %v1006_v1  ;;  %925 = vmatprep.mubr.msk.bf16.mxu1 %vm1007_vm1, %v1006_v1 }
  0x29   : > { %874 = vmatmul.mubr.msk.bf16.gmra.mrb[12].mxu0 %vm355_vm2, %v979_v9  ;;  %926 = vmatmul.mubr.msk.bf16.gmra.mrb[12].mxu1 %vm355_vm2, %v980_v10 }
  0x2a   : > { %877 = vmatprep.mubr.msk.bf16.mxu0 %vm1007_vm1, %v1006_v1  ;;  %929 = vmatprep.mubr.msk.bf16.mxu1 %vm1007_vm1, %v1006_v1 }
  0x31   : > { %878 = vmatmul.mubr.msk.bf16.gmra.mrb[16].mxu0 %vm355_vm2, %v981_v11  ;;  %930 = vmatmul.mubr.msk.bf16.gmra.mrb[16].mxu1 %vm355_vm2, %v982_v12 }
  0x32   : > { %881 = vmatprep.mubr.msk.bf16.mxu0 %vm1007_vm1, %v1006_v1  ;;  %933 = vmatprep.mubr.msk.bf16.mxu1 %vm1007_vm1, %v1006_v1 }
  0x39   : > { %882 = vmatmul.mubr.msk.bf16.gmra.mrb[20].mxu0 %vm355_vm2, %v983_v13  ;;  %934 = vmatmul.mubr.msk.bf16.gmra.mrb[20].mxu1 %vm355_vm2, %v984_v14 }
  0x3a   : > { %885 = vmatprep.mubr.msk.bf16.mxu0 %vm1007_vm1, %v1006_v1  ;;  %937 = vmatprep.mubr.msk.bf16.mxu1 %vm1007_vm1, %v1006_v1 }
  0x41   : > { %886 = vmatmul.mubr.msk.bf16.gmra.mrb[24].mxu0 %vm355_vm2, %v985_v15  ;;  %938 = vmatmul.mubr.msk.bf16.gmra.mrb[24].mxu1 %vm355_vm2, %v986_v16 }
  0x42   : > { %889 = vmatprep.mubr.msk.bf16.mxu0 %vm1007_vm1, %v1006_v1  ;;  %941 = vmatprep.mubr.msk.bf16.mxu1 %vm1007_vm1, %v1006_v1 }
  0x49   : > { %890 = vmatmul.mubr.msk.bf16.gmra.mrb[28].mxu0 %vm355_vm2, %v987_v17  ;;  %942 = vmatmul.mubr.msk.bf16.gmra.mrb[28].mxu1 %vm355_vm2, %v988_v18 }
  0x4a   : > { %893 = vmatprep.mubr.msk.bf16.mxu0 %vm1007_vm1, %v1006_v1  ;;  %945 = vmatprep.mubr.msk.bf16.mxu1 %vm1007_vm1, %v1006_v1 }
  0x51   : > { %894 = vmatmul.mubr.msk.bf16.gmra.mrb[32].mxu0 %vm355_vm2, %v989_v19  ;;  %946 = vmatmul.mubr.msk.bf16.gmra.mrb[32].mxu1 %vm355_vm2, %v990_v20 }
  0x52   : > { %897 = vmatprep.mubr.msk.bf16.mxu0 %vm1007_vm1, %v1006_v1  ;;  %949 = vmatprep.mubr.msk.bf16.mxu1 %vm1007_vm1, %v1006_v1 }
  0x59   : > { %898 = vmatmul.mubr.msk.bf16.gmra.mrb[36].mxu0 %vm355_vm2, %v991_v21  ;;  %950 = vmatmul.mubr.msk.bf16.gmra.mrb[36].mxu1 %vm355_vm2, %v992_v22 }
  0x5a   : > { %901 = vmatprep.mubr.msk.bf16.mxu0 %vm1007_vm1, %v1006_v1  ;;  %953 = vmatprep.mubr.msk.bf16.mxu1 %vm1007_vm1, %v1006_v1 }
  0x61   : > { %902 = vmatmul.mubr.msk.bf16.gmra.mrb[40].mxu0 %vm355_vm2, %v993_v23  ;;  %954 = vmatmul.mubr.msk.bf16.gmra.mrb[40].mxu1 %vm355_vm2, %v994_v24 }
  0x62   : > { %905 = vmatprep.mubr.msk.bf16.mxu0 %vm1007_vm1, %v1006_v1  ;;  %957 = vmatprep.mubr.msk.bf16.mxu1 %vm1007_vm1, %v1006_v1 }
  0x69   : > { %906 = vmatmul.mubr.msk.bf16.gmra.mrb[44].mxu0 %vm355_vm2, %v995_v25  ;;  %958 = vmatmul.mubr.msk.bf16.gmra.mrb[44].mxu1 %vm355_vm2, %v996_v26 }
  0x6a   : > { %909 = vmatprep.mubr.msk.bf16.mxu0 %vm1007_vm1, %v1006_v1 }
  0x71   : > { %910 = vmatmul.mubr.msk.bf16.gmra.mrb[48].mxu0 %vm355_vm2, %v997_v27 }
  0xe4   : > { %v469_v29 = vpop.f32.mrb[0].mxu0  ;;  %v573_v32 = vpop.f32.mrb[0].mxu1 }
  0xe5   : > { %v470_v30 = vadd.f32 %v1153_v28, %v469_v29  ;;  %v863_v31 = vpop.f32.mrb[1].mxu0  ;;  %v574_v34 = vadd.f32 %v1153_v28, %v573_v32  ;;  %v915_v35 = vpop.f32.mrb[1].mxu1 }
  0xe6   : > { %v472_v33 = vpop.f32.mrb[2].mxu0  ;;  %v576_v38 = vpop.f32.mrb[2].mxu1 }
  0xe7   : > { %668 = vst.msk [vmem:[%s1158_s26] sm:$0xff] %vm667_vm3, %v470_v30  ;;  %v473_v36 = vadd.f32 %v1153_v28, %v472_v33  ;;  %v864_v37 = vpop.f32.mrb[3].mxu0  ;;  %694 = vst.msk [vmem:[%s1158_s26 + $0xd0] sm:$0xff] %vm667_vm3, %v574_v34  ;;  %v577_v39 = vadd.f32 %v1153_v28, %v576_v38  ;;  %v916_v40 = vpop.f32.mrb[3].mxu1 }
  0xe9   : > { %669 = vst.msk [vmem:[%s1158_s26 + $0x8] sm:$0xff] %vm667_vm3, %v473_v36  ;;  %695 = vst.msk [vmem:[%s1158_s26 + $0xd8] sm:$0xff] %vm667_vm3, %v577_v39 }
  0xec   : > { %v477_v41 = vpop.f32.mrb[4].mxu0  ;;  %v581_v44 = vpop.f32.mrb[4].mxu1 }
  0xed   : > { %v478_v42 = vadd.f32 %v1153_v28, %v477_v41  ;;  %v867_v43 = vpop.f32.mrb[5].mxu0  ;;  %v582_v46 = vadd.f32 %v1153_v28, %v581_v44  ;;  %v919_v47 = vpop.f32.mrb[5].mxu1 }
  0xee   : > { %v480_v45 = vpop.f32.mrb[6].mxu0  ;;  %v584_v50 = vpop.f32.mrb[6].mxu1 }
  0xef   : > { %670 = vst.msk [vmem:[%s1158_s26 + $0x10] sm:$0xff] %vm667_vm3, %v478_v42  ;;  %v481_v48 = vadd.f32 %v1153_v28, %v480_v45  ;;  %v868_v49 = vpop.f32.mrb[7].mxu0  ;;  %696 = vst.msk [vmem:[%s1158_s26 + $0xe0] sm:$0xff] %vm667_vm3, %v582_v46  ;;  %v585_v51 = vadd.f32 %v1153_v28, %v584_v50  ;;  %v920_v52 = vpop.f32.mrb[7].mxu1 }
  0xf1   : > { %671 = vst.msk [vmem:[%s1158_s26 + $0x18] sm:$0xff] %vm667_vm3, %v481_v48  ;;  %697 = vst.msk [vmem:[%s1158_s26 + $0xe8] sm:$0xff] %vm667_vm3, %v585_v51 }
  0xf4   : > { %v485_v53 = vpop.f32.mrb[8].mxu0  ;;  %v589_v56 = vpop.f32.mrb[8].mxu1 }
  0xf5   : > { %v486_v54 = vadd.f32 %v1153_v28, %v485_v53  ;;  %v871_v55 = vpop.f32.mrb[9].mxu0  ;;  %v590_v58 = vadd.f32 %v1153_v28, %v589_v56  ;;  %v923_v59 = vpop.f32.mrb[9].mxu1 }
  0xf6   : > { %v488_v57 = vpop.f32.mrb[10].mxu0  ;;  %v592_v62 = vpop.f32.mrb[10].mxu1 }
  0xf7   : > { %672 = vst.msk [vmem:[%s1158_s26 + $0x20] sm:$0xff] %vm667_vm3, %v486_v54  ;;  %v489_v60 = vadd.f32 %v1153_v28, %v488_v57  ;;  %v872_v61 = vpop.f32.mrb[11].mxu0  ;;  %698 = vst.msk [vmem:[%s1158_s26 + $0xf0] sm:$0xff] %vm667_vm3, %v590_v58  ;;  %v593_v63 = vadd.f32 %v1153_v28, %v592_v62  ;;  %v924_v0 = vpop.f32.mrb[11].mxu1 }
  0xf9   : > { %673 = vst.msk [vmem:[%s1158_s26 + $0x28] sm:$0xff] %vm667_vm3, %v489_v60  ;;  %699 = vst.msk [vmem:[%s1158_s26 + $0xf8] sm:$0xff] %vm667_vm3, %v593_v63 }
  0xfc   : > { %v493_v1 = vpop.f32.mrb[12].mxu0  ;;  %v597_v4 = vpop.f32.mrb[12].mxu1 }
  0xfd   : > { %v494_v2 = vadd.f32 %v1153_v28, %v493_v1  ;;  %v875_v3 = vpop.f32.mrb[13].mxu0  ;;  %v598_v6 = vadd.f32 %v1153_v28, %v597_v4  ;;  %v927_v7 = vpop.f32.mrb[13].mxu1 }
  0xfe   : > { %v496_v5 = vpop.f32.mrb[14].mxu0  ;;  %v600_v10 = vpop.f32.mrb[14].mxu1 }
  0xff   : > { %674 = vst.msk [vmem:[%s1158_s26 + $0x30] sm:$0xff] %vm667_vm3, %v494_v2  ;;  %v497_v8 = vadd.f32 %v1153_v28, %v496_v5  ;;  %v876_v9 = vpop.f32.mrb[15].mxu0  ;;  %700 = vst.msk [vmem:[%s1158_s26 + $0x100] sm:$0xff] %vm667_vm3, %v598_v6  ;;  %v601_v11 = vadd.f32 %v1153_v28, %v600_v10  ;;  %v928_v12 = vpop.f32.mrb[15].mxu1 }
 0x101   : > { %675 = vst.msk [vmem:[%s1158_s26 + $0x38] sm:$0xff] %vm667_vm3, %v497_v8  ;;  %701 = vst.msk [vmem:[%s1158_s26 + $0x108] sm:$0xff] %vm667_vm3, %v601_v11 }
 0x104   : > { %v501_v13 = vpop.f32.mrb[16].mxu0  ;;  %v605_v16 = vpop.f32.mrb[16].mxu1 }
 0x105   : > { %v502_v14 = vadd.f32 %v1153_v28, %v501_v13  ;;  %v879_v15 = vpop.f32.mrb[17].mxu0  ;;  %v606_v18 = vadd.f32 %v1153_v28, %v605_v16  ;;  %v931_v19 = vpop.f32.mrb[17].mxu1 }
 0x106   : > { %v504_v17 = vpop.f32.mrb[18].mxu0  ;;  %v608_v22 = vpop.f32.mrb[18].mxu1 }
 0x107   : > { %676 = vst.msk [vmem:[%s1158_s26 + $0x40] sm:$0xff] %vm667_vm3, %v502_v14  ;;  %v505_v20 = vadd.f32 %v1153_v28, %v504_v17  ;;  %v880_v21 = vpop.f32.mrb[19].mxu0  ;;  %702 = vst.msk [vmem:[%s1158_s26 + $0x110] sm:$0xff] %vm667_vm3, %v606_v18  ;;  %v609_v23 = vadd.f32 %v1153_v28, %v608_v22  ;;  %v932_v24 = vpop.f32.mrb[19].mxu1 }
 0x109   : > { %677 = vst.msk [vmem:[%s1158_s26 + $0x48] sm:$0xff] %vm667_vm3, %v505_v20  ;;  %703 = vst.msk [vmem:[%s1158_s26 + $0x118] sm:$0xff] %vm667_vm3, %v609_v23 }
 0x10c   : > { %v509_v25 = vpop.f32.mrb[20].mxu0  ;;  %v613_v29 = vpop.f32.mrb[20].mxu1 }
 0x10d   : > { %v510_v26 = vadd.f32 %v1153_v28, %v509_v25  ;;  %v883_v27 = vpop.f32.mrb[21].mxu0  ;;  %v614_v31 = vadd.f32 %v1153_v28, %v613_v29  ;;  %v935_v32 = vpop.f32.mrb[21].mxu1 }
 0x10e   : > { %v512_v30 = vpop.f32.mrb[22].mxu0  ;;  %v616_v35 = vpop.f32.mrb[22].mxu1 }
 0x10f   : > { %678 = vst.msk [vmem:[%s1158_s26 + $0x50] sm:$0xff] %vm667_vm3, %v510_v26  ;;  %v513_v33 = vadd.f32 %v1153_v28, %v512_v30  ;;  %v884_v34 = vpop.f32.mrb[23].mxu0  ;;  %704 = vst.msk [vmem:[%s1158_s26 + $0x120] sm:$0xff] %vm667_vm3, %v614_v31  ;;  %v617_v36 = vadd.f32 %v1153_v28, %v616_v35  ;;  %v936_v37 = vpop.f32.mrb[23].mxu1 }
 0x111   : > { %679 = vst.msk [vmem:[%s1158_s26 + $0x58] sm:$0xff] %vm667_vm3, %v513_v33  ;;  %705 = vst.msk [vmem:[%s1158_s26 + $0x128] sm:$0xff] %vm667_vm3, %v617_v36 }
 0x114   : > { %v517_v38 = vpop.f32.mrb[24].mxu0  ;;  %v621_v41 = vpop.f32.mrb[24].mxu1 }
 0x115   : > { %v518_v39 = vadd.f32 %v1153_v28, %v517_v38  ;;  %v887_v40 = vpop.f32.mrb[25].mxu0  ;;  %v622_v43 = vadd.f32 %v1153_v28, %v621_v41  ;;  %v939_v44 = vpop.f32.mrb[25].mxu1 }
 0x116   : > { %v520_v42 = vpop.f32.mrb[26].mxu0  ;;  %v624_v47 = vpop.f32.mrb[26].mxu1 }
 0x117   : > { %680 = vst.msk [vmem:[%s1158_s26 + $0x60] sm:$0xff] %vm667_vm3, %v518_v39  ;;  %v521_v45 = vadd.f32 %v1153_v28, %v520_v42  ;;  %v888_v46 = vpop.f32.mrb[27].mxu0  ;;  %706 = vst.msk [vmem:[%s1158_s26 + $0x130] sm:$0xff] %vm667_vm3, %v622_v43  ;;  %v625_v48 = vadd.f32 %v1153_v28, %v624_v47  ;;  %v940_v49 = vpop.f32.mrb[27].mxu1 }
 0x119   : > { %681 = vst.msk [vmem:[%s1158_s26 + $0x68] sm:$0xff] %vm667_vm3, %v521_v45  ;;  %707 = vst.msk [vmem:[%s1158_s26 + $0x138] sm:$0xff] %vm667_vm3, %v625_v48 }
 0x11c   : > { %v525_v50 = vpop.f32.mrb[28].mxu0  ;;  %v629_v53 = vpop.f32.mrb[28].mxu1 }
 0x11d   : > { %v526_v51 = vadd.f32 %v1153_v28, %v525_v50  ;;  %v891_v52 = vpop.f32.mrb[29].mxu0  ;;  %v630_v55 = vadd.f32 %v1153_v28, %v629_v53  ;;  %v943_v56 = vpop.f32.mrb[29].mxu1 }
 0x11e   : > { %v528_v54 = vpop.f32.mrb[30].mxu0  ;;  %v632_v59 = vpop.f32.mrb[30].mxu1 }
 0x11f   : > { %682 = vst.msk [vmem:[%s1158_s26 + $0x70] sm:$0xff] %vm667_vm3, %v526_v51  ;;  %v529_v57 = vadd.f32 %v1153_v28, %v528_v54  ;;  %v892_v58 = vpop.f32.mrb[31].mxu0  ;;  %708 = vst.msk [vmem:[%s1158_s26 + $0x140] sm:$0xff] %vm667_vm3, %v630_v55  ;;  %v633_v60 = vadd.f32 %v1153_v28, %v632_v59  ;;  %v944_v61 = vpop.f32.mrb[31].mxu1 }
 0x121   : > { %683 = vst.msk [vmem:[%s1158_s26 + $0x78] sm:$0xff] %vm667_vm3, %v529_v57  ;;  %709 = vst.msk [vmem:[%s1158_s26 + $0x148] sm:$0xff] %vm667_vm3, %v633_v60 }
 0x124   : > { %v533_v62 = vpop.f32.mrb[32].mxu0  ;;  %v637_v1 = vpop.f32.mrb[32].mxu1 }
 0x125   : > { %v534_v63 = vadd.f32 %v1153_v28, %v533_v62  ;;  %v895_v0 = vpop.f32.mrb[33].mxu0  ;;  %v638_v3 = vadd.f32 %v1153_v28, %v637_v1  ;;  %v947_v4 = vpop.f32.mrb[33].mxu1 }
 0x126   : > { %v536_v2 = vpop.f32.mrb[34].mxu0  ;;  %v640_v7 = vpop.f32.mrb[34].mxu1 }
 0x127   : > { %684 = vst.msk [vmem:[%s1158_s26 + $0x80] sm:$0xff] %vm667_vm3, %v534_v63  ;;  %v537_v5 = vadd.f32 %v1153_v28, %v536_v2  ;;  %v896_v6 = vpop.f32.mrb[35].mxu0  ;;  %710 = vst.msk [vmem:[%s1158_s26 + $0x150] sm:$0xff] %vm667_vm3, %v638_v3  ;;  %v641_v8 = vadd.f32 %v1153_v28, %v640_v7  ;;  %v948_v9 = vpop.f32.mrb[35].mxu1 }
 0x129   : > { %685 = vst.msk [vmem:[%s1158_s26 + $0x88] sm:$0xff] %vm667_vm3, %v537_v5  ;;  %711 = vst.msk [vmem:[%s1158_s26 + $0x158] sm:$0xff] %vm667_vm3, %v641_v8 }
 0x12c   : > { %v541_v10 = vpop.f32.mrb[36].mxu0  ;;  %v645_v13 = vpop.f32.mrb[36].mxu1 }
 0x12d   : > { %v542_v11 = vadd.f32 %v1153_v28, %v541_v10  ;;  %v899_v12 = vpop.f32.mrb[37].mxu0  ;;  %v646_v15 = vadd.f32 %v1153_v28, %v645_v13  ;;  %v951_v16 = vpop.f32.mrb[37].mxu1 }
 0x12e   : > { %v544_v14 = vpop.f32.mrb[38].mxu0  ;;  %v648_v19 = vpop.f32.mrb[38].mxu1 }
 0x12f   : > { %686 = vst.msk [vmem:[%s1158_s26 + $0x90] sm:$0xff] %vm667_vm3, %v542_v11  ;;  %v545_v17 = vadd.f32 %v1153_v28, %v544_v14  ;;  %v900_v18 = vpop.f32.mrb[39].mxu0  ;;  %712 = vst.msk [vmem:[%s1158_s26 + $0x160] sm:$0xff] %vm667_vm3, %v646_v15  ;;  %v649_v20 = vadd.f32 %v1153_v28, %v648_v19  ;;  %v952_v21 = vpop.f32.mrb[39].mxu1 }
 0x131   : > { %687 = vst.msk [vmem:[%s1158_s26 + $0x98] sm:$0xff] %vm667_vm3, %v545_v17  ;;  %713 = vst.msk [vmem:[%s1158_s26 + $0x168] sm:$0xff] %vm667_vm3, %v649_v20 }
 0x134   : > { %v549_v22 = vpop.f32.mrb[40].mxu0  ;;  %v653_v25 = vpop.f32.mrb[40].mxu1 }
 0x135   : > { %v550_v23 = vadd.f32 %v1153_v28, %v549_v22  ;;  %v903_v24 = vpop.f32.mrb[41].mxu0  ;;  %v654_v27 = vadd.f32 %v1153_v28, %v653_v25  ;;  %v955_v29 = vpop.f32.mrb[41].mxu1 }
 0x136   : > { %v552_v26 = vpop.f32.mrb[42].mxu0  ;;  %v656_v32 = vpop.f32.mrb[42].mxu1 }
 0x137   : > { %688 = vst.msk [vmem:[%s1158_s26 + $0xa0] sm:$0xff] %vm667_vm3, %v550_v23  ;;  %v553_v30 = vadd.f32 %v1153_v28, %v552_v26  ;;  %v904_v31 = vpop.f32.mrb[43].mxu0  ;;  %714 = vst.msk [vmem:[%s1158_s26 + $0x170] sm:$0xff] %vm667_vm3, %v654_v27  ;;  %v657_v33 = vadd.f32 %v1153_v28, %v656_v32  ;;  %v956_v34 = vpop.f32.mrb[43].mxu1 }
 0x139   : > { %689 = vst.msk [vmem:[%s1158_s26 + $0xa8] sm:$0xff] %vm667_vm3, %v553_v30  ;;  %715 = vst.msk [vmem:[%s1158_s26 + $0x178] sm:$0xff] %vm667_vm3, %v657_v33 }
 0x13c   : > { %v557_v35 = vpop.f32.mrb[44].mxu0  ;;  %v661_v38 = vpop.f32.mrb[44].mxu1 }
 0x13d   : > { %v558_v36 = vadd.f32 %v1153_v28, %v557_v35  ;;  %v907_v37 = vpop.f32.mrb[45].mxu0  ;;  %v662_v40 = vadd.f32 %v1153_v28, %v661_v38  ;;  %v959_v41 = vpop.f32.mrb[45].mxu1 }
 0x13e   : > { %v560_v39 = vpop.f32.mrb[46].mxu0  ;;  %v664_v44 = vpop.f32.mrb[46].mxu1 }
 0x13f   : > { %690 = vst.msk [vmem:[%s1158_s26 + $0xb0] sm:$0xff] %vm667_vm3, %v558_v36  ;;  %v561_v42 = vadd.f32 %v1153_v28, %v560_v39  ;;  %v908_v43 = vpop.f32.mrb[47].mxu0  ;;  %716 = vst.msk [vmem:[%s1158_s26 + $0x180] sm:$0xff] %vm667_vm3, %v662_v40  ;;  %v960_v45 = vpop.f32.mrb[47].mxu1 }
 0x141   : > { %691 = vst.msk [vmem:[%s1158_s26 + $0xb8] sm:$0xff] %vm667_vm3, %v561_v42 }
 0x144   : > { %v565_v46 = vpop.f32.mrb[48].mxu0 }
 0x145   : > { %v566_v47 = vadd.f32 %v1153_v28, %v565_v46  ;;  %v911_v48 = vpop.f32.mrb[49].mxu0 }
 0x146   : > { %v568_v49 = vpop.f32.mrb[50].mxu0 }
 0x147   : > { %692 = vst.msk [vmem:[%s1158_s26 + $0xc0] sm:$0xff] %vm667_vm3, %v566_v47  ;;  %v569_v50 = vadd.f32 %v1153_v28, %v568_v49  ;;  %v912_v51 = vpop.f32.mrb[51].mxu0 }
 0x149   : > { %693 = vst.msk [vmem:[%s1158_s26 + $0xc8] sm:$0xff] %vm667_vm3, %v569_v50 }
 0x14a PF: > { %s13_s12 = sadd.s32 1, %s1004_s12  }
 0x14b   : > { %p10_p4 = scmp.ge.s32.totalorder %s13_s12, 6  }
 0x14d   :  { %12 = sbr.rel (!%p10_p4) target bundleno = 1 (0x1), region = 62 }

// kernel: unet3_forward.44
= control target key start
LH: loop header
LB: loop body
LE: loop exit
PB: predicated region body
PF: predicated region fallthrough
CT: control target
= control target key end

     0   :  { %v963_v0 = vmov 0   ;;  %vm365_vm0 = vcmask 130048   ;;  %vm722_vm1 = vcmask 261120   ;;  %s1433_s1 = inlined_call_operand.vmem [shape: bf16[144,32], index: 1, kind: input, shape index: {}]   ;;  %s1434_s0 = inlined_call_operand.vmem [shape: bf16[392,144], index: 0, kind: input, shape index: {}]   ;;  %s1435_s2 = inlined_call_operand.vmem [shape: f32[1,32], index: 2, kind: input, shape index: {}]   ;;  %s1436_s3 = inlined_call_operand.vmem [shape: f32[392,32], index: 3, kind: output, shape index: {}]  }
   0x1   :  { %441 = vmatprep.subr.bf16.mxu0 %v963_v0  ;;  %v880_v1 = vld [vmem:[%s1433_s1] sm:$0xff]   ;;  %861 = vmatprep.subr.bf16.mxu1 %v963_v0  ;;  %v881_v2 = vld [vmem:[%s1433_s1 + $0x8] sm:$0xff]   ;;  %v882_v3 = vld [vmem:[%s1433_s1 + $0x10] sm:$0xff]  }
   0x2   :  { %442 = vmatpush1.bf16.msra.mxu0 %v880_v1  ;;  %870 = vmatpush1.bf16.msra.mxu1 %v880_v1  ;;  %v883_v4 = vld [vmem:[%s1433_s1 + $0x18] sm:$0xff]   ;;  %v891_v5 = vld [vmem:[%s1434_s0 + $0x4] ss:$8 sps:$4 sm:$0xff]   ;;  %v886_v9 = vld [vmem:[%s1433_s1 + $0x30] sm:$0xff]  }
   0x3   :  { %443 = vmatprep.subr.bf16.mxu0 %v963_v0  ;;  %862 = vmatprep.subr.bf16.mxu1 %v963_v0  ;;  %v894_v6 = vld [vmem:[%s1434_s0 + $0xd4] ss:$8 sps:$4 sm:$0xff]   ;;  %v884_v7 = vld [vmem:[%s1433_s1 + $0x20] sm:$0xff]   ;;  %v885_v8 = vld [vmem:[%s1433_s1 + $0x28] sm:$0xff]  }
   0x4   :  { %836 = vmatprep.mubr.msk.bf16.mxu0 %vm365_vm0, %v891_v5  ;;  %849 = vmatprep.mubr.msk.bf16.mxu1 %vm365_vm0, %v894_v6  ;;  %v887_v10 = vld [vmem:[%s1433_s1 + $0x38] sm:$0xff]   ;;  %v888_v11 = vld [vmem:[%s1433_s1 + $0x40] sm:$0xff]  }
   0x5   :  { %v889_v12 = vld [vmem:[%s1434_s0] ss:$8 sps:$4 sm:$0xff]   ;;  %v892_v13 = vld [vmem:[%s1434_s0 + $0xd0] ss:$8 sps:$4 sm:$0xff]   ;;  %v895_v14 = vld [vmem:[%s1434_s0 + $0x14] ss:$8 sps:$4 sm:$0xff]  }
   0x6   :  { %444 = vmatpush1.bf16.msra.mxu0 %v881_v2  ;;  %871 = vmatpush1.bf16.msra.mxu1 %v881_v2  ;;  %v898_v15 = vld [vmem:[%s1434_s0 + $0xe4] ss:$8 sps:$4 sm:$0xff]   ;;  %v897_v16 = vld [vmem:[%s1434_s0 + $0x10] ss:$8 sps:$4 sm:$0xff]   ;;  %v902_v17 = vld [vmem:[%s1434_s0 + $0xe0] ss:$8 sps:$4 sm:$0xff]  }
   0x7   :  { %445 = vmatprep.subr.bf16.mxu0 %v963_v0  ;;  %863 = vmatprep.subr.bf16.mxu1 %v963_v0  ;;  %v900_v18 = vld [vmem:[%s1434_s0 + $0x24] ss:$8 sps:$4 sm:$0xff]   ;;  %v904_v19 = vld [vmem:[%s1434_s0 + $0xf4] ss:$8 sps:$4 sm:$0xff]   ;;  %v903_v20 = vld [vmem:[%s1434_s0 + $0x20] ss:$8 sps:$4 sm:$0xff]  }
   0x8   :  { %v908_v21 = vld [vmem:[%s1434_s0 + $0xf0] ss:$8 sps:$4 sm:$0xff]   ;;  %v906_v22 = vld [vmem:[%s1434_s0 + $0x34] ss:$8 sps:$4 sm:$0xff]   ;;  %v910_v23 = vld [vmem:[%s1434_s0 + $0x104] ss:$8 sps:$4 sm:$0xff]  }
   0x9   :  { %v909_v24 = vld [vmem:[%s1434_s0 + $0x30] ss:$8 sps:$4 sm:$0xff]   ;;  %v914_v25 = vld [vmem:[%s1434_s0 + $0x100] ss:$8 sps:$4 sm:$0xff]   ;;  %v912_v26 = vld [vmem:[%s1434_s0 + $0x44] ss:$8 sps:$4 sm:$0xff]  }
   0xa   :  { %446 = vmatpush1.bf16.msra.mxu0 %v882_v3  ;;  %872 = vmatpush1.bf16.msra.mxu1 %v882_v3  ;;  %v916_v27 = vld [vmem:[%s1434_s0 + $0x114] ss:$8 sps:$4 sm:$0xff]   ;;  %v915_v28 = vld [vmem:[%s1434_s0 + $0x40] ss:$8 sps:$4 sm:$0xff]   ;;  %v920_v29 = vld [vmem:[%s1434_s0 + $0x110] ss:$8 sps:$4 sm:$0xff]  }
   0xb   :  { %447 = vmatprep.subr.bf16.mxu0 %v963_v0  ;;  %864 = vmatprep.subr.bf16.mxu1 %v963_v0  ;;  %v918_v30 = vld [vmem:[%s1434_s0 + $0x54] ss:$8 sps:$4 sm:$0xff]   ;;  %v922_v31 = vld [vmem:[%s1434_s0 + $0x124] ss:$8 sps:$4 sm:$0xff]   ;;  %v921_v32 = vld [vmem:[%s1434_s0 + $0x50] ss:$8 sps:$4 sm:$0xff]  }
   0xc   :  { %v926_v33 = vld [vmem:[%s1434_s0 + $0x120] ss:$8 sps:$4 sm:$0xff]   ;;  %v924_v34 = vld [vmem:[%s1434_s0 + $0x64] ss:$8 sps:$4 sm:$0xff]   ;;  %v928_v35 = vld [vmem:[%s1434_s0 + $0x134] ss:$8 sps:$4 sm:$0xff]  }
   0xd   :  { %v927_v36 = vld [vmem:[%s1434_s0 + $0x60] ss:$8 sps:$4 sm:$0xff]   ;;  %v932_v37 = vld [vmem:[%s1434_s0 + $0x130] ss:$8 sps:$4 sm:$0xff]   ;;  %v930_v38 = vld [vmem:[%s1434_s0 + $0x74] ss:$8 sps:$4 sm:$0xff]  }
   0xe   :  { %448 = vmatpush1.bf16.msra.mxu0 %v883_v4  ;;  %873 = vmatpush1.bf16.msra.mxu1 %v883_v4  ;;  %v934_v39 = vld [vmem:[%s1434_s0 + $0x144] ss:$8 sps:$4 sm:$0xff]   ;;  %v933_v40 = vld [vmem:[%s1434_s0 + $0x70] ss:$8 sps:$4 sm:$0xff]   ;;  %v938_v41 = vld [vmem:[%s1434_s0 + $0x140] ss:$8 sps:$4 sm:$0xff]  }
   0xf   :  { %449 = vmatprep.subr.bf16.mxu0 %v963_v0  ;;  %865 = vmatprep.subr.bf16.mxu1 %v963_v0  ;;  %v936_v42 = vld [vmem:[%s1434_s0 + $0x84] ss:$8 sps:$4 sm:$0xff]   ;;  %v940_v43 = vld [vmem:[%s1434_s0 + $0x154] ss:$8 sps:$4 sm:$0xff]   ;;  %v939_v44 = vld [vmem:[%s1434_s0 + $0x80] ss:$8 sps:$4 sm:$0xff]  }
  0x10   :  { %v944_v45 = vld [vmem:[%s1434_s0 + $0x150] ss:$8 sps:$4 sm:$0xff]   ;;  %v942_v46 = vld [vmem:[%s1434_s0 + $0x94] ss:$8 sps:$4 sm:$0xff]   ;;  %v946_v47 = vld [vmem:[%s1434_s0 + $0x164] ss:$8 sps:$4 sm:$0xff]  }
  0x11   :  { %v945_v48 = vld [vmem:[%s1434_s0 + $0x90] ss:$8 sps:$4 sm:$0xff]   ;;  %v950_v49 = vld [vmem:[%s1434_s0 + $0x160] ss:$8 sps:$4 sm:$0xff]   ;;  %v948_v50 = vld [vmem:[%s1434_s0 + $0xa4] ss:$8 sps:$4 sm:$0xff]  }
  0x12   :  { %450 = vmatpush1.bf16.msra.mxu0 %v884_v7  ;;  %874 = vmatpush1.bf16.msra.mxu1 %v884_v7  ;;  %v952_v51 = vld [vmem:[%s1434_s0 + $0x174] ss:$8 sps:$4 sm:$0xff]   ;;  %v63_v52 = vld [vmem:[%s1434_s0 + $0x180] sm:$0xff]  ;;  %v956_v54 = vld [vmem:[%s1434_s0 + $0x170] ss:$8 sps:$4 sm:$0xff]  }
  0x13   :  { %451 = vmatprep.subr.bf16.mxu0 %v963_v0  ;;  %866 = vmatprep.subr.bf16.mxu1 %v963_v0  ;;  %v951_v53 = vld [vmem:[%s1434_s0 + $0xa0] ss:$8 sps:$4 sm:$0xff]   ;;  %v954_v55 = vld [vmem:[%s1434_s0 + $0xb4] ss:$8 sps:$4 sm:$0xff]   ;;  %v826_v56 = vcombine.high %v63_v52, %v63_v52  ;;  %v957_v57 = vld [vmem:[%s1434_s0 + $0xb0] ss:$8 sps:$4 sm:$0xff]   ;;  %v825_v58 = vcombine.low %v63_v52, %v63_v52 }
  0x14   :  { %v959_v59 = vld [vmem:[%s1434_s0 + $0xc4] ss:$8 sps:$4 sm:$0xff]   ;;  %v962_v60 = vld [vmem:[%s1434_s0 + $0xc0] ss:$8 sps:$4 sm:$0xff]  }
  0x15   :  { %v1186_v61 = vld [vmem:[%s1435_s2] ss:$0 sm:$0xff] }
  0x16   :  { %452 = vmatpush1.bf16.msra.mxu0 %v885_v8  ;;  %875 = vmatpush1.bf16.msra.mxu1 %v885_v8 }
  0x17   :  { %453 = vmatprep.subr.bf16.mxu0 %v963_v0  ;;  %867 = vmatprep.subr.bf16.mxu1 %v963_v0 }
  0x1a   :  { %454 = vmatpush1.bf16.msra.mxu0 %v886_v9  ;;  %876 = vmatpush1.bf16.msra.mxu1 %v886_v9 }
  0x1b   :  { %455 = vmatprep.subr.bf16.mxu0 %v963_v0  ;;  %868 = vmatprep.subr.bf16.mxu1 %v963_v0 }
  0x1e   :  { %456 = vmatpush1.bf16.msra.mxu0 %v887_v10  ;;  %877 = vmatpush1.bf16.msra.mxu1 %v887_v10 }
  0x1f   :  { %457 = vmatprep.subr.bf16.mxu0 %v963_v0  ;;  %869 = vmatprep.subr.bf16.mxu1 %v963_v0 }
  0x22   :  { %458 = vmatpush1.bf16.msra.mxu0 %v888_v11  ;;  %878 = vmatpush1.bf16.msra.mxu1 %v888_v11 }
  0x25   :  { %474 = vmatmul.mubr.bf16.vlgmr.msra.gmra.mrb[0].mxu0 %v889_v12  ;;  %578 = vmatmul.mubr.bf16.vlgmr.msra.gmra.mrb[0].mxu1 %v892_v13 }
  0x26   :  { %837 = vmatprep.mubr.msk.bf16.mxu0 %vm365_vm0, %v895_v14  ;;  %850 = vmatprep.mubr.msk.bf16.mxu1 %vm365_vm0, %v898_v15 }
  0x2d   :  { %482 = vmatmul.mubr.bf16.gmra.mrb[4].mxu0 %v897_v16  ;;  %586 = vmatmul.mubr.bf16.gmra.mrb[4].mxu1 %v902_v17 }
  0x2e   :  { %838 = vmatprep.mubr.msk.bf16.mxu0 %vm365_vm0, %v900_v18  ;;  %851 = vmatprep.mubr.msk.bf16.mxu1 %vm365_vm0, %v904_v19 }
  0x35   :  { %490 = vmatmul.mubr.bf16.gmra.mrb[8].mxu0 %v903_v20  ;;  %594 = vmatmul.mubr.bf16.gmra.mrb[8].mxu1 %v908_v21 }
  0x36   :  { %839 = vmatprep.mubr.msk.bf16.mxu0 %vm365_vm0, %v906_v22  ;;  %852 = vmatprep.mubr.msk.bf16.mxu1 %vm365_vm0, %v910_v23 }
  0x3d   :  { %498 = vmatmul.mubr.bf16.gmra.mrb[12].mxu0 %v909_v24  ;;  %602 = vmatmul.mubr.bf16.gmra.mrb[12].mxu1 %v914_v25 }
  0x3e   :  { %840 = vmatprep.mubr.msk.bf16.mxu0 %vm365_vm0, %v912_v26  ;;  %853 = vmatprep.mubr.msk.bf16.mxu1 %vm365_vm0, %v916_v27 }
  0x45   :  { %506 = vmatmul.mubr.bf16.gmra.mrb[16].mxu0 %v915_v28  ;;  %610 = vmatmul.mubr.bf16.gmra.mrb[16].mxu1 %v920_v29 }
  0x46   :  { %841 = vmatprep.mubr.msk.bf16.mxu0 %vm365_vm0, %v918_v30  ;;  %854 = vmatprep.mubr.msk.bf16.mxu1 %vm365_vm0, %v922_v31 }
  0x4d   :  { %514 = vmatmul.mubr.bf16.gmra.mrb[20].mxu0 %v921_v32  ;;  %618 = vmatmul.mubr.bf16.gmra.mrb[20].mxu1 %v926_v33 }
  0x4e   :  { %842 = vmatprep.mubr.msk.bf16.mxu0 %vm365_vm0, %v924_v34  ;;  %855 = vmatprep.mubr.msk.bf16.mxu1 %vm365_vm0, %v928_v35 }
  0x55   :  { %522 = vmatmul.mubr.bf16.gmra.mrb[24].mxu0 %v927_v36  ;;  %626 = vmatmul.mubr.bf16.gmra.mrb[24].mxu1 %v932_v37 }
  0x56   :  { %843 = vmatprep.mubr.msk.bf16.mxu0 %vm365_vm0, %v930_v38  ;;  %856 = vmatprep.mubr.msk.bf16.mxu1 %vm365_vm0, %v934_v39 }
  0x5d   :  { %530 = vmatmul.mubr.bf16.gmra.mrb[28].mxu0 %v933_v40  ;;  %634 = vmatmul.mubr.bf16.gmra.mrb[28].mxu1 %v938_v41 }
  0x5e   :  { %844 = vmatprep.mubr.msk.bf16.mxu0 %vm365_vm0, %v936_v42  ;;  %857 = vmatprep.mubr.msk.bf16.mxu1 %vm365_vm0, %v940_v43 }
  0x65   :  { %538 = vmatmul.mubr.bf16.gmra.mrb[32].mxu0 %v939_v44  ;;  %642 = vmatmul.mubr.bf16.gmra.mrb[32].mxu1 %v944_v45 }
  0x66   :  { %845 = vmatprep.mubr.msk.bf16.mxu0 %vm365_vm0, %v942_v46  ;;  %858 = vmatprep.mubr.msk.bf16.mxu1 %vm365_vm0, %v946_v47 }
  0x6d   :  { %546 = vmatmul.mubr.bf16.gmra.mrb[36].mxu0 %v945_v48  ;;  %650 = vmatmul.mubr.bf16.gmra.mrb[36].mxu1 %v950_v49 }
  0x6e   :  { %846 = vmatprep.mubr.msk.bf16.mxu0 %vm365_vm0, %v948_v50  ;;  %859 = vmatprep.mubr.msk.bf16.mxu1 %vm365_vm0, %v952_v51 }
  0x75   :  { %554 = vmatmul.mubr.bf16.gmra.mrb[40].mxu0 %v951_v53  ;;  %658 = vmatmul.mubr.bf16.gmra.mrb[40].mxu1 %v956_v54 }
  0x76   :  { %847 = vmatprep.mubr.msk.bf16.mxu0 %vm365_vm0, %v954_v55  ;;  %860 = vmatprep.mubr.msk.bf16.mxu1 %vm365_vm0, %v826_v56 }
  0x7d   :  { %562 = vmatmul.mubr.bf16.gmra.mrb[44].mxu0 %v957_v57  ;;  %666 = vmatmul.mubr.bf16.gmra.mrb[44].mxu1 %v825_v58 }
  0x7e   :  { %848 = vmatprep.mubr.msk.bf16.mxu0 %vm365_vm0, %v959_v59 }
  0x85   :  { %570 = vmatmul.mubr.bf16.gmra.mrb[48].mxu0 %v962_v60 }
  0xf8   :  { %v475_v62 = vpop.f32.mrb[0].mxu0  ;;  %v579_v63 = vpop.f32.mrb[0].mxu1 }
  0xf9   :  { %v476_v0 = vadd.f32 %v1186_v61, %v475_v62  ;;  %v477_v1 = vpop.f32.mrb[1].mxu0  ;;  %v580_v2 = vadd.f32 %v1186_v61, %v579_v63  ;;  %v581_v3 = vpop.f32.mrb[1].mxu1 }
  0xfa   :  { %v478_v4 = vpop.f32.mrb[2].mxu0  ;;  %v582_v5 = vpop.f32.mrb[2].mxu1 }
  0xfb   :  { %v673_v6 = vmax.f32 %v476_v0, 0.0  ;;  %v479_v7 = vadd.f32 %v1186_v61, %v478_v4  ;;  %v480_v8 = vpop.f32.mrb[3].mxu0  ;;  %v699_v9 = vmax.f32 %v580_v2, 0.0  ;;  %v583_v10 = vadd.f32 %v1186_v61, %v582_v5  ;;  %v584_v11 = vpop.f32.mrb[3].mxu1 }
  0xfd   :  { %723 = vst.msk [vmem:[%s1436_s3] sm:$0xff] %vm722_vm1, %v673_v6  ;;  %v674_v12 = vmax.f32 %v479_v7, 0.0  ;;  %749 = vst.msk [vmem:[%s1436_s3 + $0xd0] sm:$0xff] %vm722_vm1, %v699_v9  ;;  %v700_v13 = vmax.f32 %v583_v10, 0.0 }
  0xff   :  { %724 = vst.msk [vmem:[%s1436_s3 + $0x8] sm:$0xff] %vm722_vm1, %v674_v12  ;;  %750 = vst.msk [vmem:[%s1436_s3 + $0xd8] sm:$0xff] %vm722_vm1, %v700_v13 }
 0x100   :  { %v483_v14 = vpop.f32.mrb[4].mxu0  ;;  %v587_v15 = vpop.f32.mrb[4].mxu1 }
 0x101   :  { %v484_v16 = vadd.f32 %v1186_v61, %v483_v14  ;;  %v485_v17 = vpop.f32.mrb[5].mxu0  ;;  %v588_v18 = vadd.f32 %v1186_v61, %v587_v15  ;;  %v589_v19 = vpop.f32.mrb[5].mxu1 }
 0x102   :  { %v486_v20 = vpop.f32.mrb[6].mxu0  ;;  %v590_v21 = vpop.f32.mrb[6].mxu1 }
 0x103   :  { %v675_v22 = vmax.f32 %v484_v16, 0.0  ;;  %v487_v23 = vadd.f32 %v1186_v61, %v486_v20  ;;  %v488_v24 = vpop.f32.mrb[7].mxu0  ;;  %v701_v25 = vmax.f32 %v588_v18, 0.0  ;;  %v591_v26 = vadd.f32 %v1186_v61, %v590_v21  ;;  %v592_v27 = vpop.f32.mrb[7].mxu1 }
 0x105   :  { %725 = vst.msk [vmem:[%s1436_s3 + $0x10] sm:$0xff] %vm722_vm1, %v675_v22  ;;  %v676_v28 = vmax.f32 %v487_v23, 0.0  ;;  %751 = vst.msk [vmem:[%s1436_s3 + $0xe0] sm:$0xff] %vm722_vm1, %v701_v25  ;;  %v702_v29 = vmax.f32 %v591_v26, 0.0 }
 0x107   :  { %726 = vst.msk [vmem:[%s1436_s3 + $0x18] sm:$0xff] %vm722_vm1, %v676_v28  ;;  %752 = vst.msk [vmem:[%s1436_s3 + $0xe8] sm:$0xff] %vm722_vm1, %v702_v29 }
 0x108   :  { %v491_v30 = vpop.f32.mrb[8].mxu0  ;;  %v595_v31 = vpop.f32.mrb[8].mxu1 }
 0x109   :  { %v492_v32 = vadd.f32 %v1186_v61, %v491_v30  ;;  %v493_v33 = vpop.f32.mrb[9].mxu0  ;;  %v596_v34 = vadd.f32 %v1186_v61, %v595_v31  ;;  %v597_v35 = vpop.f32.mrb[9].mxu1 }
 0x10a   :  { %v494_v36 = vpop.f32.mrb[10].mxu0  ;;  %v598_v37 = vpop.f32.mrb[10].mxu1 }
 0x10b   :  { %v677_v38 = vmax.f32 %v492_v32, 0.0  ;;  %v495_v39 = vadd.f32 %v1186_v61, %v494_v36  ;;  %v496_v40 = vpop.f32.mrb[11].mxu0  ;;  %v703_v41 = vmax.f32 %v596_v34, 0.0  ;;  %v599_v42 = vadd.f32 %v1186_v61, %v598_v37  ;;  %v600_v43 = vpop.f32.mrb[11].mxu1 }
 0x10d   :  { %727 = vst.msk [vmem:[%s1436_s3 + $0x20] sm:$0xff] %vm722_vm1, %v677_v38  ;;  %v678_v44 = vmax.f32 %v495_v39, 0.0  ;;  %753 = vst.msk [vmem:[%s1436_s3 + $0xf0] sm:$0xff] %vm722_vm1, %v703_v41  ;;  %v704_v45 = vmax.f32 %v599_v42, 0.0 }
 0x10f   :  { %728 = vst.msk [vmem:[%s1436_s3 + $0x28] sm:$0xff] %vm722_vm1, %v678_v44  ;;  %754 = vst.msk [vmem:[%s1436_s3 + $0xf8] sm:$0xff] %vm722_vm1, %v704_v45 }
 0x110   :  { %v499_v46 = vpop.f32.mrb[12].mxu0  ;;  %v603_v47 = vpop.f32.mrb[12].mxu1 }
 0x111   :  { %v500_v48 = vadd.f32 %v1186_v61, %v499_v46  ;;  %v501_v49 = vpop.f32.mrb[13].mxu0  ;;  %v604_v50 = vadd.f32 %v1186_v61, %v603_v47  ;;  %v605_v51 = vpop.f32.mrb[13].mxu1 }
 0x112   :  { %v502_v52 = vpop.f32.mrb[14].mxu0  ;;  %v606_v53 = vpop.f32.mrb[14].mxu1 }
 0x113   :  { %v679_v54 = vmax.f32 %v500_v48, 0.0  ;;  %v503_v55 = vadd.f32 %v1186_v61, %v502_v52  ;;  %v504_v56 = vpop.f32.mrb[15].mxu0  ;;  %v705_v57 = vmax.f32 %v604_v50, 0.0  ;;  %v607_v58 = vadd.f32 %v1186_v61, %v606_v53  ;;  %v608_v59 = vpop.f32.mrb[15].mxu1 }
 0x115   :  { %729 = vst.msk [vmem:[%s1436_s3 + $0x30] sm:$0xff] %vm722_vm1, %v679_v54  ;;  %v680_v60 = vmax.f32 %v503_v55, 0.0  ;;  %755 = vst.msk [vmem:[%s1436_s3 + $0x100] sm:$0xff] %vm722_vm1, %v705_v57  ;;  %v706_v62 = vmax.f32 %v607_v58, 0.0 }
 0x117   :  { %730 = vst.msk [vmem:[%s1436_s3 + $0x38] sm:$0xff] %vm722_vm1, %v680_v60  ;;  %756 = vst.msk [vmem:[%s1436_s3 + $0x108] sm:$0xff] %vm722_vm1, %v706_v62 }
 0x118   :  { %v507_v63 = vpop.f32.mrb[16].mxu0  ;;  %v611_v0 = vpop.f32.mrb[16].mxu1 }
 0x119   :  { %v508_v1 = vadd.f32 %v1186_v61, %v507_v63  ;;  %v509_v2 = vpop.f32.mrb[17].mxu0  ;;  %v612_v3 = vadd.f32 %v1186_v61, %v611_v0  ;;  %v613_v4 = vpop.f32.mrb[17].mxu1 }
 0x11a   :  { %v510_v5 = vpop.f32.mrb[18].mxu0  ;;  %v614_v6 = vpop.f32.mrb[18].mxu1 }
 0x11b   :  { %v681_v7 = vmax.f32 %v508_v1, 0.0  ;;  %v511_v8 = vadd.f32 %v1186_v61, %v510_v5  ;;  %v512_v9 = vpop.f32.mrb[19].mxu0  ;;  %v707_v10 = vmax.f32 %v612_v3, 0.0  ;;  %v615_v11 = vadd.f32 %v1186_v61, %v614_v6  ;;  %v616_v12 = vpop.f32.mrb[19].mxu1 }
 0x11d   :  { %731 = vst.msk [vmem:[%s1436_s3 + $0x40] sm:$0xff] %vm722_vm1, %v681_v7  ;;  %v682_v13 = vmax.f32 %v511_v8, 0.0  ;;  %757 = vst.msk [vmem:[%s1436_s3 + $0x110] sm:$0xff] %vm722_vm1, %v707_v10  ;;  %v708_v14 = vmax.f32 %v615_v11, 0.0 }
 0x11f   :  { %732 = vst.msk [vmem:[%s1436_s3 + $0x48] sm:$0xff] %vm722_vm1, %v682_v13  ;;  %758 = vst.msk [vmem:[%s1436_s3 + $0x118] sm:$0xff] %vm722_vm1, %v708_v14 }
 0x120   :  { %v515_v15 = vpop.f32.mrb[20].mxu0  ;;  %v619_v16 = vpop.f32.mrb[20].mxu1 }
 0x121   :  { %v516_v17 = vadd.f32 %v1186_v61, %v515_v15  ;;  %v517_v18 = vpop.f32.mrb[21].mxu0  ;;  %v620_v19 = vadd.f32 %v1186_v61, %v619_v16  ;;  %v621_v20 = vpop.f32.mrb[21].mxu1 }
 0x122   :  { %v518_v21 = vpop.f32.mrb[22].mxu0  ;;  %v622_v22 = vpop.f32.mrb[22].mxu1 }
 0x123   :  { %v683_v23 = vmax.f32 %v516_v17, 0.0  ;;  %v519_v24 = vadd.f32 %v1186_v61, %v518_v21  ;;  %v520_v25 = vpop.f32.mrb[23].mxu0  ;;  %v709_v26 = vmax.f32 %v620_v19, 0.0  ;;  %v623_v27 = vadd.f32 %v1186_v61, %v622_v22  ;;  %v624_v28 = vpop.f32.mrb[23].mxu1 }
 0x125   :  { %733 = vst.msk [vmem:[%s1436_s3 + $0x50] sm:$0xff] %vm722_vm1, %v683_v23  ;;  %v684_v29 = vmax.f32 %v519_v24, 0.0  ;;  %759 = vst.msk [vmem:[%s1436_s3 + $0x120] sm:$0xff] %vm722_vm1, %v709_v26  ;;  %v710_v30 = vmax.f32 %v623_v27, 0.0 }
 0x127   :  { %734 = vst.msk [vmem:[%s1436_s3 + $0x58] sm:$0xff] %vm722_vm1, %v684_v29  ;;  %760 = vst.msk [vmem:[%s1436_s3 + $0x128] sm:$0xff] %vm722_vm1, %v710_v30 }
 0x128   :  { %v523_v31 = vpop.f32.mrb[24].mxu0  ;;  %v627_v32 = vpop.f32.mrb[24].mxu1 }
 0x129   :  { %v524_v33 = vadd.f32 %v1186_v61, %v523_v31  ;;  %v525_v34 = vpop.f32.mrb[25].mxu0  ;;  %v628_v35 = vadd.f32 %v1186_v61, %v627_v32  ;;  %v629_v36 = vpop.f32.mrb[25].mxu1 }
 0x12a   :  { %v526_v37 = vpop.f32.mrb[26].mxu0  ;;  %v630_v38 = vpop.f32.mrb[26].mxu1 }
 0x12b   :  { %v685_v39 = vmax.f32 %v524_v33, 0.0  ;;  %v527_v40 = vadd.f32 %v1186_v61, %v526_v37  ;;  %v528_v41 = vpop.f32.mrb[27].mxu0  ;;  %v711_v42 = vmax.f32 %v628_v35, 0.0  ;;  %v631_v43 = vadd.f32 %v1186_v61, %v630_v38  ;;  %v632_v44 = vpop.f32.mrb[27].mxu1 }
 0x12d   :  { %735 = vst.msk [vmem:[%s1436_s3 + $0x60] sm:$0xff] %vm722_vm1, %v685_v39  ;;  %v686_v45 = vmax.f32 %v527_v40, 0.0  ;;  %761 = vst.msk [vmem:[%s1436_s3 + $0x130] sm:$0xff] %vm722_vm1, %v711_v42  ;;  %v712_v46 = vmax.f32 %v631_v43, 0.0 }
 0x12f   :  { %736 = vst.msk [vmem:[%s1436_s3 + $0x68] sm:$0xff] %vm722_vm1, %v686_v45  ;;  %762 = vst.msk [vmem:[%s1436_s3 + $0x138] sm:$0xff] %vm722_vm1, %v712_v46 }
 0x130   :  { %v531_v47 = vpop.f32.mrb[28].mxu0  ;;  %v635_v48 = vpop.f32.mrb[28].mxu1 }
 0x131   :  { %v532_v49 = vadd.f32 %v1186_v61, %v531_v47  ;;  %v533_v50 = vpop.f32.mrb[29].mxu0  ;;  %v636_v51 = vadd.f32 %v1186_v61, %v635_v48  ;;  %v637_v52 = vpop.f32.mrb[29].mxu1 }
 0x132   :  { %v534_v53 = vpop.f32.mrb[30].mxu0  ;;  %v638_v54 = vpop.f32.mrb[30].mxu1 }
 0x133   :  { %v687_v55 = vmax.f32 %v532_v49, 0.0  ;;  %v535_v56 = vadd.f32 %v1186_v61, %v534_v53  ;;  %v536_v57 = vpop.f32.mrb[31].mxu0  ;;  %v713_v58 = vmax.f32 %v636_v51, 0.0  ;;  %v639_v59 = vadd.f32 %v1186_v61, %v638_v54  ;;  %v640_v60 = vpop.f32.mrb[31].mxu1 }
 0x135   :  { %737 = vst.msk [vmem:[%s1436_s3 + $0x70] sm:$0xff] %vm722_vm1, %v687_v55  ;;  %v688_v62 = vmax.f32 %v535_v56, 0.0  ;;  %763 = vst.msk [vmem:[%s1436_s3 + $0x140] sm:$0xff] %vm722_vm1, %v713_v58  ;;  %v714_v63 = vmax.f32 %v639_v59, 0.0 }
 0x137   :  { %738 = vst.msk [vmem:[%s1436_s3 + $0x78] sm:$0xff] %vm722_vm1, %v688_v62  ;;  %764 = vst.msk [vmem:[%s1436_s3 + $0x148] sm:$0xff] %vm722_vm1, %v714_v63 }
 0x138   :  { %v539_v0 = vpop.f32.mrb[32].mxu0  ;;  %v643_v1 = vpop.f32.mrb[32].mxu1 }
 0x139   :  { %v540_v2 = vadd.f32 %v1186_v61, %v539_v0  ;;  %v541_v3 = vpop.f32.mrb[33].mxu0  ;;  %v644_v4 = vadd.f32 %v1186_v61, %v643_v1  ;;  %v645_v5 = vpop.f32.mrb[33].mxu1 }
 0x13a   :  { %v542_v6 = vpop.f32.mrb[34].mxu0  ;;  %v646_v7 = vpop.f32.mrb[34].mxu1 }
 0x13b   :  { %v689_v8 = vmax.f32 %v540_v2, 0.0  ;;  %v543_v9 = vadd.f32 %v1186_v61, %v542_v6  ;;  %v544_v10 = vpop.f32.mrb[35].mxu0  ;;  %v715_v11 = vmax.f32 %v644_v4, 0.0  ;;  %v647_v12 = vadd.f32 %v1186_v61, %v646_v7  ;;  %v648_v13 = vpop.f32.mrb[35].mxu1 }
 0x13d   :  { %739 = vst.msk [vmem:[%s1436_s3 + $0x80] sm:$0xff] %vm722_vm1, %v689_v8  ;;  %v690_v14 = vmax.f32 %v543_v9, 0.0  ;;  %765 = vst.msk [vmem:[%s1436_s3 + $0x150] sm:$0xff] %vm722_vm1, %v715_v11  ;;  %v716_v15 = vmax.f32 %v647_v12, 0.0 }
 0x13f   :  { %740 = vst.msk [vmem:[%s1436_s3 + $0x88] sm:$0xff] %vm722_vm1, %v690_v14  ;;  %766 = vst.msk [vmem:[%s1436_s3 + $0x158] sm:$0xff] %vm722_vm1, %v716_v15 }
 0x140   :  { %v547_v16 = vpop.f32.mrb[36].mxu0  ;;  %v651_v17 = vpop.f32.mrb[36].mxu1 }
 0x141   :  { %v548_v18 = vadd.f32 %v1186_v61, %v547_v16  ;;  %v549_v19 = vpop.f32.mrb[37].mxu0  ;;  %v652_v20 = vadd.f32 %v1186_v61, %v651_v17  ;;  %v653_v21 = vpop.f32.mrb[37].mxu1 }
 0x142   :  { %v550_v22 = vpop.f32.mrb[38].mxu0  ;;  %v654_v23 = vpop.f32.mrb[38].mxu1 }
 0x143   :  { %v691_v24 = vmax.f32 %v548_v18, 0.0  ;;  %v551_v25 = vadd.f32 %v1186_v61, %v550_v22  ;;  %v552_v26 = vpop.f32.mrb[39].mxu0  ;;  %v717_v27 = vmax.f32 %v652_v20, 0.0  ;;  %v655_v28 = vadd.f32 %v1186_v61, %v654_v23  ;;  %v656_v29 = vpop.f32.mrb[39].mxu1 }
 0x145   :  { %741 = vst.msk [vmem:[%s1436_s3 + $0x90] sm:$0xff] %vm722_vm1, %v691_v24  ;;  %v692_v30 = vmax.f32 %v551_v25, 0.0  ;;  %767 = vst.msk [vmem:[%s1436_s3 + $0x160] sm:$0xff] %vm722_vm1, %v717_v27  ;;  %v718_v31 = vmax.f32 %v655_v28, 0.0 }
 0x147   :  { %742 = vst.msk [vmem:[%s1436_s3 + $0x98] sm:$0xff] %vm722_vm1, %v692_v30  ;;  %768 = vst.msk [vmem:[%s1436_s3 + $0x168] sm:$0xff] %vm722_vm1, %v718_v31 }
 0x148   :  { %v555_v32 = vpop.f32.mrb[40].mxu0  ;;  %v659_v33 = vpop.f32.mrb[40].mxu1 }
 0x149   :  { %v556_v34 = vadd.f32 %v1186_v61, %v555_v32  ;;  %v557_v35 = vpop.f32.mrb[41].mxu0  ;;  %v660_v36 = vadd.f32 %v1186_v61, %v659_v33  ;;  %v661_v37 = vpop.f32.mrb[41].mxu1 }
 0x14a   :  { %v558_v38 = vpop.f32.mrb[42].mxu0  ;;  %v662_v39 = vpop.f32.mrb[42].mxu1 }
 0x14b   :  { %v693_v40 = vmax.f32 %v556_v34, 0.0  ;;  %v559_v41 = vadd.f32 %v1186_v61, %v558_v38  ;;  %v560_v42 = vpop.f32.mrb[43].mxu0  ;;  %v719_v43 = vmax.f32 %v660_v36, 0.0  ;;  %v663_v44 = vadd.f32 %v1186_v61, %v662_v39  ;;  %v664_v45 = vpop.f32.mrb[43].mxu1 }
 0x14d   :  { %743 = vst.msk [vmem:[%s1436_s3 + $0xa0] sm:$0xff] %vm722_vm1, %v693_v40  ;;  %v694_v46 = vmax.f32 %v559_v41, 0.0  ;;  %769 = vst.msk [vmem:[%s1436_s3 + $0x170] sm:$0xff] %vm722_vm1, %v719_v43  ;;  %v720_v47 = vmax.f32 %v663_v44, 0.0 }
 0x14f   :  { %744 = vst.msk [vmem:[%s1436_s3 + $0xa8] sm:$0xff] %vm722_vm1, %v694_v46  ;;  %770 = vst.msk [vmem:[%s1436_s3 + $0x178] sm:$0xff] %vm722_vm1, %v720_v47 }
 0x150   :  { %v563_v48 = vpop.f32.mrb[44].mxu0  ;;  %v667_v49 = vpop.f32.mrb[44].mxu1 }
 0x151   :  { %v564_v50 = vadd.f32 %v1186_v61, %v563_v48  ;;  %v565_v51 = vpop.f32.mrb[45].mxu0  ;;  %v668_v52 = vadd.f32 %v1186_v61, %v667_v49  ;;  %v669_v53 = vpop.f32.mrb[45].mxu1 }
 0x152   :  { %v566_v54 = vpop.f32.mrb[46].mxu0  ;;  %v670_v55 = vpop.f32.mrb[46].mxu1 }
 0x153   :  { %v695_v56 = vmax.f32 %v564_v50, 0.0  ;;  %v567_v57 = vadd.f32 %v1186_v61, %v566_v54  ;;  %v568_v58 = vpop.f32.mrb[47].mxu0  ;;  %v721_v59 = vmax.f32 %v668_v52, 0.0  ;;  %v671_v60 = vpop.f32.mrb[47].mxu1 }
 0x155   :  { %745 = vst.msk [vmem:[%s1436_s3 + $0xb0] sm:$0xff] %vm722_vm1, %v695_v56  ;;  %v696_v62 = vmax.f32 %v567_v57, 0.0  ;;  %771 = vst.msk [vmem:[%s1436_s3 + $0x180] sm:$0xff] %vm722_vm1, %v721_v59 }
 0x157   :  { %746 = vst.msk [vmem:[%s1436_s3 + $0xb8] sm:$0xff] %vm722_vm1, %v696_v62 }
 0x158   :  { %v571_v63 = vpop.f32.mrb[48].mxu0 }
 0x159   :  { %v572_v0 = vadd.f32 %v1186_v61, %v571_v63  ;;  %v573_v1 = vpop.f32.mrb[49].mxu0 }
 0x15a   :  { %v574_v2 = vpop.f32.mrb[50].mxu0 }
 0x15b   :  { %v697_v3 = vmax.f32 %v572_v0, 0.0  ;;  %v575_v4 = vadd.f32 %v1186_v61, %v574_v2  ;;  %v576_v5 = vpop.f32.mrb[51].mxu0 }
 0x15d   :  { %747 = vst.msk [vmem:[%s1436_s3 + $0xc0] sm:$0xff] %vm722_vm1, %v697_v3  ;;  %v698_v6 = vmax.f32 %v575_v4, 0.0 }
 0x15f   :  { %748 = vst.msk [vmem:[%s1436_s3 + $0xc8] sm:$0xff] %vm722_vm1, %v698_v6 }

// kernel: unet3_forward.45
= control target key start
LH: loop header
LB: loop body
LE: loop exit
PB: predicated region body
PF: predicated region fallthrough
CT: control target
= control target key end

     0   :  { %v789_v0 = vmov 0.0   ;;  %vm790_vm0 = vmmov 0   ;;  %vm210_vm1 = vcmask 261120   ;;  %vm518_vm2 = vcmask 130048   ;;  %s1221_s1 = inlined_call_operand.vmem [shape: bf16[32,16], index: 1, kind: input, shape index: {}]   ;;  %s1222_s0 = inlined_call_operand.vmem [shape: bf16[392,32], index: 0, kind: input, shape index: {}]   ;;  %s1223_s2 = inlined_call_operand.vmem [shape: f32[1,16], index: 2, kind: input, shape index: {}]   ;;  %s1224_s3 = inlined_call_operand.vmem [shape: f32[392,16], index: 3, kind: output, shape index: {}]  }
   0x1   :  { %652 = vmatprep.subr.bf16.mxu0 %v789_v0  ;;  %v762_v1 = vld [vmem:[%s1221_s1] sm:$0xff]   ;;  %756 = vmatprep.subr.bf16.mxu1 %v789_v0  ;;  %v763_v2 = vld [vmem:[%s1221_s1 + $0x8] sm:$0xff]   ;;  %v767_v6 = vld [vmem:[%s1222_s0 + $0x70] sm:$0xff]  }
   0x2   :  { %656 = vmatprep.mubr.msk.bf16.mxu0 %vm790_vm0, %v789_v0  ;;  %708 = vmatprep.mubr.msk.bf16.mxu1 %vm790_vm0, %v789_v0  ;;  %v764_v3 = vld [vmem:[%s1222_s0] sm:$0xff]   ;;  %v765_v4 = vld [vmem:[%s1222_s0 + $0x68] sm:$0xff]   ;;  %v768_v7 = vld [vmem:[%s1222_s0 + $0x10] sm:$0xff]  }
   0x3   :  { %653 = vmatpush3.bf16.msra.mxu0 %v762_v1  ;;  %758 = vmatpush3.bf16.msra.mxu1 %v762_v1  ;;  %v766_v5 = vld [vmem:[%s1222_s0 + $0x8] sm:$0xff]   ;;  %v769_v8 = vld [vmem:[%s1222_s0 + $0x78] sm:$0xff]   ;;  %v771_v10 = vld [vmem:[%s1222_s0 + $0x80] sm:$0xff]  }
   0x4   :  { %654 = vmatprep.subr.bf16.mxu0 %v789_v0  ;;  %757 = vmatprep.subr.bf16.mxu1 %v789_v0  ;;  %v770_v9 = vld [vmem:[%s1222_s0 + $0x18] sm:$0xff]   ;;  %v772_v11 = vld [vmem:[%s1222_s0 + $0x20] sm:$0xff]   ;;  %v773_v12 = vld [vmem:[%s1222_s0 + $0x88] sm:$0xff]  }
   0x5   :  { %v774_v13 = vld [vmem:[%s1222_s0 + $0x28] sm:$0xff]   ;;  %v775_v14 = vld [vmem:[%s1222_s0 + $0x90] sm:$0xff]   ;;  %v777_v16 = vld [vmem:[%s1222_s0 + $0x98] sm:$0xff]  }
   0x6   :  { %v776_v15 = vld [vmem:[%s1222_s0 + $0x30] sm:$0xff]   ;;  %v778_v17 = vld [vmem:[%s1222_s0 + $0x38] sm:$0xff]   ;;  %v779_v18 = vld [vmem:[%s1222_s0 + $0xa0] sm:$0xff]  }
   0x7   :  { %655 = vmatpush3.bf16.msra.mxu0 %v763_v2  ;;  %759 = vmatpush3.bf16.msra.mxu1 %v763_v2  ;;  %v780_v19 = vld [vmem:[%s1222_s0 + $0x40] sm:$0xff]   ;;  %v781_v20 = vld [vmem:[%s1222_s0 + $0xa8] sm:$0xff]   ;;  %v783_v22 = vld [vmem:[%s1222_s0 + $0xb0] sm:$0xff]  }
   0x8   :  { %v782_v21 = vld [vmem:[%s1222_s0 + $0x48] sm:$0xff]   ;;  %v784_v23 = vld [vmem:[%s1222_s0 + $0x50] sm:$0xff]   ;;  %v785_v24 = vld [vmem:[%s1222_s0 + $0xb8] sm:$0xff]  }
   0x9   :  { %v786_v25 = vld [vmem:[%s1222_s0 + $0x58] sm:$0xff]   ;;  %v787_v26 = vld [vmem:[%s1222_s0 + $0xc0] ss:$0 sps:$4 sm:$0xff]  }
   0xa   :  { %657 = vmatmul.mubr.msk.bf16.vlgmr.msra.gmra.mrb[0].mxu0 %vm210_vm1, %v764_v3  ;;  %709 = vmatmul.mubr.msk.bf16.vlgmr.msra.gmra.mrb[0].mxu1 %vm210_vm1, %v765_v4  ;;  %v788_v27 = vld [vmem:[%s1222_s0 + $0x60] sm:$0xff]  }
   0xb   :  { %660 = vmatprep.mubr.msk.bf16.mxu0 %vm790_vm0, %v789_v0  ;;  %712 = vmatprep.mubr.msk.bf16.mxu1 %vm790_vm0, %v789_v0  ;;  %v974_v28 = vld [vmem:[%s1223_s2] ss:$0 sm:$0xff] }
  0x12   :  { %661 = vmatmul.mubr.msk.bf16.gmra.mrb[4].mxu0 %vm210_vm1, %v766_v5  ;;  %713 = vmatmul.mubr.msk.bf16.gmra.mrb[4].mxu1 %vm210_vm1, %v767_v6 }
  0x13   :  { %664 = vmatprep.mubr.msk.bf16.mxu0 %vm790_vm0, %v789_v0  ;;  %716 = vmatprep.mubr.msk.bf16.mxu1 %vm790_vm0, %v789_v0 }
  0x1a   :  { %665 = vmatmul.mubr.msk.bf16.gmra.mrb[8].mxu0 %vm210_vm1, %v768_v7  ;;  %717 = vmatmul.mubr.msk.bf16.gmra.mrb[8].mxu1 %vm210_vm1, %v769_v8 }
  0x1b   :  { %668 = vmatprep.mubr.msk.bf16.mxu0 %vm790_vm0, %v789_v0  ;;  %720 = vmatprep.mubr.msk.bf16.mxu1 %vm790_vm0, %v789_v0 }
  0x22   :  { %669 = vmatmul.mubr.msk.bf16.gmra.mrb[12].mxu0 %vm210_vm1, %v770_v9  ;;  %721 = vmatmul.mubr.msk.bf16.gmra.mrb[12].mxu1 %vm210_vm1, %v771_v10 }
  0x23   :  { %672 = vmatprep.mubr.msk.bf16.mxu0 %vm790_vm0, %v789_v0  ;;  %724 = vmatprep.mubr.msk.bf16.mxu1 %vm790_vm0, %v789_v0 }
  0x2a   :  { %673 = vmatmul.mubr.msk.bf16.gmra.mrb[16].mxu0 %vm210_vm1, %v772_v11  ;;  %725 = vmatmul.mubr.msk.bf16.gmra.mrb[16].mxu1 %vm210_vm1, %v773_v12 }
  0x2b   :  { %676 = vmatprep.mubr.msk.bf16.mxu0 %vm790_vm0, %v789_v0  ;;  %728 = vmatprep.mubr.msk.bf16.mxu1 %vm790_vm0, %v789_v0 }
  0x32   :  { %677 = vmatmul.mubr.msk.bf16.gmra.mrb[20].mxu0 %vm210_vm1, %v774_v13  ;;  %729 = vmatmul.mubr.msk.bf16.gmra.mrb[20].mxu1 %vm210_vm1, %v775_v14 }
  0x33   :  { %680 = vmatprep.mubr.msk.bf16.mxu0 %vm790_vm0, %v789_v0  ;;  %732 = vmatprep.mubr.msk.bf16.mxu1 %vm790_vm0, %v789_v0 }
  0x3a   :  { %681 = vmatmul.mubr.msk.bf16.gmra.mrb[24].mxu0 %vm210_vm1, %v776_v15  ;;  %733 = vmatmul.mubr.msk.bf16.gmra.mrb[24].mxu1 %vm210_vm1, %v777_v16 }
  0x3b   :  { %684 = vmatprep.mubr.msk.bf16.mxu0 %vm790_vm0, %v789_v0  ;;  %736 = vmatprep.mubr.msk.bf16.mxu1 %vm790_vm0, %v789_v0 }
  0x42   :  { %685 = vmatmul.mubr.msk.bf16.gmra.mrb[28].mxu0 %vm210_vm1, %v778_v17  ;;  %737 = vmatmul.mubr.msk.bf16.gmra.mrb[28].mxu1 %vm210_vm1, %v779_v18 }
  0x43   :  { %688 = vmatprep.mubr.msk.bf16.mxu0 %vm790_vm0, %v789_v0  ;;  %740 = vmatprep.mubr.msk.bf16.mxu1 %vm790_vm0, %v789_v0 }
  0x4a   :  { %689 = vmatmul.mubr.msk.bf16.gmra.mrb[32].mxu0 %vm210_vm1, %v780_v19  ;;  %741 = vmatmul.mubr.msk.bf16.gmra.mrb[32].mxu1 %vm210_vm1, %v781_v20 }
  0x4b   :  { %692 = vmatprep.mubr.msk.bf16.mxu0 %vm790_vm0, %v789_v0  ;;  %744 = vmatprep.mubr.msk.bf16.mxu1 %vm790_vm0, %v789_v0 }
  0x52   :  { %693 = vmatmul.mubr.msk.bf16.gmra.mrb[36].mxu0 %vm210_vm1, %v782_v21  ;;  %745 = vmatmul.mubr.msk.bf16.gmra.mrb[36].mxu1 %vm210_vm1, %v783_v22 }
  0x53   :  { %696 = vmatprep.mubr.msk.bf16.mxu0 %vm790_vm0, %v789_v0  ;;  %748 = vmatprep.mubr.msk.bf16.mxu1 %vm790_vm0, %v789_v0 }
  0x5a   :  { %697 = vmatmul.mubr.msk.bf16.gmra.mrb[40].mxu0 %vm210_vm1, %v784_v23  ;;  %749 = vmatmul.mubr.msk.bf16.gmra.mrb[40].mxu1 %vm210_vm1, %v785_v24 }
  0x5b   :  { %700 = vmatprep.mubr.msk.bf16.mxu0 %vm790_vm0, %v789_v0  ;;  %752 = vmatprep.mubr.msk.bf16.mxu1 %vm790_vm0, %v789_v0 }
  0x62   :  { %701 = vmatmul.mubr.msk.bf16.gmra.mrb[44].mxu0 %vm210_vm1, %v786_v25  ;;  %753 = vmatmul.mubr.msk.bf16.gmra.mrb[44].mxu1 %vm210_vm1, %v787_v26 }
  0x63   :  { %704 = vmatprep.mubr.msk.bf16.mxu0 %vm790_vm0, %v789_v0 }
  0x6a   :  { %705 = vmatmul.mubr.msk.bf16.gmra.mrb[48].mxu0 %vm210_vm1, %v788_v27 }
  0xdd   :  { %v320_v29 = vpop.f32.mrb[0].mxu0  ;;  %v424_v30 = vpop.f32.mrb[0].mxu1 }
  0xde   :  { %v321_v31 = vadd.f32 %v974_v28, %v320_v29  ;;  %v658_v32 = vpop.f32.mrb[1].mxu0  ;;  %v425_v33 = vadd.f32 %v974_v28, %v424_v30  ;;  %v710_v34 = vpop.f32.mrb[1].mxu1 }
  0xdf   :  { %v323_v35 = vpop.f32.mrb[2].mxu0  ;;  %v427_v36 = vpop.f32.mrb[2].mxu1 }
  0xe0   :  { %519 = vst.msk [vmem:[%s1224_s3] sm:$0xff] %vm518_vm2, %v321_v31  ;;  %v324_v37 = vadd.f32 %v974_v28, %v323_v35  ;;  %v659_v38 = vpop.f32.mrb[3].mxu0  ;;  %545 = vst.msk [vmem:[%s1224_s3 + $0xd0] sm:$0xff] %vm518_vm2, %v425_v33  ;;  %v428_v39 = vadd.f32 %v974_v28, %v427_v36  ;;  %v711_v40 = vpop.f32.mrb[3].mxu1 }
  0xe2   :  { %520 = vst.msk [vmem:[%s1224_s3 + $0x8] sm:$0xff] %vm518_vm2, %v324_v37  ;;  %546 = vst.msk [vmem:[%s1224_s3 + $0xd8] sm:$0xff] %vm518_vm2, %v428_v39 }
  0xe5   :  { %v328_v41 = vpop.f32.mrb[4].mxu0  ;;  %v432_v42 = vpop.f32.mrb[4].mxu1 }
  0xe6   :  { %v329_v43 = vadd.f32 %v974_v28, %v328_v41  ;;  %v662_v44 = vpop.f32.mrb[5].mxu0  ;;  %v433_v45 = vadd.f32 %v974_v28, %v432_v42  ;;  %v714_v46 = vpop.f32.mrb[5].mxu1 }
  0xe7   :  { %v331_v47 = vpop.f32.mrb[6].mxu0  ;;  %v435_v48 = vpop.f32.mrb[6].mxu1 }
  0xe8   :  { %521 = vst.msk [vmem:[%s1224_s3 + $0x10] sm:$0xff] %vm518_vm2, %v329_v43  ;;  %v332_v49 = vadd.f32 %v974_v28, %v331_v47  ;;  %v663_v50 = vpop.f32.mrb[7].mxu0  ;;  %547 = vst.msk [vmem:[%s1224_s3 + $0xe0] sm:$0xff] %vm518_vm2, %v433_v45  ;;  %v436_v51 = vadd.f32 %v974_v28, %v435_v48  ;;  %v715_v52 = vpop.f32.mrb[7].mxu1 }
  0xea   :  { %522 = vst.msk [vmem:[%s1224_s3 + $0x18] sm:$0xff] %vm518_vm2, %v332_v49  ;;  %548 = vst.msk [vmem:[%s1224_s3 + $0xe8] sm:$0xff] %vm518_vm2, %v436_v51 }
  0xed   :  { %v336_v53 = vpop.f32.mrb[8].mxu0  ;;  %v440_v54 = vpop.f32.mrb[8].mxu1 }
  0xee   :  { %v337_v55 = vadd.f32 %v974_v28, %v336_v53  ;;  %v666_v56 = vpop.f32.mrb[9].mxu0  ;;  %v441_v57 = vadd.f32 %v974_v28, %v440_v54  ;;  %v718_v58 = vpop.f32.mrb[9].mxu1 }
  0xef   :  { %v339_v59 = vpop.f32.mrb[10].mxu0  ;;  %v443_v60 = vpop.f32.mrb[10].mxu1 }
  0xf0   :  { %523 = vst.msk [vmem:[%s1224_s3 + $0x20] sm:$0xff] %vm518_vm2, %v337_v55  ;;  %v340_v61 = vadd.f32 %v974_v28, %v339_v59  ;;  %v667_v62 = vpop.f32.mrb[11].mxu0  ;;  %549 = vst.msk [vmem:[%s1224_s3 + $0xf0] sm:$0xff] %vm518_vm2, %v441_v57  ;;  %v444_v63 = vadd.f32 %v974_v28, %v443_v60  ;;  %v719_v0 = vpop.f32.mrb[11].mxu1 }
  0xf2   :  { %524 = vst.msk [vmem:[%s1224_s3 + $0x28] sm:$0xff] %vm518_vm2, %v340_v61  ;;  %550 = vst.msk [vmem:[%s1224_s3 + $0xf8] sm:$0xff] %vm518_vm2, %v444_v63 }
  0xf5   :  { %v344_v1 = vpop.f32.mrb[12].mxu0  ;;  %v448_v2 = vpop.f32.mrb[12].mxu1 }
  0xf6   :  { %v345_v3 = vadd.f32 %v974_v28, %v344_v1  ;;  %v670_v4 = vpop.f32.mrb[13].mxu0  ;;  %v449_v5 = vadd.f32 %v974_v28, %v448_v2  ;;  %v722_v6 = vpop.f32.mrb[13].mxu1 }
  0xf7   :  { %v347_v7 = vpop.f32.mrb[14].mxu0  ;;  %v451_v8 = vpop.f32.mrb[14].mxu1 }
  0xf8   :  { %525 = vst.msk [vmem:[%s1224_s3 + $0x30] sm:$0xff] %vm518_vm2, %v345_v3  ;;  %v348_v9 = vadd.f32 %v974_v28, %v347_v7  ;;  %v671_v10 = vpop.f32.mrb[15].mxu0  ;;  %551 = vst.msk [vmem:[%s1224_s3 + $0x100] sm:$0xff] %vm518_vm2, %v449_v5  ;;  %v452_v11 = vadd.f32 %v974_v28, %v451_v8  ;;  %v723_v12 = vpop.f32.mrb[15].mxu1 }
  0xfa   :  { %526 = vst.msk [vmem:[%s1224_s3 + $0x38] sm:$0xff] %vm518_vm2, %v348_v9  ;;  %552 = vst.msk [vmem:[%s1224_s3 + $0x108] sm:$0xff] %vm518_vm2, %v452_v11 }
  0xfd   :  { %v352_v13 = vpop.f32.mrb[16].mxu0  ;;  %v456_v14 = vpop.f32.mrb[16].mxu1 }
  0xfe   :  { %v353_v15 = vadd.f32 %v974_v28, %v352_v13  ;;  %v674_v16 = vpop.f32.mrb[17].mxu0  ;;  %v457_v17 = vadd.f32 %v974_v28, %v456_v14  ;;  %v726_v18 = vpop.f32.mrb[17].mxu1 }
  0xff   :  { %v355_v19 = vpop.f32.mrb[18].mxu0  ;;  %v459_v20 = vpop.f32.mrb[18].mxu1 }
 0x100   :  { %527 = vst.msk [vmem:[%s1224_s3 + $0x40] sm:$0xff] %vm518_vm2, %v353_v15  ;;  %v356_v21 = vadd.f32 %v974_v28, %v355_v19  ;;  %v675_v22 = vpop.f32.mrb[19].mxu0  ;;  %553 = vst.msk [vmem:[%s1224_s3 + $0x110] sm:$0xff] %vm518_vm2, %v457_v17  ;;  %v460_v23 = vadd.f32 %v974_v28, %v459_v20  ;;  %v727_v24 = vpop.f32.mrb[19].mxu1 }
 0x102   :  { %528 = vst.msk [vmem:[%s1224_s3 + $0x48] sm:$0xff] %vm518_vm2, %v356_v21  ;;  %554 = vst.msk [vmem:[%s1224_s3 + $0x118] sm:$0xff] %vm518_vm2, %v460_v23 }
 0x105   :  { %v360_v25 = vpop.f32.mrb[20].mxu0  ;;  %v464_v26 = vpop.f32.mrb[20].mxu1 }
 0x106   :  { %v361_v27 = vadd.f32 %v974_v28, %v360_v25  ;;  %v678_v29 = vpop.f32.mrb[21].mxu0  ;;  %v465_v30 = vadd.f32 %v974_v28, %v464_v26  ;;  %v730_v31 = vpop.f32.mrb[21].mxu1 }
 0x107   :  { %v363_v32 = vpop.f32.mrb[22].mxu0  ;;  %v467_v33 = vpop.f32.mrb[22].mxu1 }
 0x108   :  { %529 = vst.msk [vmem:[%s1224_s3 + $0x50] sm:$0xff] %vm518_vm2, %v361_v27  ;;  %v364_v34 = vadd.f32 %v974_v28, %v363_v32  ;;  %v679_v35 = vpop.f32.mrb[23].mxu0  ;;  %555 = vst.msk [vmem:[%s1224_s3 + $0x120] sm:$0xff] %vm518_vm2, %v465_v30  ;;  %v468_v36 = vadd.f32 %v974_v28, %v467_v33  ;;  %v731_v37 = vpop.f32.mrb[23].mxu1 }
 0x10a   :  { %530 = vst.msk [vmem:[%s1224_s3 + $0x58] sm:$0xff] %vm518_vm2, %v364_v34  ;;  %556 = vst.msk [vmem:[%s1224_s3 + $0x128] sm:$0xff] %vm518_vm2, %v468_v36 }
 0x10d   :  { %v368_v38 = vpop.f32.mrb[24].mxu0  ;;  %v472_v39 = vpop.f32.mrb[24].mxu1 }
 0x10e   :  { %v369_v40 = vadd.f32 %v974_v28, %v368_v38  ;;  %v682_v41 = vpop.f32.mrb[25].mxu0  ;;  %v473_v42 = vadd.f32 %v974_v28, %v472_v39  ;;  %v734_v43 = vpop.f32.mrb[25].mxu1 }
 0x10f   :  { %v371_v44 = vpop.f32.mrb[26].mxu0  ;;  %v475_v45 = vpop.f32.mrb[26].mxu1 }
 0x110   :  { %531 = vst.msk [vmem:[%s1224_s3 + $0x60] sm:$0xff] %vm518_vm2, %v369_v40  ;;  %v372_v46 = vadd.f32 %v974_v28, %v371_v44  ;;  %v683_v47 = vpop.f32.mrb[27].mxu0  ;;  %557 = vst.msk [vmem:[%s1224_s3 + $0x130] sm:$0xff] %vm518_vm2, %v473_v42  ;;  %v476_v48 = vadd.f32 %v974_v28, %v475_v45  ;;  %v735_v49 = vpop.f32.mrb[27].mxu1 }
 0x112   :  { %532 = vst.msk [vmem:[%s1224_s3 + $0x68] sm:$0xff] %vm518_vm2, %v372_v46  ;;  %558 = vst.msk [vmem:[%s1224_s3 + $0x138] sm:$0xff] %vm518_vm2, %v476_v48 }
 0x115   :  { %v376_v50 = vpop.f32.mrb[28].mxu0  ;;  %v480_v51 = vpop.f32.mrb[28].mxu1 }
 0x116   :  { %v377_v52 = vadd.f32 %v974_v28, %v376_v50  ;;  %v686_v53 = vpop.f32.mrb[29].mxu0  ;;  %v481_v54 = vadd.f32 %v974_v28, %v480_v51  ;;  %v738_v55 = vpop.f32.mrb[29].mxu1 }
 0x117   :  { %v379_v56 = vpop.f32.mrb[30].mxu0  ;;  %v483_v57 = vpop.f32.mrb[30].mxu1 }
 0x118   :  { %533 = vst.msk [vmem:[%s1224_s3 + $0x70] sm:$0xff] %vm518_vm2, %v377_v52  ;;  %v380_v58 = vadd.f32 %v974_v28, %v379_v56  ;;  %v687_v59 = vpop.f32.mrb[31].mxu0  ;;  %559 = vst.msk [vmem:[%s1224_s3 + $0x140] sm:$0xff] %vm518_vm2, %v481_v54  ;;  %v484_v60 = vadd.f32 %v974_v28, %v483_v57  ;;  %v739_v61 = vpop.f32.mrb[31].mxu1 }
 0x11a   :  { %534 = vst.msk [vmem:[%s1224_s3 + $0x78] sm:$0xff] %vm518_vm2, %v380_v58  ;;  %560 = vst.msk [vmem:[%s1224_s3 + $0x148] sm:$0xff] %vm518_vm2, %v484_v60 }
 0x11d   :  { %v384_v62 = vpop.f32.mrb[32].mxu0  ;;  %v488_v63 = vpop.f32.mrb[32].mxu1 }
 0x11e   :  { %v385_v0 = vadd.f32 %v974_v28, %v384_v62  ;;  %v690_v1 = vpop.f32.mrb[33].mxu0  ;;  %v489_v2 = vadd.f32 %v974_v28, %v488_v63  ;;  %v742_v3 = vpop.f32.mrb[33].mxu1 }
 0x11f   :  { %v387_v4 = vpop.f32.mrb[34].mxu0  ;;  %v491_v5 = vpop.f32.mrb[34].mxu1 }
 0x120   :  { %535 = vst.msk [vmem:[%s1224_s3 + $0x80] sm:$0xff] %vm518_vm2, %v385_v0  ;;  %v388_v6 = vadd.f32 %v974_v28, %v387_v4  ;;  %v691_v7 = vpop.f32.mrb[35].mxu0  ;;  %561 = vst.msk [vmem:[%s1224_s3 + $0x150] sm:$0xff] %vm518_vm2, %v489_v2  ;;  %v492_v8 = vadd.f32 %v974_v28, %v491_v5  ;;  %v743_v9 = vpop.f32.mrb[35].mxu1 }
 0x122   :  { %536 = vst.msk [vmem:[%s1224_s3 + $0x88] sm:$0xff] %vm518_vm2, %v388_v6  ;;  %562 = vst.msk [vmem:[%s1224_s3 + $0x158] sm:$0xff] %vm518_vm2, %v492_v8 }
 0x125   :  { %v392_v10 = vpop.f32.mrb[36].mxu0  ;;  %v496_v11 = vpop.f32.mrb[36].mxu1 }
 0x126   :  { %v393_v12 = vadd.f32 %v974_v28, %v392_v10  ;;  %v694_v13 = vpop.f32.mrb[37].mxu0  ;;  %v497_v14 = vadd.f32 %v974_v28, %v496_v11  ;;  %v746_v15 = vpop.f32.mrb[37].mxu1 }
 0x127   :  { %v395_v16 = vpop.f32.mrb[38].mxu0  ;;  %v499_v17 = vpop.f32.mrb[38].mxu1 }
 0x128   :  { %537 = vst.msk [vmem:[%s1224_s3 + $0x90] sm:$0xff] %vm518_vm2, %v393_v12  ;;  %v396_v18 = vadd.f32 %v974_v28, %v395_v16  ;;  %v695_v19 = vpop.f32.mrb[39].mxu0  ;;  %563 = vst.msk [vmem:[%s1224_s3 + $0x160] sm:$0xff] %vm518_vm2, %v497_v14  ;;  %v500_v20 = vadd.f32 %v974_v28, %v499_v17  ;;  %v747_v21 = vpop.f32.mrb[39].mxu1 }
 0x12a   :  { %538 = vst.msk [vmem:[%s1224_s3 + $0x98] sm:$0xff] %vm518_vm2, %v396_v18  ;;  %564 = vst.msk [vmem:[%s1224_s3 + $0x168] sm:$0xff] %vm518_vm2, %v500_v20 }
 0x12d   :  { %v400_v22 = vpop.f32.mrb[40].mxu0  ;;  %v504_v23 = vpop.f32.mrb[40].mxu1 }
 0x12e   :  { %v401_v24 = vadd.f32 %v974_v28, %v400_v22  ;;  %v698_v25 = vpop.f32.mrb[41].mxu0  ;;  %v505_v26 = vadd.f32 %v974_v28, %v504_v23  ;;  %v750_v27 = vpop.f32.mrb[41].mxu1 }
 0x12f   :  { %v403_v29 = vpop.f32.mrb[42].mxu0  ;;  %v507_v30 = vpop.f32.mrb[42].mxu1 }
 0x130   :  { %539 = vst.msk [vmem:[%s1224_s3 + $0xa0] sm:$0xff] %vm518_vm2, %v401_v24  ;;  %v404_v31 = vadd.f32 %v974_v28, %v403_v29  ;;  %v699_v32 = vpop.f32.mrb[43].mxu0  ;;  %565 = vst.msk [vmem:[%s1224_s3 + $0x170] sm:$0xff] %vm518_vm2, %v505_v26  ;;  %v508_v33 = vadd.f32 %v974_v28, %v507_v30  ;;  %v751_v34 = vpop.f32.mrb[43].mxu1 }
 0x132   :  { %540 = vst.msk [vmem:[%s1224_s3 + $0xa8] sm:$0xff] %vm518_vm2, %v404_v31  ;;  %566 = vst.msk [vmem:[%s1224_s3 + $0x178] sm:$0xff] %vm518_vm2, %v508_v33 }
 0x135   :  { %v408_v35 = vpop.f32.mrb[44].mxu0  ;;  %v512_v36 = vpop.f32.mrb[44].mxu1 }
 0x136   :  { %v409_v37 = vadd.f32 %v974_v28, %v408_v35  ;;  %v702_v38 = vpop.f32.mrb[45].mxu0  ;;  %v513_v39 = vadd.f32 %v974_v28, %v512_v36  ;;  %v754_v40 = vpop.f32.mrb[45].mxu1 }
 0x137   :  { %v411_v41 = vpop.f32.mrb[46].mxu0  ;;  %v515_v42 = vpop.f32.mrb[46].mxu1 }
 0x138   :  { %541 = vst.msk [vmem:[%s1224_s3 + $0xb0] sm:$0xff] %vm518_vm2, %v409_v37  ;;  %v412_v43 = vadd.f32 %v974_v28, %v411_v41  ;;  %v703_v44 = vpop.f32.mrb[47].mxu0  ;;  %567 = vst.msk [vmem:[%s1224_s3 + $0x180] sm:$0xff] %vm518_vm2, %v513_v39  ;;  %v755_v45 = vpop.f32.mrb[47].mxu1 }
 0x13a   :  { %542 = vst.msk [vmem:[%s1224_s3 + $0xb8] sm:$0xff] %vm518_vm2, %v412_v43 }
 0x13d   :  { %v416_v46 = vpop.f32.mrb[48].mxu0 }
 0x13e   :  { %v417_v47 = vadd.f32 %v974_v28, %v416_v46  ;;  %v706_v48 = vpop.f32.mrb[49].mxu0 }
 0x13f   :  { %v419_v49 = vpop.f32.mrb[50].mxu0 }
 0x140   :  { %543 = vst.msk [vmem:[%s1224_s3 + $0xc0] sm:$0xff] %vm518_vm2, %v417_v47  ;;  %v420_v50 = vadd.f32 %v974_v28, %v419_v49  ;;  %v707_v51 = vpop.f32.mrb[51].mxu0 }
 0x142   :  { %544 = vst.msk [vmem:[%s1224_s3 + $0xc8] sm:$0xff] %vm518_vm2, %v420_v50 }

// kernel: unet3_forward.46
= control target key start
LH: loop header
LB: loop body
LE: loop exit
PB: predicated region body
PF: predicated region fallthrough
CT: control target
= control target key end

     0   :  { %v913_v0 = vmov 0   ;;  %vm365_vm0 = vcmask 130048   ;;  %s1383_s1 = inlined_call_operand.vmem [shape: bf16[144,16], index: 1, kind: input, shape index: {}]   ;;  %s1384_s0 = inlined_call_operand.vmem [shape: bf16[392,144], index: 0, kind: input, shape index: {}]   ;;  %s1385_s2 = inlined_call_operand.vmem [shape: f32[1,16], index: 2, kind: input, shape index: {}]   ;;  %s1386_s3 = inlined_call_operand.vmem [shape: f32[392,16], index: 3, kind: output, shape index: {}]  }
   0x1   :  { %441 = vmatprep.subr.bf16.mxu0 %v913_v0  ;;  %v830_v1 = vld [vmem:[%s1383_s1] sm:$0xff]   ;;  %811 = vmatprep.subr.bf16.mxu1 %v913_v0  ;;  %v831_v2 = vld [vmem:[%s1383_s1 + $0x8] sm:$0xff]   ;;  %v832_v3 = vld [vmem:[%s1383_s1 + $0x10] sm:$0xff]  }
   0x2   :  { %442 = vmatpush1.bf16.msra.mxu0 %v830_v1  ;;  %820 = vmatpush1.bf16.msra.mxu1 %v830_v1  ;;  %v833_v4 = vld [vmem:[%s1383_s1 + $0x18] sm:$0xff]   ;;  %v841_v5 = vld [vmem:[%s1384_s0 + $0x4] ss:$8 sps:$4 sm:$0xff]   ;;  %v836_v9 = vld [vmem:[%s1383_s1 + $0x30] sm:$0xff]  }
   0x3   :  { %443 = vmatprep.subr.bf16.mxu0 %v913_v0  ;;  %812 = vmatprep.subr.bf16.mxu1 %v913_v0  ;;  %v844_v6 = vld [vmem:[%s1384_s0 + $0xd4] ss:$8 sps:$4 sm:$0xff]   ;;  %v834_v7 = vld [vmem:[%s1383_s1 + $0x20] sm:$0xff]   ;;  %v835_v8 = vld [vmem:[%s1383_s1 + $0x28] sm:$0xff]  }
   0x4   :  { %786 = vmatprep.mubr.msk.bf16.mxu0 %vm365_vm0, %v841_v5  ;;  %799 = vmatprep.mubr.msk.bf16.mxu1 %vm365_vm0, %v844_v6  ;;  %v837_v10 = vld [vmem:[%s1383_s1 + $0x38] sm:$0xff]   ;;  %v838_v11 = vld [vmem:[%s1383_s1 + $0x40] sm:$0xff]  }
   0x5   :  { %v839_v12 = vld [vmem:[%s1384_s0] ss:$8 sps:$4 sm:$0xff]   ;;  %v842_v13 = vld [vmem:[%s1384_s0 + $0xd0] ss:$8 sps:$4 sm:$0xff]   ;;  %v845_v14 = vld [vmem:[%s1384_s0 + $0x14] ss:$8 sps:$4 sm:$0xff]  }
   0x6   :  { %444 = vmatpush1.bf16.msra.mxu0 %v831_v2  ;;  %821 = vmatpush1.bf16.msra.mxu1 %v831_v2  ;;  %v848_v15 = vld [vmem:[%s1384_s0 + $0xe4] ss:$8 sps:$4 sm:$0xff]   ;;  %v847_v16 = vld [vmem:[%s1384_s0 + $0x10] ss:$8 sps:$4 sm:$0xff]   ;;  %v852_v17 = vld [vmem:[%s1384_s0 + $0xe0] ss:$8 sps:$4 sm:$0xff]  }
   0x7   :  { %445 = vmatprep.subr.bf16.mxu0 %v913_v0  ;;  %813 = vmatprep.subr.bf16.mxu1 %v913_v0  ;;  %v850_v18 = vld [vmem:[%s1384_s0 + $0x24] ss:$8 sps:$4 sm:$0xff]   ;;  %v854_v19 = vld [vmem:[%s1384_s0 + $0xf4] ss:$8 sps:$4 sm:$0xff]   ;;  %v853_v20 = vld [vmem:[%s1384_s0 + $0x20] ss:$8 sps:$4 sm:$0xff]  }
   0x8   :  { %v858_v21 = vld [vmem:[%s1384_s0 + $0xf0] ss:$8 sps:$4 sm:$0xff]   ;;  %v856_v22 = vld [vmem:[%s1384_s0 + $0x34] ss:$8 sps:$4 sm:$0xff]   ;;  %v860_v23 = vld [vmem:[%s1384_s0 + $0x104] ss:$8 sps:$4 sm:$0xff]  }
   0x9   :  { %v859_v24 = vld [vmem:[%s1384_s0 + $0x30] ss:$8 sps:$4 sm:$0xff]   ;;  %v864_v25 = vld [vmem:[%s1384_s0 + $0x100] ss:$8 sps:$4 sm:$0xff]   ;;  %v862_v26 = vld [vmem:[%s1384_s0 + $0x44] ss:$8 sps:$4 sm:$0xff]  }
   0xa   :  { %446 = vmatpush1.bf16.msra.mxu0 %v832_v3  ;;  %822 = vmatpush1.bf16.msra.mxu1 %v832_v3  ;;  %v866_v27 = vld [vmem:[%s1384_s0 + $0x114] ss:$8 sps:$4 sm:$0xff]   ;;  %v865_v28 = vld [vmem:[%s1384_s0 + $0x40] ss:$8 sps:$4 sm:$0xff]   ;;  %v870_v29 = vld [vmem:[%s1384_s0 + $0x110] ss:$8 sps:$4 sm:$0xff]  }
   0xb   :  { %447 = vmatprep.subr.bf16.mxu0 %v913_v0  ;;  %814 = vmatprep.subr.bf16.mxu1 %v913_v0  ;;  %v868_v30 = vld [vmem:[%s1384_s0 + $0x54] ss:$8 sps:$4 sm:$0xff]   ;;  %v872_v31 = vld [vmem:[%s1384_s0 + $0x124] ss:$8 sps:$4 sm:$0xff]   ;;  %v871_v32 = vld [vmem:[%s1384_s0 + $0x50] ss:$8 sps:$4 sm:$0xff]  }
   0xc   :  { %v876_v33 = vld [vmem:[%s1384_s0 + $0x120] ss:$8 sps:$4 sm:$0xff]   ;;  %v874_v34 = vld [vmem:[%s1384_s0 + $0x64] ss:$8 sps:$4 sm:$0xff]   ;;  %v878_v35 = vld [vmem:[%s1384_s0 + $0x134] ss:$8 sps:$4 sm:$0xff]  }
   0xd   :  { %v877_v36 = vld [vmem:[%s1384_s0 + $0x60] ss:$8 sps:$4 sm:$0xff]   ;;  %v882_v37 = vld [vmem:[%s1384_s0 + $0x130] ss:$8 sps:$4 sm:$0xff]   ;;  %v880_v38 = vld [vmem:[%s1384_s0 + $0x74] ss:$8 sps:$4 sm:$0xff]  }
   0xe   :  { %448 = vmatpush1.bf16.msra.mxu0 %v833_v4  ;;  %823 = vmatpush1.bf16.msra.mxu1 %v833_v4  ;;  %v884_v39 = vld [vmem:[%s1384_s0 + $0x144] ss:$8 sps:$4 sm:$0xff]   ;;  %v883_v40 = vld [vmem:[%s1384_s0 + $0x70] ss:$8 sps:$4 sm:$0xff]   ;;  %v888_v41 = vld [vmem:[%s1384_s0 + $0x140] ss:$8 sps:$4 sm:$0xff]  }
   0xf   :  { %449 = vmatprep.subr.bf16.mxu0 %v913_v0  ;;  %815 = vmatprep.subr.bf16.mxu1 %v913_v0  ;;  %v886_v42 = vld [vmem:[%s1384_s0 + $0x84] ss:$8 sps:$4 sm:$0xff]   ;;  %v890_v43 = vld [vmem:[%s1384_s0 + $0x154] ss:$8 sps:$4 sm:$0xff]   ;;  %v889_v44 = vld [vmem:[%s1384_s0 + $0x80] ss:$8 sps:$4 sm:$0xff]  }
  0x10   :  { %v894_v45 = vld [vmem:[%s1384_s0 + $0x150] ss:$8 sps:$4 sm:$0xff]   ;;  %v892_v46 = vld [vmem:[%s1384_s0 + $0x94] ss:$8 sps:$4 sm:$0xff]   ;;  %v896_v47 = vld [vmem:[%s1384_s0 + $0x164] ss:$8 sps:$4 sm:$0xff]  }
  0x11   :  { %v895_v48 = vld [vmem:[%s1384_s0 + $0x90] ss:$8 sps:$4 sm:$0xff]   ;;  %v900_v49 = vld [vmem:[%s1384_s0 + $0x160] ss:$8 sps:$4 sm:$0xff]   ;;  %v898_v50 = vld [vmem:[%s1384_s0 + $0xa4] ss:$8 sps:$4 sm:$0xff]  }
  0x12   :  { %450 = vmatpush1.bf16.msra.mxu0 %v834_v7  ;;  %824 = vmatpush1.bf16.msra.mxu1 %v834_v7  ;;  %v902_v51 = vld [vmem:[%s1384_s0 + $0x174] ss:$8 sps:$4 sm:$0xff]   ;;  %v63_v52 = vld [vmem:[%s1384_s0 + $0x180] sm:$0xff]  ;;  %v906_v54 = vld [vmem:[%s1384_s0 + $0x170] ss:$8 sps:$4 sm:$0xff]  }
  0x13   :  { %451 = vmatprep.subr.bf16.mxu0 %v913_v0  ;;  %816 = vmatprep.subr.bf16.mxu1 %v913_v0  ;;  %v901_v53 = vld [vmem:[%s1384_s0 + $0xa0] ss:$8 sps:$4 sm:$0xff]   ;;  %v904_v55 = vld [vmem:[%s1384_s0 + $0xb4] ss:$8 sps:$4 sm:$0xff]   ;;  %v776_v56 = vcombine.high %v63_v52, %v63_v52  ;;  %v907_v57 = vld [vmem:[%s1384_s0 + $0xb0] ss:$8 sps:$4 sm:$0xff]   ;;  %v775_v58 = vcombine.low %v63_v52, %v63_v52 }
  0x14   :  { %v909_v59 = vld [vmem:[%s1384_s0 + $0xc4] ss:$8 sps:$4 sm:$0xff]   ;;  %v912_v60 = vld [vmem:[%s1384_s0 + $0xc0] ss:$8 sps:$4 sm:$0xff]  }
  0x15   :  { %v1136_v61 = vld [vmem:[%s1385_s2] ss:$0 sm:$0xff] }
  0x16   :  { %452 = vmatpush1.bf16.msra.mxu0 %v835_v8  ;;  %825 = vmatpush1.bf16.msra.mxu1 %v835_v8 }
  0x17   :  { %453 = vmatprep.subr.bf16.mxu0 %v913_v0  ;;  %817 = vmatprep.subr.bf16.mxu1 %v913_v0 }
  0x1a   :  { %454 = vmatpush1.bf16.msra.mxu0 %v836_v9  ;;  %826 = vmatpush1.bf16.msra.mxu1 %v836_v9 }
  0x1b   :  { %455 = vmatprep.subr.bf16.mxu0 %v913_v0  ;;  %818 = vmatprep.subr.bf16.mxu1 %v913_v0 }
  0x1e   :  { %456 = vmatpush1.bf16.msra.mxu0 %v837_v10  ;;  %827 = vmatpush1.bf16.msra.mxu1 %v837_v10 }
  0x1f   :  { %457 = vmatprep.subr.bf16.mxu0 %v913_v0  ;;  %819 = vmatprep.subr.bf16.mxu1 %v913_v0 }
  0x22   :  { %458 = vmatpush1.bf16.msra.mxu0 %v838_v11  ;;  %828 = vmatpush1.bf16.msra.mxu1 %v838_v11 }
  0x25   :  { %474 = vmatmul.mubr.bf16.vlgmr.msra.gmra.mrb[0].mxu0 %v839_v12  ;;  %578 = vmatmul.mubr.bf16.vlgmr.msra.gmra.mrb[0].mxu1 %v842_v13 }
  0x26   :  { %787 = vmatprep.mubr.msk.bf16.mxu0 %vm365_vm0, %v845_v14  ;;  %800 = vmatprep.mubr.msk.bf16.mxu1 %vm365_vm0, %v848_v15 }
  0x2d   :  { %482 = vmatmul.mubr.bf16.gmra.mrb[4].mxu0 %v847_v16  ;;  %586 = vmatmul.mubr.bf16.gmra.mrb[4].mxu1 %v852_v17 }
  0x2e   :  { %788 = vmatprep.mubr.msk.bf16.mxu0 %vm365_vm0, %v850_v18  ;;  %801 = vmatprep.mubr.msk.bf16.mxu1 %vm365_vm0, %v854_v19 }
  0x35   :  { %490 = vmatmul.mubr.bf16.gmra.mrb[8].mxu0 %v853_v20  ;;  %594 = vmatmul.mubr.bf16.gmra.mrb[8].mxu1 %v858_v21 }
  0x36   :  { %789 = vmatprep.mubr.msk.bf16.mxu0 %vm365_vm0, %v856_v22  ;;  %802 = vmatprep.mubr.msk.bf16.mxu1 %vm365_vm0, %v860_v23 }
  0x3d   :  { %498 = vmatmul.mubr.bf16.gmra.mrb[12].mxu0 %v859_v24  ;;  %602 = vmatmul.mubr.bf16.gmra.mrb[12].mxu1 %v864_v25 }
  0x3e   :  { %790 = vmatprep.mubr.msk.bf16.mxu0 %vm365_vm0, %v862_v26  ;;  %803 = vmatprep.mubr.msk.bf16.mxu1 %vm365_vm0, %v866_v27 }
  0x45   :  { %506 = vmatmul.mubr.bf16.gmra.mrb[16].mxu0 %v865_v28  ;;  %610 = vmatmul.mubr.bf16.gmra.mrb[16].mxu1 %v870_v29 }
  0x46   :  { %791 = vmatprep.mubr.msk.bf16.mxu0 %vm365_vm0, %v868_v30  ;;  %804 = vmatprep.mubr.msk.bf16.mxu1 %vm365_vm0, %v872_v31 }
  0x4d   :  { %514 = vmatmul.mubr.bf16.gmra.mrb[20].mxu0 %v871_v32  ;;  %618 = vmatmul.mubr.bf16.gmra.mrb[20].mxu1 %v876_v33 }
  0x4e   :  { %792 = vmatprep.mubr.msk.bf16.mxu0 %vm365_vm0, %v874_v34  ;;  %805 = vmatprep.mubr.msk.bf16.mxu1 %vm365_vm0, %v878_v35 }
  0x55   :  { %522 = vmatmul.mubr.bf16.gmra.mrb[24].mxu0 %v877_v36  ;;  %626 = vmatmul.mubr.bf16.gmra.mrb[24].mxu1 %v882_v37 }
  0x56   :  { %793 = vmatprep.mubr.msk.bf16.mxu0 %vm365_vm0, %v880_v38  ;;  %806 = vmatprep.mubr.msk.bf16.mxu1 %vm365_vm0, %v884_v39 }
  0x5d   :  { %530 = vmatmul.mubr.bf16.gmra.mrb[28].mxu0 %v883_v40  ;;  %634 = vmatmul.mubr.bf16.gmra.mrb[28].mxu1 %v888_v41 }
  0x5e   :  { %794 = vmatprep.mubr.msk.bf16.mxu0 %vm365_vm0, %v886_v42  ;;  %807 = vmatprep.mubr.msk.bf16.mxu1 %vm365_vm0, %v890_v43 }
  0x65   :  { %538 = vmatmul.mubr.bf16.gmra.mrb[32].mxu0 %v889_v44  ;;  %642 = vmatmul.mubr.bf16.gmra.mrb[32].mxu1 %v894_v45 }
  0x66   :  { %795 = vmatprep.mubr.msk.bf16.mxu0 %vm365_vm0, %v892_v46  ;;  %808 = vmatprep.mubr.msk.bf16.mxu1 %vm365_vm0, %v896_v47 }
  0x6d   :  { %546 = vmatmul.mubr.bf16.gmra.mrb[36].mxu0 %v895_v48  ;;  %650 = vmatmul.mubr.bf16.gmra.mrb[36].mxu1 %v900_v49 }
  0x6e   :  { %796 = vmatprep.mubr.msk.bf16.mxu0 %vm365_vm0, %v898_v50  ;;  %809 = vmatprep.mubr.msk.bf16.mxu1 %vm365_vm0, %v902_v51 }
  0x75   :  { %554 = vmatmul.mubr.bf16.gmra.mrb[40].mxu0 %v901_v53  ;;  %658 = vmatmul.mubr.bf16.gmra.mrb[40].mxu1 %v906_v54 }
  0x76   :  { %797 = vmatprep.mubr.msk.bf16.mxu0 %vm365_vm0, %v904_v55  ;;  %810 = vmatprep.mubr.msk.bf16.mxu1 %vm365_vm0, %v776_v56 }
  0x7d   :  { %562 = vmatmul.mubr.bf16.gmra.mrb[44].mxu0 %v907_v57  ;;  %666 = vmatmul.mubr.bf16.gmra.mrb[44].mxu1 %v775_v58 }
  0x7e   :  { %798 = vmatprep.mubr.msk.bf16.mxu0 %vm365_vm0, %v909_v59 }
  0x85   :  { %570 = vmatmul.mubr.bf16.gmra.mrb[48].mxu0 %v912_v60 }
  0xf8   :  { %v475_v62 = vpop.f32.mrb[0].mxu0  ;;  %v579_v63 = vpop.f32.mrb[0].mxu1 }
  0xf9   :  { %v476_v0 = vadd.f32 %v1136_v61, %v475_v62  ;;  %v477_v1 = vpop.f32.mrb[1].mxu0  ;;  %v580_v2 = vadd.f32 %v1136_v61, %v579_v63  ;;  %v581_v3 = vpop.f32.mrb[1].mxu1 }
  0xfa   :  { %v478_v4 = vpop.f32.mrb[2].mxu0  ;;  %v582_v5 = vpop.f32.mrb[2].mxu1 }
  0xfb   :  { %673 = vst.msk [vmem:[%s1386_s3] sm:$0xff] %vm365_vm0, %v476_v0  ;;  %v479_v6 = vadd.f32 %v1136_v61, %v478_v4  ;;  %v480_v7 = vpop.f32.mrb[3].mxu0  ;;  %699 = vst.msk [vmem:[%s1386_s3 + $0xd0] sm:$0xff] %vm365_vm0, %v580_v2  ;;  %v583_v8 = vadd.f32 %v1136_v61, %v582_v5  ;;  %v584_v9 = vpop.f32.mrb[3].mxu1 }
  0xfd   :  { %674 = vst.msk [vmem:[%s1386_s3 + $0x8] sm:$0xff] %vm365_vm0, %v479_v6  ;;  %700 = vst.msk [vmem:[%s1386_s3 + $0xd8] sm:$0xff] %vm365_vm0, %v583_v8 }
 0x100   :  { %v483_v10 = vpop.f32.mrb[4].mxu0  ;;  %v587_v11 = vpop.f32.mrb[4].mxu1 }
 0x101   :  { %v484_v12 = vadd.f32 %v1136_v61, %v483_v10  ;;  %v485_v13 = vpop.f32.mrb[5].mxu0  ;;  %v588_v14 = vadd.f32 %v1136_v61, %v587_v11  ;;  %v589_v15 = vpop.f32.mrb[5].mxu1 }
 0x102   :  { %v486_v16 = vpop.f32.mrb[6].mxu0  ;;  %v590_v17 = vpop.f32.mrb[6].mxu1 }
 0x103   :  { %675 = vst.msk [vmem:[%s1386_s3 + $0x10] sm:$0xff] %vm365_vm0, %v484_v12  ;;  %v487_v18 = vadd.f32 %v1136_v61, %v486_v16  ;;  %v488_v19 = vpop.f32.mrb[7].mxu0  ;;  %701 = vst.msk [vmem:[%s1386_s3 + $0xe0] sm:$0xff] %vm365_vm0, %v588_v14  ;;  %v591_v20 = vadd.f32 %v1136_v61, %v590_v17  ;;  %v592_v21 = vpop.f32.mrb[7].mxu1 }
 0x105   :  { %676 = vst.msk [vmem:[%s1386_s3 + $0x18] sm:$0xff] %vm365_vm0, %v487_v18  ;;  %702 = vst.msk [vmem:[%s1386_s3 + $0xe8] sm:$0xff] %vm365_vm0, %v591_v20 }
 0x108   :  { %v491_v22 = vpop.f32.mrb[8].mxu0  ;;  %v595_v23 = vpop.f32.mrb[8].mxu1 }
 0x109   :  { %v492_v24 = vadd.f32 %v1136_v61, %v491_v22  ;;  %v493_v25 = vpop.f32.mrb[9].mxu0  ;;  %v596_v26 = vadd.f32 %v1136_v61, %v595_v23  ;;  %v597_v27 = vpop.f32.mrb[9].mxu1 }
 0x10a   :  { %v494_v28 = vpop.f32.mrb[10].mxu0  ;;  %v598_v29 = vpop.f32.mrb[10].mxu1 }
 0x10b   :  { %677 = vst.msk [vmem:[%s1386_s3 + $0x20] sm:$0xff] %vm365_vm0, %v492_v24  ;;  %v495_v30 = vadd.f32 %v1136_v61, %v494_v28  ;;  %v496_v31 = vpop.f32.mrb[11].mxu0  ;;  %703 = vst.msk [vmem:[%s1386_s3 + $0xf0] sm:$0xff] %vm365_vm0, %v596_v26  ;;  %v599_v32 = vadd.f32 %v1136_v61, %v598_v29  ;;  %v600_v33 = vpop.f32.mrb[11].mxu1 }
 0x10d   :  { %678 = vst.msk [vmem:[%s1386_s3 + $0x28] sm:$0xff] %vm365_vm0, %v495_v30  ;;  %704 = vst.msk [vmem:[%s1386_s3 + $0xf8] sm:$0xff] %vm365_vm0, %v599_v32 }
 0x110   :  { %v499_v34 = vpop.f32.mrb[12].mxu0  ;;  %v603_v35 = vpop.f32.mrb[12].mxu1 }
 0x111   :  { %v500_v36 = vadd.f32 %v1136_v61, %v499_v34  ;;  %v501_v37 = vpop.f32.mrb[13].mxu0  ;;  %v604_v38 = vadd.f32 %v1136_v61, %v603_v35  ;;  %v605_v39 = vpop.f32.mrb[13].mxu1 }
 0x112   :  { %v502_v40 = vpop.f32.mrb[14].mxu0  ;;  %v606_v41 = vpop.f32.mrb[14].mxu1 }
 0x113   :  { %679 = vst.msk [vmem:[%s1386_s3 + $0x30] sm:$0xff] %vm365_vm0, %v500_v36  ;;  %v503_v42 = vadd.f32 %v1136_v61, %v502_v40  ;;  %v504_v43 = vpop.f32.mrb[15].mxu0  ;;  %705 = vst.msk [vmem:[%s1386_s3 + $0x100] sm:$0xff] %vm365_vm0, %v604_v38  ;;  %v607_v44 = vadd.f32 %v1136_v61, %v606_v41  ;;  %v608_v45 = vpop.f32.mrb[15].mxu1 }
 0x115   :  { %680 = vst.msk [vmem:[%s1386_s3 + $0x38] sm:$0xff] %vm365_vm0, %v503_v42  ;;  %706 = vst.msk [vmem:[%s1386_s3 + $0x108] sm:$0xff] %vm365_vm0, %v607_v44 }
 0x118   :  { %v507_v46 = vpop.f32.mrb[16].mxu0  ;;  %v611_v47 = vpop.f32.mrb[16].mxu1 }
 0x119   :  { %v508_v48 = vadd.f32 %v1136_v61, %v507_v46  ;;  %v509_v49 = vpop.f32.mrb[17].mxu0  ;;  %v612_v50 = vadd.f32 %v1136_v61, %v611_v47  ;;  %v613_v51 = vpop.f32.mrb[17].mxu1 }
 0x11a   :  { %v510_v52 = vpop.f32.mrb[18].mxu0  ;;  %v614_v53 = vpop.f32.mrb[18].mxu1 }
 0x11b   :  { %681 = vst.msk [vmem:[%s1386_s3 + $0x40] sm:$0xff] %vm365_vm0, %v508_v48  ;;  %v511_v54 = vadd.f32 %v1136_v61, %v510_v52  ;;  %v512_v55 = vpop.f32.mrb[19].mxu0  ;;  %707 = vst.msk [vmem:[%s1386_s3 + $0x110] sm:$0xff] %vm365_vm0, %v612_v50  ;;  %v615_v56 = vadd.f32 %v1136_v61, %v614_v53  ;;  %v616_v57 = vpop.f32.mrb[19].mxu1 }
 0x11d   :  { %682 = vst.msk [vmem:[%s1386_s3 + $0x48] sm:$0xff] %vm365_vm0, %v511_v54  ;;  %708 = vst.msk [vmem:[%s1386_s3 + $0x118] sm:$0xff] %vm365_vm0, %v615_v56 }
 0x120   :  { %v515_v58 = vpop.f32.mrb[20].mxu0  ;;  %v619_v59 = vpop.f32.mrb[20].mxu1 }
 0x121   :  { %v516_v60 = vadd.f32 %v1136_v61, %v515_v58  ;;  %v517_v62 = vpop.f32.mrb[21].mxu0  ;;  %v620_v63 = vadd.f32 %v1136_v61, %v619_v59  ;;  %v621_v0 = vpop.f32.mrb[21].mxu1 }
 0x122   :  { %v518_v1 = vpop.f32.mrb[22].mxu0  ;;  %v622_v2 = vpop.f32.mrb[22].mxu1 }
 0x123   :  { %683 = vst.msk [vmem:[%s1386_s3 + $0x50] sm:$0xff] %vm365_vm0, %v516_v60  ;;  %v519_v3 = vadd.f32 %v1136_v61, %v518_v1  ;;  %v520_v4 = vpop.f32.mrb[23].mxu0  ;;  %709 = vst.msk [vmem:[%s1386_s3 + $0x120] sm:$0xff] %vm365_vm0, %v620_v63  ;;  %v623_v5 = vadd.f32 %v1136_v61, %v622_v2  ;;  %v624_v6 = vpop.f32.mrb[23].mxu1 }
 0x125   :  { %684 = vst.msk [vmem:[%s1386_s3 + $0x58] sm:$0xff] %vm365_vm0, %v519_v3  ;;  %710 = vst.msk [vmem:[%s1386_s3 + $0x128] sm:$0xff] %vm365_vm0, %v623_v5 }
 0x128   :  { %v523_v7 = vpop.f32.mrb[24].mxu0  ;;  %v627_v8 = vpop.f32.mrb[24].mxu1 }
 0x129   :  { %v524_v9 = vadd.f32 %v1136_v61, %v523_v7  ;;  %v525_v10 = vpop.f32.mrb[25].mxu0  ;;  %v628_v11 = vadd.f32 %v1136_v61, %v627_v8  ;;  %v629_v12 = vpop.f32.mrb[25].mxu1 }
 0x12a   :  { %v526_v13 = vpop.f32.mrb[26].mxu0  ;;  %v630_v14 = vpop.f32.mrb[26].mxu1 }
 0x12b   :  { %685 = vst.msk [vmem:[%s1386_s3 + $0x60] sm:$0xff] %vm365_vm0, %v524_v9  ;;  %v527_v15 = vadd.f32 %v1136_v61, %v526_v13  ;;  %v528_v16 = vpop.f32.mrb[27].mxu0  ;;  %711 = vst.msk [vmem:[%s1386_s3 + $0x130] sm:$0xff] %vm365_vm0, %v628_v11  ;;  %v631_v17 = vadd.f32 %v1136_v61, %v630_v14  ;;  %v632_v18 = vpop.f32.mrb[27].mxu1 }
 0x12d   :  { %686 = vst.msk [vmem:[%s1386_s3 + $0x68] sm:$0xff] %vm365_vm0, %v527_v15  ;;  %712 = vst.msk [vmem:[%s1386_s3 + $0x138] sm:$0xff] %vm365_vm0, %v631_v17 }
 0x130   :  { %v531_v19 = vpop.f32.mrb[28].mxu0  ;;  %v635_v20 = vpop.f32.mrb[28].mxu1 }
 0x131   :  { %v532_v21 = vadd.f32 %v1136_v61, %v531_v19  ;;  %v533_v22 = vpop.f32.mrb[29].mxu0  ;;  %v636_v23 = vadd.f32 %v1136_v61, %v635_v20  ;;  %v637_v24 = vpop.f32.mrb[29].mxu1 }
 0x132   :  { %v534_v25 = vpop.f32.mrb[30].mxu0  ;;  %v638_v26 = vpop.f32.mrb[30].mxu1 }
 0x133   :  { %687 = vst.msk [vmem:[%s1386_s3 + $0x70] sm:$0xff] %vm365_vm0, %v532_v21  ;;  %v535_v27 = vadd.f32 %v1136_v61, %v534_v25  ;;  %v536_v28 = vpop.f32.mrb[31].mxu0  ;;  %713 = vst.msk [vmem:[%s1386_s3 + $0x140] sm:$0xff] %vm365_vm0, %v636_v23  ;;  %v639_v29 = vadd.f32 %v1136_v61, %v638_v26  ;;  %v640_v30 = vpop.f32.mrb[31].mxu1 }
 0x135   :  { %688 = vst.msk [vmem:[%s1386_s3 + $0x78] sm:$0xff] %vm365_vm0, %v535_v27  ;;  %714 = vst.msk [vmem:[%s1386_s3 + $0x148] sm:$0xff] %vm365_vm0, %v639_v29 }
 0x138   :  { %v539_v31 = vpop.f32.mrb[32].mxu0  ;;  %v643_v32 = vpop.f32.mrb[32].mxu1 }
 0x139   :  { %v540_v33 = vadd.f32 %v1136_v61, %v539_v31  ;;  %v541_v34 = vpop.f32.mrb[33].mxu0  ;;  %v644_v35 = vadd.f32 %v1136_v61, %v643_v32  ;;  %v645_v36 = vpop.f32.mrb[33].mxu1 }
 0x13a   :  { %v542_v37 = vpop.f32.mrb[34].mxu0  ;;  %v646_v38 = vpop.f32.mrb[34].mxu1 }
 0x13b   :  { %689 = vst.msk [vmem:[%s1386_s3 + $0x80] sm:$0xff] %vm365_vm0, %v540_v33  ;;  %v543_v39 = vadd.f32 %v1136_v61, %v542_v37  ;;  %v544_v40 = vpop.f32.mrb[35].mxu0  ;;  %715 = vst.msk [vmem:[%s1386_s3 + $0x150] sm:$0xff] %vm365_vm0, %v644_v35  ;;  %v647_v41 = vadd.f32 %v1136_v61, %v646_v38  ;;  %v648_v42 = vpop.f32.mrb[35].mxu1 }
 0x13d   :  { %690 = vst.msk [vmem:[%s1386_s3 + $0x88] sm:$0xff] %vm365_vm0, %v543_v39  ;;  %716 = vst.msk [vmem:[%s1386_s3 + $0x158] sm:$0xff] %vm365_vm0, %v647_v41 }
 0x140   :  { %v547_v43 = vpop.f32.mrb[36].mxu0  ;;  %v651_v44 = vpop.f32.mrb[36].mxu1 }
 0x141   :  { %v548_v45 = vadd.f32 %v1136_v61, %v547_v43  ;;  %v549_v46 = vpop.f32.mrb[37].mxu0  ;;  %v652_v47 = vadd.f32 %v1136_v61, %v651_v44  ;;  %v653_v48 = vpop.f32.mrb[37].mxu1 }
 0x142   :  { %v550_v49 = vpop.f32.mrb[38].mxu0  ;;  %v654_v50 = vpop.f32.mrb[38].mxu1 }
 0x143   :  { %691 = vst.msk [vmem:[%s1386_s3 + $0x90] sm:$0xff] %vm365_vm0, %v548_v45  ;;  %v551_v51 = vadd.f32 %v1136_v61, %v550_v49  ;;  %v552_v52 = vpop.f32.mrb[39].mxu0  ;;  %717 = vst.msk [vmem:[%s1386_s3 + $0x160] sm:$0xff] %vm365_vm0, %v652_v47  ;;  %v655_v53 = vadd.f32 %v1136_v61, %v654_v50  ;;  %v656_v54 = vpop.f32.mrb[39].mxu1 }
 0x145   :  { %692 = vst.msk [vmem:[%s1386_s3 + $0x98] sm:$0xff] %vm365_vm0, %v551_v51  ;;  %718 = vst.msk [vmem:[%s1386_s3 + $0x168] sm:$0xff] %vm365_vm0, %v655_v53 }
 0x148   :  { %v555_v55 = vpop.f32.mrb[40].mxu0  ;;  %v659_v56 = vpop.f32.mrb[40].mxu1 }
 0x149   :  { %v556_v57 = vadd.f32 %v1136_v61, %v555_v55  ;;  %v557_v58 = vpop.f32.mrb[41].mxu0  ;;  %v660_v59 = vadd.f32 %v1136_v61, %v659_v56  ;;  %v661_v60 = vpop.f32.mrb[41].mxu1 }
 0x14a   :  { %v558_v62 = vpop.f32.mrb[42].mxu0  ;;  %v662_v63 = vpop.f32.mrb[42].mxu1 }
 0x14b   :  { %693 = vst.msk [vmem:[%s1386_s3 + $0xa0] sm:$0xff] %vm365_vm0, %v556_v57  ;;  %v559_v0 = vadd.f32 %v1136_v61, %v558_v62  ;;  %v560_v1 = vpop.f32.mrb[43].mxu0  ;;  %719 = vst.msk [vmem:[%s1386_s3 + $0x170] sm:$0xff] %vm365_vm0, %v660_v59  ;;  %v663_v2 = vadd.f32 %v1136_v61, %v662_v63  ;;  %v664_v3 = vpop.f32.mrb[43].mxu1 }
 0x14d   :  { %694 = vst.msk [vmem:[%s1386_s3 + $0xa8] sm:$0xff] %vm365_vm0, %v559_v0  ;;  %720 = vst.msk [vmem:[%s1386_s3 + $0x178] sm:$0xff] %vm365_vm0, %v663_v2 }
 0x150   :  { %v563_v4 = vpop.f32.mrb[44].mxu0  ;;  %v667_v5 = vpop.f32.mrb[44].mxu1 }
 0x151   :  { %v564_v6 = vadd.f32 %v1136_v61, %v563_v4  ;;  %v565_v7 = vpop.f32.mrb[45].mxu0  ;;  %v668_v8 = vadd.f32 %v1136_v61, %v667_v5  ;;  %v669_v9 = vpop.f32.mrb[45].mxu1 }
 0x152   :  { %v566_v10 = vpop.f32.mrb[46].mxu0  ;;  %v670_v11 = vpop.f32.mrb[46].mxu1 }
 0x153   :  { %695 = vst.msk [vmem:[%s1386_s3 + $0xb0] sm:$0xff] %vm365_vm0, %v564_v6  ;;  %v567_v12 = vadd.f32 %v1136_v61, %v566_v10  ;;  %v568_v13 = vpop.f32.mrb[47].mxu0  ;;  %721 = vst.msk [vmem:[%s1386_s3 + $0x180] sm:$0xff] %vm365_vm0, %v668_v8  ;;  %v671_v14 = vpop.f32.mrb[47].mxu1 }
 0x155   :  { %696 = vst.msk [vmem:[%s1386_s3 + $0xb8] sm:$0xff] %vm365_vm0, %v567_v12 }
 0x158   :  { %v571_v15 = vpop.f32.mrb[48].mxu0 }
 0x159   :  { %v572_v16 = vadd.f32 %v1136_v61, %v571_v15  ;;  %v573_v17 = vpop.f32.mrb[49].mxu0 }
 0x15a   :  { %v574_v18 = vpop.f32.mrb[50].mxu0 }
 0x15b   :  { %697 = vst.msk [vmem:[%s1386_s3 + $0xc0] sm:$0xff] %vm365_vm0, %v572_v16  ;;  %v575_v19 = vadd.f32 %v1136_v61, %v574_v18  ;;  %v576_v20 = vpop.f32.mrb[51].mxu0 }
 0x15d   :  { %698 = vst.msk [vmem:[%s1386_s3 + $0xc8] sm:$0xff] %vm365_vm0, %v575_v19 }

// kernel: unet3_forward.47
= control target key start
LH: loop header
LB: loop body
LE: loop exit
PB: predicated region body
PF: predicated region fallthrough
CT: control target
= control target key end

     0   :  { %v774_v0 = vmov 0.0   ;;  %vm775_vm0 = vmmov 0   ;;  %vm202_vm1 = vcmask 130048   ;;  %vm510_vm2 = vcmask 261120   ;;  %s1201_s1 = inlined_call_operand.vmem [shape: bf16[16,32], index: 1, kind: input, shape index: {}]   ;;  %s1202_s0 = inlined_call_operand.vmem [shape: bf16[392,16], index: 0, kind: input, shape index: {}]   ;;  %s1203_s2 = inlined_call_operand.vmem [shape: f32[1,32], index: 2, kind: input, shape index: {}]   ;;  %s1204_s3 = inlined_call_operand.vmem [shape: f32[392,32], index: 3, kind: output, shape index: {}]  }
   0x1   :  { %642 = vmatprep.subr.bf16.mxu0 %v774_v0  ;;  %v748_v1 = vld [vmem:[%s1201_s1] sm:$0xff]   ;;  %644 = vmatprep.mubr.msk.bf16.mxu0 %vm775_vm0, %v774_v0  ;;  %v750_v3 = vld [vmem:[%s1202_s0 + $0x68] sm:$0xff]   ;;  %v752_v5 = vld [vmem:[%s1202_s0 + $0x70] sm:$0xff]  }
   0x2   :  { %v749_v2 = vld [vmem:[%s1202_s0] sm:$0xff]   ;;  %744 = vmatprep.subr.bf16.mxu1 %v774_v0  ;;  %696 = vmatprep.mubr.msk.bf16.mxu1 %vm775_vm0, %v774_v0  ;;  %v751_v4 = vld [vmem:[%s1202_s0 + $0x8] sm:$0xff]   ;;  %v753_v6 = vld [vmem:[%s1202_s0 + $0x10] sm:$0xff]  }
   0x3   :  { %643 = vmatpush3.bf16.msra.mxu0 %v748_v1  ;;  %745 = vmatpush3.bf16.msra.mxu1 %v748_v1  ;;  %v754_v7 = vld [vmem:[%s1202_s0 + $0x78] sm:$0xff]   ;;  %v756_v9 = vld [vmem:[%s1202_s0 + $0x80] sm:$0xff]   ;;  %v758_v11 = vld [vmem:[%s1202_s0 + $0x88] sm:$0xff]  }
   0x4   :  { %v755_v8 = vld [vmem:[%s1202_s0 + $0x18] sm:$0xff]   ;;  %v757_v10 = vld [vmem:[%s1202_s0 + $0x20] sm:$0xff]   ;;  %v759_v12 = vld [vmem:[%s1202_s0 + $0x28] sm:$0xff]  }
   0x5   :  { %v760_v13 = vld [vmem:[%s1202_s0 + $0x90] sm:$0xff]   ;;  %v762_v15 = vld [vmem:[%s1202_s0 + $0x98] sm:$0xff]   ;;  %v764_v17 = vld [vmem:[%s1202_s0 + $0xa0] sm:$0xff]  }
   0x6   :  { %645 = vmatmul.mubr.msk.bf16.vlgmr.msra.gmra.mrb[0].mxu0 %vm202_vm1, %v749_v2  ;;  %697 = vmatmul.mubr.msk.bf16.vlgmr.msra.gmra.mrb[0].mxu1 %vm202_vm1, %v750_v3  ;;  %v761_v14 = vld [vmem:[%s1202_s0 + $0x30] sm:$0xff]   ;;  %v763_v16 = vld [vmem:[%s1202_s0 + $0x38] sm:$0xff]   ;;  %v765_v18 = vld [vmem:[%s1202_s0 + $0x40] sm:$0xff]  }
   0x7   :  { %648 = vmatprep.mubr.msk.bf16.mxu0 %vm775_vm0, %v774_v0  ;;  %700 = vmatprep.mubr.msk.bf16.mxu1 %vm775_vm0, %v774_v0  ;;  %v766_v19 = vld [vmem:[%s1202_s0 + $0xa8] sm:$0xff]   ;;  %v768_v21 = vld [vmem:[%s1202_s0 + $0xb0] sm:$0xff]   ;;  %v770_v23 = vld [vmem:[%s1202_s0 + $0xb8] sm:$0xff]  }
   0x8   :  { %v767_v20 = vld [vmem:[%s1202_s0 + $0x48] sm:$0xff]   ;;  %v769_v22 = vld [vmem:[%s1202_s0 + $0x50] sm:$0xff]   ;;  %v771_v24 = vld [vmem:[%s1202_s0 + $0x58] sm:$0xff]  }
   0x9   :  { %v772_v25 = vld [vmem:[%s1202_s0 + $0xc0] ss:$0 sps:$4 sm:$0xff]  }
   0xa   :  { %v773_v26 = vld [vmem:[%s1202_s0 + $0x60] sm:$0xff]  }
   0xb   :  { %v954_v27 = vld [vmem:[%s1203_s2] ss:$0 sm:$0xff] }
   0xe   :  { %649 = vmatmul.mubr.msk.bf16.gmra.mrb[4].mxu0 %vm202_vm1, %v751_v4  ;;  %701 = vmatmul.mubr.msk.bf16.gmra.mrb[4].mxu1 %vm202_vm1, %v752_v5 }
   0xf   :  { %652 = vmatprep.mubr.msk.bf16.mxu0 %vm775_vm0, %v774_v0  ;;  %704 = vmatprep.mubr.msk.bf16.mxu1 %vm775_vm0, %v774_v0 }
  0x16   :  { %653 = vmatmul.mubr.msk.bf16.gmra.mrb[8].mxu0 %vm202_vm1, %v753_v6  ;;  %705 = vmatmul.mubr.msk.bf16.gmra.mrb[8].mxu1 %vm202_vm1, %v754_v7 }
  0x17   :  { %656 = vmatprep.mubr.msk.bf16.mxu0 %vm775_vm0, %v774_v0  ;;  %708 = vmatprep.mubr.msk.bf16.mxu1 %vm775_vm0, %v774_v0 }
  0x1e   :  { %657 = vmatmul.mubr.msk.bf16.gmra.mrb[12].mxu0 %vm202_vm1, %v755_v8  ;;  %709 = vmatmul.mubr.msk.bf16.gmra.mrb[12].mxu1 %vm202_vm1, %v756_v9 }
  0x1f   :  { %660 = vmatprep.mubr.msk.bf16.mxu0 %vm775_vm0, %v774_v0  ;;  %712 = vmatprep.mubr.msk.bf16.mxu1 %vm775_vm0, %v774_v0 }
  0x26   :  { %661 = vmatmul.mubr.msk.bf16.gmra.mrb[16].mxu0 %vm202_vm1, %v757_v10  ;;  %713 = vmatmul.mubr.msk.bf16.gmra.mrb[16].mxu1 %vm202_vm1, %v758_v11 }
  0x27   :  { %664 = vmatprep.mubr.msk.bf16.mxu0 %vm775_vm0, %v774_v0  ;;  %716 = vmatprep.mubr.msk.bf16.mxu1 %vm775_vm0, %v774_v0 }
  0x2e   :  { %665 = vmatmul.mubr.msk.bf16.gmra.mrb[20].mxu0 %vm202_vm1, %v759_v12  ;;  %717 = vmatmul.mubr.msk.bf16.gmra.mrb[20].mxu1 %vm202_vm1, %v760_v13 }
  0x2f   :  { %668 = vmatprep.mubr.msk.bf16.mxu0 %vm775_vm0, %v774_v0  ;;  %720 = vmatprep.mubr.msk.bf16.mxu1 %vm775_vm0, %v774_v0 }
  0x36   :  { %669 = vmatmul.mubr.msk.bf16.gmra.mrb[24].mxu0 %vm202_vm1, %v761_v14  ;;  %721 = vmatmul.mubr.msk.bf16.gmra.mrb[24].mxu1 %vm202_vm1, %v762_v15 }
  0x37   :  { %672 = vmatprep.mubr.msk.bf16.mxu0 %vm775_vm0, %v774_v0  ;;  %724 = vmatprep.mubr.msk.bf16.mxu1 %vm775_vm0, %v774_v0 }
  0x3e   :  { %673 = vmatmul.mubr.msk.bf16.gmra.mrb[28].mxu0 %vm202_vm1, %v763_v16  ;;  %725 = vmatmul.mubr.msk.bf16.gmra.mrb[28].mxu1 %vm202_vm1, %v764_v17 }
  0x3f   :  { %676 = vmatprep.mubr.msk.bf16.mxu0 %vm775_vm0, %v774_v0  ;;  %728 = vmatprep.mubr.msk.bf16.mxu1 %vm775_vm0, %v774_v0 }
  0x46   :  { %677 = vmatmul.mubr.msk.bf16.gmra.mrb[32].mxu0 %vm202_vm1, %v765_v18  ;;  %729 = vmatmul.mubr.msk.bf16.gmra.mrb[32].mxu1 %vm202_vm1, %v766_v19 }
  0x47   :  { %680 = vmatprep.mubr.msk.bf16.mxu0 %vm775_vm0, %v774_v0  ;;  %732 = vmatprep.mubr.msk.bf16.mxu1 %vm775_vm0, %v774_v0 }
  0x4e   :  { %681 = vmatmul.mubr.msk.bf16.gmra.mrb[36].mxu0 %vm202_vm1, %v767_v20  ;;  %733 = vmatmul.mubr.msk.bf16.gmra.mrb[36].mxu1 %vm202_vm1, %v768_v21 }
  0x4f   :  { %684 = vmatprep.mubr.msk.bf16.mxu0 %vm775_vm0, %v774_v0  ;;  %736 = vmatprep.mubr.msk.bf16.mxu1 %vm775_vm0, %v774_v0 }
  0x56   :  { %685 = vmatmul.mubr.msk.bf16.gmra.mrb[40].mxu0 %vm202_vm1, %v769_v22  ;;  %737 = vmatmul.mubr.msk.bf16.gmra.mrb[40].mxu1 %vm202_vm1, %v770_v23 }
  0x57   :  { %688 = vmatprep.mubr.msk.bf16.mxu0 %vm775_vm0, %v774_v0  ;;  %740 = vmatprep.mubr.msk.bf16.mxu1 %vm775_vm0, %v774_v0 }
  0x5e   :  { %689 = vmatmul.mubr.msk.bf16.gmra.mrb[44].mxu0 %vm202_vm1, %v771_v24  ;;  %741 = vmatmul.mubr.msk.bf16.gmra.mrb[44].mxu1 %vm202_vm1, %v772_v25 }
  0x5f   :  { %692 = vmatprep.mubr.msk.bf16.mxu0 %vm775_vm0, %v774_v0 }
  0x66   :  { %693 = vmatmul.mubr.msk.bf16.gmra.mrb[48].mxu0 %vm202_vm1, %v773_v26 }
  0xd9   :  { %v312_v28 = vpop.f32.mrb[0].mxu0  ;;  %v416_v29 = vpop.f32.mrb[0].mxu1 }
  0xda   :  { %v313_v30 = vadd.f32 %v954_v27, %v312_v28  ;;  %v646_v31 = vpop.f32.mrb[1].mxu0  ;;  %v417_v32 = vadd.f32 %v954_v27, %v416_v29  ;;  %v698_v33 = vpop.f32.mrb[1].mxu1 }
  0xdb   :  { %v315_v34 = vpop.f32.mrb[2].mxu0  ;;  %v419_v35 = vpop.f32.mrb[2].mxu1 }
  0xdc   :  { %511 = vst.msk [vmem:[%s1204_s3] sm:$0xff] %vm510_vm2, %v313_v30  ;;  %v316_v36 = vadd.f32 %v954_v27, %v315_v34  ;;  %v647_v37 = vpop.f32.mrb[3].mxu0  ;;  %537 = vst.msk [vmem:[%s1204_s3 + $0xd0] sm:$0xff] %vm510_vm2, %v417_v32  ;;  %v420_v38 = vadd.f32 %v954_v27, %v419_v35  ;;  %v699_v39 = vpop.f32.mrb[3].mxu1 }
  0xde   :  { %512 = vst.msk [vmem:[%s1204_s3 + $0x8] sm:$0xff] %vm510_vm2, %v316_v36  ;;  %538 = vst.msk [vmem:[%s1204_s3 + $0xd8] sm:$0xff] %vm510_vm2, %v420_v38 }
  0xe1   :  { %v320_v40 = vpop.f32.mrb[4].mxu0  ;;  %v424_v41 = vpop.f32.mrb[4].mxu1 }
  0xe2   :  { %v321_v42 = vadd.f32 %v954_v27, %v320_v40  ;;  %v650_v43 = vpop.f32.mrb[5].mxu0  ;;  %v425_v44 = vadd.f32 %v954_v27, %v424_v41  ;;  %v702_v45 = vpop.f32.mrb[5].mxu1 }
  0xe3   :  { %v323_v46 = vpop.f32.mrb[6].mxu0  ;;  %v427_v47 = vpop.f32.mrb[6].mxu1 }
  0xe4   :  { %513 = vst.msk [vmem:[%s1204_s3 + $0x10] sm:$0xff] %vm510_vm2, %v321_v42  ;;  %v324_v48 = vadd.f32 %v954_v27, %v323_v46  ;;  %v651_v49 = vpop.f32.mrb[7].mxu0  ;;  %539 = vst.msk [vmem:[%s1204_s3 + $0xe0] sm:$0xff] %vm510_vm2, %v425_v44  ;;  %v428_v50 = vadd.f32 %v954_v27, %v427_v47  ;;  %v703_v51 = vpop.f32.mrb[7].mxu1 }
  0xe6   :  { %514 = vst.msk [vmem:[%s1204_s3 + $0x18] sm:$0xff] %vm510_vm2, %v324_v48  ;;  %540 = vst.msk [vmem:[%s1204_s3 + $0xe8] sm:$0xff] %vm510_vm2, %v428_v50 }
  0xe9   :  { %v328_v52 = vpop.f32.mrb[8].mxu0  ;;  %v432_v53 = vpop.f32.mrb[8].mxu1 }
  0xea   :  { %v329_v54 = vadd.f32 %v954_v27, %v328_v52  ;;  %v654_v55 = vpop.f32.mrb[9].mxu0  ;;  %v433_v56 = vadd.f32 %v954_v27, %v432_v53  ;;  %v706_v57 = vpop.f32.mrb[9].mxu1 }
  0xeb   :  { %v331_v58 = vpop.f32.mrb[10].mxu0  ;;  %v435_v59 = vpop.f32.mrb[10].mxu1 }
  0xec   :  { %515 = vst.msk [vmem:[%s1204_s3 + $0x20] sm:$0xff] %vm510_vm2, %v329_v54  ;;  %v332_v60 = vadd.f32 %v954_v27, %v331_v58  ;;  %v655_v61 = vpop.f32.mrb[11].mxu0  ;;  %541 = vst.msk [vmem:[%s1204_s3 + $0xf0] sm:$0xff] %vm510_vm2, %v433_v56  ;;  %v436_v62 = vadd.f32 %v954_v27, %v435_v59  ;;  %v707_v63 = vpop.f32.mrb[11].mxu1 }
  0xee   :  { %516 = vst.msk [vmem:[%s1204_s3 + $0x28] sm:$0xff] %vm510_vm2, %v332_v60  ;;  %542 = vst.msk [vmem:[%s1204_s3 + $0xf8] sm:$0xff] %vm510_vm2, %v436_v62 }
  0xf1   :  { %v336_v0 = vpop.f32.mrb[12].mxu0  ;;  %v440_v1 = vpop.f32.mrb[12].mxu1 }
  0xf2   :  { %v337_v2 = vadd.f32 %v954_v27, %v336_v0  ;;  %v658_v3 = vpop.f32.mrb[13].mxu0  ;;  %v441_v4 = vadd.f32 %v954_v27, %v440_v1  ;;  %v710_v5 = vpop.f32.mrb[13].mxu1 }
  0xf3   :  { %v339_v6 = vpop.f32.mrb[14].mxu0  ;;  %v443_v7 = vpop.f32.mrb[14].mxu1 }
  0xf4   :  { %517 = vst.msk [vmem:[%s1204_s3 + $0x30] sm:$0xff] %vm510_vm2, %v337_v2  ;;  %v340_v8 = vadd.f32 %v954_v27, %v339_v6  ;;  %v659_v9 = vpop.f32.mrb[15].mxu0  ;;  %543 = vst.msk [vmem:[%s1204_s3 + $0x100] sm:$0xff] %vm510_vm2, %v441_v4  ;;  %v444_v10 = vadd.f32 %v954_v27, %v443_v7  ;;  %v711_v11 = vpop.f32.mrb[15].mxu1 }
  0xf6   :  { %518 = vst.msk [vmem:[%s1204_s3 + $0x38] sm:$0xff] %vm510_vm2, %v340_v8  ;;  %544 = vst.msk [vmem:[%s1204_s3 + $0x108] sm:$0xff] %vm510_vm2, %v444_v10 }
  0xf9   :  { %v344_v12 = vpop.f32.mrb[16].mxu0  ;;  %v448_v13 = vpop.f32.mrb[16].mxu1 }
  0xfa   :  { %v345_v14 = vadd.f32 %v954_v27, %v344_v12  ;;  %v662_v15 = vpop.f32.mrb[17].mxu0  ;;  %v449_v16 = vadd.f32 %v954_v27, %v448_v13  ;;  %v714_v17 = vpop.f32.mrb[17].mxu1 }
  0xfb   :  { %v347_v18 = vpop.f32.mrb[18].mxu0  ;;  %v451_v19 = vpop.f32.mrb[18].mxu1 }
  0xfc   :  { %519 = vst.msk [vmem:[%s1204_s3 + $0x40] sm:$0xff] %vm510_vm2, %v345_v14  ;;  %v348_v20 = vadd.f32 %v954_v27, %v347_v18  ;;  %v663_v21 = vpop.f32.mrb[19].mxu0  ;;  %545 = vst.msk [vmem:[%s1204_s3 + $0x110] sm:$0xff] %vm510_vm2, %v449_v16  ;;  %v452_v22 = vadd.f32 %v954_v27, %v451_v19  ;;  %v715_v23 = vpop.f32.mrb[19].mxu1 }
  0xfe   :  { %520 = vst.msk [vmem:[%s1204_s3 + $0x48] sm:$0xff] %vm510_vm2, %v348_v20  ;;  %546 = vst.msk [vmem:[%s1204_s3 + $0x118] sm:$0xff] %vm510_vm2, %v452_v22 }
 0x101   :  { %v352_v24 = vpop.f32.mrb[20].mxu0  ;;  %v456_v25 = vpop.f32.mrb[20].mxu1 }
 0x102   :  { %v353_v26 = vadd.f32 %v954_v27, %v352_v24  ;;  %v666_v28 = vpop.f32.mrb[21].mxu0  ;;  %v457_v29 = vadd.f32 %v954_v27, %v456_v25  ;;  %v718_v30 = vpop.f32.mrb[21].mxu1 }
 0x103   :  { %v355_v31 = vpop.f32.mrb[22].mxu0  ;;  %v459_v32 = vpop.f32.mrb[22].mxu1 }
 0x104   :  { %521 = vst.msk [vmem:[%s1204_s3 + $0x50] sm:$0xff] %vm510_vm2, %v353_v26  ;;  %v356_v33 = vadd.f32 %v954_v27, %v355_v31  ;;  %v667_v34 = vpop.f32.mrb[23].mxu0  ;;  %547 = vst.msk [vmem:[%s1204_s3 + $0x120] sm:$0xff] %vm510_vm2, %v457_v29  ;;  %v460_v35 = vadd.f32 %v954_v27, %v459_v32  ;;  %v719_v36 = vpop.f32.mrb[23].mxu1 }
 0x106   :  { %522 = vst.msk [vmem:[%s1204_s3 + $0x58] sm:$0xff] %vm510_vm2, %v356_v33  ;;  %548 = vst.msk [vmem:[%s1204_s3 + $0x128] sm:$0xff] %vm510_vm2, %v460_v35 }
 0x109   :  { %v360_v37 = vpop.f32.mrb[24].mxu0  ;;  %v464_v38 = vpop.f32.mrb[24].mxu1 }
 0x10a   :  { %v361_v39 = vadd.f32 %v954_v27, %v360_v37  ;;  %v670_v40 = vpop.f32.mrb[25].mxu0  ;;  %v465_v41 = vadd.f32 %v954_v27, %v464_v38  ;;  %v722_v42 = vpop.f32.mrb[25].mxu1 }
 0x10b   :  { %v363_v43 = vpop.f32.mrb[26].mxu0  ;;  %v467_v44 = vpop.f32.mrb[26].mxu1 }
 0x10c   :  { %523 = vst.msk [vmem:[%s1204_s3 + $0x60] sm:$0xff] %vm510_vm2, %v361_v39  ;;  %v364_v45 = vadd.f32 %v954_v27, %v363_v43  ;;  %v671_v46 = vpop.f32.mrb[27].mxu0  ;;  %549 = vst.msk [vmem:[%s1204_s3 + $0x130] sm:$0xff] %vm510_vm2, %v465_v41  ;;  %v468_v47 = vadd.f32 %v954_v27, %v467_v44  ;;  %v723_v48 = vpop.f32.mrb[27].mxu1 }
 0x10e   :  { %524 = vst.msk [vmem:[%s1204_s3 + $0x68] sm:$0xff] %vm510_vm2, %v364_v45  ;;  %550 = vst.msk [vmem:[%s1204_s3 + $0x138] sm:$0xff] %vm510_vm2, %v468_v47 }
 0x111   :  { %v368_v49 = vpop.f32.mrb[28].mxu0  ;;  %v472_v50 = vpop.f32.mrb[28].mxu1 }
 0x112   :  { %v369_v51 = vadd.f32 %v954_v27, %v368_v49  ;;  %v674_v52 = vpop.f32.mrb[29].mxu0  ;;  %v473_v53 = vadd.f32 %v954_v27, %v472_v50  ;;  %v726_v54 = vpop.f32.mrb[29].mxu1 }
 0x113   :  { %v371_v55 = vpop.f32.mrb[30].mxu0  ;;  %v475_v56 = vpop.f32.mrb[30].mxu1 }
 0x114   :  { %525 = vst.msk [vmem:[%s1204_s3 + $0x70] sm:$0xff] %vm510_vm2, %v369_v51  ;;  %v372_v57 = vadd.f32 %v954_v27, %v371_v55  ;;  %v675_v58 = vpop.f32.mrb[31].mxu0  ;;  %551 = vst.msk [vmem:[%s1204_s3 + $0x140] sm:$0xff] %vm510_vm2, %v473_v53  ;;  %v476_v59 = vadd.f32 %v954_v27, %v475_v56  ;;  %v727_v60 = vpop.f32.mrb[31].mxu1 }
 0x116   :  { %526 = vst.msk [vmem:[%s1204_s3 + $0x78] sm:$0xff] %vm510_vm2, %v372_v57  ;;  %552 = vst.msk [vmem:[%s1204_s3 + $0x148] sm:$0xff] %vm510_vm2, %v476_v59 }
 0x119   :  { %v376_v61 = vpop.f32.mrb[32].mxu0  ;;  %v480_v62 = vpop.f32.mrb[32].mxu1 }
 0x11a   :  { %v377_v63 = vadd.f32 %v954_v27, %v376_v61  ;;  %v678_v0 = vpop.f32.mrb[33].mxu0  ;;  %v481_v1 = vadd.f32 %v954_v27, %v480_v62  ;;  %v730_v2 = vpop.f32.mrb[33].mxu1 }
 0x11b   :  { %v379_v3 = vpop.f32.mrb[34].mxu0  ;;  %v483_v4 = vpop.f32.mrb[34].mxu1 }
 0x11c   :  { %527 = vst.msk [vmem:[%s1204_s3 + $0x80] sm:$0xff] %vm510_vm2, %v377_v63  ;;  %v380_v5 = vadd.f32 %v954_v27, %v379_v3  ;;  %v679_v6 = vpop.f32.mrb[35].mxu0  ;;  %553 = vst.msk [vmem:[%s1204_s3 + $0x150] sm:$0xff] %vm510_vm2, %v481_v1  ;;  %v484_v7 = vadd.f32 %v954_v27, %v483_v4  ;;  %v731_v8 = vpop.f32.mrb[35].mxu1 }
 0x11e   :  { %528 = vst.msk [vmem:[%s1204_s3 + $0x88] sm:$0xff] %vm510_vm2, %v380_v5  ;;  %554 = vst.msk [vmem:[%s1204_s3 + $0x158] sm:$0xff] %vm510_vm2, %v484_v7 }
 0x121   :  { %v384_v9 = vpop.f32.mrb[36].mxu0  ;;  %v488_v10 = vpop.f32.mrb[36].mxu1 }
 0x122   :  { %v385_v11 = vadd.f32 %v954_v27, %v384_v9  ;;  %v682_v12 = vpop.f32.mrb[37].mxu0  ;;  %v489_v13 = vadd.f32 %v954_v27, %v488_v10  ;;  %v734_v14 = vpop.f32.mrb[37].mxu1 }
 0x123   :  { %v387_v15 = vpop.f32.mrb[38].mxu0  ;;  %v491_v16 = vpop.f32.mrb[38].mxu1 }
 0x124   :  { %529 = vst.msk [vmem:[%s1204_s3 + $0x90] sm:$0xff] %vm510_vm2, %v385_v11  ;;  %v388_v17 = vadd.f32 %v954_v27, %v387_v15  ;;  %v683_v18 = vpop.f32.mrb[39].mxu0  ;;  %555 = vst.msk [vmem:[%s1204_s3 + $0x160] sm:$0xff] %vm510_vm2, %v489_v13  ;;  %v492_v19 = vadd.f32 %v954_v27, %v491_v16  ;;  %v735_v20 = vpop.f32.mrb[39].mxu1 }
 0x126   :  { %530 = vst.msk [vmem:[%s1204_s3 + $0x98] sm:$0xff] %vm510_vm2, %v388_v17  ;;  %556 = vst.msk [vmem:[%s1204_s3 + $0x168] sm:$0xff] %vm510_vm2, %v492_v19 }
 0x129   :  { %v392_v21 = vpop.f32.mrb[40].mxu0  ;;  %v496_v22 = vpop.f32.mrb[40].mxu1 }
 0x12a   :  { %v393_v23 = vadd.f32 %v954_v27, %v392_v21  ;;  %v686_v24 = vpop.f32.mrb[41].mxu0  ;;  %v497_v25 = vadd.f32 %v954_v27, %v496_v22  ;;  %v738_v26 = vpop.f32.mrb[41].mxu1 }
 0x12b   :  { %v395_v28 = vpop.f32.mrb[42].mxu0  ;;  %v499_v29 = vpop.f32.mrb[42].mxu1 }
 0x12c   :  { %531 = vst.msk [vmem:[%s1204_s3 + $0xa0] sm:$0xff] %vm510_vm2, %v393_v23  ;;  %v396_v30 = vadd.f32 %v954_v27, %v395_v28  ;;  %v687_v31 = vpop.f32.mrb[43].mxu0  ;;  %557 = vst.msk [vmem:[%s1204_s3 + $0x170] sm:$0xff] %vm510_vm2, %v497_v25  ;;  %v500_v32 = vadd.f32 %v954_v27, %v499_v29  ;;  %v739_v33 = vpop.f32.mrb[43].mxu1 }
 0x12e   :  { %532 = vst.msk [vmem:[%s1204_s3 + $0xa8] sm:$0xff] %vm510_vm2, %v396_v30  ;;  %558 = vst.msk [vmem:[%s1204_s3 + $0x178] sm:$0xff] %vm510_vm2, %v500_v32 }
 0x131   :  { %v400_v34 = vpop.f32.mrb[44].mxu0  ;;  %v504_v35 = vpop.f32.mrb[44].mxu1 }
 0x132   :  { %v401_v36 = vadd.f32 %v954_v27, %v400_v34  ;;  %v690_v37 = vpop.f32.mrb[45].mxu0  ;;  %v505_v38 = vadd.f32 %v954_v27, %v504_v35  ;;  %v742_v39 = vpop.f32.mrb[45].mxu1 }
 0x133   :  { %v403_v40 = vpop.f32.mrb[46].mxu0  ;;  %v507_v41 = vpop.f32.mrb[46].mxu1 }
 0x134   :  { %533 = vst.msk [vmem:[%s1204_s3 + $0xb0] sm:$0xff] %vm510_vm2, %v401_v36  ;;  %v404_v42 = vadd.f32 %v954_v27, %v403_v40  ;;  %v691_v43 = vpop.f32.mrb[47].mxu0  ;;  %559 = vst.msk [vmem:[%s1204_s3 + $0x180] sm:$0xff] %vm510_vm2, %v505_v38  ;;  %v743_v44 = vpop.f32.mrb[47].mxu1 }
 0x136   :  { %534 = vst.msk [vmem:[%s1204_s3 + $0xb8] sm:$0xff] %vm510_vm2, %v404_v42 }
 0x139   :  { %v408_v45 = vpop.f32.mrb[48].mxu0 }
 0x13a   :  { %v409_v46 = vadd.f32 %v954_v27, %v408_v45  ;;  %v694_v47 = vpop.f32.mrb[49].mxu0 }
 0x13b   :  { %v411_v48 = vpop.f32.mrb[50].mxu0 }
 0x13c   :  { %535 = vst.msk [vmem:[%s1204_s3 + $0xc0] sm:$0xff] %vm510_vm2, %v409_v46  ;;  %v412_v49 = vadd.f32 %v954_v27, %v411_v48  ;;  %v695_v50 = vpop.f32.mrb[51].mxu0 }
 0x13e   :  { %536 = vst.msk [vmem:[%s1204_s3 + $0xc8] sm:$0xff] %vm510_vm2, %v412_v49 }

// kernel: unet3_forward.48
= control target key start
LH: loop header
LB: loop body
LE: loop exit
PB: predicated region body
PF: predicated region fallthrough
CT: control target
= control target key end

     0   :  { %v715_v1 = vmov 0.0   ;;  %vm716_vm0 = vmmov 0   ;;  %vm292_vm1 = vcmask 261120   ;;  %vm503_vm2 = vcmask 523264   ;;  %s943_s1 = inlined_call_operand.vmem [shape: bf16[288,64], index: 1, kind: input, shape index: {}]   ;;  %s944_s0 = inlined_call_operand.vmem [shape: bf16[98,288], index: 0, kind: input, shape index: {}]   ;;  %s945_s2 = inlined_call_operand.vmem [shape: f32[1,64], index: 2, kind: input, shape index: {}]   ;;  %s946_s3 = inlined_call_operand.vmem [shape: f32[98,64], index: 3, kind: output, shape index: {}]  }
   0x1   :  { %v670_v0 = vld [vmem:[%s943_s1 + $0x40] sm:$0xff]   ;;  %636 = vmatprep.subr.bf16.mxu1 %v715_v1  ;;  %640 = vmatprep.mubr.msk.bf16.mxu1 %vm716_vm0, %v715_v1  ;;  %v672_v3 = vld [vmem:[%s943_s1 + $0x48] sm:$0xff]   ;;  %v674_v5 = vld [vmem:[%s943_s1 + $0x50] sm:$0xff]   ;;  %vm516_vm3 = vcmask 517120  }
   0x2   :  { %v671_v2 = vld [vmem:[%s943_s1] sm:$0xff]   ;;  %569 = vmatprep.subr.bf16.mxu0 %v670_v0  ;;  %v673_v4 = vld [vmem:[%s943_s1 + $0x8] sm:$0xff]   ;;  %v675_v6 = vld [vmem:[%s943_s1 + $0x10] sm:$0xff]  }
   0x3   :  { %570 = vmatpush3.bf16.msra.mxu0 %v671_v2  ;;  %v676_v7 = vld [vmem:[%s943_s1 + $0x58] sm:$0xff]   ;;  %v678_v9 = vld [vmem:[%s943_s1 + $0x60] sm:$0xff]   ;;  %v680_v12 = vld [vmem:[%s943_s1 + $0x68] sm:$0xff]  }
   0x4   :  { %571 = vmatprep.subr.bf16.mxu0 %v672_v3  ;;  %v677_v8 = vld [vmem:[%s943_s1 + $0x18] sm:$0xff]   ;;  %v684_v10 = vld [vmem:[%s943_s1 + $0x80] sm:$0xff]   ;;  %v681_v13 = vld [vmem:[%s943_s1 + $0x28] sm:$0xff]  }
   0x5   :  { %v679_v11 = vld [vmem:[%s943_s1 + $0x20] sm:$0xff]   ;;  %637 = vmatpush3.bf16.msra.mxu1 %v684_v10  ;;  %v682_v14 = vld [vmem:[%s943_s1 + $0x70] sm:$0xff]   ;;  %v690_v16 = vld [vmem:[%s943_s1 + $0x88] sm:$0xff]  }
   0x6   :  { %638 = vmatprep.subr.bf16.mxu1 %v715_v1  ;;  %v689_v15 = vld [vmem:[%s944_s0 + $0x4] ss:$12 sps:$4 sm:$0xff]   ;;  %v691_v17 = vld [vmem:[%s944_s0 + $0x8] ss:$12 sps:$4 sm:$0xff]   ;;  %v685_v19 = vld [vmem:[%s943_s1 + $0x78] sm:$0xff]  }
   0x7   :  { %572 = vmatpush3.bf16.msra.mxu0 %v673_v4  ;;  %346 = vmatprep.mubr.bf16.mxu0 %v689_v15  ;;  %v683_v18 = vld [vmem:[%s943_s1 + $0x30] sm:$0xff]   ;;  %v686_v20 = vld [vmem:[%s943_s1 + $0x38] sm:$0xff]   ;;  %v695_v21 = vld [vmem:[%s944_s0 + $0x20] ss:$12 sps:$4 sm:$0xff]  }
   0x8   :  { %573 = vmatprep.subr.bf16.mxu0 %v674_v5  ;;  %v687_v22 = vld [vmem:[%s944_s0] ss:$12 sps:$4 sm:$0xff]   ;;  %v692_v23 = vld [vmem:[%s944_s0 + $0x1c] ss:$12 sps:$4 sm:$0xff]   ;;  %v699_v24 = vld [vmem:[%s944_s0 + $0x38] ss:$12 sps:$4 sm:$0xff]  }
   0x9   :  { %639 = vmatpush3.bf16.msra.mxu1 %v690_v16  ;;  %v694_v25 = vld [vmem:[%s944_s0 + $0x18] ss:$12 sps:$4 sm:$0xff]   ;;  %v696_v26 = vld [vmem:[%s944_s0 + $0x34] ss:$12 sps:$4 sm:$0xff]   ;;  %v703_v27 = vld [vmem:[%s944_s0 + $0x50] ss:$12 sps:$4 sm:$0xff]  }
   0xa   :  { %v698_v28 = vld [vmem:[%s944_s0 + $0x30] ss:$12 sps:$4 sm:$0xff]   ;;  %v700_v29 = vld [vmem:[%s944_s0 + $0x4c] ss:$12 sps:$4 sm:$0xff]   ;;  %v707_v30 = vld [vmem:[%s944_s0 + $0x68] ss:$12 sps:$4 sm:$0xff]  }
   0xb   :  { %574 = vmatpush3.bf16.msra.mxu0 %v675_v6  ;;  %v702_v31 = vld [vmem:[%s944_s0 + $0x48] ss:$12 sps:$4 sm:$0xff]   ;;  %v704_v32 = vld [vmem:[%s944_s0 + $0x64] ss:$12 sps:$4 sm:$0xff]   ;;  %v711_v33 = vld [vmem:[%s944_s0 + $0x80] ss:$12 sps:$4 sm:$0xff]  }
   0xc   :  { %575 = vmatprep.subr.bf16.mxu0 %v676_v7  ;;  %641 = vmatmul.mubr.msk.bf16.vlgmr.msra.gmra.mrb[0].mxu1 %vm292_vm1, %v691_v17  ;;  %v706_v34 = vld [vmem:[%s944_s0 + $0x60] ss:$12 sps:$4 sm:$0xff]   ;;  %v708_v35 = vld [vmem:[%s944_s0 + $0x7c] ss:$12 sps:$4 sm:$0xff]   ;;  %v39_v36 = vld [vmem:[%s944_s0 + $0x90] sm:$0x11] }
   0xd   :  { %644 = vmatprep.mubr.msk.bf16.mxu1 %vm716_vm0, %v715_v1  ;;  %v714_v37 = vld [vmem:[%s944_s0 + $0x98] ss:$0 sps:$4 sm:$0x11]   ;;  %v542_v39 = vcombine.high %v39_v36, %v39_v36  ;;  %v541_v40 = vcombine.low %v39_v36, %v39_v36  ;;  %v877_v50 = vld [vmem:[%s945_s2] ss:$0 sm:$0xff] }
   0xe   :  { %v710_v38 = vld [vmem:[%s944_s0 + $0x78] ss:$12 sps:$4 sm:$0xff]  }
   0xf   :  { %576 = vmatpush3.bf16.msra.mxu0 %v677_v8 }
  0x10   :  { %577 = vmatprep.subr.bf16.mxu0 %v678_v9 }
  0x13   :  { %578 = vmatpush3.bf16.msra.mxu0 %v679_v11 }
  0x14   :  { %579 = vmatprep.subr.bf16.mxu0 %v680_v12  ;;  %645 = vmatmul.mubr.msk.bf16.gmra.mrb[4].mxu1 %vm292_vm1, %v695_v21 }
  0x15   :  { %648 = vmatprep.mubr.msk.bf16.mxu1 %vm716_vm0, %v715_v1 }
  0x17   :  { %580 = vmatpush3.bf16.msra.mxu0 %v681_v13 }
  0x18   :  { %581 = vmatprep.subr.bf16.mxu0 %v682_v14 }
  0x1b   :  { %582 = vmatpush3.bf16.msra.mxu0 %v683_v18 }
  0x1c   :  { %583 = vmatprep.subr.bf16.mxu0 %v685_v19  ;;  %649 = vmatmul.mubr.msk.bf16.gmra.mrb[8].mxu1 %vm292_vm1, %v699_v24 }
  0x1d   :  { %652 = vmatprep.mubr.msk.bf16.mxu1 %vm716_vm0, %v715_v1 }
  0x1f   :  { %584 = vmatpush3.bf16.msra.mxu0 %v686_v20 }
  0x22   :  { %347 = vmatmul.mubr.bf16.vlgmr.msra.gmra.mrb[0].mxu0 %v687_v22 }
  0x23   :  { %354 = vmatprep.mubr.bf16.mxu0 %v692_v23 }
  0x24   :  { %653 = vmatmul.mubr.msk.bf16.gmra.mrb[12].mxu1 %vm292_vm1, %v703_v27 }
  0x25   :  { %656 = vmatprep.mubr.msk.bf16.mxu1 %vm716_vm0, %v715_v1 }
  0x2a   :  { %355 = vmatmul.mubr.bf16.gmra.mrb[4].mxu0 %v694_v25 }
  0x2b   :  { %362 = vmatprep.mubr.bf16.mxu0 %v696_v26 }
  0x2c   :  { %657 = vmatmul.mubr.msk.bf16.gmra.mrb[16].mxu1 %vm292_vm1, %v707_v30 }
  0x2d   :  { %660 = vmatprep.mubr.msk.bf16.mxu1 %vm716_vm0, %v715_v1 }
  0x32   :  { %363 = vmatmul.mubr.bf16.gmra.mrb[8].mxu0 %v698_v28 }
  0x33   :  { %370 = vmatprep.mubr.bf16.mxu0 %v700_v29 }
  0x34   :  { %661 = vmatmul.mubr.msk.bf16.gmra.mrb[20].mxu1 %vm292_vm1, %v711_v33 }
  0x35   :  { %664 = vmatprep.mubr.msk.bf16.mxu1 %vm716_vm0, %v715_v1 }
  0x3a   :  { %371 = vmatmul.mubr.bf16.gmra.mrb[12].mxu0 %v702_v31 }
  0x3b   :  { %378 = vmatprep.mubr.bf16.mxu0 %v704_v32 }
  0x3c   :  { %665 = vmatmul.mubr.msk.bf16.gmra.mrb[24].mxu1 %vm292_vm1, %v714_v37 }
  0x42   :  { %379 = vmatmul.mubr.bf16.gmra.mrb[16].mxu0 %v706_v34 }
  0x43   :  { %386 = vmatprep.mubr.bf16.mxu0 %v708_v35 }
  0x4a   :  { %387 = vmatmul.mubr.bf16.gmra.mrb[20].mxu0 %v710_v38 }
  0x4b   :  { %394 = vmatprep.mubr.bf16.mxu0 %v542_v39 }
  0x52   :  { %395 = vmatmul.mubr.bf16.gmra.mrb[24].mxu0 %v541_v40 }
  0xdf   :  { %v436_v41 = vpop.f32.mrb[0].mxu1 }
  0xe0   :  { %v642_v42 = vpop.f32.mrb[1].mxu1 }
  0xe1   :  { %v439_v43 = vpop.f32.mrb[2].mxu1 }
  0xe2   :  { %v643_v44 = vpop.f32.mrb[3].mxu1 }
  0xe7   :  { %v444_v45 = vpop.f32.mrb[4].mxu1 }
  0xe8   :  { %v646_v46 = vpop.f32.mrb[5].mxu1 }
  0xe9   :  { %v447_v48 = vpop.f32.mrb[6].mxu1 }
  0xea   :  { %v647_v51 = vpop.f32.mrb[7].mxu1 }
  0xef   :  { %v452_v59 = vpop.f32.mrb[8].mxu1 }
  0xf0   :  { %v650_v60 = vpop.f32.mrb[9].mxu1 }
  0xf1   :  { %v455_v0 = vpop.f32.mrb[10].mxu1 }
  0xf2   :  { %v651_v2 = vpop.f32.mrb[11].mxu1 }
  0xf5   :  { %v585_v47 = vpop.f32.mrb[0].mxu0 }
  0xf6   :  { %v586_v49 = vpop.f32.mrb[1].mxu0 }
  0xf7   :  { %v587_v52 = vadd.f32 %v586_v49, %v585_v47  ;;  %v588_v53 = vpop.f32.mrb[2].mxu0  ;;  %v460_v11 = vpop.f32.mrb[12].mxu1 }
  0xf8   :  { %v589_v54 = vpop.f32.mrb[3].mxu0  ;;  %v654_v12 = vpop.f32.mrb[13].mxu1 }
  0xf9   :  { %v349_v55 = vadd.f32 %v587_v52, %v877_v50  ;;  %v590_v56 = vadd.f32 %v589_v54, %v588_v53  ;;  %v463_v16 = vpop.f32.mrb[14].mxu1 }
  0xfa   :  { %v655_v18 = vpop.f32.mrb[15].mxu1 }
  0xfb   :  { %v437_v57 = vadd.f32 %v436_v41, %v349_v55  ;;  %v352_v58 = vadd.f32 %v590_v56, %v877_v50 }
  0xfd   :  { %v490_v61 = vmax.f32 %v437_v57, 0.0  ;;  %v440_v62 = vadd.f32 %v439_v43, %v352_v58  ;;  %v591_v63 = vpop.f32.mrb[4].mxu0 }
  0xfe   :  { %v592_v1 = vpop.f32.mrb[5].mxu0 }
  0xff   :  { %504 = vst.msk [vmem:[%s946_s3] sm:$0xff] %vm503_vm2, %v490_v61  ;;  %v491_v3 = vmax.f32 %v440_v62, 0.0  ;;  %v593_v4 = vadd.f32 %v592_v1, %v591_v63  ;;  %v594_v5 = vpop.f32.mrb[6].mxu0  ;;  %v468_v27 = vpop.f32.mrb[16].mxu1 }
 0x100   :  { %v595_v6 = vpop.f32.mrb[7].mxu0  ;;  %v658_v28 = vpop.f32.mrb[17].mxu1 }
 0x101   :  { %505 = vst.msk [vmem:[%s946_s3 + $0x8] sm:$0xff] %vm503_vm2, %v491_v3  ;;  %v357_v7 = vadd.f32 %v593_v4, %v877_v50  ;;  %v596_v8 = vadd.f32 %v595_v6, %v594_v5  ;;  %v471_v32 = vpop.f32.mrb[18].mxu1 }
 0x102   :  { %v659_v34 = vpop.f32.mrb[19].mxu1 }
 0x103   :  { %v445_v9 = vadd.f32 %v444_v45, %v357_v7  ;;  %v360_v10 = vadd.f32 %v596_v8, %v877_v50 }
 0x105   :  { %v492_v13 = vmax.f32 %v445_v9, 0.0  ;;  %v448_v14 = vadd.f32 %v447_v48, %v360_v10  ;;  %v597_v15 = vpop.f32.mrb[8].mxu0 }
 0x106   :  { %v598_v17 = vpop.f32.mrb[9].mxu0 }
 0x107   :  { %506 = vst.msk [vmem:[%s946_s3 + $0x10] sm:$0xff] %vm503_vm2, %v492_v13  ;;  %v493_v19 = vmax.f32 %v448_v14, 0.0  ;;  %v599_v20 = vadd.f32 %v598_v17, %v597_v15  ;;  %v600_v21 = vpop.f32.mrb[10].mxu0  ;;  %v476_v43 = vpop.f32.mrb[20].mxu1 }
 0x108   :  { %v601_v22 = vpop.f32.mrb[11].mxu0  ;;  %v662_v44 = vpop.f32.mrb[21].mxu1 }
 0x109   :  { %507 = vst.msk [vmem:[%s946_s3 + $0x18] sm:$0xff] %vm503_vm2, %v493_v19  ;;  %v365_v23 = vadd.f32 %v599_v20, %v877_v50  ;;  %v602_v24 = vadd.f32 %v601_v22, %v600_v21  ;;  %v479_v48 = vpop.f32.mrb[22].mxu1 }
 0x10a   :  { %v663_v51 = vpop.f32.mrb[23].mxu1 }
 0x10b   :  { %v453_v25 = vadd.f32 %v452_v59, %v365_v23  ;;  %v368_v26 = vadd.f32 %v602_v24, %v877_v50 }
 0x10d   :  { %v494_v29 = vmax.f32 %v453_v25, 0.0  ;;  %v456_v30 = vadd.f32 %v455_v0, %v368_v26  ;;  %v603_v31 = vpop.f32.mrb[12].mxu0 }
 0x10e   :  { %v604_v33 = vpop.f32.mrb[13].mxu0 }
 0x10f   :  { %508 = vst.msk [vmem:[%s946_s3 + $0x20] sm:$0xff] %vm503_vm2, %v494_v29  ;;  %v495_v35 = vmax.f32 %v456_v30, 0.0  ;;  %v605_v36 = vadd.f32 %v604_v33, %v603_v31  ;;  %v606_v37 = vpop.f32.mrb[14].mxu0  ;;  %v484_v60 = vpop.f32.mrb[24].mxu1 }
 0x110   :  { %v607_v38 = vpop.f32.mrb[15].mxu0  ;;  %v666_v61 = vpop.f32.mrb[25].mxu1 }
 0x111   :  { %509 = vst.msk [vmem:[%s946_s3 + $0x28] sm:$0xff] %vm503_vm2, %v495_v35  ;;  %v373_v39 = vadd.f32 %v605_v36, %v877_v50  ;;  %v608_v40 = vadd.f32 %v607_v38, %v606_v37  ;;  %v487_v1 = vpop.f32.mrb[26].mxu1 }
 0x112   :  { %v667_v3 = vpop.f32.mrb[27].mxu1 }
 0x113   :  { %v461_v41 = vadd.f32 %v460_v11, %v373_v39  ;;  %v376_v42 = vadd.f32 %v608_v40, %v877_v50 }
 0x115   :  { %v496_v45 = vmax.f32 %v461_v41, 0.0  ;;  %v464_v46 = vadd.f32 %v463_v16, %v376_v42  ;;  %v609_v47 = vpop.f32.mrb[16].mxu0 }
 0x116   :  { %v610_v49 = vpop.f32.mrb[17].mxu0 }
 0x117   :  { %510 = vst.msk [vmem:[%s946_s3 + $0x30] sm:$0xff] %vm503_vm2, %v496_v45  ;;  %v497_v52 = vmax.f32 %v464_v46, 0.0  ;;  %v611_v53 = vadd.f32 %v610_v49, %v609_v47  ;;  %v612_v54 = vpop.f32.mrb[18].mxu0 }
 0x118   :  { %v613_v55 = vpop.f32.mrb[19].mxu0 }
 0x119   :  { %511 = vst.msk [vmem:[%s946_s3 + $0x38] sm:$0xff] %vm503_vm2, %v497_v52  ;;  %v381_v56 = vadd.f32 %v611_v53, %v877_v50  ;;  %v614_v57 = vadd.f32 %v613_v55, %v612_v54 }
 0x11b   :  { %v469_v58 = vadd.f32 %v468_v27, %v381_v56  ;;  %v384_v59 = vadd.f32 %v614_v57, %v877_v50 }
 0x11d   :  { %v498_v62 = vmax.f32 %v469_v58, 0.0  ;;  %v472_v63 = vadd.f32 %v471_v32, %v384_v59  ;;  %v615_v0 = vpop.f32.mrb[20].mxu0 }
 0x11e   :  { %v616_v2 = vpop.f32.mrb[21].mxu0 }
 0x11f   :  { %512 = vst.msk [vmem:[%s946_s3 + $0x40] sm:$0xff] %vm503_vm2, %v498_v62  ;;  %v499_v4 = vmax.f32 %v472_v63, 0.0  ;;  %v617_v5 = vadd.f32 %v616_v2, %v615_v0  ;;  %v618_v6 = vpop.f32.mrb[22].mxu0 }
 0x120   :  { %v619_v7 = vpop.f32.mrb[23].mxu0 }
 0x121   :  { %513 = vst.msk [vmem:[%s946_s3 + $0x48] sm:$0xff] %vm503_vm2, %v499_v4  ;;  %v389_v8 = vadd.f32 %v617_v5, %v877_v50  ;;  %v620_v9 = vadd.f32 %v619_v7, %v618_v6 }
 0x123   :  { %v477_v10 = vadd.f32 %v476_v43, %v389_v8  ;;  %v392_v11 = vadd.f32 %v620_v9, %v877_v50 }
 0x125   :  { %v500_v12 = vmax.f32 %v477_v10, 0.0  ;;  %v480_v13 = vadd.f32 %v479_v48, %v392_v11  ;;  %v621_v14 = vpop.f32.mrb[24].mxu0 }
 0x126   :  { %v622_v15 = vpop.f32.mrb[25].mxu0 }
 0x127   :  { %514 = vst.msk [vmem:[%s946_s3 + $0x50] sm:$0xff] %vm503_vm2, %v500_v12  ;;  %v501_v16 = vmax.f32 %v480_v13, 0.0  ;;  %v623_v17 = vadd.f32 %v622_v15, %v621_v14  ;;  %v624_v18 = vpop.f32.mrb[26].mxu0 }
 0x128   :  { %v625_v19 = vpop.f32.mrb[27].mxu0 }
 0x129   :  { %515 = vst.msk [vmem:[%s946_s3 + $0x58] sm:$0xff] %vm503_vm2, %v501_v16  ;;  %v397_v20 = vadd.f32 %v623_v17, %v877_v50 }
 0x12b   :  { %v485_v21 = vadd.f32 %v484_v60, %v397_v20 }
 0x12d   :  { %v502_v22 = vmax.f32 %v485_v21, 0.0 }
 0x12f   :  { %517 = vst.msk [vmem:[%s946_s3 + $0x60] sm:$0x3] %vm516_vm3, %v502_v22 }

// kernel: unet3_forward.49
= control target key start
LH: loop header
LB: loop body
LE: loop exit
PB: predicated region body
PF: predicated region fallthrough
CT: control target
= control target key end

     0   :  { %v316_v0 = vmov 0.0   ;;  %vm317_vm0 = vmmov 0   ;;  %vm100_vm1 = vcmask 523264   ;;  %vm210_vm2 = vcmask 261120   ;;  %s439_s1 = inlined_call_operand.vmem [shape: bf16[64,32], index: 1, kind: input, shape index: {}]   ;;  %s440_s0 = inlined_call_operand.vmem [shape: bf16[98,64], index: 0, kind: input, shape index: {}]   ;;  %s441_s2 = inlined_call_operand.vmem [shape: f32[1,32], index: 2, kind: input, shape index: {}]   ;;  %s442_s3 = inlined_call_operand.vmem [shape: f32[98,32], index: 3, kind: output, shape index: {}]  }
   0x1   :  { %259 = vmatprep.subr.bf16.mxu0 %v316_v0  ;;  %v305_v1 = vld [vmem:[%s439_s1] sm:$0xff]   ;;  %295 = vmatprep.subr.bf16.mxu1 %v316_v0  ;;  %v306_v2 = vld [vmem:[%s439_s1 + $0x8] sm:$0xff]   ;;  %v307_v3 = vld [vmem:[%s439_s1 + $0x10] sm:$0xff]   ;;  %vm223_vm3 = vcmask 254976  }
   0x2   :  { %267 = vmatprep.mubr.msk.bf16.mxu0 %vm317_vm0, %v316_v0  ;;  %283 = vmatprep.mubr.msk.bf16.mxu1 %vm317_vm0, %v316_v0  ;;  %v308_v4 = vld [vmem:[%s439_s1 + $0x18] sm:$0xff]   ;;  %v309_v5 = vld [vmem:[%s440_s0] sm:$0xff]   ;;  %v311_v7 = vld [vmem:[%s440_s0 + $0x8] sm:$0xff]  }
   0x3   :  { %260 = vmatpush3.bf16.msra.mxu0 %v305_v1  ;;  %299 = vmatpush3.bf16.msra.mxu1 %v305_v1  ;;  %v310_v6 = vld [vmem:[%s440_s0 + $0x20] sm:$0xff]   ;;  %v312_v8 = vld [vmem:[%s440_s0 + $0x28] sm:$0xff]   ;;  %v313_v9 = vld [vmem:[%s440_s0 + $0x10] sm:$0xff]  }
   0x4   :  { %261 = vmatprep.subr.bf16.mxu0 %v316_v0  ;;  %296 = vmatprep.subr.bf16.mxu1 %v316_v0  ;;  %v314_v10 = vld [vmem:[%s440_s0 + $0x30] ss:$0 sps:$4 sm:$0x11]   ;;  %v315_v11 = vld [vmem:[%s440_s0 + $0x18] sm:$0xff]   ;;  %v229_v12 = vld [vmem:[%s441_s2] ss:$0 sm:$0xff] }
   0x7   :  { %262 = vmatpush3.bf16.msra.mxu0 %v306_v2  ;;  %300 = vmatpush3.bf16.msra.mxu1 %v306_v2 }
   0x8   :  { %263 = vmatprep.subr.bf16.mxu0 %v316_v0  ;;  %297 = vmatprep.subr.bf16.mxu1 %v316_v0 }
   0xb   :  { %264 = vmatpush3.bf16.msra.mxu0 %v307_v3  ;;  %301 = vmatpush3.bf16.msra.mxu1 %v307_v3 }
   0xc   :  { %265 = vmatprep.subr.bf16.mxu0 %v316_v0  ;;  %298 = vmatprep.subr.bf16.mxu1 %v316_v0 }
   0xf   :  { %266 = vmatpush3.bf16.msra.mxu0 %v308_v4  ;;  %302 = vmatpush3.bf16.msra.mxu1 %v308_v4 }
  0x12   :  { %268 = vmatmul.mubr.msk.bf16.vlgmr.msra.gmra.mrb[0].mxu0 %vm100_vm1, %v309_v5  ;;  %284 = vmatmul.mubr.msk.bf16.vlgmr.msra.gmra.mrb[0].mxu1 %vm100_vm1, %v310_v6 }
  0x13   :  { %271 = vmatprep.mubr.msk.bf16.mxu0 %vm317_vm0, %v316_v0  ;;  %287 = vmatprep.mubr.msk.bf16.mxu1 %vm317_vm0, %v316_v0 }
  0x1a   :  { %272 = vmatmul.mubr.msk.bf16.gmra.mrb[4].mxu0 %vm100_vm1, %v311_v7  ;;  %288 = vmatmul.mubr.msk.bf16.gmra.mrb[4].mxu1 %vm100_vm1, %v312_v8 }
  0x1b   :  { %275 = vmatprep.mubr.msk.bf16.mxu0 %vm317_vm0, %v316_v0  ;;  %291 = vmatprep.mubr.msk.bf16.mxu1 %vm317_vm0, %v316_v0 }
  0x22   :  { %276 = vmatmul.mubr.msk.bf16.gmra.mrb[8].mxu0 %vm100_vm1, %v313_v9  ;;  %292 = vmatmul.mubr.msk.bf16.gmra.mrb[8].mxu1 %vm100_vm1, %v314_v10 }
  0x23   :  { %279 = vmatprep.mubr.msk.bf16.mxu0 %vm317_vm0, %v316_v0 }
  0x2a   :  { %280 = vmatmul.mubr.msk.bf16.gmra.mrb[12].mxu0 %vm100_vm1, %v315_v11 }
  0xe5   :  { %v156_v13 = vpop.f32.mrb[0].mxu0  ;;  %v188_v14 = vpop.f32.mrb[0].mxu1 }
  0xe6   :  { %v157_v15 = vadd.f32 %v229_v12, %v156_v13  ;;  %v269_v16 = vpop.f32.mrb[1].mxu0  ;;  %v189_v17 = vadd.f32 %v229_v12, %v188_v14  ;;  %v285_v18 = vpop.f32.mrb[1].mxu1 }
  0xe7   :  { %v159_v19 = vpop.f32.mrb[2].mxu0  ;;  %v191_v20 = vpop.f32.mrb[2].mxu1 }
  0xe8   :  { %211 = vst.msk [vmem:[%s442_s3] sm:$0xff] %vm210_vm2, %v157_v15  ;;  %v160_v21 = vadd.f32 %v229_v12, %v159_v19  ;;  %v270_v22 = vpop.f32.mrb[3].mxu0  ;;  %219 = vst.msk [vmem:[%s442_s3 + $0x40] sm:$0xff] %vm210_vm2, %v189_v17  ;;  %v192_v23 = vadd.f32 %v229_v12, %v191_v20  ;;  %v286_v24 = vpop.f32.mrb[3].mxu1 }
  0xea   :  { %212 = vst.msk [vmem:[%s442_s3 + $0x8] sm:$0xff] %vm210_vm2, %v160_v21  ;;  %220 = vst.msk [vmem:[%s442_s3 + $0x48] sm:$0xff] %vm210_vm2, %v192_v23 }
  0xed   :  { %v164_v25 = vpop.f32.mrb[4].mxu0  ;;  %v196_v26 = vpop.f32.mrb[4].mxu1 }
  0xee   :  { %v165_v27 = vadd.f32 %v229_v12, %v164_v25  ;;  %v273_v28 = vpop.f32.mrb[5].mxu0  ;;  %v197_v29 = vadd.f32 %v229_v12, %v196_v26  ;;  %v289_v30 = vpop.f32.mrb[5].mxu1 }
  0xef   :  { %v167_v31 = vpop.f32.mrb[6].mxu0  ;;  %v199_v32 = vpop.f32.mrb[6].mxu1 }
  0xf0   :  { %213 = vst.msk [vmem:[%s442_s3 + $0x10] sm:$0xff] %vm210_vm2, %v165_v27  ;;  %v168_v33 = vadd.f32 %v229_v12, %v167_v31  ;;  %v274_v34 = vpop.f32.mrb[7].mxu0  ;;  %221 = vst.msk [vmem:[%s442_s3 + $0x50] sm:$0xff] %vm210_vm2, %v197_v29  ;;  %v200_v35 = vadd.f32 %v229_v12, %v199_v32  ;;  %v290_v36 = vpop.f32.mrb[7].mxu1 }
  0xf2   :  { %214 = vst.msk [vmem:[%s442_s3 + $0x18] sm:$0xff] %vm210_vm2, %v168_v33  ;;  %222 = vst.msk [vmem:[%s442_s3 + $0x58] sm:$0xff] %vm210_vm2, %v200_v35 }
  0xf5   :  { %v172_v37 = vpop.f32.mrb[8].mxu0  ;;  %v204_v38 = vpop.f32.mrb[8].mxu1 }
  0xf6   :  { %v173_v39 = vadd.f32 %v229_v12, %v172_v37  ;;  %v277_v40 = vpop.f32.mrb[9].mxu0  ;;  %v205_v41 = vadd.f32 %v229_v12, %v204_v38  ;;  %v293_v42 = vpop.f32.mrb[9].mxu1 }
  0xf7   :  { %v175_v43 = vpop.f32.mrb[10].mxu0  ;;  %v207_v44 = vpop.f32.mrb[10].mxu1 }
  0xf8   :  { %215 = vst.msk [vmem:[%s442_s3 + $0x20] sm:$0xff] %vm210_vm2, %v173_v39  ;;  %v176_v45 = vadd.f32 %v229_v12, %v175_v43  ;;  %v278_v46 = vpop.f32.mrb[11].mxu0  ;;  %v294_v47 = vpop.f32.mrb[11].mxu1 }
  0xf9   :  { %224 = vst.msk [vmem:[%s442_s3 + $0x60] sm:$0x3] %vm223_vm3, %v205_v41 }
  0xfa   :  { %216 = vst.msk [vmem:[%s442_s3 + $0x28] sm:$0xff] %vm210_vm2, %v176_v45 }
  0xfd   :  { %v180_v48 = vpop.f32.mrb[12].mxu0 }
  0xfe   :  { %v181_v49 = vadd.f32 %v229_v12, %v180_v48  ;;  %v281_v50 = vpop.f32.mrb[13].mxu0 }
  0xff   :  { %v183_v51 = vpop.f32.mrb[14].mxu0 }
 0x100   :  { %217 = vst.msk [vmem:[%s442_s3 + $0x30] sm:$0xff] %vm210_vm2, %v181_v49  ;;  %v184_v52 = vadd.f32 %v229_v12, %v183_v51  ;;  %v282_v53 = vpop.f32.mrb[15].mxu0 }
 0x102   :  { %218 = vst.msk [vmem:[%s442_s3 + $0x38] sm:$0xff] %vm210_vm2, %v184_v52 }

// kernel: unet3_forward.50
= control target key start
LH: loop header
LB: loop body
LE: loop exit
PB: predicated region body
PF: predicated region fallthrough
CT: control target
= control target key end

     0   :  { %v701_v1 = vmov 0.0   ;;  %vm702_vm0 = vmmov 0   ;;  %vm292_vm1 = vcmask 261120   ;;  %vm502_vm2 = vcmask 254976   ;;  %s929_s1 = inlined_call_operand.vmem [shape: bf16[288,32], index: 1, kind: input, shape index: {}]   ;;  %s930_s0 = inlined_call_operand.vmem [shape: bf16[98,288], index: 0, kind: input, shape index: {}]   ;;  %s931_s2 = inlined_call_operand.vmem [shape: f32[1,32], index: 2, kind: input, shape index: {}]   ;;  %s932_s3 = inlined_call_operand.vmem [shape: f32[98,32], index: 3, kind: output, shape index: {}]  }
   0x1   :  { %v656_v0 = vld [vmem:[%s929_s1 + $0x40] sm:$0xff]   ;;  %622 = vmatprep.subr.bf16.mxu1 %v701_v1  ;;  %626 = vmatprep.mubr.msk.bf16.mxu1 %vm702_vm0, %v701_v1  ;;  %v658_v3 = vld [vmem:[%s929_s1 + $0x48] sm:$0xff]   ;;  %v660_v5 = vld [vmem:[%s929_s1 + $0x50] sm:$0xff]  }
   0x2   :  { %v657_v2 = vld [vmem:[%s929_s1] sm:$0xff]   ;;  %555 = vmatprep.subr.bf16.mxu0 %v656_v0  ;;  %v659_v4 = vld [vmem:[%s929_s1 + $0x8] sm:$0xff]   ;;  %v661_v6 = vld [vmem:[%s929_s1 + $0x10] sm:$0xff]  }
   0x3   :  { %556 = vmatpush3.bf16.msra.mxu0 %v657_v2  ;;  %v662_v7 = vld [vmem:[%s929_s1 + $0x58] sm:$0xff]   ;;  %v664_v9 = vld [vmem:[%s929_s1 + $0x60] sm:$0xff]   ;;  %v666_v12 = vld [vmem:[%s929_s1 + $0x68] sm:$0xff]  }
   0x4   :  { %557 = vmatprep.subr.bf16.mxu0 %v658_v3  ;;  %v663_v8 = vld [vmem:[%s929_s1 + $0x18] sm:$0xff]   ;;  %v670_v10 = vld [vmem:[%s929_s1 + $0x80] sm:$0xff]   ;;  %v667_v13 = vld [vmem:[%s929_s1 + $0x28] sm:$0xff]  }
   0x5   :  { %v665_v11 = vld [vmem:[%s929_s1 + $0x20] sm:$0xff]   ;;  %623 = vmatpush3.bf16.msra.mxu1 %v670_v10  ;;  %v668_v14 = vld [vmem:[%s929_s1 + $0x70] sm:$0xff]   ;;  %v676_v16 = vld [vmem:[%s929_s1 + $0x88] sm:$0xff]  }
   0x6   :  { %624 = vmatprep.subr.bf16.mxu1 %v701_v1  ;;  %v675_v15 = vld [vmem:[%s930_s0 + $0x4] ss:$12 sps:$4 sm:$0xff]   ;;  %v677_v17 = vld [vmem:[%s930_s0 + $0x8] ss:$12 sps:$4 sm:$0xff]   ;;  %v671_v19 = vld [vmem:[%s929_s1 + $0x78] sm:$0xff]  }
   0x7   :  { %558 = vmatpush3.bf16.msra.mxu0 %v659_v4  ;;  %346 = vmatprep.mubr.bf16.mxu0 %v675_v15  ;;  %v669_v18 = vld [vmem:[%s929_s1 + $0x30] sm:$0xff]   ;;  %v672_v20 = vld [vmem:[%s929_s1 + $0x38] sm:$0xff]   ;;  %v681_v21 = vld [vmem:[%s930_s0 + $0x20] ss:$12 sps:$4 sm:$0xff]  }
   0x8   :  { %559 = vmatprep.subr.bf16.mxu0 %v660_v5  ;;  %v673_v22 = vld [vmem:[%s930_s0] ss:$12 sps:$4 sm:$0xff]   ;;  %v678_v23 = vld [vmem:[%s930_s0 + $0x1c] ss:$12 sps:$4 sm:$0xff]   ;;  %v685_v24 = vld [vmem:[%s930_s0 + $0x38] ss:$12 sps:$4 sm:$0xff]  }
   0x9   :  { %625 = vmatpush3.bf16.msra.mxu1 %v676_v16  ;;  %v680_v25 = vld [vmem:[%s930_s0 + $0x18] ss:$12 sps:$4 sm:$0xff]   ;;  %v682_v26 = vld [vmem:[%s930_s0 + $0x34] ss:$12 sps:$4 sm:$0xff]   ;;  %v689_v27 = vld [vmem:[%s930_s0 + $0x50] ss:$12 sps:$4 sm:$0xff]  }
   0xa   :  { %v684_v28 = vld [vmem:[%s930_s0 + $0x30] ss:$12 sps:$4 sm:$0xff]   ;;  %v686_v29 = vld [vmem:[%s930_s0 + $0x4c] ss:$12 sps:$4 sm:$0xff]   ;;  %v693_v30 = vld [vmem:[%s930_s0 + $0x68] ss:$12 sps:$4 sm:$0xff]  }
   0xb   :  { %560 = vmatpush3.bf16.msra.mxu0 %v661_v6  ;;  %v688_v31 = vld [vmem:[%s930_s0 + $0x48] ss:$12 sps:$4 sm:$0xff]   ;;  %v690_v32 = vld [vmem:[%s930_s0 + $0x64] ss:$12 sps:$4 sm:$0xff]   ;;  %v697_v33 = vld [vmem:[%s930_s0 + $0x80] ss:$12 sps:$4 sm:$0xff]  }
   0xc   :  { %561 = vmatprep.subr.bf16.mxu0 %v662_v7  ;;  %627 = vmatmul.mubr.msk.bf16.vlgmr.msra.gmra.mrb[0].mxu1 %vm292_vm1, %v677_v17  ;;  %v692_v34 = vld [vmem:[%s930_s0 + $0x60] ss:$12 sps:$4 sm:$0xff]   ;;  %v694_v35 = vld [vmem:[%s930_s0 + $0x7c] ss:$12 sps:$4 sm:$0xff]   ;;  %v39_v36 = vld [vmem:[%s930_s0 + $0x90] sm:$0x11] }
   0xd   :  { %630 = vmatprep.mubr.msk.bf16.mxu1 %vm702_vm0, %v701_v1  ;;  %v700_v37 = vld [vmem:[%s930_s0 + $0x98] ss:$0 sps:$4 sm:$0x11]   ;;  %v528_v39 = vcombine.high %v39_v36, %v39_v36  ;;  %v527_v40 = vcombine.low %v39_v36, %v39_v36  ;;  %v863_v50 = vld [vmem:[%s931_s2] ss:$0 sm:$0xff] }
   0xe   :  { %v696_v38 = vld [vmem:[%s930_s0 + $0x78] ss:$12 sps:$4 sm:$0xff]  }
   0xf   :  { %562 = vmatpush3.bf16.msra.mxu0 %v663_v8 }
  0x10   :  { %563 = vmatprep.subr.bf16.mxu0 %v664_v9 }
  0x13   :  { %564 = vmatpush3.bf16.msra.mxu0 %v665_v11 }
  0x14   :  { %565 = vmatprep.subr.bf16.mxu0 %v666_v12  ;;  %631 = vmatmul.mubr.msk.bf16.gmra.mrb[4].mxu1 %vm292_vm1, %v681_v21 }
  0x15   :  { %634 = vmatprep.mubr.msk.bf16.mxu1 %vm702_vm0, %v701_v1 }
  0x17   :  { %566 = vmatpush3.bf16.msra.mxu0 %v667_v13 }
  0x18   :  { %567 = vmatprep.subr.bf16.mxu0 %v668_v14 }
  0x1b   :  { %568 = vmatpush3.bf16.msra.mxu0 %v669_v18 }
  0x1c   :  { %569 = vmatprep.subr.bf16.mxu0 %v671_v19  ;;  %635 = vmatmul.mubr.msk.bf16.gmra.mrb[8].mxu1 %vm292_vm1, %v685_v24 }
  0x1d   :  { %638 = vmatprep.mubr.msk.bf16.mxu1 %vm702_vm0, %v701_v1 }
  0x1f   :  { %570 = vmatpush3.bf16.msra.mxu0 %v672_v20 }
  0x22   :  { %347 = vmatmul.mubr.bf16.vlgmr.msra.gmra.mrb[0].mxu0 %v673_v22 }
  0x23   :  { %354 = vmatprep.mubr.bf16.mxu0 %v678_v23 }
  0x24   :  { %639 = vmatmul.mubr.msk.bf16.gmra.mrb[12].mxu1 %vm292_vm1, %v689_v27 }
  0x25   :  { %642 = vmatprep.mubr.msk.bf16.mxu1 %vm702_vm0, %v701_v1 }
  0x2a   :  { %355 = vmatmul.mubr.bf16.gmra.mrb[4].mxu0 %v680_v25 }
  0x2b   :  { %362 = vmatprep.mubr.bf16.mxu0 %v682_v26 }
  0x2c   :  { %643 = vmatmul.mubr.msk.bf16.gmra.mrb[16].mxu1 %vm292_vm1, %v693_v30 }
  0x2d   :  { %646 = vmatprep.mubr.msk.bf16.mxu1 %vm702_vm0, %v701_v1 }
  0x32   :  { %363 = vmatmul.mubr.bf16.gmra.mrb[8].mxu0 %v684_v28 }
  0x33   :  { %370 = vmatprep.mubr.bf16.mxu0 %v686_v29 }
  0x34   :  { %647 = vmatmul.mubr.msk.bf16.gmra.mrb[20].mxu1 %vm292_vm1, %v697_v33 }
  0x35   :  { %650 = vmatprep.mubr.msk.bf16.mxu1 %vm702_vm0, %v701_v1 }
  0x3a   :  { %371 = vmatmul.mubr.bf16.gmra.mrb[12].mxu0 %v688_v31 }
  0x3b   :  { %378 = vmatprep.mubr.bf16.mxu0 %v690_v32 }
  0x3c   :  { %651 = vmatmul.mubr.msk.bf16.gmra.mrb[24].mxu1 %vm292_vm1, %v700_v37 }
  0x42   :  { %379 = vmatmul.mubr.bf16.gmra.mrb[16].mxu0 %v692_v34 }
  0x43   :  { %386 = vmatprep.mubr.bf16.mxu0 %v694_v35 }
  0x4a   :  { %387 = vmatmul.mubr.bf16.gmra.mrb[20].mxu0 %v696_v38 }
  0x4b   :  { %394 = vmatprep.mubr.bf16.mxu0 %v528_v39 }
  0x52   :  { %395 = vmatmul.mubr.bf16.gmra.mrb[24].mxu0 %v527_v40 }
  0xdf   :  { %v436_v41 = vpop.f32.mrb[0].mxu1 }
  0xe0   :  { %v628_v42 = vpop.f32.mrb[1].mxu1 }
  0xe1   :  { %v439_v43 = vpop.f32.mrb[2].mxu1 }
  0xe2   :  { %v629_v44 = vpop.f32.mrb[3].mxu1 }
  0xe7   :  { %v444_v45 = vpop.f32.mrb[4].mxu1 }
  0xe8   :  { %v632_v46 = vpop.f32.mrb[5].mxu1 }
  0xe9   :  { %v447_v48 = vpop.f32.mrb[6].mxu1 }
  0xea   :  { %v633_v51 = vpop.f32.mrb[7].mxu1 }
  0xef   :  { %v452_v59 = vpop.f32.mrb[8].mxu1 }
  0xf0   :  { %v636_v60 = vpop.f32.mrb[9].mxu1 }
  0xf1   :  { %v455_v63 = vpop.f32.mrb[10].mxu1 }
  0xf2   :  { %v637_v1 = vpop.f32.mrb[11].mxu1 }
  0xf5   :  { %v571_v47 = vpop.f32.mrb[0].mxu0 }
  0xf6   :  { %v572_v49 = vpop.f32.mrb[1].mxu0 }
  0xf7   :  { %v573_v52 = vadd.f32 %v572_v49, %v571_v47  ;;  %v574_v53 = vpop.f32.mrb[2].mxu0  ;;  %v460_v9 = vpop.f32.mrb[12].mxu1 }
  0xf8   :  { %v575_v54 = vpop.f32.mrb[3].mxu0  ;;  %v640_v10 = vpop.f32.mrb[13].mxu1 }
  0xf9   :  { %v349_v55 = vadd.f32 %v573_v52, %v863_v50  ;;  %v576_v56 = vadd.f32 %v575_v54, %v574_v53  ;;  %v463_v13 = vpop.f32.mrb[14].mxu1 }
  0xfa   :  { %v641_v15 = vpop.f32.mrb[15].mxu1 }
  0xfb   :  { %v437_v57 = vadd.f32 %v436_v41, %v349_v55  ;;  %v352_v58 = vadd.f32 %v576_v56, %v863_v50 }
  0xfd   :  { %490 = vst.msk [vmem:[%s932_s3] sm:$0xff] %vm292_vm1, %v437_v57  ;;  %v440_v61 = vadd.f32 %v439_v43, %v352_v58  ;;  %v577_v62 = vpop.f32.mrb[4].mxu0 }
  0xfe   :  { %v578_v0 = vpop.f32.mrb[5].mxu0 }
  0xff   :  { %491 = vst.msk [vmem:[%s932_s3 + $0x8] sm:$0xff] %vm292_vm1, %v440_v61  ;;  %v579_v2 = vadd.f32 %v578_v0, %v577_v62  ;;  %v580_v3 = vpop.f32.mrb[6].mxu0  ;;  %v468_v23 = vpop.f32.mrb[16].mxu1 }
 0x100   :  { %v581_v4 = vpop.f32.mrb[7].mxu0  ;;  %v644_v24 = vpop.f32.mrb[17].mxu1 }
 0x101   :  { %v357_v5 = vadd.f32 %v579_v2, %v863_v50  ;;  %v582_v6 = vadd.f32 %v581_v4, %v580_v3  ;;  %v471_v27 = vpop.f32.mrb[18].mxu1 }
 0x102   :  { %v645_v29 = vpop.f32.mrb[19].mxu1 }
 0x103   :  { %v445_v7 = vadd.f32 %v444_v45, %v357_v5  ;;  %v360_v8 = vadd.f32 %v582_v6, %v863_v50 }
 0x105   :  { %492 = vst.msk [vmem:[%s932_s3 + $0x10] sm:$0xff] %vm292_vm1, %v445_v7  ;;  %v448_v11 = vadd.f32 %v447_v48, %v360_v8  ;;  %v583_v12 = vpop.f32.mrb[8].mxu0 }
 0x106   :  { %v584_v14 = vpop.f32.mrb[9].mxu0 }
 0x107   :  { %493 = vst.msk [vmem:[%s932_s3 + $0x18] sm:$0xff] %vm292_vm1, %v448_v11  ;;  %v585_v16 = vadd.f32 %v584_v14, %v583_v12  ;;  %v586_v17 = vpop.f32.mrb[10].mxu0  ;;  %v476_v37 = vpop.f32.mrb[20].mxu1 }
 0x108   :  { %v587_v18 = vpop.f32.mrb[11].mxu0  ;;  %v648_v38 = vpop.f32.mrb[21].mxu1 }
 0x109   :  { %v365_v19 = vadd.f32 %v585_v16, %v863_v50  ;;  %v588_v20 = vadd.f32 %v587_v18, %v586_v17  ;;  %v479_v41 = vpop.f32.mrb[22].mxu1 }
 0x10a   :  { %v649_v43 = vpop.f32.mrb[23].mxu1 }
 0x10b   :  { %v453_v21 = vadd.f32 %v452_v59, %v365_v19  ;;  %v368_v22 = vadd.f32 %v588_v20, %v863_v50 }
 0x10d   :  { %494 = vst.msk [vmem:[%s932_s3 + $0x20] sm:$0xff] %vm292_vm1, %v453_v21  ;;  %v456_v25 = vadd.f32 %v455_v63, %v368_v22  ;;  %v589_v26 = vpop.f32.mrb[12].mxu0 }
 0x10e   :  { %v590_v28 = vpop.f32.mrb[13].mxu0 }
 0x10f   :  { %495 = vst.msk [vmem:[%s932_s3 + $0x28] sm:$0xff] %vm292_vm1, %v456_v25  ;;  %v591_v30 = vadd.f32 %v590_v28, %v589_v26  ;;  %v592_v31 = vpop.f32.mrb[14].mxu0  ;;  %v484_v52 = vpop.f32.mrb[24].mxu1 }
 0x110   :  { %v593_v32 = vpop.f32.mrb[15].mxu0  ;;  %v652_v53 = vpop.f32.mrb[25].mxu1 }
 0x111   :  { %v373_v33 = vadd.f32 %v591_v30, %v863_v50  ;;  %v594_v34 = vadd.f32 %v593_v32, %v592_v31  ;;  %v487_v56 = vpop.f32.mrb[26].mxu1 }
 0x112   :  { %v653_v58 = vpop.f32.mrb[27].mxu1 }
 0x113   :  { %v461_v35 = vadd.f32 %v460_v9, %v373_v33  ;;  %v376_v36 = vadd.f32 %v594_v34, %v863_v50 }
 0x115   :  { %496 = vst.msk [vmem:[%s932_s3 + $0x30] sm:$0xff] %vm292_vm1, %v461_v35  ;;  %v464_v39 = vadd.f32 %v463_v13, %v376_v36  ;;  %v595_v40 = vpop.f32.mrb[16].mxu0 }
 0x116   :  { %v596_v42 = vpop.f32.mrb[17].mxu0 }
 0x117   :  { %497 = vst.msk [vmem:[%s932_s3 + $0x38] sm:$0xff] %vm292_vm1, %v464_v39  ;;  %v597_v44 = vadd.f32 %v596_v42, %v595_v40  ;;  %v598_v45 = vpop.f32.mrb[18].mxu0 }
 0x118   :  { %v599_v46 = vpop.f32.mrb[19].mxu0 }
 0x119   :  { %v381_v47 = vadd.f32 %v597_v44, %v863_v50  ;;  %v600_v48 = vadd.f32 %v599_v46, %v598_v45 }
 0x11b   :  { %v469_v49 = vadd.f32 %v468_v23, %v381_v47  ;;  %v384_v51 = vadd.f32 %v600_v48, %v863_v50 }
 0x11d   :  { %498 = vst.msk [vmem:[%s932_s3 + $0x40] sm:$0xff] %vm292_vm1, %v469_v49  ;;  %v472_v54 = vadd.f32 %v471_v27, %v384_v51  ;;  %v601_v55 = vpop.f32.mrb[20].mxu0 }
 0x11e   :  { %v602_v57 = vpop.f32.mrb[21].mxu0 }
 0x11f   :  { %499 = vst.msk [vmem:[%s932_s3 + $0x48] sm:$0xff] %vm292_vm1, %v472_v54  ;;  %v603_v59 = vadd.f32 %v602_v57, %v601_v55  ;;  %v604_v60 = vpop.f32.mrb[22].mxu0 }
 0x120   :  { %v605_v61 = vpop.f32.mrb[23].mxu0 }
 0x121   :  { %v389_v62 = vadd.f32 %v603_v59, %v863_v50  ;;  %v606_v63 = vadd.f32 %v605_v61, %v604_v60 }
 0x123   :  { %v477_v0 = vadd.f32 %v476_v37, %v389_v62  ;;  %v392_v1 = vadd.f32 %v606_v63, %v863_v50 }
 0x125   :  { %500 = vst.msk [vmem:[%s932_s3 + $0x50] sm:$0xff] %vm292_vm1, %v477_v0  ;;  %v480_v2 = vadd.f32 %v479_v41, %v392_v1  ;;  %v607_v3 = vpop.f32.mrb[24].mxu0 }
 0x126   :  { %v608_v4 = vpop.f32.mrb[25].mxu0 }
 0x127   :  { %501 = vst.msk [vmem:[%s932_s3 + $0x58] sm:$0xff] %vm292_vm1, %v480_v2  ;;  %v609_v5 = vadd.f32 %v608_v4, %v607_v3  ;;  %v610_v6 = vpop.f32.mrb[26].mxu0 }
 0x128   :  { %v611_v7 = vpop.f32.mrb[27].mxu0 }
 0x129   :  { %v397_v8 = vadd.f32 %v609_v5, %v863_v50 }
 0x12b   :  { %v485_v9 = vadd.f32 %v484_v52, %v397_v8 }
 0x12d   :  { %503 = vst.msk [vmem:[%s932_s3 + $0x60] sm:$0x3] %vm502_vm2, %v485_v9 }

// kernel: unet3_forward.51
= control target key start
LH: loop header
LB: loop body
LE: loop exit
PB: predicated region body
PF: predicated region fallthrough
CT: control target
= control target key end

     0   :  { %v286_v0 = vmov 0.0   ;;  %vm287_vm0 = vmmov 0   ;;  %vm84_vm1 = vcmask 261120   ;;  %vm194_vm2 = vcmask 523264   ;;  %s403_s1 = inlined_call_operand.vmem [shape: bf16[32,64], index: 1, kind: input, shape index: {}]   ;;  %s404_s0 = inlined_call_operand.vmem [shape: bf16[98,32], index: 0, kind: input, shape index: {}]   ;;  %s405_s2 = inlined_call_operand.vmem [shape: f32[1,64], index: 2, kind: input, shape index: {}]   ;;  %s406_s3 = inlined_call_operand.vmem [shape: f32[98,64], index: 3, kind: output, shape index: {}]  }
   0x1   :  { %239 = vmatprep.subr.bf16.mxu0 %v286_v0  ;;  %v277_v1 = vld [vmem:[%s403_s1] sm:$0xff]   ;;  %271 = vmatprep.subr.bf16.mxu1 %v286_v0  ;;  %v278_v2 = vld [vmem:[%s403_s1 + $0x8] sm:$0xff]   ;;  %v283_v7 = vld [vmem:[%s404_s0 + $0x10] sm:$0xff]   ;;  %vm207_vm3 = vcmask 517120  }
   0x2   :  { %243 = vmatprep.mubr.msk.bf16.mxu0 %vm287_vm0, %v286_v0  ;;  %259 = vmatprep.mubr.msk.bf16.mxu1 %vm287_vm0, %v286_v0  ;;  %v279_v3 = vld [vmem:[%s404_s0] sm:$0xff]   ;;  %v281_v5 = vld [vmem:[%s404_s0 + $0x8] sm:$0xff]   ;;  %v284_v8 = vld [vmem:[%s404_s0 + $0x30] ss:$0 sps:$4 sm:$0x11]  }
   0x3   :  { %240 = vmatpush3.bf16.msra.mxu0 %v277_v1  ;;  %273 = vmatpush3.bf16.msra.mxu1 %v277_v1  ;;  %v280_v4 = vld [vmem:[%s404_s0 + $0x20] sm:$0xff]   ;;  %v282_v6 = vld [vmem:[%s404_s0 + $0x28] sm:$0xff]   ;;  %v285_v9 = vld [vmem:[%s404_s0 + $0x18] sm:$0xff]  }
   0x4   :  { %241 = vmatprep.subr.bf16.mxu0 %v286_v0  ;;  %272 = vmatprep.subr.bf16.mxu1 %v286_v0  ;;  %v213_v10 = vld [vmem:[%s405_s2] ss:$0 sm:$0xff] }
   0x7   :  { %242 = vmatpush3.bf16.msra.mxu0 %v278_v2  ;;  %274 = vmatpush3.bf16.msra.mxu1 %v278_v2 }
   0xa   :  { %244 = vmatmul.mubr.msk.bf16.vlgmr.msra.gmra.mrb[0].mxu0 %vm84_vm1, %v279_v3  ;;  %260 = vmatmul.mubr.msk.bf16.vlgmr.msra.gmra.mrb[0].mxu1 %vm84_vm1, %v280_v4 }
   0xb   :  { %247 = vmatprep.mubr.msk.bf16.mxu0 %vm287_vm0, %v286_v0  ;;  %263 = vmatprep.mubr.msk.bf16.mxu1 %vm287_vm0, %v286_v0 }
  0x12   :  { %248 = vmatmul.mubr.msk.bf16.gmra.mrb[4].mxu0 %vm84_vm1, %v281_v5  ;;  %264 = vmatmul.mubr.msk.bf16.gmra.mrb[4].mxu1 %vm84_vm1, %v282_v6 }
  0x13   :  { %251 = vmatprep.mubr.msk.bf16.mxu0 %vm287_vm0, %v286_v0  ;;  %267 = vmatprep.mubr.msk.bf16.mxu1 %vm287_vm0, %v286_v0 }
  0x1a   :  { %252 = vmatmul.mubr.msk.bf16.gmra.mrb[8].mxu0 %vm84_vm1, %v283_v7  ;;  %268 = vmatmul.mubr.msk.bf16.gmra.mrb[8].mxu1 %vm84_vm1, %v284_v8 }
  0x1b   :  { %255 = vmatprep.mubr.msk.bf16.mxu0 %vm287_vm0, %v286_v0 }
  0x22   :  { %256 = vmatmul.mubr.msk.bf16.gmra.mrb[12].mxu0 %vm84_vm1, %v285_v9 }
  0xdd   :  { %v140_v11 = vpop.f32.mrb[0].mxu0  ;;  %v172_v12 = vpop.f32.mrb[0].mxu1 }
  0xde   :  { %v141_v13 = vadd.f32 %v213_v10, %v140_v11  ;;  %v245_v14 = vpop.f32.mrb[1].mxu0  ;;  %v173_v15 = vadd.f32 %v213_v10, %v172_v12  ;;  %v261_v16 = vpop.f32.mrb[1].mxu1 }
  0xdf   :  { %v143_v17 = vpop.f32.mrb[2].mxu0  ;;  %v175_v18 = vpop.f32.mrb[2].mxu1 }
  0xe0   :  { %195 = vst.msk [vmem:[%s406_s3] sm:$0xff] %vm194_vm2, %v141_v13  ;;  %v144_v19 = vadd.f32 %v213_v10, %v143_v17  ;;  %v246_v20 = vpop.f32.mrb[3].mxu0  ;;  %203 = vst.msk [vmem:[%s406_s3 + $0x40] sm:$0xff] %vm194_vm2, %v173_v15  ;;  %v176_v21 = vadd.f32 %v213_v10, %v175_v18  ;;  %v262_v22 = vpop.f32.mrb[3].mxu1 }
  0xe2   :  { %196 = vst.msk [vmem:[%s406_s3 + $0x8] sm:$0xff] %vm194_vm2, %v144_v19  ;;  %204 = vst.msk [vmem:[%s406_s3 + $0x48] sm:$0xff] %vm194_vm2, %v176_v21 }
  0xe5   :  { %v148_v23 = vpop.f32.mrb[4].mxu0  ;;  %v180_v24 = vpop.f32.mrb[4].mxu1 }
  0xe6   :  { %v149_v25 = vadd.f32 %v213_v10, %v148_v23  ;;  %v249_v26 = vpop.f32.mrb[5].mxu0  ;;  %v181_v27 = vadd.f32 %v213_v10, %v180_v24  ;;  %v265_v28 = vpop.f32.mrb[5].mxu1 }
  0xe7   :  { %v151_v29 = vpop.f32.mrb[6].mxu0  ;;  %v183_v30 = vpop.f32.mrb[6].mxu1 }
  0xe8   :  { %197 = vst.msk [vmem:[%s406_s3 + $0x10] sm:$0xff] %vm194_vm2, %v149_v25  ;;  %v152_v31 = vadd.f32 %v213_v10, %v151_v29  ;;  %v250_v32 = vpop.f32.mrb[7].mxu0  ;;  %205 = vst.msk [vmem:[%s406_s3 + $0x50] sm:$0xff] %vm194_vm2, %v181_v27  ;;  %v184_v33 = vadd.f32 %v213_v10, %v183_v30  ;;  %v266_v34 = vpop.f32.mrb[7].mxu1 }
  0xea   :  { %198 = vst.msk [vmem:[%s406_s3 + $0x18] sm:$0xff] %vm194_vm2, %v152_v31  ;;  %206 = vst.msk [vmem:[%s406_s3 + $0x58] sm:$0xff] %vm194_vm2, %v184_v33 }
  0xed   :  { %v156_v35 = vpop.f32.mrb[8].mxu0  ;;  %v188_v36 = vpop.f32.mrb[8].mxu1 }
  0xee   :  { %v157_v37 = vadd.f32 %v213_v10, %v156_v35  ;;  %v253_v38 = vpop.f32.mrb[9].mxu0  ;;  %v189_v39 = vadd.f32 %v213_v10, %v188_v36  ;;  %v269_v40 = vpop.f32.mrb[9].mxu1 }
  0xef   :  { %v159_v41 = vpop.f32.mrb[10].mxu0  ;;  %v191_v42 = vpop.f32.mrb[10].mxu1 }
  0xf0   :  { %199 = vst.msk [vmem:[%s406_s3 + $0x20] sm:$0xff] %vm194_vm2, %v157_v37  ;;  %v160_v43 = vadd.f32 %v213_v10, %v159_v41  ;;  %v254_v44 = vpop.f32.mrb[11].mxu0  ;;  %v270_v45 = vpop.f32.mrb[11].mxu1 }
  0xf1   :  { %208 = vst.msk [vmem:[%s406_s3 + $0x60] sm:$0x3] %vm207_vm3, %v189_v39 }
  0xf2   :  { %200 = vst.msk [vmem:[%s406_s3 + $0x28] sm:$0xff] %vm194_vm2, %v160_v43 }
  0xf5   :  { %v164_v46 = vpop.f32.mrb[12].mxu0 }
  0xf6   :  { %v165_v47 = vadd.f32 %v213_v10, %v164_v46  ;;  %v257_v48 = vpop.f32.mrb[13].mxu0 }
  0xf7   :  { %v167_v49 = vpop.f32.mrb[14].mxu0 }
  0xf8   :  { %201 = vst.msk [vmem:[%s406_s3 + $0x30] sm:$0xff] %vm194_vm2, %v165_v47  ;;  %v168_v50 = vadd.f32 %v213_v10, %v167_v49  ;;  %v258_v51 = vpop.f32.mrb[15].mxu0 }
  0xfa   :  { %202 = vst.msk [vmem:[%s406_s3 + $0x38] sm:$0xff] %vm194_vm2, %v168_v50 }

// kernel: unet3_forward.52
= control target key start
LH: loop header
LB: loop body
LE: loop exit
PB: predicated region body
PF: predicated region fallthrough
CT: control target
= control target key end

     0   :  { %vm372_vm0 = vcmask 523264   ;;  %s890_s1 = inlined_call_operand.vmem [shape: bf16[576,64], index: 1, kind: input, shape index: {}]   ;;  %s891_s0 = inlined_call_operand.vmem [shape: bf16[32,576], index: 0, kind: input, shape index: {}]   ;;  %s892_s2 = inlined_call_operand.vmem [shape: f32[1,64], index: 2, kind: input, shape index: {}]   ;;  %s893_s3 = inlined_call_operand.vmem [shape: f32[32,64], index: 3, kind: output, shape index: {}]  }
   0x1   :  { %v661_v0 = vld [vmem:[%s890_s1 + $0x40] sm:$0xff]   ;;  %v665_v4 = vld [vmem:[%s890_s1 + $0x48] sm:$0xff]   ;;  %v669_v8 = vld [vmem:[%s890_s1 + $0x50] sm:$0xff]  }
   0x2   :  { %v662_v1 = vld [vmem:[%s890_s1] sm:$0xff]   ;;  %587 = vmatprep.subr.bf16.mxu0 %v661_v0  ;;  %v666_v5 = vld [vmem:[%s890_s1 + $0x8] sm:$0xff]   ;;  %v670_v9 = vld [vmem:[%s890_s1 + $0x10] sm:$0xff]  }
   0x3   :  { %v663_v2 = vld [vmem:[%s890_s1 + $0xc0] sm:$0xff]   ;;  %588 = vmatpush3.bf16.msra.mxu0 %v662_v1  ;;  %v667_v6 = vld [vmem:[%s890_s1 + $0xc8] sm:$0xff]   ;;  %v671_v10 = vld [vmem:[%s890_s1 + $0xd0] sm:$0xff]  }
   0x4   :  { %v664_v3 = vld [vmem:[%s890_s1 + $0x80] sm:$0xff]   ;;  %615 = vmatprep.subr.bf16.mxu1 %v663_v2  ;;  %589 = vmatprep.subr.bf16.mxu0 %v665_v4  ;;  %v668_v7 = vld [vmem:[%s890_s1 + $0x88] sm:$0xff]   ;;  %v672_v11 = vld [vmem:[%s890_s1 + $0x90] sm:$0xff]  }
   0x5   :  { %616 = vmatpush3.bf16.msra.mxu1 %v664_v3  ;;  %v673_v12 = vld [vmem:[%s890_s1 + $0x58] sm:$0xff]   ;;  %v677_v16 = vld [vmem:[%s890_s1 + $0x60] sm:$0xff]   ;;  %v681_v20 = vld [vmem:[%s890_s1 + $0x68] sm:$0xff]  }
   0x6   :  { %617 = vmatprep.subr.bf16.mxu1 %v667_v6  ;;  %v674_v13 = vld [vmem:[%s890_s1 + $0x18] sm:$0xff]   ;;  %v678_v17 = vld [vmem:[%s890_s1 + $0x20] sm:$0xff]   ;;  %v682_v21 = vld [vmem:[%s890_s1 + $0x28] sm:$0xff]  }
   0x7   :  { %590 = vmatpush3.bf16.msra.mxu0 %v666_v5  ;;  %v675_v14 = vld [vmem:[%s890_s1 + $0xd8] sm:$0xff]   ;;  %v679_v18 = vld [vmem:[%s890_s1 + $0xe0] sm:$0xff]   ;;  %v683_v22 = vld [vmem:[%s890_s1 + $0xe8] sm:$0xff]  }
   0x8   :  { %591 = vmatprep.subr.bf16.mxu0 %v669_v8  ;;  %v676_v15 = vld [vmem:[%s890_s1 + $0x98] sm:$0xff]   ;;  %v680_v19 = vld [vmem:[%s890_s1 + $0xa0] sm:$0xff]   ;;  %v684_v23 = vld [vmem:[%s890_s1 + $0xa8] sm:$0xff]  }
   0x9   :  { %618 = vmatpush3.bf16.msra.mxu1 %v668_v7  ;;  %v685_v24 = vld [vmem:[%s890_s1 + $0x70] sm:$0xff]   ;;  %v689_v28 = vld [vmem:[%s890_s1 + $0x78] sm:$0xff]   ;;  %v696_v34 = vld [vmem:[%s890_s1 + $0x100] sm:$0xff]  }
   0xa   :  { %619 = vmatprep.subr.bf16.mxu1 %v671_v10  ;;  %v686_v25 = vld [vmem:[%s890_s1 + $0x30] sm:$0xff]   ;;  %v690_v29 = vld [vmem:[%s890_s1 + $0x38] sm:$0xff]   ;;  %v699_v36 = vld [vmem:[%s891_s0 + $0xc] ss:$20 sps:$4 sm:$0xff]  }
   0xb   :  { %592 = vmatpush3.bf16.msra.mxu0 %v670_v9  ;;  %v687_v26 = vld [vmem:[%s890_s1 + $0xf0] sm:$0xff]   ;;  %v691_v30 = vld [vmem:[%s890_s1 + $0xf8] sm:$0xff]   ;;  %v700_v37 = vld [vmem:[%s890_s1 + $0x108] sm:$0xff]   ;;  %460 = vmatprep.mubr.bf16.mxu1 %v699_v36 }
   0xc   :  { %593 = vmatprep.subr.bf16.mxu0 %v673_v12  ;;  %v688_v27 = vld [vmem:[%s890_s1 + $0xb0] sm:$0xff]   ;;  %v694_v32 = vld [vmem:[%s891_s0 + $0x4] ss:$20 sps:$4 sm:$0xff]   ;;  %v697_v35 = vld [vmem:[%s891_s0 + $0x8] ss:$20 sps:$4 sm:$0xff]  }
   0xd   :  { %620 = vmatpush3.bf16.msra.mxu1 %v672_v11  ;;  %v692_v31 = vld [vmem:[%s891_s0] ss:$20 sps:$4 sm:$0xff]   ;;  %v695_v33 = vld [vmem:[%s890_s1 + $0xb8] sm:$0xff]   ;;  %411 = vmatprep.mubr.bf16.mxu0 %v694_v32  ;;  %v707_v42 = vld [vmem:[%s891_s0 + $0x30] ss:$20 sps:$4 sm:$0xff]  }
   0xe   :  { %621 = vmatprep.subr.bf16.mxu1 %v675_v14  ;;  %v701_v38 = vld [vmem:[%s891_s0 + $0x2c] ss:$20 sps:$4 sm:$0xff]   ;;  %v703_v39 = vld [vmem:[%s891_s0 + $0x28] ss:$20 sps:$4 sm:$0xff]   ;;  %v704_v40 = vld [vmem:[%s890_s1 + $0x110] sm:$0xff]  }
   0xf   :  { %594 = vmatpush3.bf16.msra.mxu0 %v674_v13  ;;  %v705_v41 = vld [vmem:[%s891_s0 + $0x34] ss:$20 sps:$4 sm:$0xff]   ;;  %v708_v43 = vld [vmem:[%s890_s1 + $0x118] sm:$0xff]   ;;  %v709_v44 = vld [vmem:[%s891_s0 + $0x10] ss:$20 sps:$4 sm:$0xff]  }
  0x10   :  { %595 = vmatprep.subr.bf16.mxu0 %v677_v16  ;;  %v710_v45 = vld [vmem:[%s891_s0 + $0x38] ss:$20 sps:$4 sm:$0xff]   ;;  %v538_v47 = vld [vmem:[%s892_s2] ss:$0 sm:$0xff] }
  0x11   :  { %622 = vmatpush3.bf16.msra.mxu1 %v676_v15 }
  0x12   :  { %623 = vmatprep.subr.bf16.mxu1 %v679_v18 }
  0x13   :  { %596 = vmatpush3.bf16.msra.mxu0 %v678_v17 }
  0x14   :  { %597 = vmatprep.subr.bf16.mxu0 %v681_v20 }
  0x15   :  { %624 = vmatpush3.bf16.msra.mxu1 %v680_v19 }
  0x16   :  { %625 = vmatprep.subr.bf16.mxu1 %v683_v22 }
  0x17   :  { %598 = vmatpush3.bf16.msra.mxu0 %v682_v21 }
  0x18   :  { %599 = vmatprep.subr.bf16.mxu0 %v685_v24 }
  0x19   :  { %626 = vmatpush3.bf16.msra.mxu1 %v684_v23 }
  0x1a   :  { %627 = vmatprep.subr.bf16.mxu1 %v687_v26 }
  0x1b   :  { %600 = vmatpush3.bf16.msra.mxu0 %v686_v25 }
  0x1c   :  { %601 = vmatprep.subr.bf16.mxu0 %v689_v28 }
  0x1d   :  { %628 = vmatpush3.bf16.msra.mxu1 %v688_v27 }
  0x1e   :  { %629 = vmatprep.subr.bf16.mxu1 %v691_v30 }
  0x1f   :  { %602 = vmatpush3.bf16.msra.mxu0 %v690_v29 }
  0x20   :  { %649 = vmatprep.subr.bf16.mxu0 %v696_v34 }
  0x21   :  { %630 = vmatpush3.bf16.msra.mxu1 %v695_v33 }
  0x22   :  { %412 = vmatmul.mubr.bf16.vlgmr.msra.gmra.mrb[0].mxu0 %v692_v31 }
  0x23   :  { %650 = vmatpush3.bf16.msra.mxu0 %v696_v34  ;;  %419 = vmatprep.mubr.bf16.mxu0 %v701_v38 }
  0x24   :  { %461 = vmatmul.mubr.bf16.vlgmr.msra.gmra.mrb[0].mxu1 %v697_v35  ;;  %651 = vmatprep.subr.bf16.mxu0 %v700_v37 }
  0x25   :  { %468 = vmatprep.mubr.bf16.mxu1 %v705_v41 }
  0x27   :  { %652 = vmatpush3.bf16.msra.mxu0 %v700_v37 }
  0x28   :  { %653 = vmatprep.subr.bf16.mxu0 %v704_v40 }
  0x2a   :  { %420 = vmatmul.mubr.bf16.gmra.mrb[4].mxu0 %v703_v39 }
  0x2b   :  { %657 = vmatprep.mubr.msk.bf16.mxu0 %vm372_vm0, %v709_v44  ;;  %654 = vmatpush3.bf16.msra.mxu0 %v704_v40 }
  0x2c   :  { %469 = vmatmul.mubr.bf16.gmra.mrb[4].mxu1 %v707_v42  ;;  %655 = vmatprep.subr.bf16.mxu0 %v708_v43 }
  0x2f   :  { %656 = vmatpush3.bf16.msra.mxu0 %v708_v43 }
  0x32   :  { %658 = vmatmul.mubr.msk.bf16.vlgmr.msra.gmra.mrb[8].mxu0 %vm372_vm0, %v710_v45 }
  0xf5   :  { %v603_v46 = vpop.f32.mrb[0].mxu0 }
  0xf6   :  { %v604_v48 = vpop.f32.mrb[1].mxu0 }
  0xf7   :  { %v605_v49 = vadd.f32 %v604_v48, %v603_v46  ;;  %v606_v50 = vpop.f32.mrb[2].mxu0  ;;  %v631_v51 = vpop.f32.mrb[0].mxu1 }
  0xf8   :  { %v607_v52 = vpop.f32.mrb[3].mxu0  ;;  %v632_v55 = vpop.f32.mrb[1].mxu1 }
  0xf9   :  { %v414_v53 = vadd.f32 %v605_v49, %v538_v47  ;;  %v608_v54 = vadd.f32 %v607_v52, %v606_v50  ;;  %v633_v56 = vadd.f32 %v632_v55, %v631_v51  ;;  %v634_v57 = vpop.f32.mrb[2].mxu1 }
  0xfa   :  { %v635_v59 = vpop.f32.mrb[3].mxu1 }
  0xfb   :  { %v417_v58 = vadd.f32 %v608_v54, %v538_v47  ;;  %v636_v60 = vadd.f32 %v635_v59, %v634_v57  ;;  %v463_v61 = vadd.f32 %v633_v56, %v414_v53 }
  0xfd   :  { %v609_v62 = vpop.f32.mrb[4].mxu0  ;;  %v466_v0 = vadd.f32 %v636_v60, %v417_v58 }
  0xfe   :  { %v610_v63 = vpop.f32.mrb[5].mxu0 }
  0xff   :  { %v611_v1 = vadd.f32 %v610_v63, %v609_v62  ;;  %v612_v2 = vpop.f32.mrb[6].mxu0  ;;  %v637_v3 = vpop.f32.mrb[4].mxu1 }
 0x100   :  { %v613_v4 = vpop.f32.mrb[7].mxu0  ;;  %v638_v7 = vpop.f32.mrb[5].mxu1 }
 0x101   :  { %v422_v5 = vadd.f32 %v611_v1, %v538_v47  ;;  %v614_v6 = vadd.f32 %v613_v4, %v612_v2  ;;  %v639_v8 = vadd.f32 %v638_v7, %v637_v3  ;;  %v640_v9 = vpop.f32.mrb[6].mxu1 }
 0x102   :  { %v641_v11 = vpop.f32.mrb[7].mxu1 }
 0x103   :  { %v425_v10 = vadd.f32 %v614_v6, %v538_v47  ;;  %v642_v12 = vadd.f32 %v641_v11, %v640_v9  ;;  %v471_v13 = vadd.f32 %v639_v8, %v422_v5 }
 0x105   :  { %v659_v14 = vpop.f32.mrb[8].mxu0  ;;  %v474_v15 = vadd.f32 %v642_v12, %v425_v10 }
 0x106   :  { %v520_v16 = vadd.f32 %v659_v14, %v471_v13  ;;  %v511_v17 = vpop.f32.mrb[9].mxu0 }
 0x107   :  { %v512_v18 = vadd.f32 %v511_v17, %v463_v61  ;;  %v660_v19 = vpop.f32.mrb[10].mxu0 }
 0x108   :  { %v528_v20 = vmax.f32 %v520_v16, 0.0  ;;  %v523_v21 = vadd.f32 %v660_v19, %v474_v15  ;;  %v514_v22 = vpop.f32.mrb[11].mxu0 }
 0x109   :  { %v526_v23 = vmax.f32 %v512_v18, 0.0  ;;  %v515_v24 = vadd.f32 %v514_v22, %v466_v0 }
 0x10a   :  { %532 = vst.msk [vmem:[%s893_s3 + $0x10] sm:$0xff] %vm372_vm0, %v528_v20  ;;  %v529_v25 = vmax.f32 %v523_v21, 0.0 }
 0x10b   :  { %530 = vst.msk [vmem:[%s893_s3] sm:$0xff] %vm372_vm0, %v526_v23  ;;  %v527_v26 = vmax.f32 %v515_v24, 0.0 }
 0x10c   :  { %533 = vst.msk [vmem:[%s893_s3 + $0x18] sm:$0xff] %vm372_vm0, %v529_v25 }
 0x10d   :  { %531 = vst.msk [vmem:[%s893_s3 + $0x8] sm:$0xff] %vm372_vm0, %v527_v26 }

// kernel: unet3_forward.53
= control target key start
LH: loop header
LB: loop body
LE: loop exit
PB: predicated region body
PF: predicated region fallthrough
CT: control target
= control target key end

     0   :  { %vm68_vm0 = vcmask 523264   ;;  %vm124_vm1 = vcmask 261120   ;;  %s219_s1 = inlined_call_operand.vmem [shape: bf16[64,32], index: 1, kind: input, shape index: {}]   ;;  %s220_s0 = inlined_call_operand.vmem [shape: bf16[32,64], index: 0, kind: input, shape index: {}]   ;;  %s221_s2 = inlined_call_operand.vmem [shape: f32[1,32], index: 2, kind: input, shape index: {}]   ;;  %s222_s3 = inlined_call_operand.vmem [shape: f32[32,32], index: 3, kind: output, shape index: {}]  }
   0x1   :  { %v160_v0 = vld [vmem:[%s219_s1] sm:$0xff]   ;;  %v161_v1 = vld [vmem:[%s219_s1 + $0x8] sm:$0xff]   ;;  %v162_v2 = vld [vmem:[%s219_s1 + $0x10] sm:$0xff]  }
   0x2   :  { %148 = vmatprep.subr.bf16.mxu0 %v160_v0  ;;  %v164_v3 = vld [vmem:[%s220_s0] sm:$0xff]   ;;  %v163_v4 = vld [vmem:[%s219_s1 + $0x18] sm:$0xff]   ;;  %v165_v5 = vld [vmem:[%s220_s0 + $0x8] sm:$0xff]  }
   0x3   :  { %149 = vmatpush3.bf16.msra.mxu0 %v160_v0  ;;  %156 = vmatprep.mubr.msk.bf16.mxu0 %vm68_vm0, %v164_v3  ;;  %v133_v6 = vld [vmem:[%s221_s2] ss:$0 sm:$0xff] }
   0x4   :  { %150 = vmatprep.subr.bf16.mxu0 %v161_v1 }
   0x7   :  { %151 = vmatpush3.bf16.msra.mxu0 %v161_v1 }
   0x8   :  { %152 = vmatprep.subr.bf16.mxu0 %v162_v2 }
   0xb   :  { %153 = vmatpush3.bf16.msra.mxu0 %v162_v2 }
   0xc   :  { %154 = vmatprep.subr.bf16.mxu0 %v163_v4 }
   0xf   :  { %155 = vmatpush3.bf16.msra.mxu0 %v163_v4 }
  0x12   :  { %157 = vmatmul.mubr.msk.bf16.vlgmr.msra.gmra.mrb[0].mxu0 %vm68_vm0, %v165_v5 }
  0xe5   :  { %v158_v7 = vpop.f32.mrb[0].mxu0 }
  0xe6   :  { %v118_v8 = vadd.f32 %v158_v7, %v133_v6  ;;  %v109_v9 = vpop.f32.mrb[1].mxu0 }
  0xe7   :  { %v110_v10 = vadd.f32 %v133_v6, %v109_v9  ;;  %v159_v11 = vpop.f32.mrb[2].mxu0 }
  0xe8   :  { %127 = vst.msk [vmem:[%s222_s3 + $0x10] sm:$0xff] %vm124_vm1, %v118_v8  ;;  %v121_v12 = vadd.f32 %v159_v11, %v133_v6  ;;  %v112_v13 = vpop.f32.mrb[3].mxu0 }
  0xe9   :  { %125 = vst.msk [vmem:[%s222_s3] sm:$0xff] %vm124_vm1, %v110_v10  ;;  %v113_v14 = vadd.f32 %v133_v6, %v112_v13 }
  0xea   :  { %128 = vst.msk [vmem:[%s222_s3 + $0x18] sm:$0xff] %vm124_vm1, %v121_v12 }
  0xeb   :  { %126 = vst.msk [vmem:[%s222_s3 + $0x8] sm:$0xff] %vm124_vm1, %v113_v14 }

// kernel: unet3_forward.54
= control target key start
LH: loop header
LB: loop body
LE: loop exit
PB: predicated region body
PF: predicated region fallthrough
CT: control target
= control target key end

     0   :  { %vm204_vm0 = vcmask 261120   ;;  %s523_s1 = inlined_call_operand.vmem [shape: bf16[288,32], index: 1, kind: input, shape index: {}]   ;;  %s524_s0 = inlined_call_operand.vmem [shape: bf16[32,288], index: 0, kind: input, shape index: {}]   ;;  %s525_s2 = inlined_call_operand.vmem [shape: f32[1,32], index: 2, kind: input, shape index: {}]   ;;  %s526_s3 = inlined_call_operand.vmem [shape: f32[32,32], index: 3, kind: output, shape index: {}]  }
   0x1   :  { %v384_v0 = vld [vmem:[%s523_s1 + $0x40] sm:$0xff]   ;;  %v386_v2 = vld [vmem:[%s523_s1 + $0x48] sm:$0xff]   ;;  %v388_v4 = vld [vmem:[%s523_s1 + $0x50] sm:$0xff]  }
   0x2   :  { %v385_v1 = vld [vmem:[%s523_s1] sm:$0xff]   ;;  %344 = vmatprep.subr.bf16.mxu0 %v384_v0  ;;  %v387_v3 = vld [vmem:[%s523_s1 + $0x8] sm:$0xff]   ;;  %v389_v5 = vld [vmem:[%s523_s1 + $0x10] sm:$0xff]  }
   0x3   :  { %345 = vmatpush3.bf16.msra.mxu0 %v385_v1  ;;  %v390_v6 = vld [vmem:[%s523_s1 + $0x58] sm:$0xff]   ;;  %v392_v8 = vld [vmem:[%s523_s1 + $0x60] sm:$0xff]   ;;  %v394_v11 = vld [vmem:[%s523_s1 + $0x68] sm:$0xff]  }
   0x4   :  { %346 = vmatprep.subr.bf16.mxu0 %v386_v2  ;;  %v391_v7 = vld [vmem:[%s523_s1 + $0x18] sm:$0xff]   ;;  %v393_v9 = vld [vmem:[%s523_s1 + $0x20] sm:$0xff]   ;;  %v395_v12 = vld [vmem:[%s523_s1 + $0x28] sm:$0xff]  }
   0x5   :  { %v399_v10 = vld [vmem:[%s523_s1 + $0x80] sm:$0xff]   ;;  %v396_v13 = vld [vmem:[%s523_s1 + $0x70] sm:$0xff]   ;;  %v404_v15 = vld [vmem:[%s523_s1 + $0x88] sm:$0xff]  }
   0x6   :  { %376 = vmatprep.subr.bf16.mxu1 %v399_v10  ;;  %v403_v14 = vld [vmem:[%s524_s0 + $0x4] ss:$12 sps:$4 sm:$0xff]   ;;  %v405_v16 = vld [vmem:[%s524_s0 + $0x8] ss:$12 sps:$4 sm:$0xff]   ;;  %v406_v17 = vld [vmem:[%s524_s0 + $0x20] ss:$12 sps:$4 sm:$0xff]  }
   0x7   :  { %347 = vmatpush3.bf16.msra.mxu0 %v387_v3  ;;  %377 = vmatpush3.bf16.msra.mxu1 %v399_v10  ;;  %v397_v18 = vld [vmem:[%s523_s1 + $0x30] sm:$0xff]   ;;  %v398_v19 = vld [vmem:[%s523_s1 + $0x78] sm:$0xff]   ;;  %v401_v21 = vld [vmem:[%s524_s0] ss:$12 sps:$4 sm:$0xff]  }
   0x8   :  { %348 = vmatprep.subr.bf16.mxu0 %v388_v4  ;;  %243 = vmatprep.mubr.bf16.mxu0 %v403_v14  ;;  %v400_v20 = vld [vmem:[%s523_s1 + $0x38] sm:$0xff]   ;;  %v317_v30 = vld [vmem:[%s525_s2] ss:$0 sm:$0xff] }
   0x9   :  { %378 = vmatprep.subr.bf16.mxu1 %v404_v15  ;;  %380 = vmatprep.mubr.msk.bf16.mxu1 %vm204_vm0, %v405_v16  ;;  %v407_v22 = vld [vmem:[%s524_s0 + $0x1c] ss:$12 sps:$4 sm:$0xff]   ;;  %v409_v23 = vld [vmem:[%s524_s0 + $0x18] ss:$12 sps:$4 sm:$0xff]  }
   0xb   :  { %349 = vmatpush3.bf16.msra.mxu0 %v389_v5  ;;  %379 = vmatpush3.bf16.msra.mxu1 %v404_v15 }
   0xc   :  { %350 = vmatprep.subr.bf16.mxu0 %v390_v6 }
   0xe   :  { %381 = vmatmul.mubr.msk.bf16.vlgmr.msra.gmra.mrb[0].mxu1 %vm204_vm0, %v406_v17 }
   0xf   :  { %351 = vmatpush3.bf16.msra.mxu0 %v391_v7 }
  0x10   :  { %352 = vmatprep.subr.bf16.mxu0 %v392_v8 }
  0x13   :  { %353 = vmatpush3.bf16.msra.mxu0 %v393_v9 }
  0x14   :  { %354 = vmatprep.subr.bf16.mxu0 %v394_v11 }
  0x17   :  { %355 = vmatpush3.bf16.msra.mxu0 %v395_v12 }
  0x18   :  { %356 = vmatprep.subr.bf16.mxu0 %v396_v13 }
  0x1b   :  { %357 = vmatpush3.bf16.msra.mxu0 %v397_v18 }
  0x1c   :  { %358 = vmatprep.subr.bf16.mxu0 %v398_v19 }
  0x1f   :  { %359 = vmatpush3.bf16.msra.mxu0 %v400_v20 }
  0x22   :  { %244 = vmatmul.mubr.bf16.vlgmr.msra.gmra.mrb[0].mxu0 %v401_v21 }
  0x23   :  { %251 = vmatprep.mubr.bf16.mxu0 %v407_v22 }
  0x2a   :  { %252 = vmatmul.mubr.bf16.gmra.mrb[4].mxu0 %v409_v23 }
  0xe1   :  { %v382_v24 = vpop.f32.mrb[0].mxu1 }
  0xe2   :  { %v294_v25 = vpop.f32.mrb[1].mxu1 }
  0xe3   :  { %v383_v26 = vpop.f32.mrb[2].mxu1 }
  0xe4   :  { %v297_v27 = vpop.f32.mrb[3].mxu1 }
  0xf5   :  { %v360_v28 = vpop.f32.mrb[0].mxu0 }
  0xf6   :  { %v361_v29 = vpop.f32.mrb[1].mxu0 }
  0xf7   :  { %v362_v31 = vadd.f32 %v361_v29, %v360_v28  ;;  %v363_v32 = vpop.f32.mrb[2].mxu0 }
  0xf8   :  { %v364_v33 = vpop.f32.mrb[3].mxu0 }
  0xf9   :  { %v365_v34 = vadd.f32 %v364_v33, %v363_v32  ;;  %v246_v35 = vadd.f32 %v362_v31, %v317_v30 }
  0xfb   :  { %v295_v36 = vadd.f32 %v294_v25, %v246_v35  ;;  %v249_v37 = vadd.f32 %v365_v34, %v317_v30 }
  0xfd   :  { %309 = vst.msk [vmem:[%s526_s3] sm:$0xff] %vm204_vm0, %v295_v36  ;;  %v298_v38 = vadd.f32 %v297_v27, %v249_v37  ;;  %v366_v39 = vpop.f32.mrb[4].mxu0 }
  0xfe   :  { %v367_v40 = vpop.f32.mrb[5].mxu0 }
  0xff   :  { %310 = vst.msk [vmem:[%s526_s3 + $0x8] sm:$0xff] %vm204_vm0, %v298_v38  ;;  %v368_v41 = vadd.f32 %v367_v40, %v366_v39  ;;  %v369_v42 = vpop.f32.mrb[6].mxu0 }
 0x100   :  { %v370_v43 = vpop.f32.mrb[7].mxu0 }
 0x101   :  { %v254_v44 = vadd.f32 %v368_v41, %v317_v30  ;;  %v371_v45 = vadd.f32 %v370_v43, %v369_v42 }
 0x103   :  { %v303_v46 = vadd.f32 %v382_v24, %v254_v44  ;;  %v257_v47 = vadd.f32 %v371_v45, %v317_v30 }
 0x105   :  { %311 = vst.msk [vmem:[%s526_s3 + $0x10] sm:$0xff] %vm204_vm0, %v303_v46  ;;  %v306_v48 = vadd.f32 %v383_v26, %v257_v47 }
 0x107   :  { %312 = vst.msk [vmem:[%s526_s3 + $0x18] sm:$0xff] %vm204_vm0, %v306_v48 }

// kernel: unet3_forward.55
= control target key start
LH: loop header
LB: loop body
LE: loop exit
PB: predicated region body
PF: predicated region fallthrough
CT: control target
= control target key end

     0   :  { %vm52_vm0 = vcmask 261120   ;;  %vm108_vm1 = vcmask 523264   ;;  %s187_s1 = inlined_call_operand.vmem [shape: bf16[32,64], index: 1, kind: input, shape index: {}]   ;;  %s188_s0 = inlined_call_operand.vmem [shape: bf16[32,32], index: 0, kind: input, shape index: {}]   ;;  %s189_s2 = inlined_call_operand.vmem [shape: f32[1,64], index: 2, kind: input, shape index: {}]   ;;  %s190_s3 = inlined_call_operand.vmem [shape: f32[32,64], index: 3, kind: output, shape index: {}]  }
   0x1   :  { %v136_v0 = vld [vmem:[%s187_s1] sm:$0xff]   ;;  %v137_v1 = vld [vmem:[%s187_s1 + $0x8] sm:$0xff]  }
   0x2   :  { %128 = vmatprep.subr.bf16.mxu0 %v136_v0  ;;  %v138_v2 = vld [vmem:[%s188_s0] sm:$0xff]   ;;  %v139_v3 = vld [vmem:[%s188_s0 + $0x8] sm:$0xff]  }
   0x3   :  { %129 = vmatpush3.bf16.msra.mxu0 %v136_v0  ;;  %132 = vmatprep.mubr.msk.bf16.mxu0 %vm52_vm0, %v138_v2  ;;  %v117_v4 = vld [vmem:[%s189_s2] ss:$0 sm:$0xff] }
   0x4   :  { %130 = vmatprep.subr.bf16.mxu0 %v137_v1 }
   0x7   :  { %131 = vmatpush3.bf16.msra.mxu0 %v137_v1 }
   0xa   :  { %133 = vmatmul.mubr.msk.bf16.vlgmr.msra.gmra.mrb[0].mxu0 %vm52_vm0, %v139_v3 }
  0xdd   :  { %v134_v5 = vpop.f32.mrb[0].mxu0 }
  0xde   :  { %v102_v6 = vadd.f32 %v134_v5, %v117_v4  ;;  %v93_v7 = vpop.f32.mrb[1].mxu0 }
  0xdf   :  { %v94_v8 = vadd.f32 %v117_v4, %v93_v7  ;;  %v135_v9 = vpop.f32.mrb[2].mxu0 }
  0xe0   :  { %111 = vst.msk [vmem:[%s190_s3 + $0x10] sm:$0xff] %vm108_vm1, %v102_v6  ;;  %v105_v10 = vadd.f32 %v135_v9, %v117_v4  ;;  %v96_v11 = vpop.f32.mrb[3].mxu0 }
  0xe1   :  { %109 = vst.msk [vmem:[%s190_s3] sm:$0xff] %vm108_vm1, %v94_v8  ;;  %v97_v12 = vadd.f32 %v117_v4, %v96_v11 }
  0xe2   :  { %112 = vst.msk [vmem:[%s190_s3 + $0x18] sm:$0xff] %vm108_vm1, %v105_v10 }
  0xe3   :  { %110 = vst.msk [vmem:[%s190_s3 + $0x8] sm:$0xff] %vm108_vm1, %v97_v12 }

// kernel: unet3_forward.38
= control target key start
LH: loop header
LB: loop body
LE: loop exit
PB: predicated region body
PF: predicated region fallthrough
CT: control target
= control target key end

     0   :  { %v108_v0 = vmov 0.0   ;;  %vm109_vm0 = vmmov 0   ;;  %vm39_vm1 = vcmask 261120   ;;  %vm83_vm2 = vcmask 254976   ;;  %s145_s1 = inlined_call_operand.vmem [shape: bf16[32,32], index: 1, kind: input, shape index: {}]   ;;  %s146_s0 = inlined_call_operand.vmem [shape: bf16[2,32], index: 0, kind: input, shape index: {}]   ;;  %s147_s2 = inlined_call_operand.vmem [shape: f32[1,32], index: 2, kind: input, shape index: {}]   ;;  %s148_s3 = inlined_call_operand.vmem [shape: f32[2,32], index: 3, kind: output, shape index: {}]  }
   0x1   :  { %96 = vmatprep.subr.bf16.mxu0 %v108_v0  ;;  %v106_v1 = vld [vmem:[%s145_s1] sm:$0xff]   ;;  %100 = vmatprep.mubr.msk.bf16.mxu0 %vm109_vm0, %v108_v0  ;;  %v107_v2 = vld [vmem:[%s145_s1 + $0x8] sm:$0xff]  }
   0x2   :  { %97 = vmatpush3.bf16.msra.mxu0 %v106_v1  ;;  %v15_v3 = vld [vmem:[%s146_s0] sm:$0x1] }
   0x3   :  { %98 = vmatprep.subr.bf16.mxu0 %v108_v0  ;;  %v89_v4 = vld [vmem:[%s147_s2] ss:$0 sm:$0xff] }
   0x6   :  { %99 = vmatpush3.bf16.msra.mxu0 %v107_v2 }
   0x9   :  { %101 = vmatmul.mubr.msk.bf16.vlgmr.msra.gmra.mrb[0].mxu0 %vm39_vm1, %v15_v3 }
  0xdc   :  { %v77_v5 = vpop.f32.mrb[0].mxu0 }
  0xdd   :  { %v78_v6 = vadd.f32 %v89_v4, %v77_v5  ;;  %v102_v7 = vpop.f32.mrb[1].mxu0 }
  0xde   :  { %v80_v8 = vpop.f32.mrb[2].mxu0 }
  0xdf   :  { %84 = vst.msk [vmem:[%s148_s3] sm:$0x3] %vm83_vm2, %v78_v6  ;;  %v103_v9 = vpop.f32.mrb[3].mxu0 }

// kernel: unet3_forward.59
= control target key start
LH: loop header
LB: loop body
LE: loop exit
PB: predicated region body
PF: predicated region fallthrough
CT: control target
= control target key end

     0   :  { %v234_v1 = vmov 0   ;;  %vm113_vm0 = vcmask 785408   ;;  %v33_v15 = vlaneseq  ;;  %s324_s1 = inlined_call_operand.vmem [shape: bf16[96,256], index: 1, kind: input, shape index: {}]   ;;  %s325_s0 = inlined_call_operand.vmem [shape: bf16[32,96], index: 0, kind: input, shape index: {}]   ;;  %s326_s2 = inlined_call_operand.vmem [shape: f32[1,256], index: 2, kind: input, shape index: {}]   ;;  %s327_s3 = inlined_call_operand.vmem [shape: f32[32,256], index: 3, kind: output, shape index: {}]  }
   0x1   :  { %v214_v0 = vld [vmem:[%s324_s1 + $0x4] ss:$8 sps:$4 sm:$0xff]   ;;  %152 = vmatprep.mubr.bf16.mxu0 %v234_v1  ;;  %162 = vmatprep.mubr.bf16.mxu1 %v234_v1  ;;  %v216_v2 = vld [vmem:[%s324_s1] ss:$8 sps:$4 sm:$0xff]   ;;  %v217_v3 = vld [vmem:[%s324_s1 + $0x14] ss:$8 sps:$4 sm:$0xff]  }
   0x2   :  { %120 = vmatprep.subr.bf16.mxu0 %v214_v0  ;;  %201 = vmatprep.subr.bf16.mxu1 %v214_v0  ;;  %v219_v4 = vld [vmem:[%s324_s1 + $0x10] ss:$8 sps:$4 sm:$0xff]   ;;  %v220_v5 = vld [vmem:[%s324_s1 + $0x24] ss:$8 sps:$4 sm:$0xff]   ;;  %v222_v6 = vld [vmem:[%s324_s1 + $0x20] ss:$8 sps:$4 sm:$0xff]  }
   0x3   :  { %121 = vmatpush1.bf16.msra.mxu0 %v216_v2  ;;  %207 = vmatpush1.bf16.msra.mxu1 %v216_v2  ;;  %v223_v7 = vld [vmem:[%s324_s1 + $0x34] ss:$8 sps:$4 sm:$0xff]   ;;  %v225_v8 = vld [vmem:[%s324_s1 + $0x30] ss:$8 sps:$4 sm:$0xff]   ;;  %v226_v9 = vld [vmem:[%s324_s1 + $0x44] ss:$8 sps:$4 sm:$0xff]  }
   0x4   :  { %122 = vmatprep.subr.bf16.mxu0 %v217_v3  ;;  %202 = vmatprep.subr.bf16.mxu1 %v217_v3  ;;  %v228_v10 = vld [vmem:[%s324_s1 + $0x40] ss:$8 sps:$4 sm:$0xff]   ;;  %v229_v11 = vld [vmem:[%s324_s1 + $0x54] ss:$8 sps:$4 sm:$0xff]   ;;  %v231_v12 = vld [vmem:[%s324_s1 + $0x50] ss:$8 sps:$4 sm:$0xff]  }
   0x5   :  { %v232_v13 = vld [vmem:[%s325_s0] sm:$0xff]   ;;  %v233_v14 = vld [vmem:[%s325_s0 + $0x8] sm:$0xff]   ;;  %v34_v16 = vshrl.u32 %v33_v15, 7 }
   0x6   :  { %v31_v18 = vld [vmem:[%s326_s2] sm:$0x3] }
   0x7   :  { %123 = vmatpush1.bf16.msra.mxu0 %v219_v4  ;;  %208 = vmatpush1.bf16.msra.mxu1 %v219_v4  ;;  %v35_v17 = vsub.s32 0, %v34_v16  ;;  %v39_v19 = vsub.s32 1, %v34_v16 }
   0x8   :  { %124 = vmatprep.subr.bf16.mxu0 %v220_v5  ;;  %203 = vmatprep.subr.bf16.mxu1 %v220_v5 }
   0x9   :  { %v36_v20 = vrot.slane %v31_v18, %v35_v17  ;;  %v40_v21 = vrot.slane %v31_v18, %v39_v19 }
   0xb   :  { %125 = vmatpush1.bf16.msra.mxu0 %v222_v6  ;;  %209 = vmatpush1.bf16.msra.mxu1 %v222_v6 }
   0xc   :  { %126 = vmatprep.subr.bf16.mxu0 %v223_v7  ;;  %204 = vmatprep.subr.bf16.mxu1 %v223_v7 }
   0xf   :  { %127 = vmatpush1.bf16.msra.mxu0 %v225_v8  ;;  %210 = vmatpush1.bf16.msra.mxu1 %v225_v8 }
  0x10   :  { %128 = vmatprep.subr.bf16.mxu0 %v226_v9  ;;  %205 = vmatprep.subr.bf16.mxu1 %v226_v9 }
  0x13   :  { %129 = vmatpush1.bf16.msra.mxu0 %v228_v10  ;;  %211 = vmatpush1.bf16.msra.mxu1 %v228_v10 }
  0x14   :  { %130 = vmatprep.subr.bf16.mxu0 %v229_v11  ;;  %206 = vmatprep.subr.bf16.mxu1 %v229_v11 }
  0x17   :  { %131 = vmatpush1.bf16.msra.mxu0 %v231_v12  ;;  %212 = vmatpush1.bf16.msra.mxu1 %v231_v12 }
  0x1a   :  { %199 = vmatmul.mubr.msk.bf16.vlgmr.msra.gmra.mrb[0].mxu0 %vm113_vm0, %v232_v13  ;;  %200 = vmatmul.mubr.msk.bf16.vlgmr.msra.gmra.mrb[0].mxu1 %vm113_vm0, %v233_v14 }
  0xed   :  { %v154_v22 = vpop.f32.mrb[0].mxu0  ;;  %v164_v23 = vpop.f32.mrb[0].mxu1 }
  0xee   :  { %v155_v24 = vadd.f32 %v154_v22, %v36_v20  ;;  %v165_v25 = vadd.f32 %v164_v23, %v36_v20  ;;  %v156_v26 = vpop.f32.mrb[1].mxu0  ;;  %v166_v27 = vpop.f32.mrb[1].mxu1 }
  0xef   :  { %v157_v28 = vadd.f32 %v156_v26, %v40_v21  ;;  %v167_v29 = vadd.f32 %v166_v27, %v40_v21  ;;  %v158_v30 = vpop.f32.mrb[2].mxu0  ;;  %v168_v31 = vpop.f32.mrb[2].mxu1 }
  0xf0   :  { %173 = vst [vmem:[%s327_s3] sm:$0xff] %v155_v24  ;;  %177 = vst [vmem:[%s327_s3 + $0x20] sm:$0xff] %v165_v25  ;;  %v159_v32 = vadd.f32 %v158_v30, %v36_v20  ;;  %v169_v33 = vadd.f32 %v168_v31, %v36_v20  ;;  %v160_v34 = vpop.f32.mrb[3].mxu0  ;;  %v170_v35 = vpop.f32.mrb[3].mxu1 }
  0xf1   :  { %174 = vst [vmem:[%s327_s3 + $0x8] sm:$0xff] %v157_v28  ;;  %178 = vst [vmem:[%s327_s3 + $0x28] sm:$0xff] %v167_v29  ;;  %v161_v36 = vadd.f32 %v160_v34, %v40_v21  ;;  %v171_v37 = vadd.f32 %v170_v35, %v40_v21 }
  0xf2   :  { %175 = vst [vmem:[%s327_s3 + $0x10] sm:$0xff] %v159_v32  ;;  %179 = vst [vmem:[%s327_s3 + $0x30] sm:$0xff] %v169_v33 }
  0xf3   :  { %176 = vst [vmem:[%s327_s3 + $0x18] sm:$0xff] %v161_v36  ;;  %180 = vst [vmem:[%s327_s3 + $0x38] sm:$0xff] %v171_v37 }

// kernel: unet3_forward.63
= control target key start
LH: loop header
LB: loop body
LE: loop exit
PB: predicated region body
PF: predicated region fallthrough
CT: control target
= control target key end

     0   :  { %v265_v1 = vmov 0   ;;  %v37_v19 = vlaneseq  ;;  %s367_s1 = inlined_call_operand.vmem [shape: bf16[128,256], index: 1, kind: input, shape index: {}]   ;;  %s368_s0 = inlined_call_operand.vmem [shape: bf16[32,128], index: 0, kind: input, shape index: {}]   ;;  %s369_s2 = inlined_call_operand.vmem [shape: f32[1,256], index: 2, kind: input, shape index: {}]   ;;  %s370_s3 = inlined_call_operand.vmem [shape: f32[32,256], index: 3, kind: output, shape index: {}]  }
   0x1   :  { %v239_v0 = vld [vmem:[%s367_s1 + $0x4] ss:$8 sps:$4 sm:$0xff]   ;;  %171 = vmatprep.mubr.bf16.mxu0 %v265_v1  ;;  %181 = vmatprep.mubr.bf16.mxu1 %v265_v1  ;;  %v241_v2 = vld [vmem:[%s367_s1] ss:$8 sps:$4 sm:$0xff]   ;;  %v242_v3 = vld [vmem:[%s367_s1 + $0x14] ss:$8 sps:$4 sm:$0xff]  }
   0x2   :  { %139 = vmatprep.subr.bf16.mxu0 %v239_v0  ;;  %222 = vmatprep.subr.bf16.mxu1 %v239_v0  ;;  %v244_v4 = vld [vmem:[%s367_s1 + $0x10] ss:$8 sps:$4 sm:$0xff]   ;;  %v245_v5 = vld [vmem:[%s367_s1 + $0x24] ss:$8 sps:$4 sm:$0xff]   ;;  %v247_v6 = vld [vmem:[%s367_s1 + $0x20] ss:$8 sps:$4 sm:$0xff]  }
   0x3   :  { %140 = vmatpush1.bf16.msra.mxu0 %v241_v2  ;;  %230 = vmatpush1.bf16.msra.mxu1 %v241_v2  ;;  %v248_v7 = vld [vmem:[%s367_s1 + $0x34] ss:$8 sps:$4 sm:$0xff]   ;;  %v250_v8 = vld [vmem:[%s367_s1 + $0x30] ss:$8 sps:$4 sm:$0xff]   ;;  %v251_v9 = vld [vmem:[%s367_s1 + $0x44] ss:$8 sps:$4 sm:$0xff]  }
   0x4   :  { %141 = vmatprep.subr.bf16.mxu0 %v242_v3  ;;  %223 = vmatprep.subr.bf16.mxu1 %v242_v3  ;;  %v253_v10 = vld [vmem:[%s367_s1 + $0x40] ss:$8 sps:$4 sm:$0xff]   ;;  %v254_v11 = vld [vmem:[%s367_s1 + $0x54] ss:$8 sps:$4 sm:$0xff]   ;;  %v256_v12 = vld [vmem:[%s367_s1 + $0x50] ss:$8 sps:$4 sm:$0xff]  }
   0x5   :  { %v257_v13 = vld [vmem:[%s367_s1 + $0x64] ss:$8 sps:$4 sm:$0xff]   ;;  %v259_v14 = vld [vmem:[%s367_s1 + $0x60] ss:$8 sps:$4 sm:$0xff]   ;;  %v260_v15 = vld [vmem:[%s367_s1 + $0x74] ss:$8 sps:$4 sm:$0xff]  }
   0x6   :  { %v262_v16 = vld [vmem:[%s367_s1 + $0x70] ss:$8 sps:$4 sm:$0xff]   ;;  %v263_v17 = vld [vmem:[%s368_s0] sm:$0xff]   ;;  %v264_v18 = vld [vmem:[%s368_s0 + $0x8] sm:$0xff]   ;;  %v38_v20 = vshrl.u32 %v37_v19, 7 }
   0x7   :  { %142 = vmatpush1.bf16.msra.mxu0 %v244_v4  ;;  %231 = vmatpush1.bf16.msra.mxu1 %v244_v4  ;;  %v35_v22 = vld [vmem:[%s369_s2] sm:$0x3] }
   0x8   :  { %143 = vmatprep.subr.bf16.mxu0 %v245_v5  ;;  %224 = vmatprep.subr.bf16.mxu1 %v245_v5  ;;  %v39_v21 = vsub.s32 0, %v38_v20  ;;  %v43_v23 = vsub.s32 1, %v38_v20 }
   0xa   :  { %v40_v24 = vrot.slane %v35_v22, %v39_v21  ;;  %v44_v25 = vrot.slane %v35_v22, %v43_v23 }
   0xb   :  { %144 = vmatpush1.bf16.msra.mxu0 %v247_v6  ;;  %232 = vmatpush1.bf16.msra.mxu1 %v247_v6 }
   0xc   :  { %145 = vmatprep.subr.bf16.mxu0 %v248_v7  ;;  %225 = vmatprep.subr.bf16.mxu1 %v248_v7 }
   0xf   :  { %146 = vmatpush1.bf16.msra.mxu0 %v250_v8  ;;  %233 = vmatpush1.bf16.msra.mxu1 %v250_v8 }
  0x10   :  { %147 = vmatprep.subr.bf16.mxu0 %v251_v9  ;;  %226 = vmatprep.subr.bf16.mxu1 %v251_v9 }
  0x13   :  { %148 = vmatpush1.bf16.msra.mxu0 %v253_v10  ;;  %234 = vmatpush1.bf16.msra.mxu1 %v253_v10 }
  0x14   :  { %149 = vmatprep.subr.bf16.mxu0 %v254_v11  ;;  %227 = vmatprep.subr.bf16.mxu1 %v254_v11 }
  0x17   :  { %150 = vmatpush1.bf16.msra.mxu0 %v256_v12  ;;  %235 = vmatpush1.bf16.msra.mxu1 %v256_v12 }
  0x18   :  { %151 = vmatprep.subr.bf16.mxu0 %v257_v13  ;;  %228 = vmatprep.subr.bf16.mxu1 %v257_v13 }
  0x1b   :  { %152 = vmatpush1.bf16.msra.mxu0 %v259_v14  ;;  %236 = vmatpush1.bf16.msra.mxu1 %v259_v14 }
  0x1c   :  { %153 = vmatprep.subr.bf16.mxu0 %v260_v15  ;;  %229 = vmatprep.subr.bf16.mxu1 %v260_v15 }
  0x1f   :  { %154 = vmatpush1.bf16.msra.mxu0 %v262_v16  ;;  %237 = vmatpush1.bf16.msra.mxu1 %v262_v16 }
  0x22   :  { %172 = vmatmul.mubr.bf16.vlgmr.msra.gmra.mrb[0].mxu0 %v263_v17  ;;  %182 = vmatmul.mubr.bf16.vlgmr.msra.gmra.mrb[0].mxu1 %v264_v18 }
  0xf5   :  { %v173_v26 = vpop.f32.mrb[0].mxu0  ;;  %v183_v27 = vpop.f32.mrb[0].mxu1 }
  0xf6   :  { %v174_v28 = vadd.f32 %v173_v26, %v40_v24  ;;  %v184_v29 = vadd.f32 %v183_v27, %v40_v24  ;;  %v175_v30 = vpop.f32.mrb[1].mxu0  ;;  %v185_v31 = vpop.f32.mrb[1].mxu1 }
  0xf7   :  { %v176_v32 = vadd.f32 %v175_v30, %v44_v25  ;;  %v186_v33 = vadd.f32 %v185_v31, %v44_v25  ;;  %v177_v34 = vpop.f32.mrb[2].mxu0  ;;  %v187_v35 = vpop.f32.mrb[2].mxu1 }
  0xf8   :  { %192 = vst [vmem:[%s370_s3] sm:$0xff] %v174_v28  ;;  %196 = vst [vmem:[%s370_s3 + $0x20] sm:$0xff] %v184_v29  ;;  %v178_v36 = vadd.f32 %v177_v34, %v40_v24  ;;  %v188_v37 = vadd.f32 %v187_v35, %v40_v24  ;;  %v179_v38 = vpop.f32.mrb[3].mxu0  ;;  %v189_v39 = vpop.f32.mrb[3].mxu1 }
  0xf9   :  { %193 = vst [vmem:[%s370_s3 + $0x8] sm:$0xff] %v176_v32  ;;  %197 = vst [vmem:[%s370_s3 + $0x28] sm:$0xff] %v186_v33  ;;  %v180_v40 = vadd.f32 %v179_v38, %v44_v25  ;;  %v190_v41 = vadd.f32 %v189_v39, %v44_v25 }
  0xfa   :  { %194 = vst [vmem:[%s370_s3 + $0x10] sm:$0xff] %v178_v36  ;;  %198 = vst [vmem:[%s370_s3 + $0x30] sm:$0xff] %v188_v37 }
  0xfb   :  { %195 = vst [vmem:[%s370_s3 + $0x18] sm:$0xff] %v180_v40  ;;  %199 = vst [vmem:[%s370_s3 + $0x38] sm:$0xff] %v190_v41 }

// kernel: unet3_forward.67
= control target key start
LH: loop header
LB: loop body
LE: loop exit
PB: predicated region body
PF: predicated region fallthrough
CT: control target
= control target key end

     0   :  { %v352_v0 = vmov 0.0   ;;  %vm353_vm0 = vmmov 0   ;;  %s468_s1 = inlined_call_operand.vmem [shape: bf16[128,128], index: 1, kind: input, shape index: {}]   ;;  %s469_s0 = inlined_call_operand.vmem [shape: bf16[98,128], index: 0, kind: input, shape index: {}]   ;;  %s470_s2 = inlined_call_operand.vmem [shape: f32[1,128], index: 2, kind: input, shape index: {}]   ;;  %s471_s3 = inlined_call_operand.vmem [shape: f32[98,128], index: 3, kind: output, shape index: {}]  }
   0x1   :  { %275 = vmatprep.subr.bf16.mxu0 %v352_v0  ;;  %v337_v1 = vld [vmem:[%s468_s1] sm:$0xff]   ;;  %319 = vmatprep.subr.bf16.mxu1 %v352_v0  ;;  %v338_v2 = vld [vmem:[%s468_s1 + $0x8] sm:$0xff]   ;;  %v339_v3 = vld [vmem:[%s468_s1 + $0x10] sm:$0xff]  }
   0x2   :  { %291 = vmatprep.mubr.msk.bf16.mxu0 %vm353_vm0, %v352_v0  ;;  %307 = vmatprep.mubr.msk.bf16.mxu1 %vm353_vm0, %v352_v0  ;;  %v340_v4 = vld [vmem:[%s468_s1 + $0x18] sm:$0xff]   ;;  %v341_v5 = vld [vmem:[%s468_s1 + $0x20] sm:$0xff]   ;;  %v342_v6 = vld [vmem:[%s468_s1 + $0x28] sm:$0xff]  }
   0x3   :  { %276 = vmatpush3.bf16.msra.mxu0 %v337_v1  ;;  %327 = vmatpush3.bf16.msra.mxu1 %v337_v1  ;;  %v343_v7 = vld [vmem:[%s468_s1 + $0x30] sm:$0xff]   ;;  %v344_v8 = vld [vmem:[%s468_s1 + $0x38] sm:$0xff]   ;;  %v345_v9 = vld [vmem:[%s469_s0] sm:$0xff]  }
   0x4   :  { %277 = vmatprep.subr.bf16.mxu0 %v352_v0  ;;  %320 = vmatprep.subr.bf16.mxu1 %v352_v0  ;;  %v346_v10 = vld [vmem:[%s469_s0 + $0x20] sm:$0xff]   ;;  %v347_v11 = vld [vmem:[%s469_s0 + $0x8] sm:$0xff]   ;;  %v349_v13 = vld [vmem:[%s469_s0 + $0x10] sm:$0xff]  }
   0x5   :  { %v348_v12 = vld [vmem:[%s469_s0 + $0x28] sm:$0xff]   ;;  %v350_v14 = vld [vmem:[%s469_s0 + $0x30] ss:$0 sps:$4 sm:$0x11]   ;;  %v351_v15 = vld [vmem:[%s469_s0 + $0x18] sm:$0xff]  }
   0x6   :  { %v244_v16 = vld [vmem:[%s470_s2] ss:$0 sm:$0xff] }
   0x7   :  { %278 = vmatpush3.bf16.msra.mxu0 %v338_v2  ;;  %328 = vmatpush3.bf16.msra.mxu1 %v338_v2 }
   0x8   :  { %279 = vmatprep.subr.bf16.mxu0 %v352_v0  ;;  %321 = vmatprep.subr.bf16.mxu1 %v352_v0 }
   0xb   :  { %280 = vmatpush3.bf16.msra.mxu0 %v339_v3  ;;  %329 = vmatpush3.bf16.msra.mxu1 %v339_v3 }
   0xc   :  { %281 = vmatprep.subr.bf16.mxu0 %v352_v0  ;;  %322 = vmatprep.subr.bf16.mxu1 %v352_v0 }
   0xf   :  { %282 = vmatpush3.bf16.msra.mxu0 %v340_v4  ;;  %330 = vmatpush3.bf16.msra.mxu1 %v340_v4 }
  0x10   :  { %283 = vmatprep.subr.bf16.mxu0 %v352_v0  ;;  %323 = vmatprep.subr.bf16.mxu1 %v352_v0 }
  0x13   :  { %284 = vmatpush3.bf16.msra.mxu0 %v341_v5  ;;  %331 = vmatpush3.bf16.msra.mxu1 %v341_v5 }
  0x14   :  { %285 = vmatprep.subr.bf16.mxu0 %v352_v0  ;;  %324 = vmatprep.subr.bf16.mxu1 %v352_v0 }
  0x17   :  { %286 = vmatpush3.bf16.msra.mxu0 %v342_v6  ;;  %332 = vmatpush3.bf16.msra.mxu1 %v342_v6 }
  0x18   :  { %287 = vmatprep.subr.bf16.mxu0 %v352_v0  ;;  %325 = vmatprep.subr.bf16.mxu1 %v352_v0 }
  0x1b   :  { %288 = vmatpush3.bf16.msra.mxu0 %v343_v7  ;;  %333 = vmatpush3.bf16.msra.mxu1 %v343_v7 }
  0x1c   :  { %289 = vmatprep.subr.bf16.mxu0 %v352_v0  ;;  %326 = vmatprep.subr.bf16.mxu1 %v352_v0 }
  0x1f   :  { %290 = vmatpush3.bf16.msra.mxu0 %v344_v8  ;;  %334 = vmatpush3.bf16.msra.mxu1 %v344_v8 }
  0x22   :  { %292 = vmatmul.mubr.bf16.vlgmr.msra.gmra.mrb[0].mxu0 %v345_v9  ;;  %308 = vmatmul.mubr.bf16.vlgmr.msra.gmra.mrb[0].mxu1 %v346_v10 }
  0x23   :  { %295 = vmatprep.mubr.msk.bf16.mxu0 %vm353_vm0, %v352_v0  ;;  %311 = vmatprep.mubr.msk.bf16.mxu1 %vm353_vm0, %v352_v0 }
  0x2a   :  { %296 = vmatmul.mubr.bf16.gmra.mrb[4].mxu0 %v347_v11  ;;  %312 = vmatmul.mubr.bf16.gmra.mrb[4].mxu1 %v348_v12 }
  0x2b   :  { %299 = vmatprep.mubr.msk.bf16.mxu0 %vm353_vm0, %v352_v0  ;;  %315 = vmatprep.mubr.msk.bf16.mxu1 %vm353_vm0, %v352_v0 }
  0x32   :  { %300 = vmatmul.mubr.bf16.gmra.mrb[8].mxu0 %v349_v13  ;;  %316 = vmatmul.mubr.bf16.gmra.mrb[8].mxu1 %v350_v14 }
  0x33   :  { %303 = vmatprep.mubr.msk.bf16.mxu0 %vm353_vm0, %v352_v0 }
  0x3a   :  { %304 = vmatmul.mubr.bf16.gmra.mrb[12].mxu0 %v351_v15 }
  0xf5   :  { %v173_v17 = vpop.f32.mrb[0].mxu0  ;;  %v205_v18 = vpop.f32.mrb[0].mxu1 }
  0xf6   :  { %v174_v19 = vadd.f32 %v244_v16, %v173_v17  ;;  %v293_v20 = vpop.f32.mrb[1].mxu0  ;;  %v206_v21 = vadd.f32 %v244_v16, %v205_v18  ;;  %v309_v22 = vpop.f32.mrb[1].mxu1 }
  0xf7   :  { %v176_v23 = vpop.f32.mrb[2].mxu0  ;;  %v208_v24 = vpop.f32.mrb[2].mxu1 }
  0xf8   :  { %227 = vst [vmem:[%s471_s3] sm:$0xff] %v174_v19  ;;  %v177_v25 = vadd.f32 %v244_v16, %v176_v23  ;;  %v294_v26 = vpop.f32.mrb[3].mxu0  ;;  %235 = vst [vmem:[%s471_s3 + $0x40] sm:$0xff] %v206_v21  ;;  %v209_v27 = vadd.f32 %v244_v16, %v208_v24  ;;  %v310_v28 = vpop.f32.mrb[3].mxu1 }
  0xfa   :  { %228 = vst [vmem:[%s471_s3 + $0x8] sm:$0xff] %v177_v25  ;;  %236 = vst [vmem:[%s471_s3 + $0x48] sm:$0xff] %v209_v27 }
  0xfd   :  { %v181_v29 = vpop.f32.mrb[4].mxu0  ;;  %v213_v30 = vpop.f32.mrb[4].mxu1 }
  0xfe   :  { %v182_v31 = vadd.f32 %v244_v16, %v181_v29  ;;  %v297_v32 = vpop.f32.mrb[5].mxu0  ;;  %v214_v33 = vadd.f32 %v244_v16, %v213_v30  ;;  %v313_v34 = vpop.f32.mrb[5].mxu1 }
  0xff   :  { %v184_v35 = vpop.f32.mrb[6].mxu0  ;;  %v216_v36 = vpop.f32.mrb[6].mxu1 }
 0x100   :  { %229 = vst [vmem:[%s471_s3 + $0x10] sm:$0xff] %v182_v31  ;;  %v185_v37 = vadd.f32 %v244_v16, %v184_v35  ;;  %v298_v38 = vpop.f32.mrb[7].mxu0  ;;  %237 = vst [vmem:[%s471_s3 + $0x50] sm:$0xff] %v214_v33  ;;  %v217_v39 = vadd.f32 %v244_v16, %v216_v36  ;;  %v314_v40 = vpop.f32.mrb[7].mxu1 }
 0x102   :  { %230 = vst [vmem:[%s471_s3 + $0x18] sm:$0xff] %v185_v37  ;;  %238 = vst [vmem:[%s471_s3 + $0x58] sm:$0xff] %v217_v39 }
 0x105   :  { %v189_v41 = vpop.f32.mrb[8].mxu0  ;;  %v221_v42 = vpop.f32.mrb[8].mxu1 }
 0x106   :  { %v190_v43 = vadd.f32 %v244_v16, %v189_v41  ;;  %v301_v44 = vpop.f32.mrb[9].mxu0  ;;  %v222_v45 = vadd.f32 %v244_v16, %v221_v42  ;;  %v317_v46 = vpop.f32.mrb[9].mxu1 }
 0x107   :  { %v192_v47 = vpop.f32.mrb[10].mxu0  ;;  %v224_v48 = vpop.f32.mrb[10].mxu1 }
 0x108   :  { %231 = vst [vmem:[%s471_s3 + $0x20] sm:$0xff] %v190_v43  ;;  %v193_v49 = vadd.f32 %v244_v16, %v192_v47  ;;  %v302_v50 = vpop.f32.mrb[11].mxu0  ;;  %239 = vst [vmem:[%s471_s3 + $0x60] sm:$0x3] %v222_v45  ;;  %v318_v51 = vpop.f32.mrb[11].mxu1 }
 0x10a   :  { %232 = vst [vmem:[%s471_s3 + $0x28] sm:$0xff] %v193_v49 }
 0x10d   :  { %v197_v52 = vpop.f32.mrb[12].mxu0 }
 0x10e   :  { %v198_v53 = vadd.f32 %v244_v16, %v197_v52  ;;  %v305_v54 = vpop.f32.mrb[13].mxu0 }
 0x10f   :  { %v200_v55 = vpop.f32.mrb[14].mxu0 }
 0x110   :  { %233 = vst [vmem:[%s471_s3 + $0x30] sm:$0xff] %v198_v53  ;;  %v201_v56 = vadd.f32 %v244_v16, %v200_v55  ;;  %v306_v57 = vpop.f32.mrb[15].mxu0 }
 0x112   :  { %234 = vst [vmem:[%s471_s3 + $0x38] sm:$0xff] %v201_v56 }

// kernel: unet3_forward.71
= control target key start
LH: loop header
LB: loop body
LE: loop exit
PB: predicated region body
PF: predicated region fallthrough
CT: control target
= control target key end

     0   :  { %v818_v0 = vmov 0.0   ;;  %vm819_vm0 = vmmov 0   ;;  %vm226_vm1 = vcmask 523264   ;;  %s1260_s1 = inlined_call_operand.vmem [shape: bf16[64,64], index: 1, kind: input, shape index: {}]   ;;  %s1261_s0 = inlined_call_operand.vmem [shape: bf16[392,64], index: 0, kind: input, shape index: {}]   ;;  %s1262_s2 = inlined_call_operand.vmem [shape: f32[1,64], index: 2, kind: input, shape index: {}]   ;;  %s1263_s3 = inlined_call_operand.vmem [shape: f32[392,64], index: 3, kind: output, shape index: {}]  }
   0x1   :  { %671 = vmatprep.subr.bf16.mxu0 %v818_v0  ;;  %v789_v1 = vld [vmem:[%s1260_s1] sm:$0xff]   ;;  %779 = vmatprep.subr.bf16.mxu1 %v818_v0  ;;  %v790_v2 = vld [vmem:[%s1260_s1 + $0x8] sm:$0xff]   ;;  %v791_v3 = vld [vmem:[%s1260_s1 + $0x10] sm:$0xff]  }
   0x2   :  { %679 = vmatprep.mubr.msk.bf16.mxu0 %vm819_vm0, %v818_v0  ;;  %731 = vmatprep.mubr.msk.bf16.mxu1 %vm819_vm0, %v818_v0  ;;  %v792_v4 = vld [vmem:[%s1260_s1 + $0x18] sm:$0xff]   ;;  %v793_v5 = vld [vmem:[%s1261_s0] sm:$0xff]   ;;  %v794_v6 = vld [vmem:[%s1261_s0 + $0x68] sm:$0xff]  }
   0x3   :  { %672 = vmatpush3.bf16.msra.mxu0 %v789_v1  ;;  %783 = vmatpush3.bf16.msra.mxu1 %v789_v1  ;;  %v795_v7 = vld [vmem:[%s1261_s0 + $0x8] sm:$0xff]   ;;  %v796_v8 = vld [vmem:[%s1261_s0 + $0x70] sm:$0xff]   ;;  %v798_v10 = vld [vmem:[%s1261_s0 + $0x78] sm:$0xff]  }
   0x4   :  { %673 = vmatprep.subr.bf16.mxu0 %v818_v0  ;;  %780 = vmatprep.subr.bf16.mxu1 %v818_v0  ;;  %v797_v9 = vld [vmem:[%s1261_s0 + $0x10] sm:$0xff]   ;;  %v799_v11 = vld [vmem:[%s1261_s0 + $0x18] sm:$0xff]   ;;  %v800_v12 = vld [vmem:[%s1261_s0 + $0x80] sm:$0xff]  }
   0x5   :  { %v801_v13 = vld [vmem:[%s1261_s0 + $0x20] sm:$0xff]   ;;  %v802_v14 = vld [vmem:[%s1261_s0 + $0x88] sm:$0xff]   ;;  %v804_v16 = vld [vmem:[%s1261_s0 + $0x90] sm:$0xff]  }
   0x6   :  { %v803_v15 = vld [vmem:[%s1261_s0 + $0x28] sm:$0xff]   ;;  %v805_v17 = vld [vmem:[%s1261_s0 + $0x30] sm:$0xff]   ;;  %v806_v18 = vld [vmem:[%s1261_s0 + $0x98] sm:$0xff]  }
   0x7   :  { %674 = vmatpush3.bf16.msra.mxu0 %v790_v2  ;;  %784 = vmatpush3.bf16.msra.mxu1 %v790_v2  ;;  %v807_v19 = vld [vmem:[%s1261_s0 + $0x38] sm:$0xff]   ;;  %v808_v20 = vld [vmem:[%s1261_s0 + $0xa0] sm:$0xff]   ;;  %v810_v22 = vld [vmem:[%s1261_s0 + $0xa8] sm:$0xff]  }
   0x8   :  { %675 = vmatprep.subr.bf16.mxu0 %v818_v0  ;;  %781 = vmatprep.subr.bf16.mxu1 %v818_v0  ;;  %v809_v21 = vld [vmem:[%s1261_s0 + $0x40] sm:$0xff]   ;;  %v811_v23 = vld [vmem:[%s1261_s0 + $0x48] sm:$0xff]   ;;  %v812_v24 = vld [vmem:[%s1261_s0 + $0xb0] sm:$0xff]  }
   0x9   :  { %v813_v25 = vld [vmem:[%s1261_s0 + $0x50] sm:$0xff]   ;;  %v814_v26 = vld [vmem:[%s1261_s0 + $0xb8] sm:$0xff]   ;;  %v816_v28 = vld [vmem:[%s1261_s0 + $0xc0] ss:$0 sps:$4 sm:$0xff]  }
   0xa   :  { %v815_v27 = vld [vmem:[%s1261_s0 + $0x58] sm:$0xff]   ;;  %v817_v29 = vld [vmem:[%s1261_s0 + $0x60] sm:$0xff]  }
   0xb   :  { %676 = vmatpush3.bf16.msra.mxu0 %v791_v3  ;;  %785 = vmatpush3.bf16.msra.mxu1 %v791_v3  ;;  %v1013_v30 = vld [vmem:[%s1262_s2] ss:$0 sm:$0xff] }
   0xc   :  { %677 = vmatprep.subr.bf16.mxu0 %v818_v0  ;;  %782 = vmatprep.subr.bf16.mxu1 %v818_v0 }
   0xf   :  { %678 = vmatpush3.bf16.msra.mxu0 %v792_v4  ;;  %786 = vmatpush3.bf16.msra.mxu1 %v792_v4 }
  0x12   :  { %680 = vmatmul.mubr.msk.bf16.vlgmr.msra.gmra.mrb[0].mxu0 %vm226_vm1, %v793_v5  ;;  %732 = vmatmul.mubr.msk.bf16.vlgmr.msra.gmra.mrb[0].mxu1 %vm226_vm1, %v794_v6 }
  0x13   :  { %683 = vmatprep.mubr.msk.bf16.mxu0 %vm819_vm0, %v818_v0  ;;  %735 = vmatprep.mubr.msk.bf16.mxu1 %vm819_vm0, %v818_v0 }
  0x1a   :  { %684 = vmatmul.mubr.msk.bf16.gmra.mrb[4].mxu0 %vm226_vm1, %v795_v7  ;;  %736 = vmatmul.mubr.msk.bf16.gmra.mrb[4].mxu1 %vm226_vm1, %v796_v8 }
  0x1b   :  { %687 = vmatprep.mubr.msk.bf16.mxu0 %vm819_vm0, %v818_v0  ;;  %739 = vmatprep.mubr.msk.bf16.mxu1 %vm819_vm0, %v818_v0 }
  0x22   :  { %688 = vmatmul.mubr.msk.bf16.gmra.mrb[8].mxu0 %vm226_vm1, %v797_v9  ;;  %740 = vmatmul.mubr.msk.bf16.gmra.mrb[8].mxu1 %vm226_vm1, %v798_v10 }
  0x23   :  { %691 = vmatprep.mubr.msk.bf16.mxu0 %vm819_vm0, %v818_v0  ;;  %743 = vmatprep.mubr.msk.bf16.mxu1 %vm819_vm0, %v818_v0 }
  0x2a   :  { %692 = vmatmul.mubr.msk.bf16.gmra.mrb[12].mxu0 %vm226_vm1, %v799_v11  ;;  %744 = vmatmul.mubr.msk.bf16.gmra.mrb[12].mxu1 %vm226_vm1, %v800_v12 }
  0x2b   :  { %695 = vmatprep.mubr.msk.bf16.mxu0 %vm819_vm0, %v818_v0  ;;  %747 = vmatprep.mubr.msk.bf16.mxu1 %vm819_vm0, %v818_v0 }
  0x32   :  { %696 = vmatmul.mubr.msk.bf16.gmra.mrb[16].mxu0 %vm226_vm1, %v801_v13  ;;  %748 = vmatmul.mubr.msk.bf16.gmra.mrb[16].mxu1 %vm226_vm1, %v802_v14 }
  0x33   :  { %699 = vmatprep.mubr.msk.bf16.mxu0 %vm819_vm0, %v818_v0  ;;  %751 = vmatprep.mubr.msk.bf16.mxu1 %vm819_vm0, %v818_v0 }
  0x3a   :  { %700 = vmatmul.mubr.msk.bf16.gmra.mrb[20].mxu0 %vm226_vm1, %v803_v15  ;;  %752 = vmatmul.mubr.msk.bf16.gmra.mrb[20].mxu1 %vm226_vm1, %v804_v16 }
  0x3b   :  { %703 = vmatprep.mubr.msk.bf16.mxu0 %vm819_vm0, %v818_v0  ;;  %755 = vmatprep.mubr.msk.bf16.mxu1 %vm819_vm0, %v818_v0 }
  0x42   :  { %704 = vmatmul.mubr.msk.bf16.gmra.mrb[24].mxu0 %vm226_vm1, %v805_v17  ;;  %756 = vmatmul.mubr.msk.bf16.gmra.mrb[24].mxu1 %vm226_vm1, %v806_v18 }
  0x43   :  { %707 = vmatprep.mubr.msk.bf16.mxu0 %vm819_vm0, %v818_v0  ;;  %759 = vmatprep.mubr.msk.bf16.mxu1 %vm819_vm0, %v818_v0 }
  0x4a   :  { %708 = vmatmul.mubr.msk.bf16.gmra.mrb[28].mxu0 %vm226_vm1, %v807_v19  ;;  %760 = vmatmul.mubr.msk.bf16.gmra.mrb[28].mxu1 %vm226_vm1, %v808_v20 }
  0x4b   :  { %711 = vmatprep.mubr.msk.bf16.mxu0 %vm819_vm0, %v818_v0  ;;  %763 = vmatprep.mubr.msk.bf16.mxu1 %vm819_vm0, %v818_v0 }
  0x52   :  { %712 = vmatmul.mubr.msk.bf16.gmra.mrb[32].mxu0 %vm226_vm1, %v809_v21  ;;  %764 = vmatmul.mubr.msk.bf16.gmra.mrb[32].mxu1 %vm226_vm1, %v810_v22 }
  0x53   :  { %715 = vmatprep.mubr.msk.bf16.mxu0 %vm819_vm0, %v818_v0  ;;  %767 = vmatprep.mubr.msk.bf16.mxu1 %vm819_vm0, %v818_v0 }
  0x5a   :  { %716 = vmatmul.mubr.msk.bf16.gmra.mrb[36].mxu0 %vm226_vm1, %v811_v23  ;;  %768 = vmatmul.mubr.msk.bf16.gmra.mrb[36].mxu1 %vm226_vm1, %v812_v24 }
  0x5b   :  { %719 = vmatprep.mubr.msk.bf16.mxu0 %vm819_vm0, %v818_v0  ;;  %771 = vmatprep.mubr.msk.bf16.mxu1 %vm819_vm0, %v818_v0 }
  0x62   :  { %720 = vmatmul.mubr.msk.bf16.gmra.mrb[40].mxu0 %vm226_vm1, %v813_v25  ;;  %772 = vmatmul.mubr.msk.bf16.gmra.mrb[40].mxu1 %vm226_vm1, %v814_v26 }
  0x63   :  { %723 = vmatprep.mubr.msk.bf16.mxu0 %vm819_vm0, %v818_v0  ;;  %775 = vmatprep.mubr.msk.bf16.mxu1 %vm819_vm0, %v818_v0 }
  0x6a   :  { %724 = vmatmul.mubr.msk.bf16.gmra.mrb[44].mxu0 %vm226_vm1, %v815_v27  ;;  %776 = vmatmul.mubr.msk.bf16.gmra.mrb[44].mxu1 %vm226_vm1, %v816_v28 }
  0x6b   :  { %727 = vmatprep.mubr.msk.bf16.mxu0 %vm819_vm0, %v818_v0 }
  0x72   :  { %728 = vmatmul.mubr.msk.bf16.gmra.mrb[48].mxu0 %vm226_vm1, %v817_v29 }
  0xe5   :  { %v336_v31 = vpop.f32.mrb[0].mxu0  ;;  %v440_v32 = vpop.f32.mrb[0].mxu1 }
  0xe6   :  { %v337_v33 = vadd.f32 %v1013_v30, %v336_v31  ;;  %v681_v34 = vpop.f32.mrb[1].mxu0  ;;  %v441_v35 = vadd.f32 %v1013_v30, %v440_v32  ;;  %v733_v36 = vpop.f32.mrb[1].mxu1 }
  0xe7   :  { %v339_v37 = vpop.f32.mrb[2].mxu0  ;;  %v443_v38 = vpop.f32.mrb[2].mxu1 }
  0xe8   :  { %534 = vst.msk [vmem:[%s1263_s3] sm:$0xff] %vm226_vm1, %v337_v33  ;;  %v340_v39 = vadd.f32 %v1013_v30, %v339_v37  ;;  %v682_v40 = vpop.f32.mrb[3].mxu0  ;;  %560 = vst.msk [vmem:[%s1263_s3 + $0xd0] sm:$0xff] %vm226_vm1, %v441_v35  ;;  %v444_v41 = vadd.f32 %v1013_v30, %v443_v38  ;;  %v734_v42 = vpop.f32.mrb[3].mxu1 }
  0xea   :  { %535 = vst.msk [vmem:[%s1263_s3 + $0x8] sm:$0xff] %vm226_vm1, %v340_v39  ;;  %561 = vst.msk [vmem:[%s1263_s3 + $0xd8] sm:$0xff] %vm226_vm1, %v444_v41 }
  0xed   :  { %v344_v43 = vpop.f32.mrb[4].mxu0  ;;  %v448_v44 = vpop.f32.mrb[4].mxu1 }
  0xee   :  { %v345_v45 = vadd.f32 %v1013_v30, %v344_v43  ;;  %v685_v46 = vpop.f32.mrb[5].mxu0  ;;  %v449_v47 = vadd.f32 %v1013_v30, %v448_v44  ;;  %v737_v48 = vpop.f32.mrb[5].mxu1 }
  0xef   :  { %v347_v49 = vpop.f32.mrb[6].mxu0  ;;  %v451_v50 = vpop.f32.mrb[6].mxu1 }
  0xf0   :  { %536 = vst.msk [vmem:[%s1263_s3 + $0x10] sm:$0xff] %vm226_vm1, %v345_v45  ;;  %v348_v51 = vadd.f32 %v1013_v30, %v347_v49  ;;  %v686_v52 = vpop.f32.mrb[7].mxu0  ;;  %562 = vst.msk [vmem:[%s1263_s3 + $0xe0] sm:$0xff] %vm226_vm1, %v449_v47  ;;  %v452_v53 = vadd.f32 %v1013_v30, %v451_v50  ;;  %v738_v54 = vpop.f32.mrb[7].mxu1 }
  0xf2   :  { %537 = vst.msk [vmem:[%s1263_s3 + $0x18] sm:$0xff] %vm226_vm1, %v348_v51  ;;  %563 = vst.msk [vmem:[%s1263_s3 + $0xe8] sm:$0xff] %vm226_vm1, %v452_v53 }
  0xf5   :  { %v352_v55 = vpop.f32.mrb[8].mxu0  ;;  %v456_v56 = vpop.f32.mrb[8].mxu1 }
  0xf6   :  { %v353_v57 = vadd.f32 %v1013_v30, %v352_v55  ;;  %v689_v58 = vpop.f32.mrb[9].mxu0  ;;  %v457_v59 = vadd.f32 %v1013_v30, %v456_v56  ;;  %v741_v60 = vpop.f32.mrb[9].mxu1 }
  0xf7   :  { %v355_v61 = vpop.f32.mrb[10].mxu0  ;;  %v459_v62 = vpop.f32.mrb[10].mxu1 }
  0xf8   :  { %538 = vst.msk [vmem:[%s1263_s3 + $0x20] sm:$0xff] %vm226_vm1, %v353_v57  ;;  %v356_v63 = vadd.f32 %v1013_v30, %v355_v61  ;;  %v690_v0 = vpop.f32.mrb[11].mxu0  ;;  %564 = vst.msk [vmem:[%s1263_s3 + $0xf0] sm:$0xff] %vm226_vm1, %v457_v59  ;;  %v460_v1 = vadd.f32 %v1013_v30, %v459_v62  ;;  %v742_v2 = vpop.f32.mrb[11].mxu1 }
  0xfa   :  { %539 = vst.msk [vmem:[%s1263_s3 + $0x28] sm:$0xff] %vm226_vm1, %v356_v63  ;;  %565 = vst.msk [vmem:[%s1263_s3 + $0xf8] sm:$0xff] %vm226_vm1, %v460_v1 }
  0xfd   :  { %v360_v3 = vpop.f32.mrb[12].mxu0  ;;  %v464_v4 = vpop.f32.mrb[12].mxu1 }
  0xfe   :  { %v361_v5 = vadd.f32 %v1013_v30, %v360_v3  ;;  %v693_v6 = vpop.f32.mrb[13].mxu0  ;;  %v465_v7 = vadd.f32 %v1013_v30, %v464_v4  ;;  %v745_v8 = vpop.f32.mrb[13].mxu1 }
  0xff   :  { %v363_v9 = vpop.f32.mrb[14].mxu0  ;;  %v467_v10 = vpop.f32.mrb[14].mxu1 }
 0x100   :  { %540 = vst.msk [vmem:[%s1263_s3 + $0x30] sm:$0xff] %vm226_vm1, %v361_v5  ;;  %v364_v11 = vadd.f32 %v1013_v30, %v363_v9  ;;  %v694_v12 = vpop.f32.mrb[15].mxu0  ;;  %566 = vst.msk [vmem:[%s1263_s3 + $0x100] sm:$0xff] %vm226_vm1, %v465_v7  ;;  %v468_v13 = vadd.f32 %v1013_v30, %v467_v10  ;;  %v746_v14 = vpop.f32.mrb[15].mxu1 }
 0x102   :  { %541 = vst.msk [vmem:[%s1263_s3 + $0x38] sm:$0xff] %vm226_vm1, %v364_v11  ;;  %567 = vst.msk [vmem:[%s1263_s3 + $0x108] sm:$0xff] %vm226_vm1, %v468_v13 }
 0x105   :  { %v368_v15 = vpop.f32.mrb[16].mxu0  ;;  %v472_v16 = vpop.f32.mrb[16].mxu1 }
 0x106   :  { %v369_v17 = vadd.f32 %v1013_v30, %v368_v15  ;;  %v697_v18 = vpop.f32.mrb[17].mxu0  ;;  %v473_v19 = vadd.f32 %v1013_v30, %v472_v16  ;;  %v749_v20 = vpop.f32.mrb[17].mxu1 }
 0x107   :  { %v371_v21 = vpop.f32.mrb[18].mxu0  ;;  %v475_v22 = vpop.f32.mrb[18].mxu1 }
 0x108   :  { %542 = vst.msk [vmem:[%s1263_s3 + $0x40] sm:$0xff] %vm226_vm1, %v369_v17  ;;  %v372_v23 = vadd.f32 %v1013_v30, %v371_v21  ;;  %v698_v24 = vpop.f32.mrb[19].mxu0  ;;  %568 = vst.msk [vmem:[%s1263_s3 + $0x110] sm:$0xff] %vm226_vm1, %v473_v19  ;;  %v476_v25 = vadd.f32 %v1013_v30, %v475_v22  ;;  %v750_v26 = vpop.f32.mrb[19].mxu1 }
 0x10a   :  { %543 = vst.msk [vmem:[%s1263_s3 + $0x48] sm:$0xff] %vm226_vm1, %v372_v23  ;;  %569 = vst.msk [vmem:[%s1263_s3 + $0x118] sm:$0xff] %vm226_vm1, %v476_v25 }
 0x10d   :  { %v376_v27 = vpop.f32.mrb[20].mxu0  ;;  %v480_v28 = vpop.f32.mrb[20].mxu1 }
 0x10e   :  { %v377_v29 = vadd.f32 %v1013_v30, %v376_v27  ;;  %v701_v31 = vpop.f32.mrb[21].mxu0  ;;  %v481_v32 = vadd.f32 %v1013_v30, %v480_v28  ;;  %v753_v33 = vpop.f32.mrb[21].mxu1 }
 0x10f   :  { %v379_v34 = vpop.f32.mrb[22].mxu0  ;;  %v483_v35 = vpop.f32.mrb[22].mxu1 }
 0x110   :  { %544 = vst.msk [vmem:[%s1263_s3 + $0x50] sm:$0xff] %vm226_vm1, %v377_v29  ;;  %v380_v36 = vadd.f32 %v1013_v30, %v379_v34  ;;  %v702_v37 = vpop.f32.mrb[23].mxu0  ;;  %570 = vst.msk [vmem:[%s1263_s3 + $0x120] sm:$0xff] %vm226_vm1, %v481_v32  ;;  %v484_v38 = vadd.f32 %v1013_v30, %v483_v35  ;;  %v754_v39 = vpop.f32.mrb[23].mxu1 }
 0x112   :  { %545 = vst.msk [vmem:[%s1263_s3 + $0x58] sm:$0xff] %vm226_vm1, %v380_v36  ;;  %571 = vst.msk [vmem:[%s1263_s3 + $0x128] sm:$0xff] %vm226_vm1, %v484_v38 }
 0x115   :  { %v384_v40 = vpop.f32.mrb[24].mxu0  ;;  %v488_v41 = vpop.f32.mrb[24].mxu1 }
 0x116   :  { %v385_v42 = vadd.f32 %v1013_v30, %v384_v40  ;;  %v705_v43 = vpop.f32.mrb[25].mxu0  ;;  %v489_v44 = vadd.f32 %v1013_v30, %v488_v41  ;;  %v757_v45 = vpop.f32.mrb[25].mxu1 }
 0x117   :  { %v387_v46 = vpop.f32.mrb[26].mxu0  ;;  %v491_v47 = vpop.f32.mrb[26].mxu1 }
 0x118   :  { %546 = vst.msk [vmem:[%s1263_s3 + $0x60] sm:$0xff] %vm226_vm1, %v385_v42  ;;  %v388_v48 = vadd.f32 %v1013_v30, %v387_v46  ;;  %v706_v49 = vpop.f32.mrb[27].mxu0  ;;  %572 = vst.msk [vmem:[%s1263_s3 + $0x130] sm:$0xff] %vm226_vm1, %v489_v44  ;;  %v492_v50 = vadd.f32 %v1013_v30, %v491_v47  ;;  %v758_v51 = vpop.f32.mrb[27].mxu1 }
 0x11a   :  { %547 = vst.msk [vmem:[%s1263_s3 + $0x68] sm:$0xff] %vm226_vm1, %v388_v48  ;;  %573 = vst.msk [vmem:[%s1263_s3 + $0x138] sm:$0xff] %vm226_vm1, %v492_v50 }
 0x11d   :  { %v392_v52 = vpop.f32.mrb[28].mxu0  ;;  %v496_v53 = vpop.f32.mrb[28].mxu1 }
 0x11e   :  { %v393_v54 = vadd.f32 %v1013_v30, %v392_v52  ;;  %v709_v55 = vpop.f32.mrb[29].mxu0  ;;  %v497_v56 = vadd.f32 %v1013_v30, %v496_v53  ;;  %v761_v57 = vpop.f32.mrb[29].mxu1 }
 0x11f   :  { %v395_v58 = vpop.f32.mrb[30].mxu0  ;;  %v499_v59 = vpop.f32.mrb[30].mxu1 }
 0x120   :  { %548 = vst.msk [vmem:[%s1263_s3 + $0x70] sm:$0xff] %vm226_vm1, %v393_v54  ;;  %v396_v60 = vadd.f32 %v1013_v30, %v395_v58  ;;  %v710_v61 = vpop.f32.mrb[31].mxu0  ;;  %574 = vst.msk [vmem:[%s1263_s3 + $0x140] sm:$0xff] %vm226_vm1, %v497_v56  ;;  %v500_v62 = vadd.f32 %v1013_v30, %v499_v59  ;;  %v762_v63 = vpop.f32.mrb[31].mxu1 }
 0x122   :  { %549 = vst.msk [vmem:[%s1263_s3 + $0x78] sm:$0xff] %vm226_vm1, %v396_v60  ;;  %575 = vst.msk [vmem:[%s1263_s3 + $0x148] sm:$0xff] %vm226_vm1, %v500_v62 }
 0x125   :  { %v400_v0 = vpop.f32.mrb[32].mxu0  ;;  %v504_v1 = vpop.f32.mrb[32].mxu1 }
 0x126   :  { %v401_v2 = vadd.f32 %v1013_v30, %v400_v0  ;;  %v713_v3 = vpop.f32.mrb[33].mxu0  ;;  %v505_v4 = vadd.f32 %v1013_v30, %v504_v1  ;;  %v765_v5 = vpop.f32.mrb[33].mxu1 }
 0x127   :  { %v403_v6 = vpop.f32.mrb[34].mxu0  ;;  %v507_v7 = vpop.f32.mrb[34].mxu1 }
 0x128   :  { %550 = vst.msk [vmem:[%s1263_s3 + $0x80] sm:$0xff] %vm226_vm1, %v401_v2  ;;  %v404_v8 = vadd.f32 %v1013_v30, %v403_v6  ;;  %v714_v9 = vpop.f32.mrb[35].mxu0  ;;  %576 = vst.msk [vmem:[%s1263_s3 + $0x150] sm:$0xff] %vm226_vm1, %v505_v4  ;;  %v508_v10 = vadd.f32 %v1013_v30, %v507_v7  ;;  %v766_v11 = vpop.f32.mrb[35].mxu1 }
 0x12a   :  { %551 = vst.msk [vmem:[%s1263_s3 + $0x88] sm:$0xff] %vm226_vm1, %v404_v8  ;;  %577 = vst.msk [vmem:[%s1263_s3 + $0x158] sm:$0xff] %vm226_vm1, %v508_v10 }
 0x12d   :  { %v408_v12 = vpop.f32.mrb[36].mxu0  ;;  %v512_v13 = vpop.f32.mrb[36].mxu1 }
 0x12e   :  { %v409_v14 = vadd.f32 %v1013_v30, %v408_v12  ;;  %v717_v15 = vpop.f32.mrb[37].mxu0  ;;  %v513_v16 = vadd.f32 %v1013_v30, %v512_v13  ;;  %v769_v17 = vpop.f32.mrb[37].mxu1 }
 0x12f   :  { %v411_v18 = vpop.f32.mrb[38].mxu0  ;;  %v515_v19 = vpop.f32.mrb[38].mxu1 }
 0x130   :  { %552 = vst.msk [vmem:[%s1263_s3 + $0x90] sm:$0xff] %vm226_vm1, %v409_v14  ;;  %v412_v20 = vadd.f32 %v1013_v30, %v411_v18  ;;  %v718_v21 = vpop.f32.mrb[39].mxu0  ;;  %578 = vst.msk [vmem:[%s1263_s3 + $0x160] sm:$0xff] %vm226_vm1, %v513_v16  ;;  %v516_v22 = vadd.f32 %v1013_v30, %v515_v19  ;;  %v770_v23 = vpop.f32.mrb[39].mxu1 }
 0x132   :  { %553 = vst.msk [vmem:[%s1263_s3 + $0x98] sm:$0xff] %vm226_vm1, %v412_v20  ;;  %579 = vst.msk [vmem:[%s1263_s3 + $0x168] sm:$0xff] %vm226_vm1, %v516_v22 }
 0x135   :  { %v416_v24 = vpop.f32.mrb[40].mxu0  ;;  %v520_v25 = vpop.f32.mrb[40].mxu1 }
 0x136   :  { %v417_v26 = vadd.f32 %v1013_v30, %v416_v24  ;;  %v721_v27 = vpop.f32.mrb[41].mxu0  ;;  %v521_v28 = vadd.f32 %v1013_v30, %v520_v25  ;;  %v773_v29 = vpop.f32.mrb[41].mxu1 }
 0x137   :  { %v419_v31 = vpop.f32.mrb[42].mxu0  ;;  %v523_v32 = vpop.f32.mrb[42].mxu1 }
 0x138   :  { %554 = vst.msk [vmem:[%s1263_s3 + $0xa0] sm:$0xff] %vm226_vm1, %v417_v26  ;;  %v420_v33 = vadd.f32 %v1013_v30, %v419_v31  ;;  %v722_v34 = vpop.f32.mrb[43].mxu0  ;;  %580 = vst.msk [vmem:[%s1263_s3 + $0x170] sm:$0xff] %vm226_vm1, %v521_v28  ;;  %v524_v35 = vadd.f32 %v1013_v30, %v523_v32  ;;  %v774_v36 = vpop.f32.mrb[43].mxu1 }
 0x13a   :  { %555 = vst.msk [vmem:[%s1263_s3 + $0xa8] sm:$0xff] %vm226_vm1, %v420_v33  ;;  %581 = vst.msk [vmem:[%s1263_s3 + $0x178] sm:$0xff] %vm226_vm1, %v524_v35 }
 0x13d   :  { %v424_v37 = vpop.f32.mrb[44].mxu0  ;;  %v528_v38 = vpop.f32.mrb[44].mxu1 }
 0x13e   :  { %v425_v39 = vadd.f32 %v1013_v30, %v424_v37  ;;  %v725_v40 = vpop.f32.mrb[45].mxu0  ;;  %v529_v41 = vadd.f32 %v1013_v30, %v528_v38  ;;  %v777_v42 = vpop.f32.mrb[45].mxu1 }
 0x13f   :  { %v427_v43 = vpop.f32.mrb[46].mxu0  ;;  %v531_v44 = vpop.f32.mrb[46].mxu1 }
 0x140   :  { %556 = vst.msk [vmem:[%s1263_s3 + $0xb0] sm:$0xff] %vm226_vm1, %v425_v39  ;;  %v428_v45 = vadd.f32 %v1013_v30, %v427_v43  ;;  %v726_v46 = vpop.f32.mrb[47].mxu0  ;;  %582 = vst.msk [vmem:[%s1263_s3 + $0x180] sm:$0xff] %vm226_vm1, %v529_v41  ;;  %v778_v47 = vpop.f32.mrb[47].mxu1 }
 0x142   :  { %557 = vst.msk [vmem:[%s1263_s3 + $0xb8] sm:$0xff] %vm226_vm1, %v428_v45 }
 0x145   :  { %v432_v48 = vpop.f32.mrb[48].mxu0 }
 0x146   :  { %v433_v49 = vadd.f32 %v1013_v30, %v432_v48  ;;  %v729_v50 = vpop.f32.mrb[49].mxu0 }
 0x147   :  { %v435_v51 = vpop.f32.mrb[50].mxu0 }
 0x148   :  { %558 = vst.msk [vmem:[%s1263_s3 + $0xc0] sm:$0xff] %vm226_vm1, %v433_v49  ;;  %v436_v52 = vadd.f32 %v1013_v30, %v435_v51  ;;  %v730_v53 = vpop.f32.mrb[51].mxu0 }
 0x14a   :  { %559 = vst.msk [vmem:[%s1263_s3 + $0xc8] sm:$0xff] %vm226_vm1, %v436_v52 }

// kernel: unet3_forward.75
= control target key start
LH: loop header
LB: loop body
LE: loop exit
PB: predicated region body
PF: predicated region fallthrough
CT: control target
= control target key end

     0   :  { %s1053_s14 = smov 0   ;;  %s1337_s0 = inlined_call_operand.vmem [shape: bf16[1568,32], index: 0, kind: input, shape index: {}]   ;;  %s1338_s1 = inlined_call_operand.vmem [shape: bf16[32,1], index: 1, kind: input, shape index: {}]   ;;  %s1339_s2 = inlined_call_operand.<no memory space> [shape: f32[1,1], index: 2, kind: input, shape index: {}]   ;;  %s1340_s3 = inlined_call_operand.vmem [shape: f32[1568,1], index: 3, kind: output, shape index: {}]  }
   0x1   :  { %v8_v0 = vstv %s1339_s2 }
   0x2   :  { %9 = vst [vmem:[#allocation2] sm:$0x1] %v8_v0 }
   0x3 LB: > { %s786_s15 = sadd.s32 4294967295, %s1026_s14   ;;  %p790_p0 = scmp.ge.s32.totalorder %s1026_s14, 1  ;;  %s1026_s14 = sphi %s1053_s14, %s15_s14  }
   0x4   : > { %p140_p1 = scmp.lt.s32.totalorder %s1026_s14, 5 }
   0x6   : > { %p141_p2 = pnand %p790_p0, %p140_p1 }
   0x7   : > { %v993_v1 = vld [vmem:[%s1338_s1] sm:$0xff] (!%p141_p2)   ;;  %v1028_v2 = vmov (!%p141_p2), 0.0   ;;  %v994_v3 = vld [vmem:[%s1338_s1 + $0x8] sm:$0xff] (!%p141_p2)   ;;  %vm1029_vm0 = vmmov (!%p141_p2), 0   ;;  %s164_s19 = smul.u32 (!%p141_p2), 49, %s786_s15  ;;  %vm372_vm1 = vcmask (!%p141_p2), 261120  }
   0x8   : > { %144 = sbr.rel (%p141_p2) target bundleno = 332 (0x14c), region = 32  ;;  %875 = vmatprep.subr.bf16.mxu0 (!%p141_p2), %v1028_v2  ;;  %979 = vmatprep.subr.bf16.mxu1 (!%p141_p2), %v1028_v2  ;;  %vm680_vm2 = vcmask (!%p141_p2), 7168  }
   0x9   : > { %876 = vmatpush3.bf16.msra.mxu0 (!%p141_p2), %v993_v1  ;;  %879 = vmatprep.mubr.msk.bf16.mxu0 (!%p141_p2), %vm1029_vm0, %v1028_v2  ;;  %p165_p3 = scmp.lt.s32.totalorder (!%p141_p2), %s164_s19, 195  ;;  %v1180_v29 = vld [vmem:[#allocation2] ss:$0 sm:$0xff] (!%p141_p2) }
   0xa   : > { %877 = vmatprep.subr.bf16.mxu0 (!%p141_p2), %v1028_v2  ;;  %981 = vmatpush3.bf16.msra.mxu1 (!%p141_p2), %v993_v1 }
   0xb   : > { %980 = vmatprep.subr.bf16.mxu1 (!%p141_p2), %v1028_v2  ;;  %931 = vmatprep.mubr.msk.bf16.mxu1 (!%p141_p2), %vm1029_vm0, %v1028_v2 }
   0xd   : > { %878 = vmatpush3.bf16.msra.mxu0 (!%p141_p2), %v994_v3 }
   0xe   : > { %982 = vmatpush3.bf16.msra.mxu1 (!%p141_p2), %v994_v3 }
   0xf   : > { %s1342_s19 = smov (!%p165_p3, %s164_s19), 195 }
  0x10   : > { %s791_s20 = sshll.u32 %s1342_s19, 2  ;;  %s792_s24 = sshll.u32 %s1342_s19, 3 }
  0x11   : > { %s1081_s23 = scalar_lea.vmem %s1337_s0, %s791_s20  ;;  %s1185_s27 = scalar_lea.vmem %s1340_s3, %s792_s24 }
  0x12   : > { %v995_v4 = vld [vmem:[%s1081_s23] sm:$0xff]   ;;  %v996_v5 = vld [vmem:[%s1081_s23 + $0x68] sm:$0xff]   ;;  %v998_v7 = vld [vmem:[%s1081_s23 + $0x70] sm:$0xff]  }
  0x13   : > { %880 = vmatmul.mubr.msk.bf16.vlgmr.msra.gmra.mrb[0].mxu0 %vm372_vm1, %v995_v4  ;;  %932 = vmatmul.mubr.msk.bf16.vlgmr.msra.gmra.mrb[0].mxu1 %vm372_vm1, %v996_v5  ;;  %v997_v6 = vld [vmem:[%s1081_s23 + $0x8] sm:$0xff]   ;;  %v999_v8 = vld [vmem:[%s1081_s23 + $0x10] sm:$0xff]   ;;  %v1000_v9 = vld [vmem:[%s1081_s23 + $0x78] sm:$0xff]  }
  0x14   : > { %883 = vmatprep.mubr.msk.bf16.mxu0 %vm1029_vm0, %v1028_v2  ;;  %935 = vmatprep.mubr.msk.bf16.mxu1 %vm1029_vm0, %v1028_v2  ;;  %v1001_v10 = vld [vmem:[%s1081_s23 + $0x18] sm:$0xff]   ;;  %v1002_v11 = vld [vmem:[%s1081_s23 + $0x80] sm:$0xff]   ;;  %v1004_v13 = vld [vmem:[%s1081_s23 + $0x88] sm:$0xff]  }
  0x15   : > { %v1003_v12 = vld [vmem:[%s1081_s23 + $0x20] sm:$0xff]   ;;  %v1005_v14 = vld [vmem:[%s1081_s23 + $0x28] sm:$0xff]   ;;  %v1006_v15 = vld [vmem:[%s1081_s23 + $0x90] sm:$0xff]  }
  0x16   : > { %v1007_v16 = vld [vmem:[%s1081_s23 + $0x30] sm:$0xff]   ;;  %v1008_v17 = vld [vmem:[%s1081_s23 + $0x98] sm:$0xff]   ;;  %v1010_v19 = vld [vmem:[%s1081_s23 + $0xa0] sm:$0xff]  }
  0x17   : > { %v1009_v18 = vld [vmem:[%s1081_s23 + $0x38] sm:$0xff]   ;;  %v1011_v20 = vld [vmem:[%s1081_s23 + $0x40] sm:$0xff]   ;;  %v1012_v21 = vld [vmem:[%s1081_s23 + $0xa8] sm:$0xff]  }
  0x18   : > { %v1013_v22 = vld [vmem:[%s1081_s23 + $0x48] sm:$0xff]   ;;  %v1014_v23 = vld [vmem:[%s1081_s23 + $0xb0] sm:$0xff]   ;;  %v1016_v25 = vld [vmem:[%s1081_s23 + $0xb8] sm:$0xff]  }
  0x19   : > { %v1015_v24 = vld [vmem:[%s1081_s23 + $0x50] sm:$0xff]   ;;  %v1017_v26 = vld [vmem:[%s1081_s23 + $0x58] sm:$0xff]   ;;  %v1018_v27 = vld [vmem:[%s1081_s23 + $0xc0] ss:$0 sps:$4 sm:$0xff]  }
  0x1a   : > { %v1019_v28 = vld [vmem:[%s1081_s23 + $0x60] sm:$0xff]  }
  0x1b   : > { %884 = vmatmul.mubr.msk.bf16.gmra.mrb[4].mxu0 %vm372_vm1, %v997_v6  ;;  %936 = vmatmul.mubr.msk.bf16.gmra.mrb[4].mxu1 %vm372_vm1, %v998_v7 }
  0x1c   : > { %887 = vmatprep.mubr.msk.bf16.mxu0 %vm1029_vm0, %v1028_v2  ;;  %939 = vmatprep.mubr.msk.bf16.mxu1 %vm1029_vm0, %v1028_v2 }
  0x23   : > { %888 = vmatmul.mubr.msk.bf16.gmra.mrb[8].mxu0 %vm372_vm1, %v999_v8  ;;  %940 = vmatmul.mubr.msk.bf16.gmra.mrb[8].mxu1 %vm372_vm1, %v1000_v9 }
  0x24   : > { %891 = vmatprep.mubr.msk.bf16.mxu0 %vm1029_vm0, %v1028_v2  ;;  %943 = vmatprep.mubr.msk.bf16.mxu1 %vm1029_vm0, %v1028_v2 }
  0x2b   : > { %892 = vmatmul.mubr.msk.bf16.gmra.mrb[12].mxu0 %vm372_vm1, %v1001_v10  ;;  %944 = vmatmul.mubr.msk.bf16.gmra.mrb[12].mxu1 %vm372_vm1, %v1002_v11 }
  0x2c   : > { %895 = vmatprep.mubr.msk.bf16.mxu0 %vm1029_vm0, %v1028_v2  ;;  %947 = vmatprep.mubr.msk.bf16.mxu1 %vm1029_vm0, %v1028_v2 }
  0x33   : > { %896 = vmatmul.mubr.msk.bf16.gmra.mrb[16].mxu0 %vm372_vm1, %v1003_v12  ;;  %948 = vmatmul.mubr.msk.bf16.gmra.mrb[16].mxu1 %vm372_vm1, %v1004_v13 }
  0x34   : > { %899 = vmatprep.mubr.msk.bf16.mxu0 %vm1029_vm0, %v1028_v2  ;;  %951 = vmatprep.mubr.msk.bf16.mxu1 %vm1029_vm0, %v1028_v2 }
  0x3b   : > { %900 = vmatmul.mubr.msk.bf16.gmra.mrb[20].mxu0 %vm372_vm1, %v1005_v14  ;;  %952 = vmatmul.mubr.msk.bf16.gmra.mrb[20].mxu1 %vm372_vm1, %v1006_v15 }
  0x3c   : > { %903 = vmatprep.mubr.msk.bf16.mxu0 %vm1029_vm0, %v1028_v2  ;;  %955 = vmatprep.mubr.msk.bf16.mxu1 %vm1029_vm0, %v1028_v2 }
  0x43   : > { %904 = vmatmul.mubr.msk.bf16.gmra.mrb[24].mxu0 %vm372_vm1, %v1007_v16  ;;  %956 = vmatmul.mubr.msk.bf16.gmra.mrb[24].mxu1 %vm372_vm1, %v1008_v17 }
  0x44   : > { %907 = vmatprep.mubr.msk.bf16.mxu0 %vm1029_vm0, %v1028_v2  ;;  %959 = vmatprep.mubr.msk.bf16.mxu1 %vm1029_vm0, %v1028_v2 }
  0x4b   : > { %908 = vmatmul.mubr.msk.bf16.gmra.mrb[28].mxu0 %vm372_vm1, %v1009_v18  ;;  %960 = vmatmul.mubr.msk.bf16.gmra.mrb[28].mxu1 %vm372_vm1, %v1010_v19 }
  0x4c   : > { %911 = vmatprep.mubr.msk.bf16.mxu0 %vm1029_vm0, %v1028_v2  ;;  %963 = vmatprep.mubr.msk.bf16.mxu1 %vm1029_vm0, %v1028_v2 }
  0x53   : > { %912 = vmatmul.mubr.msk.bf16.gmra.mrb[32].mxu0 %vm372_vm1, %v1011_v20  ;;  %964 = vmatmul.mubr.msk.bf16.gmra.mrb[32].mxu1 %vm372_vm1, %v1012_v21 }
  0x54   : > { %915 = vmatprep.mubr.msk.bf16.mxu0 %vm1029_vm0, %v1028_v2  ;;  %967 = vmatprep.mubr.msk.bf16.mxu1 %vm1029_vm0, %v1028_v2 }
  0x5b   : > { %916 = vmatmul.mubr.msk.bf16.gmra.mrb[36].mxu0 %vm372_vm1, %v1013_v22  ;;  %968 = vmatmul.mubr.msk.bf16.gmra.mrb[36].mxu1 %vm372_vm1, %v1014_v23 }
  0x5c   : > { %919 = vmatprep.mubr.msk.bf16.mxu0 %vm1029_vm0, %v1028_v2  ;;  %971 = vmatprep.mubr.msk.bf16.mxu1 %vm1029_vm0, %v1028_v2 }
  0x63   : > { %920 = vmatmul.mubr.msk.bf16.gmra.mrb[40].mxu0 %vm372_vm1, %v1015_v24  ;;  %972 = vmatmul.mubr.msk.bf16.gmra.mrb[40].mxu1 %vm372_vm1, %v1016_v25 }
  0x64   : > { %923 = vmatprep.mubr.msk.bf16.mxu0 %vm1029_vm0, %v1028_v2  ;;  %975 = vmatprep.mubr.msk.bf16.mxu1 %vm1029_vm0, %v1028_v2 }
  0x6b   : > { %924 = vmatmul.mubr.msk.bf16.gmra.mrb[44].mxu0 %vm372_vm1, %v1017_v26  ;;  %976 = vmatmul.mubr.msk.bf16.gmra.mrb[44].mxu1 %vm372_vm1, %v1018_v27 }
  0x6c   : > { %927 = vmatprep.mubr.msk.bf16.mxu0 %vm1029_vm0, %v1028_v2 }
  0x73   : > { %928 = vmatmul.mubr.msk.bf16.gmra.mrb[48].mxu0 %vm372_vm1, %v1019_v28 }
  0xe6   : > { %v482_v30 = vpop.f32.mrb[0].mxu0  ;;  %v586_v33 = vpop.f32.mrb[0].mxu1 }
  0xe7   : > { %v483_v31 = vadd.f32 %v1180_v29, %v482_v30  ;;  %v881_v32 = vpop.f32.mrb[1].mxu0  ;;  %v587_v35 = vadd.f32 %v1180_v29, %v586_v33  ;;  %v933_v36 = vpop.f32.mrb[1].mxu1 }
  0xe8   : > { %v485_v34 = vpop.f32.mrb[2].mxu0  ;;  %v589_v39 = vpop.f32.mrb[2].mxu1 }
  0xe9   : > { %681 = vst.msk [vmem:[%s1185_s27] sm:$0xff] %vm680_vm2, %v483_v31  ;;  %v486_v37 = vadd.f32 %v1180_v29, %v485_v34  ;;  %v882_v38 = vpop.f32.mrb[3].mxu0  ;;  %707 = vst.msk [vmem:[%s1185_s27 + $0xd0] sm:$0xff] %vm680_vm2, %v587_v35  ;;  %v590_v40 = vadd.f32 %v1180_v29, %v589_v39  ;;  %v934_v41 = vpop.f32.mrb[3].mxu1 }
  0xeb   : > { %682 = vst.msk [vmem:[%s1185_s27 + $0x8] sm:$0xff] %vm680_vm2, %v486_v37  ;;  %708 = vst.msk [vmem:[%s1185_s27 + $0xd8] sm:$0xff] %vm680_vm2, %v590_v40 }
  0xee   : > { %v490_v42 = vpop.f32.mrb[4].mxu0  ;;  %v594_v45 = vpop.f32.mrb[4].mxu1 }
  0xef   : > { %v491_v43 = vadd.f32 %v1180_v29, %v490_v42  ;;  %v885_v44 = vpop.f32.mrb[5].mxu0  ;;  %v595_v47 = vadd.f32 %v1180_v29, %v594_v45  ;;  %v937_v48 = vpop.f32.mrb[5].mxu1 }
  0xf0   : > { %v493_v46 = vpop.f32.mrb[6].mxu0  ;;  %v597_v51 = vpop.f32.mrb[6].mxu1 }
  0xf1   : > { %683 = vst.msk [vmem:[%s1185_s27 + $0x10] sm:$0xff] %vm680_vm2, %v491_v43  ;;  %v494_v49 = vadd.f32 %v1180_v29, %v493_v46  ;;  %v886_v50 = vpop.f32.mrb[7].mxu0  ;;  %709 = vst.msk [vmem:[%s1185_s27 + $0xe0] sm:$0xff] %vm680_vm2, %v595_v47  ;;  %v598_v52 = vadd.f32 %v1180_v29, %v597_v51  ;;  %v938_v53 = vpop.f32.mrb[7].mxu1 }
  0xf3   : > { %684 = vst.msk [vmem:[%s1185_s27 + $0x18] sm:$0xff] %vm680_vm2, %v494_v49  ;;  %710 = vst.msk [vmem:[%s1185_s27 + $0xe8] sm:$0xff] %vm680_vm2, %v598_v52 }
  0xf6   : > { %v498_v54 = vpop.f32.mrb[8].mxu0  ;;  %v602_v57 = vpop.f32.mrb[8].mxu1 }
  0xf7   : > { %v499_v55 = vadd.f32 %v1180_v29, %v498_v54  ;;  %v889_v56 = vpop.f32.mrb[9].mxu0  ;;  %v603_v59 = vadd.f32 %v1180_v29, %v602_v57  ;;  %v941_v60 = vpop.f32.mrb[9].mxu1 }
  0xf8   : > { %v501_v58 = vpop.f32.mrb[10].mxu0  ;;  %v605_v63 = vpop.f32.mrb[10].mxu1 }
  0xf9   : > { %685 = vst.msk [vmem:[%s1185_s27 + $0x20] sm:$0xff] %vm680_vm2, %v499_v55  ;;  %v502_v61 = vadd.f32 %v1180_v29, %v501_v58  ;;  %v890_v62 = vpop.f32.mrb[11].mxu0  ;;  %711 = vst.msk [vmem:[%s1185_s27 + $0xf0] sm:$0xff] %vm680_vm2, %v603_v59  ;;  %v606_v0 = vadd.f32 %v1180_v29, %v605_v63  ;;  %v942_v1 = vpop.f32.mrb[11].mxu1 }
  0xfb   : > { %686 = vst.msk [vmem:[%s1185_s27 + $0x28] sm:$0xff] %vm680_vm2, %v502_v61  ;;  %712 = vst.msk [vmem:[%s1185_s27 + $0xf8] sm:$0xff] %vm680_vm2, %v606_v0 }
  0xfe   : > { %v506_v2 = vpop.f32.mrb[12].mxu0  ;;  %v610_v5 = vpop.f32.mrb[12].mxu1 }
  0xff   : > { %v507_v3 = vadd.f32 %v1180_v29, %v506_v2  ;;  %v893_v4 = vpop.f32.mrb[13].mxu0  ;;  %v611_v7 = vadd.f32 %v1180_v29, %v610_v5  ;;  %v945_v8 = vpop.f32.mrb[13].mxu1 }
 0x100   : > { %v509_v6 = vpop.f32.mrb[14].mxu0  ;;  %v613_v11 = vpop.f32.mrb[14].mxu1 }
 0x101   : > { %687 = vst.msk [vmem:[%s1185_s27 + $0x30] sm:$0xff] %vm680_vm2, %v507_v3  ;;  %v510_v9 = vadd.f32 %v1180_v29, %v509_v6  ;;  %v894_v10 = vpop.f32.mrb[15].mxu0  ;;  %713 = vst.msk [vmem:[%s1185_s27 + $0x100] sm:$0xff] %vm680_vm2, %v611_v7  ;;  %v614_v12 = vadd.f32 %v1180_v29, %v613_v11  ;;  %v946_v13 = vpop.f32.mrb[15].mxu1 }
 0x103   : > { %688 = vst.msk [vmem:[%s1185_s27 + $0x38] sm:$0xff] %vm680_vm2, %v510_v9  ;;  %714 = vst.msk [vmem:[%s1185_s27 + $0x108] sm:$0xff] %vm680_vm2, %v614_v12 }
 0x106   : > { %v514_v14 = vpop.f32.mrb[16].mxu0  ;;  %v618_v17 = vpop.f32.mrb[16].mxu1 }
 0x107   : > { %v515_v15 = vadd.f32 %v1180_v29, %v514_v14  ;;  %v897_v16 = vpop.f32.mrb[17].mxu0  ;;  %v619_v19 = vadd.f32 %v1180_v29, %v618_v17  ;;  %v949_v20 = vpop.f32.mrb[17].mxu1 }
 0x108   : > { %v517_v18 = vpop.f32.mrb[18].mxu0  ;;  %v621_v23 = vpop.f32.mrb[18].mxu1 }
 0x109   : > { %689 = vst.msk [vmem:[%s1185_s27 + $0x40] sm:$0xff] %vm680_vm2, %v515_v15  ;;  %v518_v21 = vadd.f32 %v1180_v29, %v517_v18  ;;  %v898_v22 = vpop.f32.mrb[19].mxu0  ;;  %715 = vst.msk [vmem:[%s1185_s27 + $0x110] sm:$0xff] %vm680_vm2, %v619_v19  ;;  %v622_v24 = vadd.f32 %v1180_v29, %v621_v23  ;;  %v950_v25 = vpop.f32.mrb[19].mxu1 }
 0x10b   : > { %690 = vst.msk [vmem:[%s1185_s27 + $0x48] sm:$0xff] %vm680_vm2, %v518_v21  ;;  %716 = vst.msk [vmem:[%s1185_s27 + $0x118] sm:$0xff] %vm680_vm2, %v622_v24 }
 0x10e   : > { %v522_v26 = vpop.f32.mrb[20].mxu0  ;;  %v626_v30 = vpop.f32.mrb[20].mxu1 }
 0x10f   : > { %v523_v27 = vadd.f32 %v1180_v29, %v522_v26  ;;  %v901_v28 = vpop.f32.mrb[21].mxu0  ;;  %v627_v32 = vadd.f32 %v1180_v29, %v626_v30  ;;  %v953_v33 = vpop.f32.mrb[21].mxu1 }
 0x110   : > { %v525_v31 = vpop.f32.mrb[22].mxu0  ;;  %v629_v36 = vpop.f32.mrb[22].mxu1 }
 0x111   : > { %691 = vst.msk [vmem:[%s1185_s27 + $0x50] sm:$0xff] %vm680_vm2, %v523_v27  ;;  %v526_v34 = vadd.f32 %v1180_v29, %v525_v31  ;;  %v902_v35 = vpop.f32.mrb[23].mxu0  ;;  %717 = vst.msk [vmem:[%s1185_s27 + $0x120] sm:$0xff] %vm680_vm2, %v627_v32  ;;  %v630_v37 = vadd.f32 %v1180_v29, %v629_v36  ;;  %v954_v38 = vpop.f32.mrb[23].mxu1 }
 0x113   : > { %692 = vst.msk [vmem:[%s1185_s27 + $0x58] sm:$0xff] %vm680_vm2, %v526_v34  ;;  %718 = vst.msk [vmem:[%s1185_s27 + $0x128] sm:$0xff] %vm680_vm2, %v630_v37 }
 0x116   : > { %v530_v39 = vpop.f32.mrb[24].mxu0  ;;  %v634_v42 = vpop.f32.mrb[24].mxu1 }
 0x117   : > { %v531_v40 = vadd.f32 %v1180_v29, %v530_v39  ;;  %v905_v41 = vpop.f32.mrb[25].mxu0  ;;  %v635_v44 = vadd.f32 %v1180_v29, %v634_v42  ;;  %v957_v45 = vpop.f32.mrb[25].mxu1 }
 0x118   : > { %v533_v43 = vpop.f32.mrb[26].mxu0  ;;  %v637_v48 = vpop.f32.mrb[26].mxu1 }
 0x119   : > { %693 = vst.msk [vmem:[%s1185_s27 + $0x60] sm:$0xff] %vm680_vm2, %v531_v40  ;;  %v534_v46 = vadd.f32 %v1180_v29, %v533_v43  ;;  %v906_v47 = vpop.f32.mrb[27].mxu0  ;;  %719 = vst.msk [vmem:[%s1185_s27 + $0x130] sm:$0xff] %vm680_vm2, %v635_v44  ;;  %v638_v49 = vadd.f32 %v1180_v29, %v637_v48  ;;  %v958_v50 = vpop.f32.mrb[27].mxu1 }
 0x11b   : > { %694 = vst.msk [vmem:[%s1185_s27 + $0x68] sm:$0xff] %vm680_vm2, %v534_v46  ;;  %720 = vst.msk [vmem:[%s1185_s27 + $0x138] sm:$0xff] %vm680_vm2, %v638_v49 }
 0x11e   : > { %v538_v51 = vpop.f32.mrb[28].mxu0  ;;  %v642_v54 = vpop.f32.mrb[28].mxu1 }
 0x11f   : > { %v539_v52 = vadd.f32 %v1180_v29, %v538_v51  ;;  %v909_v53 = vpop.f32.mrb[29].mxu0  ;;  %v643_v56 = vadd.f32 %v1180_v29, %v642_v54  ;;  %v961_v57 = vpop.f32.mrb[29].mxu1 }
 0x120   : > { %v541_v55 = vpop.f32.mrb[30].mxu0  ;;  %v645_v60 = vpop.f32.mrb[30].mxu1 }
 0x121   : > { %695 = vst.msk [vmem:[%s1185_s27 + $0x70] sm:$0xff] %vm680_vm2, %v539_v52  ;;  %v542_v58 = vadd.f32 %v1180_v29, %v541_v55  ;;  %v910_v59 = vpop.f32.mrb[31].mxu0  ;;  %721 = vst.msk [vmem:[%s1185_s27 + $0x140] sm:$0xff] %vm680_vm2, %v643_v56  ;;  %v646_v61 = vadd.f32 %v1180_v29, %v645_v60  ;;  %v962_v62 = vpop.f32.mrb[31].mxu1 }
 0x123   : > { %696 = vst.msk [vmem:[%s1185_s27 + $0x78] sm:$0xff] %vm680_vm2, %v542_v58  ;;  %722 = vst.msk [vmem:[%s1185_s27 + $0x148] sm:$0xff] %vm680_vm2, %v646_v61 }
 0x126   : > { %v546_v63 = vpop.f32.mrb[32].mxu0  ;;  %v650_v2 = vpop.f32.mrb[32].mxu1 }
 0x127   : > { %v547_v0 = vadd.f32 %v1180_v29, %v546_v63  ;;  %v913_v1 = vpop.f32.mrb[33].mxu0  ;;  %v651_v4 = vadd.f32 %v1180_v29, %v650_v2  ;;  %v965_v5 = vpop.f32.mrb[33].mxu1 }
 0x128   : > { %v549_v3 = vpop.f32.mrb[34].mxu0  ;;  %v653_v8 = vpop.f32.mrb[34].mxu1 }
 0x129   : > { %697 = vst.msk [vmem:[%s1185_s27 + $0x80] sm:$0xff] %vm680_vm2, %v547_v0  ;;  %v550_v6 = vadd.f32 %v1180_v29, %v549_v3  ;;  %v914_v7 = vpop.f32.mrb[35].mxu0  ;;  %723 = vst.msk [vmem:[%s1185_s27 + $0x150] sm:$0xff] %vm680_vm2, %v651_v4  ;;  %v654_v9 = vadd.f32 %v1180_v29, %v653_v8  ;;  %v966_v10 = vpop.f32.mrb[35].mxu1 }
 0x12b   : > { %698 = vst.msk [vmem:[%s1185_s27 + $0x88] sm:$0xff] %vm680_vm2, %v550_v6  ;;  %724 = vst.msk [vmem:[%s1185_s27 + $0x158] sm:$0xff] %vm680_vm2, %v654_v9 }
 0x12e   : > { %v554_v11 = vpop.f32.mrb[36].mxu0  ;;  %v658_v14 = vpop.f32.mrb[36].mxu1 }
 0x12f   : > { %v555_v12 = vadd.f32 %v1180_v29, %v554_v11  ;;  %v917_v13 = vpop.f32.mrb[37].mxu0  ;;  %v659_v16 = vadd.f32 %v1180_v29, %v658_v14  ;;  %v969_v17 = vpop.f32.mrb[37].mxu1 }
 0x130   : > { %v557_v15 = vpop.f32.mrb[38].mxu0  ;;  %v661_v20 = vpop.f32.mrb[38].mxu1 }
 0x131   : > { %699 = vst.msk [vmem:[%s1185_s27 + $0x90] sm:$0xff] %vm680_vm2, %v555_v12  ;;  %v558_v18 = vadd.f32 %v1180_v29, %v557_v15  ;;  %v918_v19 = vpop.f32.mrb[39].mxu0  ;;  %725 = vst.msk [vmem:[%s1185_s27 + $0x160] sm:$0xff] %vm680_vm2, %v659_v16  ;;  %v662_v21 = vadd.f32 %v1180_v29, %v661_v20  ;;  %v970_v22 = vpop.f32.mrb[39].mxu1 }
 0x133   : > { %700 = vst.msk [vmem:[%s1185_s27 + $0x98] sm:$0xff] %vm680_vm2, %v558_v18  ;;  %726 = vst.msk [vmem:[%s1185_s27 + $0x168] sm:$0xff] %vm680_vm2, %v662_v21 }
 0x136   : > { %v562_v23 = vpop.f32.mrb[40].mxu0  ;;  %v666_v26 = vpop.f32.mrb[40].mxu1 }
 0x137   : > { %v563_v24 = vadd.f32 %v1180_v29, %v562_v23  ;;  %v921_v25 = vpop.f32.mrb[41].mxu0  ;;  %v667_v28 = vadd.f32 %v1180_v29, %v666_v26  ;;  %v973_v30 = vpop.f32.mrb[41].mxu1 }
 0x138   : > { %v565_v27 = vpop.f32.mrb[42].mxu0  ;;  %v669_v33 = vpop.f32.mrb[42].mxu1 }
 0x139   : > { %701 = vst.msk [vmem:[%s1185_s27 + $0xa0] sm:$0xff] %vm680_vm2, %v563_v24  ;;  %v566_v31 = vadd.f32 %v1180_v29, %v565_v27  ;;  %v922_v32 = vpop.f32.mrb[43].mxu0  ;;  %727 = vst.msk [vmem:[%s1185_s27 + $0x170] sm:$0xff] %vm680_vm2, %v667_v28  ;;  %v670_v34 = vadd.f32 %v1180_v29, %v669_v33  ;;  %v974_v35 = vpop.f32.mrb[43].mxu1 }
 0x13b   : > { %702 = vst.msk [vmem:[%s1185_s27 + $0xa8] sm:$0xff] %vm680_vm2, %v566_v31  ;;  %728 = vst.msk [vmem:[%s1185_s27 + $0x178] sm:$0xff] %vm680_vm2, %v670_v34 }
 0x13e   : > { %v570_v36 = vpop.f32.mrb[44].mxu0  ;;  %v674_v39 = vpop.f32.mrb[44].mxu1 }
 0x13f   : > { %v571_v37 = vadd.f32 %v1180_v29, %v570_v36  ;;  %v925_v38 = vpop.f32.mrb[45].mxu0  ;;  %v675_v41 = vadd.f32 %v1180_v29, %v674_v39  ;;  %v977_v42 = vpop.f32.mrb[45].mxu1 }
 0x140   : > { %v573_v40 = vpop.f32.mrb[46].mxu0  ;;  %v677_v45 = vpop.f32.mrb[46].mxu1 }
 0x141   : > { %703 = vst.msk [vmem:[%s1185_s27 + $0xb0] sm:$0xff] %vm680_vm2, %v571_v37  ;;  %v574_v43 = vadd.f32 %v1180_v29, %v573_v40  ;;  %v926_v44 = vpop.f32.mrb[47].mxu0  ;;  %729 = vst.msk [vmem:[%s1185_s27 + $0x180] sm:$0xff] %vm680_vm2, %v675_v41  ;;  %v978_v46 = vpop.f32.mrb[47].mxu1 }
 0x143   : > { %704 = vst.msk [vmem:[%s1185_s27 + $0xb8] sm:$0xff] %vm680_vm2, %v574_v43 }
 0x146   : > { %v578_v47 = vpop.f32.mrb[48].mxu0 }
 0x147   : > { %v579_v48 = vadd.f32 %v1180_v29, %v578_v47  ;;  %v929_v49 = vpop.f32.mrb[49].mxu0 }
 0x148   : > { %v581_v50 = vpop.f32.mrb[50].mxu0 }
 0x149   : > { %705 = vst.msk [vmem:[%s1185_s27 + $0xc0] sm:$0xff] %vm680_vm2, %v579_v48  ;;  %v582_v51 = vadd.f32 %v1180_v29, %v581_v50  ;;  %v930_v52 = vpop.f32.mrb[51].mxu0 }
 0x14b   : > { %706 = vst.msk [vmem:[%s1185_s27 + $0xc8] sm:$0xff] %vm680_vm2, %v582_v51 }
 0x14c PF: > { %s15_s14 = sadd.s32 1, %s1026_s14  }
 0x14d   : > { %p12_p4 = scmp.ge.s32.totalorder %s15_s14, 6  }
 0x14f   :  { %14 = sbr.rel (!%p12_p4) target bundleno = 3 (0x3), region = 62 }

</bundles_post_ra>
